<compile_context>
chip_gen: v7x
topology: tpu7x:2x2x1
jax: 0.10.0
libtpu: 0.0.40
codegen_flags: <defaults>
</compile_context>

<pallas_src>
import functools

import jax
import jax.numpy as jnp
from jax import lax
from jax.experimental import pallas as pl
from jax.experimental.pallas import tpu as pltpu

_INV_SQRT2 = 0.7071067811865476


def _gelu_exact(x):
    # nn.GELU() default = exact erf-based GELU
    return 0.5 * x * (1.0 + lax.erf(x * _INV_SQRT2))


def _round_up(n, m):
    return ((n + m - 1) // m) * m


def _cdiv(a, b):
    return -(-a // b)


def _vmem_capacity_bytes():
    try:
        cap = int(pltpu.get_tpu_info().vmem_capacity_bytes)
        if cap > 0:
            return cap
    except Exception:
        pass
    return 64 * 1024 * 1024  # conservative default: v7x per-TensorCore VMEM


def _pick_band_rows(H, B, Wh, Wo, dim_p, hid_p, out_bytes, budget_bytes):
    """Largest multiple-of-8 band height whose per-step working set fits the
    budget; keeps at least 2 grid steps when possible (pipeline overlap and
    work for both v7x TensorCores)."""
    H8 = _round_up(max(H, 1), 8)

    def band_bytes(th):
        r = th + 2
        return (2 * r * Wh * dim_p * 2            # x band block, 2 bufs, bf16
                + 2 * th * Wo * dim_p * out_bytes  # output block, 2 bufs
                + 2 * r * Wh * hid_p * 4           # h + masked h
                + 3 * r * Wo * hid_p * 4           # three dx-shifted slices
                + th * Wo * hid_p * 4               # conv accumulator
                + th * Wo * hid_p * 2               # bf16 cast for 2nd matmul
                + th * Wo * dim_p * 4)              # f32 2nd-matmul result

    best = 8
    th = 8
    while th <= H8:
        if band_bytes(th) <= budget_bytes:
            best = th
        th += 8
    while B * _cdiv(H, best) < 2 and best > 8:
        best -= 8
    return best


def leff_kernel(x_ref, colmask_ref, rowmask_ref, w1_ref, b1_ref, wdw_ref,
                bdw_ref, w2_ref, b2_ref, o_ref, *, TH, Wo, Wh):
    R = TH + 2
    dim_p = x_ref.shape[-1]
    hid_p = w1_ref.shape[1]

    # ---- Linear(dim -> hidden) + GELU over the halo'd band (MXU bf16, f32 acc)
    h = jnp.dot(x_ref[...], w1_ref[...], preferred_element_type=jnp.float32)
    h = _gelu_exact(h + b1_ref[...])                     # (R*Wh, hid_p) f32
    h = h.reshape(R, Wh, hid_p)                          # Wh % 8 == 0 -> no relayout

    # Conv2d(padding=1) zero-pads its *input*, so positions outside the real
    # image must be 0 in h (not GELU(b1)).  Two tiny multiplicative masks
    # (per-column constant, per-band per-row) broadcast over the band.
    h = h * colmask_ref[...] * rowmask_ref[...]

    # ---- depthwise 3x3 conv + GELU; bias folded into the accumulator init ----
    wdw = wdw_ref[...]                                   # (9, hid_p) f32
    acc = jnp.broadcast_to(bdw_ref[...].reshape(1, 1, hid_p), (TH, Wo, hid_p))
    for dx in range(3):
        hc = h[:, dx:dx + Wo, :]                         # (R, Wo, hid_p)
        for dy in range(3):
            k = dy * 3 + dx
            w_tap = wdw[k:k + 1].reshape(1, 1, hid_p)
            acc = acc + hc[dy:dy + TH] * w_tap           # leading-axis slice: free
    acc = _gelu_exact(acc)                               # (TH, Wo, hid_p) f32

    # ---- Linear(hidden -> dim); Wo % 8 == 0 keeps these reshapes layout no-ops
    out = jnp.dot(acc.reshape(TH * Wo, hid_p).astype(jnp.bfloat16), w2_ref[...],
                  preferred_element_type=jnp.float32) + b2_ref[...]
    o_ref[...] = out.reshape(TH, Wo, dim_p).astype(o_ref.dtype)


def leff_pallas(x, params):
    """x: (B, H, W, dim) float32 (NHWC). params: (w1, b1, wdw, bdw, w2, b2)."""
    w1, b1, wdw, bdw, w2, b2 = params
    B, H, W, dim = x.shape
    hidden = w1.shape[1]

    dim_p = _round_up(dim, 128)
    hid_p = _round_up(hidden, 128)
    Wo = _round_up(W, 8)                 # conv/output band width (mult. of 8)
    Wh = _round_up(Wo + 2, 8)            # stage-1 band width incl. conv halo cols

    # bf16 output when dim is heavily lane-padded (cuts HBM writeback; f32
    # accumulation kept, only the final store rounds).
    out_dtype = jnp.bfloat16 if dim <= 64 else jnp.float32
    out_bytes = 2 if out_dtype == jnp.bfloat16 else 4

    # Chip-aware VMEM budget (v7x: 64 MiB/TC; v5e/v6e: 128 MiB physical).
    vmem_cap = _vmem_capacity_bytes()
    vmem_limit = max(32 << 20, min(int(vmem_cap * 0.70), 96 << 20))
    weight_bytes = 2 * (2 * dim_p * hid_p * 2            # w1 + w2 (bf16), 2 bufs
                        + 12 * hid_p * 4 + dim_p * 4     # biases + dw weights
                        + Wh * hid_p * 4)                # column mask
    band_budget = max(1 << 20, vmem_limit - weight_bytes - (4 << 20))

    TH = _pick_band_rows(H, B, Wh, Wo, dim_p, hid_p, out_bytes, band_budget)
    nb = _cdiv(H, TH)
    H_pad = nb * TH
    R = TH + 2

    # --- HBM-side band layout: the 1-pixel conv halo, the lane padding and the
    # ragged last band are all carried in the layout, so each grid step DMAs
    # exactly its (R, Wh) window and only O(band) activations live in VMEM.
    xpad = jnp.pad(x, ((0, 0), (1, H_pad - H + 1), (1, Wh - W - 1),
                       (0, dim_p - dim))).astype(jnp.bfloat16)
    row_ids = jnp.arange(nb)[:, None] * TH + jnp.arange(R)[None, :]   # (nb, R)
    xbands = jnp.take(xpad, row_ids.reshape(-1), axis=1)
    xbands = xbands.reshape(B, nb, R * Wh, dim_p)        # pre-flattened for MXU

    # Multiplicative conv-padding masks (replace full-band iota/compare/select).
    cols = jnp.arange(Wh)
    colmask = jnp.where((cols >= 1) & (cols <= W), 1.0, 0.0).astype(jnp.float32)
    colmask = jnp.broadcast_to(colmask.reshape(1, Wh, 1), (1, Wh, hid_p))
    rowmask = jnp.where((row_ids >= 1) & (row_ids <= H), 1.0, 0.0)
    rowmask = jnp.broadcast_to(
        rowmask.astype(jnp.float32).reshape(nb, R, 1, 1), (nb, R, 1, hid_p))

    # Lane-dense zero-padded weights; the padding channels are exactly inert
    # (GELU(0)=0, zero dw weights/bias, zero w2 rows/cols) and sliced off.
    w1_p = jnp.pad(w1, ((0, dim_p - dim), (0, hid_p - hidden))).astype(jnp.bfloat16)
    b1_p = jnp.pad(b1, (0, hid_p - hidden)).reshape(1, hid_p)
    wdw_p = jnp.pad(wdw.reshape(9, hidden), ((0, 0), (0, hid_p - hidden)))
    bdw_p = jnp.pad(bdw, (0, hid_p - hidden)).reshape(1, hid_p)
    w2_p = jnp.pad(w2, ((0, hid_p - hidden), (0, dim_p - dim))).astype(jnp.bfloat16)
    b2_p = jnp.pad(b2, (0, dim_p - dim)).reshape(1, dim_p)

    kernel = functools.partial(leff_kernel, TH=TH, Wo=Wo, Wh=Wh)

    steps = B * nb
    flops = steps * (2 * R * Wh * dim_p * hid_p + 18 * TH * Wo * hid_p
                     + 2 * TH * Wo * hid_p * dim_p)
    transcendentals = steps * (R * Wh + TH * Wo) * hid_p
    bytes_accessed = (xbands.size * 2 + B * H_pad * Wo * dim_p * out_bytes
                      + (w1_p.size + w2_p.size) * 2
                      + (b1_p.size + wdw_p.size + bdw_p.size + b2_p.size
                         + colmask.size + rowmask.size) * 4)

    def run(single_buffer_consts):
        ckw = {}
        if single_buffer_consts and hasattr(pl, "Buffered"):
            ckw["pipeline_mode"] = pl.Buffered(1)   # constant blocks: 1 buffer

        def const(shape):
            return pl.BlockSpec(shape, lambda b, i: (0,) * len(shape), **ckw)

        in_specs = [
            pl.BlockSpec((None, None, R * Wh, dim_p),
                         lambda b, i: (b, i, 0, 0)),                     # x band
            const((1, Wh, hid_p)),                                       # colmask
            pl.BlockSpec((None, R, 1, hid_p), lambda b, i: (i, 0, 0, 0)),  # rowmask
            const((dim_p, hid_p)),                                       # w1
            const((1, hid_p)),                                           # b1
            const((9, hid_p)),                                           # dw weight
            const((1, hid_p)),                                           # dw bias
            const((hid_p, dim_p)),                                       # w2
            const((1, dim_p)),                                           # b2
        ]
        return pl.pallas_call(
            kernel,
            out_shape=jax.ShapeDtypeStruct((B, H_pad, Wo, dim_p), out_dtype),
            grid=(B, nb),
            in_specs=in_specs,
            out_specs=pl.BlockSpec((None, TH, Wo, dim_p),
                                   lambda b, i: (b, i, 0, 0)),
            compiler_params=pltpu.CompilerParams(
                dimension_semantics=("parallel", "parallel"),
                vmem_limit_bytes=int(vmem_limit)),
            cost_estimate=pl.CostEstimate(
                flops=int(flops), transcendentals=int(transcendentals),
                bytes_accessed=int(bytes_accessed)),
        )(xbands, colmask, rowmask, w1_p, b1_p, wdw_p, bdw_p, w2_p, b2_p)

    try:
        out_p = run(True)
    except Exception:
        # pipeline_mode=pl.Buffered(1) not supported by this JAX build:
        # fall back to default double-buffered constant blocks.
        out_p = run(False)

    return out_p[:, :H, :W, :dim].astype(x.dtype)


def leff_reference(x, params):
    """Plain-JAX f32 reference (same math as the PyTorch module)."""
    w1, b1, wdw, bdw, w2, b2 = params
    B, H, W, dim = x.shape
    hidden = w1.shape[1]
    h = _gelu_exact(x @ w1 + b1)                          # (B,H,W,hidden)
    hp = jnp.pad(h, ((0, 0), (1, 1), (1, 1), (0, 0)))
    wdw3 = wdw.reshape(3, 3, hidden)
    acc = jnp.zeros((B, H, W, hidden), jnp.float32)
    for dy in range(3):
        for dx in range(3):
            acc = acc + hp[:, dy:dy + H, dx:dx + W, :] * wdw3[dy, dx]
    acc = _gelu_exact(acc + bdw)
    return acc @ w2 + b2


def init_params(key, dim, hidden):
    ks = jax.random.split(key, 6)
    bnd1 = 1.0 / jnp.sqrt(dim)
    bnd_dw = 1.0 / jnp.sqrt(9.0)          # fan_in of depthwise 3x3, 1 ch/group
    bnd2 = 1.0 / jnp.sqrt(hidden)
    w1 = jax.random.uniform(ks[0], (dim, hidden), jnp.float32, -bnd1, bnd1)
    b1 = jax.random.uniform(ks[1], (hidden,), jnp.float32, -bnd1, bnd1)
    wdw = jax.random.uniform(ks[2], (3, 3, hidden), jnp.float32, -bnd_dw, bnd_dw)
    bdw = jax.random.uniform(ks[3], (hidden,), jnp.float32, -bnd_dw, bnd_dw)
    w2 = jax.random.uniform(ks[4], (hidden, dim), jnp.float32, -bnd2, bnd2)
    b2 = jax.random.uniform(ks[5], (dim,), jnp.float32, -bnd2, bnd2)
    return (w1, b1, wdw, bdw, w2, b2)


if __name__ == "__main__":
    B, H, W = 2, 16, 16
    dim, hidden = 4, 32

    key = jax.random.PRNGKey(0)
    kx, kp = jax.random.split(key)
    x = jax.random.normal(kx, (B, H, W, dim), jnp.float32)
    params = init_params(kp, dim, hidden)

    out = jax.block_until_ready(leff_pallas(x, params))
    ref = leff_reference(x, params)

    assert out.shape == (B, H, W, dim)
    # bf16 matmul inputs / bf16 output store (f32 accumulation) -> loose tol.
    assert jnp.allclose(out, ref, atol=2e-2, rtol=2e-2), "mismatch vs reference"

    print("KERNEL_OK")
</pallas_src>

<mosaic_0001>
module attributes {stable_mosaic.version = 11 : i64} {
  func.func @leff_kernel(%arg0: i32, %arg1: i32, %arg2: memref<1x1x432x128xbf16, #tpu.memory_space<vmem>>, %arg3: memref<1x24x128xf32, #tpu.memory_space<vmem>>, %arg4: memref<1x18x1x128xf32, #tpu.memory_space<vmem>>, %arg5: memref<128x128xbf16, #tpu.memory_space<vmem>>, %arg6: memref<1x128xf32, #tpu.memory_space<vmem>>, %arg7: memref<9x128xf32, #tpu.memory_space<vmem>>, %arg8: memref<1x128xf32, #tpu.memory_space<vmem>>, %arg9: memref<128x128xbf16, #tpu.memory_space<vmem>>, %arg10: memref<1x128xf32, #tpu.memory_space<vmem>>, %arg11: memref<1x16x16x128xbf16, #tpu.memory_space<vmem>>) attributes {dimension_semantics = [#tpu.dimension_semantics<parallel>, #tpu.dimension_semantics<parallel>], iteration_bounds = array<i64: 2, 1>, scalar_prefetch = 0 : i64, scratch_operands = 0 : i64, tpu.core_type = #tpu.core_type<tc>, window_params = [{transform_indices = @transform_0, window_bounds = array<i64: 1, 1, 432, 128>}, {pipeline_mode = #tpu.pipeline_mode<synchronous>, transform_indices = @transform_1, window_bounds = array<i64: 1, 24, 128>}, {transform_indices = @transform_2, window_bounds = array<i64: 1, 18, 1, 128>}, {pipeline_mode = #tpu.pipeline_mode<synchronous>, transform_indices = @transform_3, window_bounds = array<i64: 128, 128>}, {pipeline_mode = #tpu.pipeline_mode<synchronous>, transform_indices = @transform_4, window_bounds = array<i64: 1, 128>}, {pipeline_mode = #tpu.pipeline_mode<synchronous>, transform_indices = @transform_5, window_bounds = array<i64: 9, 128>}, {pipeline_mode = #tpu.pipeline_mode<synchronous>, transform_indices = @transform_6, window_bounds = array<i64: 1, 128>}, {pipeline_mode = #tpu.pipeline_mode<synchronous>, transform_indices = @transform_7, window_bounds = array<i64: 128, 128>}, {pipeline_mode = #tpu.pipeline_mode<synchronous>, transform_indices = @transform_8, window_bounds = array<i64: 1, 128>}, {transform_indices = @transform_9, window_bounds = array<i64: 1, 16, 16, 128>}]} {
    %c0 = arith.constant 0 : index
    %c0_0 = arith.constant 0 : index
    %c0_1 = arith.constant 0 : index
    %c0_2 = arith.constant 0 : index
    %0 = vector.load %arg2[%c0, %c0_0, %c0_1, %c0_2] : memref<1x1x432x128xbf16, #tpu.memory_space<vmem>>, vector<1x1x432x128xbf16>
    %1 = vector.shape_cast %0 : vector<1x1x432x128xbf16> to vector<432x128xbf16>
    %c0_3 = arith.constant 0 : index
    %c0_4 = arith.constant 0 : index
    %2 = vector.load %arg5[%c0_3, %c0_4] : memref<128x128xbf16, #tpu.memory_space<vmem>>, vector<128x128xbf16>
    %cst = arith.constant dense<0.000000e+00> : vector<432x128xf32>
    %3 = tpu.matmul %1, %2, %cst {dimension_numbers = #tpu.dot_dimension_numbers<[1], [0], [0], [1], [0, 0, 1, 1], [], []>} : vector<432x128xbf16>, vector<128x128xbf16>, vector<432x128xf32> -> vector<432x128xf32>
    %c0_5 = arith.constant 0 : index
    %c0_6 = arith.constant 0 : index
    %4 = vector.load %arg6[%c0_5, %c0_6] : memref<1x128xf32, #tpu.memory_space<vmem>>, vector<1x128xf32>
    %5 = vector.broadcast %4 : vector<1x128xf32> to vector<432x128xf32>
    %6 = arith.addf %3, %5 : vector<432x128xf32>
    %cst_7 = arith.constant 5.000000e-01 : f32
    %7 = vector.broadcast %cst_7 : f32 to vector<432x128xf32>
    %8 = arith.mulf %7, %6 : vector<432x128xf32>
    %cst_8 = arith.constant 0.707106769 : f32
    %9 = vector.broadcast %cst_8 : f32 to vector<432x128xf32>
    %10 = arith.mulf %6, %9 : vector<432x128xf32>
    %11 = math.erf %10 : vector<432x128xf32>
    %cst_9 = arith.constant 1.000000e+00 : f32
    %12 = vector.broadcast %cst_9 : f32 to vector<432x128xf32>
    %13 = arith.addf %12, %11 : vector<432x128xf32>
    %14 = arith.mulf %8, %13 : vector<432x128xf32>
    %15 = vector.shape_cast %14 : vector<432x128xf32> to vector<18x24x128xf32>
    %c0_10 = arith.constant 0 : index
    %c0_11 = arith.constant 0 : index
    %c0_12 = arith.constant 0 : index
    %16 = vector.load %arg3[%c0_10, %c0_11, %c0_12] : memref<1x24x128xf32, #tpu.memory_space<vmem>>, vector<1x24x128xf32>
    %17 = vector.broadcast %16 : vector<1x24x128xf32> to vector<18x24x128xf32>
    %18 = arith.mulf %15, %17 : vector<18x24x128xf32>
    %c0_13 = arith.constant 0 : index
    %c0_14 = arith.constant 0 : index
    %c0_15 = arith.constant 0 : index
    %c0_16 = arith.constant 0 : index
    %19 = vector.load %arg4[%c0_13, %c0_14, %c0_15, %c0_16] : memref<1x18x1x128xf32, #tpu.memory_space<vmem>>, vector<1x18x1x128xf32>
    %20 = vector.shape_cast %19 : vector<1x18x1x128xf32> to vector<18x1x128xf32>
    %21 = vector.broadcast %20 : vector<18x1x128xf32> to vector<18x24x128xf32>
    %22 = arith.mulf %18, %21 : vector<18x24x128xf32>
    %c0_17 = arith.constant 0 : index
    %c0_18 = arith.constant 0 : index
    %23 = vector.load %arg7[%c0_17, %c0_18] : memref<9x128xf32, #tpu.memory_space<vmem>>, vector<9x128xf32>
    %c0_19 = arith.constant 0 : index
    %c0_20 = arith.constant 0 : index
    %24 = vector.load %arg8[%c0_19, %c0_20] : memref<1x128xf32, #tpu.memory_space<vmem>>, vector<1x128xf32>
    %25 = vector.shape_cast %24 : vector<1x128xf32> to vector<1x1x128xf32>
    %26 = vector.shape_cast %25 : vector<1x1x128xf32> to vector<1x1x128xf32>
    %27 = vector.broadcast %26 : vector<1x1x128xf32> to vector<16x16x128xf32>
    %28 = vector.extract_strided_slice %22 {offsets = [0, 0, 0], sizes = [18, 16, 128], strides = [1, 1, 1]} : vector<18x24x128xf32> to vector<18x16x128xf32>
    %29 = vector.extract_strided_slice %23 {offsets = [0, 0], sizes = [1, 128], strides = [1, 1]} : vector<9x128xf32> to vector<1x128xf32>
    %30 = vector.shape_cast %29 : vector<1x128xf32> to vector<1x1x128xf32>
    %31 = vector.extract_strided_slice %28 {offsets = [0, 0, 0], sizes = [16, 16, 128], strides = [1, 1, 1]} : vector<18x16x128xf32> to vector<16x16x128xf32>
    %32 = vector.broadcast %30 : vector<1x1x128xf32> to vector<16x16x128xf32>
    %33 = arith.mulf %31, %32 : vector<16x16x128xf32>
    %34 = arith.addf %27, %33 : vector<16x16x128xf32>
    %35 = vector.extract_strided_slice %23 {offsets = [3, 0], sizes = [1, 128], strides = [1, 1]} : vector<9x128xf32> to vector<1x128xf32>
    %36 = vector.shape_cast %35 : vector<1x128xf32> to vector<1x1x128xf32>
    %37 = vector.extract_strided_slice %28 {offsets = [1, 0, 0], sizes = [16, 16, 128], strides = [1, 1, 1]} : vector<18x16x128xf32> to vector<16x16x128xf32>
    %38 = vector.broadcast %36 : vector<1x1x128xf32> to vector<16x16x128xf32>
    %39 = arith.mulf %37, %38 : vector<16x16x128xf32>
    %40 = arith.addf %34, %39 : vector<16x16x128xf32>
    %41 = vector.extract_strided_slice %23 {offsets = [6, 0], sizes = [1, 128], strides = [1, 1]} : vector<9x128xf32> to vector<1x128xf32>
    %42 = vector.shape_cast %41 : vector<1x128xf32> to vector<1x1x128xf32>
    %43 = vector.extract_strided_slice %28 {offsets = [2, 0, 0], sizes = [16, 16, 128], strides = [1, 1, 1]} : vector<18x16x128xf32> to vector<16x16x128xf32>
    %44 = vector.broadcast %42 : vector<1x1x128xf32> to vector<16x16x128xf32>
    %45 = arith.mulf %43, %44 : vector<16x16x128xf32>
    %46 = arith.addf %40, %45 : vector<16x16x128xf32>
    %47 = vector.extract_strided_slice %22 {offsets = [0, 1, 0], sizes = [18, 16, 128], strides = [1, 1, 1]} : vector<18x24x128xf32> to vector<18x16x128xf32>
    %48 = vector.extract_strided_slice %23 {offsets = [1, 0], sizes = [1, 128], strides = [1, 1]} : vector<9x128xf32> to vector<1x128xf32>
    %49 = vector.shape_cast %48 : vector<1x128xf32> to vector<1x1x128xf32>
    %50 = vector.extract_strided_slice %47 {offsets = [0, 0, 0], sizes = [16, 16, 128], strides = [1, 1, 1]} : vector<18x16x128xf32> to vector<16x16x128xf32>
    %51 = vector.broadcast %49 : vector<1x1x128xf32> to vector<16x16x128xf32>
    %52 = arith.mulf %50, %51 : vector<16x16x128xf32>
    %53 = arith.addf %46, %52 : vector<16x16x128xf32>
    %54 = vector.extract_strided_slice %23 {offsets = [4, 0], sizes = [1, 128], strides = [1, 1]} : vector<9x128xf32> to vector<1x128xf32>
    %55 = vector.shape_cast %54 : vector<1x128xf32> to vector<1x1x128xf32>
    %56 = vector.extract_strided_slice %47 {offsets = [1, 0, 0], sizes = [16, 16, 128], strides = [1, 1, 1]} : vector<18x16x128xf32> to vector<16x16x128xf32>
    %57 = vector.broadcast %55 : vector<1x1x128xf32> to vector<16x16x128xf32>
    %58 = arith.mulf %56, %57 : vector<16x16x128xf32>
    %59 = arith.addf %53, %58 : vector<16x16x128xf32>
    %60 = vector.extract_strided_slice %23 {offsets = [7, 0], sizes = [1, 128], strides = [1, 1]} : vector<9x128xf32> to vector<1x128xf32>
    %61 = vector.shape_cast %60 : vector<1x128xf32> to vector<1x1x128xf32>
    %62 = vector.extract_strided_slice %47 {offsets = [2, 0, 0], sizes = [16, 16, 128], strides = [1, 1, 1]} : vector<18x16x128xf32> to vector<16x16x128xf32>
    %63 = vector.broadcast %61 : vector<1x1x128xf32> to vector<16x16x128xf32>
    %64 = arith.mulf %62, %63 : vector<16x16x128xf32>
    %65 = arith.addf %59, %64 : vector<16x16x128xf32>
    %66 = vector.extract_strided_slice %22 {offsets = [0, 2, 0], sizes = [18, 16, 128], strides = [1, 1, 1]} : vector<18x24x128xf32> to vector<18x16x128xf32>
    %67 = vector.extract_strided_slice %23 {offsets = [2, 0], sizes = [1, 128], strides = [1, 1]} : vector<9x128xf32> to vector<1x128xf32>
    %68 = vector.shape_cast %67 : vector<1x128xf32> to vector<1x1x128xf32>
    %69 = vector.extract_strided_slice %66 {offsets = [0, 0, 0], sizes = [16, 16, 128], strides = [1, 1, 1]} : vector<18x16x128xf32> to vector<16x16x128xf32>
    %70 = vector.broadcast %68 : vector<1x1x128xf32> to vector<16x16x128xf32>
    %71 = arith.mulf %69, %70 : vector<16x16x128xf32>
    %72 = arith.addf %65, %71 : vector<16x16x128xf32>
    %73 = vector.extract_strided_slice %23 {offsets = [5, 0], sizes = [1, 128], strides = [1, 1]} : vector<9x128xf32> to vector<1x128xf32>
    %74 = vector.shape_cast %73 : vector<1x128xf32> to vector<1x1x128xf32>
    %75 = vector.extract_strided_slice %66 {offsets = [1, 0, 0], sizes = [16, 16, 128], strides = [1, 1, 1]} : vector<18x16x128xf32> to vector<16x16x128xf32>
    %76 = vector.broadcast %74 : vector<1x1x128xf32> to vector<16x16x128xf32>
    %77 = arith.mulf %75, %76 : vector<16x16x128xf32>
    %78 = arith.addf %72, %77 : vector<16x16x128xf32>
    %79 = vector.extract_strided_slice %23 {offsets = [8, 0], sizes = [1, 128], strides = [1, 1]} : vector<9x128xf32> to vector<1x128xf32>
    %80 = vector.shape_cast %79 : vector<1x128xf32> to vector<1x1x128xf32>
    %81 = vector.extract_strided_slice %66 {offsets = [2, 0, 0], sizes = [16, 16, 128], strides = [1, 1, 1]} : vector<18x16x128xf32> to vector<16x16x128xf32>
    %82 = vector.broadcast %80 : vector<1x1x128xf32> to vector<16x16x128xf32>
    %83 = arith.mulf %81, %82 : vector<16x16x128xf32>
    %84 = arith.addf %78, %83 : vector<16x16x128xf32>
    %cst_21 = arith.constant 5.000000e-01 : f32
    %85 = vector.broadcast %cst_21 : f32 to vector<16x16x128xf32>
    %86 = arith.mulf %85, %84 : vector<16x16x128xf32>
    %cst_22 = arith.constant 0.707106769 : f32
    %87 = vector.broadcast %cst_22 : f32 to vector<16x16x128xf32>
    %88 = arith.mulf %84, %87 : vector<16x16x128xf32>
    %89 = math.erf %88 : vector<16x16x128xf32>
    %cst_23 = arith.constant 1.000000e+00 : f32
    %90 = vector.broadcast %cst_23 : f32 to vector<16x16x128xf32>
    %91 = arith.addf %90, %89 : vector<16x16x128xf32>
    %92 = arith.mulf %86, %91 : vector<16x16x128xf32>
    %93 = vector.shape_cast %92 : vector<16x16x128xf32> to vector<256x128xf32>
    %94 = arith.truncf %93 : vector<256x128xf32> to vector<256x128xbf16>
    %c0_24 = arith.constant 0 : index
    %c0_25 = arith.constant 0 : index
    %95 = vector.load %arg9[%c0_24, %c0_25] : memref<128x128xbf16, #tpu.memory_space<vmem>>, vector<128x128xbf16>
    %cst_26 = arith.constant dense<0.000000e+00> : vector<256x128xf32>
    %96 = tpu.matmul %94, %95, %cst_26 {dimension_numbers = #tpu.dot_dimension_numbers<[1], [0], [0], [1], [0, 0, 1, 1], [], []>} : vector<256x128xbf16>, vector<128x128xbf16>, vector<256x128xf32> -> vector<256x128xf32>
    %c0_27 = arith.constant 0 : index
    %c0_28 = arith.constant 0 : index
    %97 = vector.load %arg10[%c0_27, %c0_28] : memref<1x128xf32, #tpu.memory_space<vmem>>, vector<1x128xf32>
    %98 = vector.broadcast %97 : vector<1x128xf32> to vector<256x128xf32>
    %99 = arith.addf %96, %98 : vector<256x128xf32>
    %100 = vector.shape_cast %99 : vector<256x128xf32> to vector<16x16x128xf32>
    %101 = arith.truncf %100 : vector<16x16x128xf32> to vector<16x16x128xbf16>
    %c0_29 = arith.constant 0 : index
    %c0_30 = arith.constant 0 : index
    %c0_31 = arith.constant 0 : index
    %c0_32 = arith.constant 0 : index
    %102 = vector.load %arg11[%c0_29, %c0_30, %c0_31, %c0_32] : memref<1x16x16x128xbf16, #tpu.memory_space<vmem>>, vector<1x16x16x128xbf16>
    %103 = vector.shape_cast %102 : vector<1x16x16x128xbf16> to vector<16x16x128xbf16>
    %104 = vector.shape_cast %101 : vector<16x16x128xbf16> to vector<1x16x16x128xbf16>
    tpu.vector_store %arg11[%c0_29, %c0_30, %c0_31, %c0_32], %104 {strides = array<i32>} : memref<1x16x16x128xbf16, #tpu.memory_space<vmem>>, vector<1x16x16x128xbf16>,
    return
  }
  func.func @transform_0(%arg0: i32, %arg1: i32) -> (i32, i32, i32, i32) {
    %c0_i32 = arith.constant 0 : i32
    %c0_i32_0 = arith.constant 0 : i32
    %c0_i32_1 = arith.constant 0 : i32
    return %arg0, %arg1, %c0_i32, %c0_i32_0 : i32, i32, i32, i32
  }
  func.func @transform_1(%arg0: i32, %arg1: i32) -> (i32, i32, i32) {
    %c0_i32 = arith.constant 0 : i32
    %c0_i32_0 = arith.constant 0 : i32
    %c0_i32_1 = arith.constant 0 : i32
    %c0_i32_2 = arith.constant 0 : i32
    return %c0_i32, %c0_i32_0, %c0_i32_1 : i32, i32, i32
  }
  func.func @transform_2(%arg0: i32, %arg1: i32) -> (i32, i32, i32, i32) {
    %c0_i32 = arith.constant 0 : i32
    %c0_i32_0 = arith.constant 0 : i32
    %c0_i32_1 = arith.constant 0 : i32
    %c0_i32_2 = arith.constant 0 : i32
    return %arg1, %c0_i32, %c0_i32_0, %c0_i32_1 : i32, i32, i32, i32
  }
  func.func @transform_3(%arg0: i32, %arg1: i32) -> (i32, i32) {
    %c0_i32 = arith.constant 0 : i32
    %c0_i32_0 = arith.constant 0 : i32
    %c0_i32_1 = arith.constant 0 : i32
    return %c0_i32, %c0_i32_0 : i32, i32
  }
  func.func @transform_4(%arg0: i32, %arg1: i32) -> (i32, i32) {
    %c0_i32 = arith.constant 0 : i32
    %c0_i32_0 = arith.constant 0 : i32
    %c0_i32_1 = arith.constant 0 : i32
    return %c0_i32, %c0_i32_0 : i32, i32
  }
  func.func @transform_5(%arg0: i32, %arg1: i32) -> (i32, i32) {
    %c0_i32 = arith.constant 0 : i32
    %c0_i32_0 = arith.constant 0 : i32
    %c0_i32_1 = arith.constant 0 : i32
    return %c0_i32, %c0_i32_0 : i32, i32
  }
  func.func @transform_6(%arg0: i32, %arg1: i32) -> (i32, i32) {
    %c0_i32 = arith.constant 0 : i32
    %c0_i32_0 = arith.constant 0 : i32
    %c0_i32_1 = arith.constant 0 : i32
    return %c0_i32, %c0_i32_0 : i32, i32
  }
  func.func @transform_7(%arg0: i32, %arg1: i32) -> (i32, i32) {
    %c0_i32 = arith.constant 0 : i32
    %c0_i32_0 = arith.constant 0 : i32
    %c0_i32_1 = arith.constant 0 : i32
    return %c0_i32, %c0_i32_0 : i32, i32
  }
  func.func @transform_8(%arg0: i32, %arg1: i32) -> (i32, i32) {
    %c0_i32 = arith.constant 0 : i32
    %c0_i32_0 = arith.constant 0 : i32
    %c0_i32_1 = arith.constant 0 : i32
    return %c0_i32, %c0_i32_0 : i32, i32
  }
  func.func @transform_9(%arg0: i32, %arg1: i32) -> (i32, i32, i32, i32) {
    %c0_i32 = arith.constant 0 : i32
    %c0_i32_0 = arith.constant 0 : i32
    %c0_i32_1 = arith.constant 0 : i32
    return %arg0, %arg1, %c0_i32, %c0_i32_0 : i32, i32, i32, i32
  }
}

module attributes {stable_mosaic.version = 11 : i64} {
  func.func @leff_kernel(%arg0: i32, %arg1: i32, %arg2: memref<1x1x432x128xbf16, #tpu.memory_space<vmem>>, %arg3: memref<1x24x128xf32, #tpu.memory_space<vmem>>, %arg4: memref<1x18x1x128xf32, #tpu.memory_space<vmem>>, %arg5: memref<128x128xbf16, #tpu.memory_space<vmem>>, %arg6: memref<1x128xf32, #tpu.memory_space<vmem>>, %arg7: memref<9x128xf32, #tpu.memory_space<vmem>>, %arg8: memref<1x128xf32, #tpu.memory_space<vmem>>, %arg9: memref<128x128xbf16, #tpu.memory_space<vmem>>, %arg10: memref<1x128xf32, #tpu.memory_space<vmem>>, %arg11: memref<1x16x16x128xbf16, #tpu.memory_space<vmem>>) attributes {dimension_semantics = [#tpu.dimension_semantics<parallel>, #tpu.dimension_semantics<parallel>], iteration_bounds = array<i64: 2, 1>, scalar_prefetch = 0 : i64, scratch_operands = 0 : i64, tpu.core_type = #tpu.core_type<tc>, window_params = [{transform_indices = @transform_0, window_bounds = array<i64: 1, 1, 432, 128>}, {pipeline_mode = #tpu.pipeline_mode<synchronous>, transform_indices = @transform_1, window_bounds = array<i64: 1, 24, 128>}, {transform_indices = @transform_2, window_bounds = array<i64: 1, 18, 1, 128>}, {pipeline_mode = #tpu.pipeline_mode<synchronous>, transform_indices = @transform_3, window_bounds = array<i64: 128, 128>}, {pipeline_mode = #tpu.pipeline_mode<synchronous>, transform_indices = @transform_4, window_bounds = array<i64: 1, 128>}, {pipeline_mode = #tpu.pipeline_mode<synchronous>, transform_indices = @transform_5, window_bounds = array<i64: 9, 128>}, {pipeline_mode = #tpu.pipeline_mode<synchronous>, transform_indices = @transform_6, window_bounds = array<i64: 1, 128>}, {pipeline_mode = #tpu.pipeline_mode<synchronous>, transform_indices = @transform_7, window_bounds = array<i64: 128, 128>}, {pipeline_mode = #tpu.pipeline_mode<synchronous>, transform_indices = @transform_8, window_bounds = array<i64: 1, 128>}, {transform_indices = @transform_9, window_bounds = array<i64: 1, 16, 16, 128>}]} {
    %c0 = arith.constant 0 : index
    %c0_0 = arith.constant 0 : index
    %c0_1 = arith.constant 0 : index
    %c0_2 = arith.constant 0 : index
    %0 = vector.load %arg2[%c0, %c0_0, %c0_1, %c0_2] : memref<1x1x432x128xbf16, #tpu.memory_space<vmem>>, vector<1x1x432x128xbf16>
    %1 = vector.shape_cast %0 : vector<1x1x432x128xbf16> to vector<432x128xbf16>
    %c0_3 = arith.constant 0 : index
    %c0_4 = arith.constant 0 : index
    %2 = vector.load %arg5[%c0_3, %c0_4] : memref<128x128xbf16, #tpu.memory_space<vmem>>, vector<128x128xbf16>
    %cst = arith.constant dense<0.000000e+00> : vector<432x128xf32>
    %3 = tpu.matmul %1, %2, %cst {dimension_numbers = #tpu.dot_dimension_numbers<[1], [0], [0], [1], [0, 0, 1, 1], [], []>} : vector<432x128xbf16>, vector<128x128xbf16>, vector<432x128xf32> -> vector<432x128xf32>
    %c0_5 = arith.constant 0 : index
    %c0_6 = arith.constant 0 : index
    %4 = vector.load %arg6[%c0_5, %c0_6] : memref<1x128xf32, #tpu.memory_space<vmem>>, vector<1x128xf32>
    %5 = vector.broadcast %4 : vector<1x128xf32> to vector<432x128xf32>
    %6 = arith.addf %3, %5 : vector<432x128xf32>
    %cst_7 = arith.constant 5.000000e-01 : f32
    %7 = vector.broadcast %cst_7 : f32 to vector<432x128xf32>
    %8 = arith.mulf %7, %6 : vector<432x128xf32>
    %cst_8 = arith.constant 0.707106769 : f32
    %9 = vector.broadcast %cst_8 : f32 to vector<432x128xf32>
    %10 = arith.mulf %6, %9 : vector<432x128xf32>
    %11 = math.erf %10 : vector<432x128xf32>
    %cst_9 = arith.constant 1.000000e+00 : f32
    %12 = vector.broadcast %cst_9 : f32 to vector<432x128xf32>
    %13 = arith.addf %12, %11 : vector<432x128xf32>
    %14 = arith.mulf %8, %13 : vector<432x128xf32>
    %15 = vector.shape_cast %14 : vector<432x128xf32> to vector<18x24x128xf32>
    %c0_10 = arith.constant 0 : index
    %c0_11 = arith.constant 0 : index
    %c0_12 = arith.constant 0 : index
    %16 = vector.load %arg3[%c0_10, %c0_11, %c0_12] : memref<1x24x128xf32, #tpu.memory_space<vmem>>, vector<1x24x128xf32>
    %17 = vector.broadcast %16 : vector<1x24x128xf32> to vector<18x24x128xf32>
    %18 = arith.mulf %15, %17 : vector<18x24x128xf32>
    %c0_13 = arith.constant 0 : index
    %c0_14 = arith.constant 0 : index
    %c0_15 = arith.constant 0 : index
    %c0_16 = arith.constant 0 : index
    %19 = vector.load %arg4[%c0_13, %c0_14, %c0_15, %c0_16] : memref<1x18x1x128xf32, #tpu.memory_space<vmem>>, vector<1x18x1x128xf32>
    %20 = vector.shape_cast %19 : vector<1x18x1x128xf32> to vector<18x1x128xf32>
    %21 = vector.broadcast %20 : vector<18x1x128xf32> to vector<18x24x128xf32>
    %22 = arith.mulf %18, %21 : vector<18x24x128xf32>
    %c0_17 = arith.constant 0 : index
    %c0_18 = arith.constant 0 : index
    %23 = vector.load %arg7[%c0_17, %c0_18] : memref<9x128xf32, #tpu.memory_space<vmem>>, vector<9x128xf32>
    %c0_19 = arith.constant 0 : index
    %c0_20 = arith.constant 0 : index
    %24 = vector.load %arg8[%c0_19, %c0_20] : memref<1x128xf32, #tpu.memory_space<vmem>>, vector<1x128xf32>
    %25 = vector.shape_cast %24 : vector<1x128xf32> to vector<1x1x128xf32>
    %26 = vector.shape_cast %25 : vector<1x1x128xf32> to vector<1x1x128xf32>
    %27 = vector.broadcast %26 : vector<1x1x128xf32> to vector<16x16x128xf32>
    %28 = vector.extract_strided_slice %22 {offsets = [0, 0, 0], sizes = [18, 16, 128], strides = [1, 1, 1]} : vector<18x24x128xf32> to vector<18x16x128xf32>
    %29 = vector.extract_strided_slice %23 {offsets = [0, 0], sizes = [1, 128], strides = [1, 1]} : vector<9x128xf32> to vector<1x128xf32>
    %30 = vector.shape_cast %29 : vector<1x128xf32> to vector<1x1x128xf32>
    %31 = vector.extract_strided_slice %28 {offsets = [0, 0, 0], sizes = [16, 16, 128], strides = [1, 1, 1]} : vector<18x16x128xf32> to vector<16x16x128xf32>
    %32 = vector.broadcast %30 : vector<1x1x128xf32> to vector<16x16x128xf32>
    %33 = arith.mulf %31, %32 : vector<16x16x128xf32>
    %34 = arith.addf %27, %33 : vector<16x16x128xf32>
    %35 = vector.extract_strided_slice %23 {offsets = [3, 0], sizes = [1, 128], strides = [1, 1]} : vector<9x128xf32> to vector<1x128xf32>
    %36 = vector.shape_cast %35 : vector<1x128xf32> to vector<1x1x128xf32>
    %37 = vector.extract_strided_slice %28 {offsets = [1, 0, 0], sizes = [16, 16, 128], strides = [1, 1, 1]} : vector<18x16x128xf32> to vector<16x16x128xf32>
    %38 = vector.broadcast %36 : vector<1x1x128xf32> to vector<16x16x128xf32>
    %39 = arith.mulf %37, %38 : vector<16x16x128xf32>
    %40 = arith.addf %34, %39 : vector<16x16x128xf32>
    %41 = vector.extract_strided_slice %23 {offsets = [6, 0], sizes = [1, 128], strides = [1, 1]} : vector<9x128xf32> to vector<1x128xf32>
    %42 = vector.shape_cast %41 : vector<1x128xf32> to vector<1x1x128xf32>
    %43 = vector.extract_strided_slice %28 {offsets = [2, 0, 0], sizes = [16, 16, 128], strides = [1, 1, 1]} : vector<18x16x128xf32> to vector<16x16x128xf32>
    %44 = vector.broadcast %42 : vector<1x1x128xf32> to vector<16x16x128xf32>
    %45 = arith.mulf %43, %44 : vector<16x16x128xf32>
    %46 = arith.addf %40, %45 : vector<16x16x128xf32>
    %47 = vector.extract_strided_slice %22 {offsets = [0, 1, 0], sizes = [18, 16, 128], strides = [1, 1, 1]} : vector<18x24x128xf32> to vector<18x16x128xf32>
    %48 = vector.extract_strided_slice %23 {offsets = [1, 0], sizes = [1, 128], strides = [1, 1]} : vector<9x128xf32> to vector<1x128xf32>
    %49 = vector.shape_cast %48 : vector<1x128xf32> to vector<1x1x128xf32>
    %50 = vector.extract_strided_slice %47 {offsets = [0, 0, 0], sizes = [16, 16, 128], strides = [1, 1, 1]} : vector<18x16x128xf32> to vector<16x16x128xf32>
    %51 = vector.broadcast %49 : vector<1x1x128xf32> to vector<16x16x128xf32>
    %52 = arith.mulf %50, %51 : vector<16x16x128xf32>
    %53 = arith.addf %46, %52 : vector<16x16x128xf32>
    %54 = vector.extract_strided_slice %23 {offsets = [4, 0], sizes = [1, 128], strides = [1, 1]} : vector<9x128xf32> to vector<1x128xf32>
    %55 = vector.shape_cast %54 : vector<1x128xf32> to vector<1x1x128xf32>
    %56 = vector.extract_strided_slice %47 {offsets = [1, 0, 0], sizes = [16, 16, 128], strides = [1, 1, 1]} : vector<18x16x128xf32> to vector<16x16x128xf32>
    %57 = vector.broadcast %55 : vector<1x1x128xf32> to vector<16x16x128xf32>
    %58 = arith.mulf %56, %57 : vector<16x16x128xf32>
    %59 = arith.addf %53, %58 : vector<16x16x128xf32>
    %60 = vector.extract_strided_slice %23 {offsets = [7, 0], sizes = [1, 128], strides = [1, 1]} : vector<9x128xf32> to vector<1x128xf32>
    %61 = vector.shape_cast %60 : vector<1x128xf32> to vector<1x1x128xf32>
    %62 = vector.extract_strided_slice %47 {offsets = [2, 0, 0], sizes = [16, 16, 128], strides = [1, 1, 1]} : vector<18x16x128xf32> to vector<16x16x128xf32>
    %63 = vector.broadcast %61 : vector<1x1x128xf32> to vector<16x16x128xf32>
    %64 = arith.mulf %62, %63 : vector<16x16x128xf32>
    %65 = arith.addf %59, %64 : vector<16x16x128xf32>
    %66 = vector.extract_strided_slice %22 {offsets = [0, 2, 0], sizes = [18, 16, 128], strides = [1, 1, 1]} : vector<18x24x128xf32> to vector<18x16x128xf32>
    %67 = vector.extract_strided_slice %23 {offsets = [2, 0], sizes = [1, 128], strides = [1, 1]} : vector<9x128xf32> to vector<1x128xf32>
    %68 = vector.shape_cast %67 : vector<1x128xf32> to vector<1x1x128xf32>
    %69 = vector.extract_strided_slice %66 {offsets = [0, 0, 0], sizes = [16, 16, 128], strides = [1, 1, 1]} : vector<18x16x128xf32> to vector<16x16x128xf32>
    %70 = vector.broadcast %68 : vector<1x1x128xf32> to vector<16x16x128xf32>
    %71 = arith.mulf %69, %70 : vector<16x16x128xf32>
    %72 = arith.addf %65, %71 : vector<16x16x128xf32>
    %73 = vector.extract_strided_slice %23 {offsets = [5, 0], sizes = [1, 128], strides = [1, 1]} : vector<9x128xf32> to vector<1x128xf32>
    %74 = vector.shape_cast %73 : vector<1x128xf32> to vector<1x1x128xf32>
    %75 = vector.extract_strided_slice %66 {offsets = [1, 0, 0], sizes = [16, 16, 128], strides = [1, 1, 1]} : vector<18x16x128xf32> to vector<16x16x128xf32>
    %76 = vector.broadcast %74 : vector<1x1x128xf32> to vector<16x16x128xf32>
    %77 = arith.mulf %75, %76 : vector<16x16x128xf32>
    %78 = arith.addf %72, %77 : vector<16x16x128xf32>
    %79 = vector.extract_strided_slice %23 {offsets = [8, 0], sizes = [1, 128], strides = [1, 1]} : vector<9x128xf32> to vector<1x128xf32>
    %80 = vector.shape_cast %79 : vector<1x128xf32> to vector<1x1x128xf32>
    %81 = vector.extract_strided_slice %66 {offsets = [2, 0, 0], sizes = [16, 16, 128], strides = [1, 1, 1]} : vector<18x16x128xf32> to vector<16x16x128xf32>
    %82 = vector.broadcast %80 : vector<1x1x128xf32> to vector<16x16x128xf32>
    %83 = arith.mulf %81, %82 : vector<16x16x128xf32>
    %84 = arith.addf %78, %83 : vector<16x16x128xf32>
    %cst_21 = arith.constant 5.000000e-01 : f32
    %85 = vector.broadcast %cst_21 : f32 to vector<16x16x128xf32>
    %86 = arith.mulf %85, %84 : vector<16x16x128xf32>
    %cst_22 = arith.constant 0.707106769 : f32
    %87 = vector.broadcast %cst_22 : f32 to vector<16x16x128xf32>
    %88 = arith.mulf %84, %87 : vector<16x16x128xf32>
    %89 = math.erf %88 : vector<16x16x128xf32>
    %cst_23 = arith.constant 1.000000e+00 : f32
    %90 = vector.broadcast %cst_23 : f32 to vector<16x16x128xf32>
    %91 = arith.addf %90, %89 : vector<16x16x128xf32>
    %92 = arith.mulf %86, %91 : vector<16x16x128xf32>
    %93 = vector.shape_cast %92 : vector<16x16x128xf32> to vector<256x128xf32>
    %94 = arith.truncf %93 : vector<256x128xf32> to vector<256x128xbf16>
    %c0_24 = arith.constant 0 : index
    %c0_25 = arith.constant 0 : index
    %95 = vector.load %arg9[%c0_24, %c0_25] : memref<128x128xbf16, #tpu.memory_space<vmem>>, vector<128x128xbf16>
    %cst_26 = arith.constant dense<0.000000e+00> : vector<256x128xf32>
    %96 = tpu.matmul %94, %95, %cst_26 {dimension_numbers = #tpu.dot_dimension_numbers<[1], [0], [0], [1], [0, 0, 1, 1], [], []>} : vector<256x128xbf16>, vector<128x128xbf16>, vector<256x128xf32> -> vector<256x128xf32>
    %c0_27 = arith.constant 0 : index
    %c0_28 = arith.constant 0 : index
    %97 = vector.load %arg10[%c0_27, %c0_28] : memref<1x128xf32, #tpu.memory_space<vmem>>, vector<1x128xf32>
    %98 = vector.broadcast %97 : vector<1x128xf32> to vector<256x128xf32>
    %99 = arith.addf %96, %98 : vector<256x128xf32>
    %100 = vector.shape_cast %99 : vector<256x128xf32> to vector<16x16x128xf32>
    %101 = arith.truncf %100 : vector<16x16x128xf32> to vector<16x16x128xbf16>
    %c0_29 = arith.constant 0 : index
    %c0_30 = arith.constant 0 : index
    %c0_31 = arith.constant 0 : index
    %c0_32 = arith.constant 0 : index
    %102 = vector.load %arg11[%c0_29, %c0_30, %c0_31, %c0_32] : memref<1x16x16x128xbf16, #tpu.memory_space<vmem>>, vector<1x16x16x128xbf16>
    %103 = vector.shape_cast %102 : vector<1x16x16x128xbf16> to vector<16x16x128xbf16>
    %104 = vector.shape_cast %101 : vector<16x16x128xbf16> to vector<1x16x16x128xbf16>
    tpu.vector_store %arg11[%c0_29, %c0_30, %c0_31, %c0_32], %104 {strides = array<i32>} : memref<1x16x16x128xbf16, #tpu.memory_space<vmem>>, vector<1x16x16x128xbf16>,
    return
  }
  func.func @transform_0(%arg0: i32, %arg1: i32) -> (i32, i32, i32, i32) {
    %c0_i32 = arith.constant 0 : i32
    %c0_i32_0 = arith.constant 0 : i32
    %c0_i32_1 = arith.constant 0 : i32
    return %arg0, %arg1, %c0_i32, %c0_i32_0 : i32, i32, i32, i32
  }
  func.func @transform_1(%arg0: i32, %arg1: i32) -> (i32, i32, i32) {
    %c0_i32 = arith.constant 0 : i32
    %c0_i32_0 = arith.constant 0 : i32
    %c0_i32_1 = arith.constant 0 : i32
    %c0_i32_2 = arith.constant 0 : i32
    return %c0_i32, %c0_i32_0, %c0_i32_1 : i32, i32, i32
  }
  func.func @transform_2(%arg0: i32, %arg1: i32) -> (i32, i32, i32, i32) {
    %c0_i32 = arith.constant 0 : i32
    %c0_i32_0 = arith.constant 0 : i32
    %c0_i32_1 = arith.constant 0 : i32
    %c0_i32_2 = arith.constant 0 : i32
    return %arg1, %c0_i32, %c0_i32_0, %c0_i32_1 : i32, i32, i32, i32
  }
  func.func @transform_3(%arg0: i32, %arg1: i32) -> (i32, i32) {
    %c0_i32 = arith.constant 0 : i32
    %c0_i32_0 = arith.constant 0 : i32
    %c0_i32_1 = arith.constant 0 : i32
    return %c0_i32, %c0_i32_0 : i32, i32
  }
  func.func @transform_4(%arg0: i32, %arg1: i32) -> (i32, i32) {
    %c0_i32 = arith.constant 0 : i32
    %c0_i32_0 = arith.constant 0 : i32
    %c0_i32_1 = arith.constant 0 : i32
    return %c0_i32, %c0_i32_0 : i32, i32
  }
  func.func @transform_5(%arg0: i32, %arg1: i32) -> (i32, i32) {
    %c0_i32 = arith.constant 0 : i32
    %c0_i32_0 = arith.constant 0 : i32
    %c0_i32_1 = arith.constant 0 : i32
    return %c0_i32, %c0_i32_0 : i32, i32
  }
  func.func @transform_6(%arg0: i32, %arg1: i32) -> (i32, i32) {
    %c0_i32 = arith.constant 0 : i32
    %c0_i32_0 = arith.constant 0 : i32
    %c0_i32_1 = arith.constant 0 : i32
    return %c0_i32, %c0_i32_0 : i32, i32
  }
  func.func @transform_7(%arg0: i32, %arg1: i32) -> (i32, i32) {
    %c0_i32 = arith.constant 0 : i32
    %c0_i32_0 = arith.constant 0 : i32
    %c0_i32_1 = arith.constant 0 : i32
    return %c0_i32, %c0_i32_0 : i32, i32
  }
  func.func @transform_8(%arg0: i32, %arg1: i32) -> (i32, i32) {
    %c0_i32 = arith.constant 0 : i32
    %c0_i32_0 = arith.constant 0 : i32
    %c0_i32_1 = arith.constant 0 : i32
    return %c0_i32, %c0_i32_0 : i32, i32
  }
  func.func @transform_9(%arg0: i32, %arg1: i32) -> (i32, i32, i32, i32) {
    %c0_i32 = arith.constant 0 : i32
    %c0_i32_0 = arith.constant 0 : i32
    %c0_i32_1 = arith.constant 0 : i32
    return %arg0, %arg1, %c0_i32, %c0_i32_0 : i32, i32, i32, i32
  }
}

</mosaic_0001>

<bundles_post_ra>
// kernel: tpu_custom_call.1
= control target key start
LH: loop header
LB: loop body
LE: loop exit
PB: predicated region body
PF: predicated region fallthrough
CT: control target
= control target key end

     0   :  { %s7194_s0 = inlined_call_operand.hbm [shape: bf16[2,1,432,128], index: 0, kind: input, shape index: {}]   ;;  %s7195_s1 = inlined_call_operand.hbm [shape: f32[1,24,128], index: 1, kind: input, shape index: {}]   ;;  %s7196_s2 = inlined_call_operand.hbm [shape: f32[1,18,1,128], index: 2, kind: input, shape index: {}]   ;;  %s7197_s3 = inlined_call_operand.hbm [shape: bf16[128,128], index: 3, kind: input, shape index: {}]   ;;  %s7198_s4 = inlined_call_operand.vmem [shape: f32[1,128], index: 4, kind: input, shape index: {}]   ;;  %s7199_s5 = inlined_call_operand.vmem [shape: f32[9,128], index: 5, kind: input, shape index: {}]   ;;  %s7200_s6 = inlined_call_operand.vmem [shape: f32[1,128], index: 6, kind: input, shape index: {}]   ;;  %s7201_s7 = inlined_call_operand.hbm [shape: bf16[128,128], index: 7, kind: input, shape index: {}]   ;;  %s7202_s8 = inlined_call_operand.vmem [shape: f32[1,128], index: 8, kind: input, shape index: {}]   ;;  %s7203_s9 = inlined_call_operand.hbm [shape: bf16[2,16,16,128], index: 9, kind: output, shape index: {}]  }
   0x1   :  { %7267 = sst [smem:[#allocation60_spill]] %s7195_s1 }
   0x2   :  { %7268 = sst [smem:[#allocation61_spill]] %s7202_s8 }
   0x3   :  { %7269 = sst [smem:[#allocation62_spill]] %s7203_s9 }
   0x4   :  { %14 = vsyncpa [#allocation3], 0 }
   0x5   :  { %16 = vsyncpa [#allocation3 + $0x1], 0 }
   0x6   :  { %17 = vsyncpa [#allocation6], 0 }
   0x7   :  { %18 = vsyncpa [#allocation9], 0 }
   0x8   :  { %19 = vsyncpa [#allocation4], 0 }
   0x9   :  { %21 = vsyncpa [#allocation4 + $0x1], 0  ;;  %s5004_s30 = smov 0   ;;  %s5006_s10 = smov 0  }
   0xa   :  { %s5008_s11 = smov 0   ;;  %s5010_s12 = smov 0  }
   0xb   :  { %s5012_s13 = smov 0   ;;  %s5014_s14 = smov 0  }
   0xc LB: > { %7270 = sst [smem:[#allocation16_spill]] %s4916_s30  ;;  %s3871_s15 = sadd.s32 4294967295, %s4936_s14   ;;  %s4936_s14 = sphi %s5014_s14, %s27_s14   ;;  %s4932_s13 = sphi %s5012_s13, %s7426_s13   ;;  %s4928_s12 = sphi %s5010_s12, %s7425_s12   ;;  %s4924_s11 = sphi %s5008_s11, %s7424_s11   ;;  %s4920_s10 = sphi %s5006_s10, %s7423_s10   ;;  %s4916_s30 = sphi %s5004_s30, %s7422_s30  }
   0xd   : > { %7271 = sst [smem:[#allocation17_spill]] %s4928_s12  ;;  %s3872_s16 = sadd.s32 4294967294, %s4936_s14  }
   0xe   : > { %p61_p0 = scmp.ne.s32.totalorder %s4920_s10, %s4916_s30  ;;  %p5038_p1 = scmp.eq.s32.totalorder %s3871_s15, 0 }
   0xf   : > { %p5042_p2 = scmp.eq.s32.totalorder %s3871_s15, 1  ;;  %p266_p3 = scmp.eq.s32.totalorder %s3872_s16, 1 }
  0x10   : > { %s7272_s17 = scalar_select %p5038_p1, 1, 0 }
  0x11   : > { %s7273_s18 = scalar_select %p5042_p2, 1, 0 }
  0x12   : > { %p5048_p4 = por %p5038_p1, %p61_p0  ;;  %p3873_p5 = scmp.ge.s32.totalorder %s4936_s14, 1 }
  0x13   : > { %p5053_p6 = por %p266_p3, %p61_p0  ;;  %p273_p7 = scmp.lt.s32.totalorder %s4936_s14, 3 }
  0x14   : > { %s7274_s19 = scalar_select %p5048_p4, 1, 0 }
  0x15   : > { %s7275_s20 = scalar_select %p5053_p6, 1, 0 }
  0x16   : > { %p5058_p8 = pnand %p3873_p5, %p273_p7  ;;  %s4938_s22 = smov [#allocation5]  }
  0x17   : > { %7276 = sst [smem:[#allocation18_spill]] %s7275_s20  ;;  %s285_s23 = sshll.u32 %s4938_s22, 4  ;;  %s5062_s23 = int_to_ptr.vmem [resolvable:$true] %s285_s23 }
  0x18   : > { %s7277_s21 = scalar_select %p5058_p8, 1, 0 }
  0x19   : > { %p4386_p9 = pneg %p5058_p8  ;;  %s4939_s25 = smov [#allocation8]  }
  0x1a   : > { %s314_s26 = sshll.u32 %s4939_s25, 4  ;;  %s7279_s1 = sld [smem:[#allocation60_spill]]  ;;  %s5073_s26 = int_to_ptr.vmem [resolvable:$true] %s314_s26 }
  0x1b   : > { %p5069_p11 = pnand %p4386_p9, %p5038_p1 }
  0x1d   : > { %p5083_p13 = pneg %p5069_p11 }
  0x20   : > { %s4704_s29 = scalar_lea.hbm %s7279_s1, 384 }
  0x21   : > { %p4705_p12 = scmp.ne.s32.totalorder %s7279_s1, %s4704_s29  ;;  %p4711_p5 = scmp.lt.u32.totalorder %s4704_s29, %s7279_s1 }
  0x23   : > { %p4707_p0 = pnand %p5083_p13, %p4705_p12 }
  0x25   : > { %p4708_p3 = pneg %p4707_p0 }
  0x27   : > { %p4713_p7 = pnand %p4711_p5, %p4708_p3 }
  0x29   : > { %4716 = shalt.err (!%p4713_p7)
}
  0x2a   : > { %s4717_s27 = scalar_lea.vmem %s5062_s23, 384  ;;  %p4725_p1 = scmp.lt.s32.totalorder %s5062_s23, %s5062_s23 }
  0x2b   : > { %p4718_p9 = scmp.ne.s32.totalorder %s5062_s23, %s4717_s27  ;;  %p4726_p4 = scmp.lt.s32.totalorder %s4717_s27, %s4717_s27 }
  0x2d   : > { %p4720_p10 = pnand %p4718_p9, %p5083_p13  ;;  %p4727_p12 = por %p4726_p4, %p4725_p1 }
  0x2f   : > { %p4721_p6 = pneg %p4720_p10 }
  0x31   : > { %p4728_p0 = pnand %p4727_p12, %p4721_p6 }
  0x33   : > { %4731 = shalt.err (!%p4728_p0)
}
  0x34   : > { %s4940_s28 = smov 128   ;;  %s4941_s20 = smov 8  }
  0x35   : > { %4389 = dma.hbm_to_vmem [thread:$0]  (!%p5069_p11), %s7279_s1, 384, %s5062_s23, [#allocation6], %s4940_s28, %s4940_s28, %s4941_s20  }
  0x36   : > { %s4732_s30 = scalar_lea.hbm %s7197_s3, 1024 }
  0x37   : > { %p4733_p1 = scmp.ne.s32.totalorder %s7197_s3, %s4732_s30  ;;  %p4739_p10 = scmp.lt.u32.totalorder %s4732_s30, %s7197_s3 }
  0x39   : > { %p4735_p4 = pnand %p4733_p1, %p5083_p13 }
  0x3b   : > { %p4736_p6 = pneg %p4735_p4 }
  0x3d   : > { %p4741_p3 = pnand %p4739_p10, %p4736_p6 }
  0x3f   : > { %4744 = shalt.err (!%p4741_p3)
}
  0x40   : > { %s4745_s23 = scalar_lea.vmem %s5073_s26, 1024  ;;  %p4753_p12 = scmp.lt.s32.totalorder %s5073_s26, %s5073_s26 }
  0x41   : > { %p4746_p5 = scmp.ne.s32.totalorder %s5073_s26, %s4745_s23  ;;  %p4754_p0 = scmp.lt.s32.totalorder %s4745_s23, %s4745_s23 }
  0x43   : > { %p4748_p7 = pnand %p4746_p5, %p5083_p13  ;;  %p4755_p1 = por %p4754_p0, %p4753_p12 }
  0x45   : > { %p4749_p9 = pneg %p4748_p7 }
  0x47   : > { %p4756_p4 = pnand %p4755_p1, %p4749_p9 }
  0x49   : > { %4759 = shalt.err (!%p4756_p4)
}
  0x4a   : > { %s7211_s9 = smov 64   ;;  %s7213_s8 = smov 4  }
  0x4b   : > { %4395 = dma.hbm_to_vmem [thread:$0]  (!%p5069_p11), %s7197_s3, 1024, %s5073_s26, [#allocation9], %s7211_s9, %s7211_s9, %s7213_s8  }
  0x4c   : > { %s4944_s28 = smov [#allocation7]   ;;  %s4760_s16 = scalar_lea.hbm %s7196_s2, 288 }
  0x4d   : > { %s301_s20 = sshll.u32 %s4944_s28, 4  ;;  %p4761_p6 = scmp.ne.s32.totalorder %s7196_s2, %s4760_s16  ;;  %s302_s20 = int_to_ptr.vmem [resolvable:$true] %s301_s20 }
  0x4e   : > { %p4767_p5 = scmp.lt.u32.totalorder %s4760_s16, %s7196_s2 }
  0x4f   : > { %p4763_p10 = pnand %p4761_p6, %p5083_p13 }
  0x51   : > { %p4764_p3 = pneg %p4763_p10 }
  0x53   : > { %p4769_p7 = pnand %p4767_p5, %p4764_p3 }
  0x55   : > { %4772 = shalt.err (!%p4769_p7)
}
  0x56   : > { %s4773_s26 = scalar_lea.vmem %s302_s20, 288  ;;  %p4781_p1 = scmp.lt.s32.totalorder %s302_s20, %s302_s20 }
  0x57   : > { %p4774_p9 = scmp.ne.s32.totalorder %s302_s20, %s4773_s26  ;;  %p4782_p4 = scmp.lt.s32.totalorder %s4773_s26, %s4773_s26 }
  0x59   : > { %p4776_p12 = pnand %p4774_p9, %p5083_p13  ;;  %p4783_p8 = por %p4782_p4, %p4781_p1 }
  0x5b   : > { %p4777_p0 = pneg %p4776_p12 }
  0x5d   : > { %p4784_p2 = pnand %p4783_p8, %p4777_p0 }
  0x5f   : > { %4787 = shalt.err (!%p4784_p2)
}
  0x60   : > { %s4945_s30 = smov 16   ;;  %s4946_s12 = smov 1  }
  0x61   : > { %4392 = dma.hbm_to_vmem [thread:$0]  (!%p5069_p11), %s7196_s2, 288, %s302_s20, [#allocation6], %s4945_s30, %s4945_s30, %s4946_s12  }
  0x62   : > { %s4947_s29 = smov [#allocation10]   ;;  %s4788_s27 = scalar_lea.hbm %s7201_s7, 1024 }
  0x63   : > { %s336_s15 = sshll.u32 %s4947_s29, 4  ;;  %p4789_p2 = scmp.ne.s32.totalorder %s7201_s7, %s4788_s27  ;;  %s337_s15 = int_to_ptr.vmem [resolvable:$true] %s336_s15 }
  0x64   : > { %p4795_p10 = scmp.lt.u32.totalorder %s4788_s27, %s7201_s7 }
  0x65   : > { %p4791_p8 = pnand %p4789_p2, %p5083_p13 }
  0x67   : > { %p4792_p6 = pneg %p4791_p8 }
  0x69   : > { %p4797_p3 = pnand %p4795_p10, %p4792_p6 }
  0x6b   : > { %4800 = shalt.err (!%p4797_p3)
}
  0x6c   : > { %s4801_s20 = scalar_lea.vmem %s337_s15, 1024  ;;  %p4809_p12 = scmp.lt.s32.totalorder %s337_s15, %s337_s15 }
  0x6d   : > { %p4802_p5 = scmp.ne.s32.totalorder %s337_s15, %s4801_s20  ;;  %p4810_p0 = scmp.lt.s32.totalorder %s4801_s20, %s4801_s20 }
  0x6f   : > { %p4804_p7 = pnand %p4802_p5, %p5083_p13  ;;  %p4811_p1 = por %p4810_p0, %p4809_p12 }
  0x71   : > { %p4805_p9 = pneg %p4804_p7 }
  0x73   : > { %p4812_p4 = pnand %p4811_p1, %p4805_p9 }
  0x75   : > { %4815 = shalt.err (!%p4812_p4)
}
  0x76   : > { %s7281_s30 = smov 4   ;;  %s7282_s12 = smov 64  }
  0x77   : > { %4398 = dma.hbm_to_vmem [thread:$0]  (!%p5069_p11), %s7201_s7, 1024, %s337_s15, [#allocation9], %s7282_s12, %s7282_s12, %s7281_s30  }
  0x78   : > { %s39_s22 = sadd.s32 1, %s4932_s13  ;;  %s48_s24 = sadd.s32 1, %s4924_s11 }
  0x79   : > { %p41_p13 = scmp.ge.s32.totalorder %s39_s22, 2  ;;  %p55_p2 = scmp.ne.s32.totalorder %s4924_s11, %s4920_s10 }
  0x7a   : > { %p56_p8 = scmp.eq.s32.totalorder %s4936_s14, 0  ;;  %p4411_p6 = scmp.lt.s32.totalorder %s4936_s14, 2 }
  0x7b   : > { %s7428_s22 = smov (%p41_p13, %s39_s22), 0  ;;  %p7283_p3 = scmp.ne.s32.totalorder %s7273_s18, 0 }
  0x7c   : > { %p57_p10 = por %p56_p8, %p55_p2  ;;  %s43_s28 = ssub.s32 %s4932_s13, %s7428_s22 }
  0x7d   : > { %p5179_p5 = por %p7283_p3, %p55_p2  ;;  %s353_s29 = sand.u32 1, %s4924_s11  }
  0x7e   : > { %p46_p7 = scmp.eq.s32.totalorder %s43_s28, 0  ;;  %s4363_s15 = smul.u32 216, %s353_s29 }
  0x7f   : > { %p5186_p11 = pnand %p4411_p6, %p57_p10  ;;  %s4364_s27 = smul.u32 3456, %s4932_s13 }
  0x80   : > { %s5191_s25 = scalar_select %p46_p7, %s4924_s11, %s48_s24  }
  0x81   : > { %s357_s23 = scalar_lea.vmem [#allocation2], %s4363_s15  ;;  %s5197_s9 = scalar_lea.hbm %s7194_s0, %s4364_s27 }
  0x82   : > { %s366_s26 = sshll.u32 %s357_s23, 4  ;;  %s5201_s8 = scalar_lea.sflag [#allocation3], %s353_s29  ;;  %s5199_s26 = int_to_ptr.vmem [resolvable:$true] %s366_s26 }
  0x83   : > { %s4816_s28 = scalar_lea.hbm %s5197_s9, 3456  ;;  %p4818_p12 = pneg %p5186_p11 }
  0x84   : > { %p4817_p9 = scmp.ne.s32.totalorder %s5197_s9, %s4816_s28  ;;  %s4821_s27 = scalar_lea.hbm %s7194_s0, 6912 }
  0x85   : > { %p4822_p4 = scmp.lt.u32.totalorder %s5197_s9, %s7194_s0  ;;  %p4823_p13 = scmp.lt.u32.totalorder %s4821_s27, %s4816_s28 }
  0x86   : > { %p4819_p0 = pnand %p4818_p12, %p4817_p9  ;;  %p4825_p8 = scmp.lt.u32.totalorder %s4816_s28, %s5197_s9 }
  0x87   : > { %p4824_p2 = por %p4823_p13, %p4822_p4 }
  0x88   : > { %p4820_p1 = pneg %p4819_p0 }
  0x89   : > { %p4826_p6 = por %p4825_p8, %p4824_p2 }
  0x8b   : > { %p4827_p10 = pnand %p4826_p6, %p4820_p1 }
  0x8d   : > { %4830 = shalt.err (!%p4827_p10)
}
  0x8e   : > { %s4831_s29 = scalar_lea.vmem %s5199_s26, 3456  ;;  %s4948_s20 = smov [#allocation2]  }
  0x8f   : > { %p4832_p3 = scmp.ne.s32.totalorder %s5199_s26, %s4831_s29  ;;  %s4836_s24 = sshll.u32 %s4948_s20, 4  ;;  %s4837_s24 = int_to_ptr.vmem [resolvable:$false] %s4836_s24 }
  0x90   : > { %s4838_s15 = scalar_lea.vmem %s4837_s24, 6912  ;;  %p4839_p0 = scmp.lt.s32.totalorder %s5199_s26, %s4837_s24 }
  0x91   : > { %p4834_p7 = pnand %p4832_p3, %p4818_p12  ;;  %p4840_p4 = scmp.lt.s32.totalorder %s4838_s15, %s4831_s29 }
  0x93   : > { %p4835_p9 = pneg %p4834_p7  ;;  %p4841_p13 = por %p4840_p4, %p4839_p0 }
  0x95   : > { %p4842_p2 = pnand %p4841_p13, %p4835_p9 }
  0x97   : > { %4845 = shalt.err (!%p4842_p2)
}
  0x98   : > { %4402 = dma.hbm_to_vmem [thread:$0]  (!%p5186_p11), %s5197_s9, 3456, %s5199_s26, %s5201_s8, %s7282_s12, %s7282_s12, %s7281_s30  }
  0x99   : > { %p7286_p12 = scmp.ne.s32.totalorder %s7277_s21, 0 }
  0x9b   : > { %378 = sbr.rel (%p7286_p12) target bundleno = 1125 (0x465), region = 56 }
  0xa2   : > { %s5235_s28 = sand.u32 1, %s4920_s10   ;;  %p7287_p1 = scmp.ne.s32.totalorder %s7274_s19, 0 }
  0xa3   : > { %s4365_s27 = smul.u32 216, %s5235_s28  ;;  %s381_s23 = scalar_lea.sflag [#allocation3], %s5235_s28 }
  0xa5   : > { %s5239_s18 = scalar_lea.vmem [#allocation2], %s4365_s27 }
  0xa6   : > { %4899 = dma.done.wait (%p7287_p1), %s381_s23, 3456  }
  0xa7   : > { %4901 = vsyncadd (%p7287_p1), %s381_s23, 4294963840  ;;  %p7288_p11 = scmp.ne.s32.totalorder %s7272_s17, 0 }
  0xa9   : > { %4903 = dma.done.wait (%p7288_p11), [#allocation6], 672  }
  0xaa   : > { %4905 = vsyncadd (%p7288_p11), [#allocation6], 4294966624 }
  0xab   : > { %4907 = dma.done.wait (%p7288_p11), [#allocation9], 2048  }
  0xac   : > { %4909 = vsyncadd (%p7288_p11), [#allocation9], 4294965248  ;;  %v4949_v0 = vmov 0.0   ;;  %vm4950_vm0 = vmmov 0   ;;  %v4479_v1 = vld [vmem:[#allocation8] sm:$0xff]   ;;  %v4480_v2 = vld [vmem:[#allocation8 + $0x8] sm:$0xff]   ;;  %v1489_v45 = vlaneseq }
  0xad   : > { %4175 = vmatprep.subr.bf16.mxu0 %v4949_v0  ;;  %4191 = vmatprep.mubr.msk.bf16.mxu0 %vm4950_vm0, %v4949_v0  ;;  %v4481_v3 = vld [vmem:[#allocation8 + $0x10] sm:$0xff]   ;;  %v4482_v4 = vld [vmem:[#allocation8 + $0x18] sm:$0xff]   ;;  %v4483_v5 = vld [vmem:[#allocation8 + $0x20] sm:$0xff]   ;;  %vm1793_vm1 = vcmask 1046528   ;;  %vm2526_vm2 = vcmask 1045504   ;;  %s7408_s8 = sld [smem:[#allocation61_spill]] }
  0xae   : > { %4347 = vmatprep.subr.bf16.mxu1 %v4949_v0  ;;  %4263 = vmatprep.mubr.msk.bf16.mxu1 %vm4950_vm0, %v4949_v0  ;;  %v4484_v6 = vld [vmem:[#allocation8 + $0x28] sm:$0xff]   ;;  %v4485_v7 = vld [vmem:[#allocation8 + $0x30] sm:$0xff]   ;;  %v4486_v8 = vld [vmem:[#allocation8 + $0x38] sm:$0xff]   ;;  %v1490_v57 = vshrl.u32 %v1489_v45, 7  ;;  %s3885_s29 = sshll.u32 %s5235_s28, 7  ;;  %s7416_s24 = sld [smem:[#allocation17_spill]] }
  0xaf   : > { %4176 = vmatpush3.bf16.msra.mxu0 %v4479_v1  ;;  %4355 = vmatpush3.bf16.msra.mxu1 %v4479_v1  ;;  %v4487_v9 = vld [vmem:[%s5239_s18] sm:$0xff]   ;;  %v4492_v10 = vld [vmem:[%s5239_s18 + $0x90] sm:$0xff]   ;;  %v4488_v11 = vld [vmem:[%s5239_s18 + $0x8] sm:$0xff]   ;;  %s7096_s20 = scalar_lea.vmem [#allocation11], %s3885_s29  ;;  %s7417_s17 = sld [smem:[#allocation62_spill]] }
  0xb0   : > { %4177 = vmatprep.subr.bf16.mxu0 %v4949_v0  ;;  %4348 = vmatprep.subr.bf16.mxu1 %v4949_v0  ;;  %v4494_v12 = vld [vmem:[%s5239_s18 + $0x98] sm:$0xff]   ;;  %v4489_v13 = vld [vmem:[%s5239_s18 + $0x10] sm:$0xff]   ;;  %v4496_v14 = vld [vmem:[%s5239_s18 + $0xa0] sm:$0xff]   ;;  %v1491_v63 = vsub.s32 0, %v1490_v57  ;;  %s3744_s27 = sshll.u32 %s7096_s20, 4  ;;  %s3728_s21 = scalar_lea.sflag [#allocation4], %s5235_s28  ;;  %s7143_s27 = int_to_ptr.vmem [resolvable:$true] %s3744_s27 }
  0xb1   : > { %v4490_v15 = vld [vmem:[%s5239_s18 + $0x18] sm:$0xff]   ;;  %v4498_v16 = vld [vmem:[%s5239_s18 + $0xa8] sm:$0xff]   ;;  %v4491_v17 = vld [vmem:[%s5239_s18 + $0x20] sm:$0xff]   ;;  %s4846_s30 = scalar_lea.vmem %s7143_s27, 2048  ;;  %s4951_s12 = smov [#allocation11]  }
  0xb2   : > { %v4500_v18 = vld [vmem:[%s5239_s18 + $0xb0] sm:$0xff]   ;;  %v4493_v19 = vld [vmem:[%s5239_s18 + $0x28] sm:$0xff]   ;;  %v4502_v20 = vld [vmem:[%s5239_s18 + $0xb8] sm:$0xff]   ;;  %p4847_p8 = scmp.ne.s32.totalorder %s7143_s27, %s4846_s30  ;;  %s4850_s16 = sshll.u32 %s4951_s12, 4  ;;  %s4851_s16 = int_to_ptr.vmem [resolvable:$false] %s4850_s16 }
  0xb3   : > { %4178 = vmatpush3.bf16.msra.mxu0 %v4480_v2  ;;  %4356 = vmatpush3.bf16.msra.mxu1 %v4480_v2  ;;  %v4495_v21 = vld [vmem:[%s5239_s18 + $0x30] sm:$0xff]   ;;  %v4504_v22 = vld [vmem:[%s5239_s18 + $0xc0] sm:$0xff]   ;;  %v4497_v23 = vld [vmem:[%s5239_s18 + $0x38] sm:$0xff]   ;;  %s4852_s26 = scalar_lea.vmem %s4851_s16, 4096  ;;  %p4853_p3 = scmp.lt.s32.totalorder %s7143_s27, %s4851_s16 }
  0xb4   : > { %4179 = vmatprep.subr.bf16.mxu0 %v4949_v0  ;;  %4349 = vmatprep.subr.bf16.mxu1 %v4949_v0  ;;  %v4506_v24 = vld [vmem:[%s5239_s18 + $0xc8] sm:$0xff]   ;;  %v4499_v25 = vld [vmem:[%s5239_s18 + $0x40] sm:$0xff]   ;;  %v4508_v26 = vld [vmem:[%s5239_s18 + $0xd0] sm:$0xff]   ;;  %s4020_s15 = sshll.u32 %s7416_s24, 11  ;;  %p4848_p6 = pnand %p4847_p8, %p5179_p5 }
  0xb5   : > { %v4501_v27 = vld [vmem:[%s5239_s18 + $0x48] sm:$0xff]   ;;  %v4503_v28 = vld [vmem:[%s5239_s18 + $0x50] sm:$0xff]   ;;  %v4505_v29 = vld [vmem:[%s5239_s18 + $0x58] sm:$0xff]   ;;  %s7141_s19 = scalar_lea.hbm %s7417_s17, %s4020_s15  ;;  %p4854_p7 = scmp.lt.s32.totalorder %s4852_s26, %s4846_s30 }
  0xb6   : > { %v4507_v30 = vld [vmem:[%s5239_s18 + $0x60] sm:$0xff]   ;;  %v4509_v31 = vld [vmem:[%s5239_s18 + $0x68] sm:$0xff]   ;;  %v4510_v32 = vld [vmem:[%s5239_s18 + $0x70] sm:$0xff]   ;;  %p4849_p10 = pneg %p4848_p6 }
  0xb7   : > { %4180 = vmatpush3.bf16.msra.mxu0 %v4481_v3  ;;  %4357 = vmatpush3.bf16.msra.mxu1 %v4481_v3  ;;  %v4511_v33 = vld [vmem:[%s5239_s18 + $0x78] sm:$0xff]   ;;  %v4512_v34 = vld [vmem:[%s5239_s18 + $0x80] sm:$0xff]   ;;  %v4513_v35 = vld [vmem:[%s5239_s18 + $0x88] sm:$0xff]   ;;  %v1695_v3 = vsub.s32 1, %v1490_v57  ;;  %p4855_p9 = por %p4854_p7, %p4853_p3 }
  0xb8   : > { %4181 = vmatprep.subr.bf16.mxu0 %v4949_v0  ;;  %4350 = vmatprep.subr.bf16.mxu1 %v4949_v0  ;;  %v4514_v36 = vld [vmem:[#allocation10] sm:$0xff]   ;;  %v4515_v37 = vld [vmem:[#allocation10 + $0x8] sm:$0xff]   ;;  %v4516_v38 = vld [vmem:[#allocation10 + $0x10] sm:$0xff]  }
  0xb9   : > { %v4517_v39 = vld [vmem:[#allocation10 + $0x18] sm:$0xff]   ;;  %v4518_v40 = vld [vmem:[#allocation10 + $0x20] sm:$0xff]   ;;  %v4519_v41 = vld [vmem:[#allocation10 + $0x28] sm:$0xff]   ;;  %p4856_p0 = pnand %p4855_p9, %p4849_p10 }
  0xba   : > { %v5353_v42 = vld [vmem:[%s7198_s4] ss:$0 sm:$0xff]  ;;  %v4520_v43 = vld [vmem:[#allocation10 + $0x30] sm:$0xff]   ;;  %v4521_v62 = vld [vmem:[#allocation10 + $0x38] sm:$0xff]  }
  0xbb   : > { %4182 = vmatpush3.bf16.msra.mxu0 %v4482_v4  ;;  %4358 = vmatpush3.bf16.msra.mxu1 %v4482_v4  ;;  %v1480_v2 = vld [vmem:[%s7199_s5] sm:$0xff]  ;;  %v2428_v4 = vsub.s32 2, %v1490_v57 }
  0xbc   : > { %4183 = vmatprep.subr.bf16.mxu0 %v4949_v0  ;;  %4351 = vmatprep.subr.bf16.mxu1 %v4949_v0 }
  0xbf   : > { %4184 = vmatpush3.bf16.msra.mxu0 %v4483_v5  ;;  %4359 = vmatpush3.bf16.msra.mxu1 %v4483_v5 }
  0xc0   : > { %4185 = vmatprep.subr.bf16.mxu0 %v4949_v0  ;;  %4352 = vmatprep.subr.bf16.mxu1 %v4949_v0 }
  0xc3   : > { %4186 = vmatpush3.bf16.msra.mxu0 %v4484_v6  ;;  %4360 = vmatpush3.bf16.msra.mxu1 %v4484_v6 }
  0xc4   : > { %4187 = vmatprep.subr.bf16.mxu0 %v4949_v0  ;;  %4353 = vmatprep.subr.bf16.mxu1 %v4949_v0 }
  0xc7   : > { %4188 = vmatpush3.bf16.msra.mxu0 %v4485_v7  ;;  %4361 = vmatpush3.bf16.msra.mxu1 %v4485_v7 }
  0xc8   : > { %4189 = vmatprep.subr.bf16.mxu0 %v4949_v0  ;;  %4354 = vmatprep.subr.bf16.mxu1 %v4949_v0 }
  0xcb   : > { %4190 = vmatpush3.bf16.msra.mxu0 %v4486_v8  ;;  %4362 = vmatpush3.bf16.msra.mxu1 %v4486_v8 }
  0xcc   : > { %4299 = vmatprep.subr.bf16.mxu1 %v4514_v36 }
  0xce   : > { %4192 = vmatmul.mubr.bf16.vlgmr.msra.gmra.mrb[0].mxu0 %v4487_v9  ;;  %4264 = vmatmul.mubr.bf16.vlgmr.msra.gmra.mrb[0].mxu1 %v4492_v10  ;;  %v1940_v10 = vsub.s32 4, %v1490_v57 }
  0xcf   : > { %4195 = vmatprep.mubr.msk.bf16.mxu0 %vm4950_vm0, %v4949_v0  ;;  %4267 = vmatprep.mubr.msk.bf16.mxu1 %vm4950_vm0, %v4949_v0 }
  0xd0   : > { %4300 = vmatpush3.bf16.msra.mxu1 %v4514_v36 }
  0xd1   : > { %4301 = vmatprep.subr.bf16.mxu1 %v4515_v37 }
  0xd4   : > { %4302 = vmatpush3.bf16.msra.mxu1 %v4515_v37 }
  0xd5   : > { %4303 = vmatprep.subr.bf16.mxu1 %v4516_v38 }
  0xd6   : > { %4196 = vmatmul.mubr.bf16.gmra.mrb[4].mxu0 %v4488_v11  ;;  %4268 = vmatmul.mubr.bf16.gmra.mrb[4].mxu1 %v4494_v12  ;;  %v2673_v11 = vsub.s32 5, %v1490_v57 }
  0xd7   : > { %4199 = vmatprep.mubr.msk.bf16.mxu0 %vm4950_vm0, %v4949_v0  ;;  %4271 = vmatprep.mubr.msk.bf16.mxu1 %vm4950_vm0, %v4949_v0 }
  0xd8   : > { %4304 = vmatpush3.bf16.msra.mxu1 %v4516_v38 }
  0xd9   : > { %4305 = vmatprep.subr.bf16.mxu1 %v4517_v39 }
  0xdc   : > { %4306 = vmatpush3.bf16.msra.mxu1 %v4517_v39 }
  0xdd   : > { %4307 = vmatprep.subr.bf16.mxu1 %v4518_v40 }
  0xde   : > { %4200 = vmatmul.mubr.bf16.gmra.mrb[8].mxu0 %v4489_v13  ;;  %4272 = vmatmul.mubr.bf16.gmra.mrb[8].mxu1 %v4496_v14 }
  0xdf   : > { %4203 = vmatprep.mubr.msk.bf16.mxu0 %vm4950_vm0, %v4949_v0  ;;  %4275 = vmatprep.mubr.msk.bf16.mxu1 %vm4950_vm0, %v4949_v0 }
  0xe0   : > { %4308 = vmatpush3.bf16.msra.mxu1 %v4518_v40 }
  0xe1   : > { %4309 = vmatprep.subr.bf16.mxu1 %v4519_v41 }
  0xe4   : > { %4310 = vmatpush3.bf16.msra.mxu1 %v4519_v41  ;;  %v5382_v41 = vld [vmem:[#allocation5] sm:$0xff] }
  0xe5   : > { %4311 = vmatprep.subr.bf16.mxu1 %v4520_v43 }
  0xe6   : > { %4204 = vmatmul.mubr.bf16.gmra.mrb[12].mxu0 %v4490_v15  ;;  %4276 = vmatmul.mubr.bf16.gmra.mrb[12].mxu1 %v4498_v16  ;;  %v2184_v16 = vsub.s32 7, %v1490_v57 }
  0xe7   : > { %4207 = vmatprep.mubr.msk.bf16.mxu0 %vm4950_vm0, %v4949_v0  ;;  %4279 = vmatprep.mubr.msk.bf16.mxu1 %vm4950_vm0, %v4949_v0 }
  0xe8   : > { %4312 = vmatpush3.bf16.msra.mxu1 %v4520_v43 }
  0xe9   : > { %4313 = vmatprep.subr.bf16.mxu1 %v4521_v62 }
  0xec   : > { %4314 = vmatpush3.bf16.msra.mxu1 %v4521_v62 }
  0xee   : > { %4208 = vmatmul.mubr.bf16.gmra.mrb[16].mxu0 %v4491_v17  ;;  %4280 = vmatmul.mubr.bf16.gmra.mrb[16].mxu1 %v4500_v18  ;;  %v1559_v18 = vsub.s32 3, %v1490_v57 }
  0xef   : > { %4211 = vmatprep.mubr.msk.bf16.mxu0 %vm4950_vm0, %v4949_v0  ;;  %4283 = vmatprep.mubr.msk.bf16.mxu1 %vm4950_vm0, %v4949_v0 }
  0xf6   : > { %4212 = vmatmul.mubr.bf16.gmra.mrb[20].mxu0 %v4493_v19  ;;  %4284 = vmatmul.mubr.bf16.gmra.mrb[20].mxu1 %v4502_v20  ;;  %v5365_v19 = vrot.slane %v1480_v2, %v1491_v63 }
  0xf7   : > { %4215 = vmatprep.mubr.msk.bf16.mxu0 %vm4950_vm0, %v4949_v0  ;;  %4287 = vmatprep.mubr.msk.bf16.mxu1 %vm4950_vm0, %v4949_v0 }
  0xfe   : > { %4216 = vmatmul.mubr.bf16.gmra.mrb[24].mxu0 %v4495_v21  ;;  %4288 = vmatmul.mubr.bf16.gmra.mrb[24].mxu1 %v4504_v22  ;;  %v1627_v22 = vsub.s32 6, %v1490_v57 }
  0xff   : > { %4219 = vmatprep.mubr.msk.bf16.mxu0 %vm4950_vm0, %v4949_v0  ;;  %4291 = vmatprep.mubr.msk.bf16.mxu1 %vm4950_vm0, %v4949_v0 }
 0x100   : > { %v5380_v39 = vrot.slane %v1480_v2, %v1627_v22 }
 0x106   : > { %4220 = vmatmul.mubr.bf16.gmra.mrb[28].mxu0 %v4497_v23  ;;  %4292 = vmatmul.mubr.bf16.gmra.mrb[28].mxu1 %v4506_v24  ;;  %v5368_v23 = vrot.slane %v1480_v2, %v1695_v3  ;;  %v5370_v24 = vrot.slane %v1480_v2, %v2428_v4 }
 0x107   : > { %4223 = vmatprep.mubr.msk.bf16.mxu0 %vm4950_vm0, %v4949_v0  ;;  %4295 = vmatprep.mubr.msk.bf16.mxu1 %vm4950_vm0, %v4949_v0 }
 0x108   : > { %7289 = vst [vmem:[#allocation19_spill] sm:$0xff] %v5368_v23  ;;  %7290 = vst [vmem:[#allocation20_spill] sm:$0xff] %v5370_v24 }
 0x10e   : > { %4224 = vmatmul.mubr.bf16.gmra.mrb[32].mxu0 %v4499_v25  ;;  %4296 = vmatmul.mubr.bf16.gmra.mrb[32].mxu1 %v4508_v26  ;;  %v5372_v26 = vrot.slane %v1480_v2, %v1940_v10 }
 0x10f   : > { %4227 = vmatprep.mubr.msk.bf16.mxu0 %vm4950_vm0, %v4949_v0 }
 0x116   : > { %4228 = vmatmul.mubr.bf16.gmra.mrb[36].mxu0 %v4501_v27  ;;  %v5374_v27 = vrot.slane %v1480_v2, %v2673_v11 }
 0x117   : > { %4231 = vmatprep.mubr.msk.bf16.mxu0 %vm4950_vm0, %v4949_v0 }
 0x11e   : > { %4232 = vmatmul.mubr.bf16.gmra.mrb[40].mxu0 %v4503_v28 }
 0x11f   : > { %4235 = vmatprep.mubr.msk.bf16.mxu0 %vm4950_vm0, %v4949_v0 }
 0x126   : > { %4236 = vmatmul.mubr.bf16.gmra.mrb[44].mxu0 %v4505_v29 }
 0x127   : > { %4239 = vmatprep.mubr.msk.bf16.mxu0 %vm4950_vm0, %v4949_v0 }
 0x12e   : > { %4240 = vmatmul.mubr.bf16.gmra.mrb[48].mxu0 %v4507_v30  ;;  %v5376_v30 = vrot.slane %v1480_v2, %v2184_v16 }
 0x12f   : > { %4243 = vmatprep.mubr.msk.bf16.mxu0 %vm4950_vm0, %v4949_v0 }
 0x136   : > { %4244 = vmatmul.mubr.bf16.gmra.mrb[52].mxu0 %v4509_v31 }
 0x137   : > { %4247 = vmatprep.mubr.msk.bf16.mxu0 %vm4950_vm0, %v4949_v0 }
 0x13e   : > { %4248 = vmatmul.mubr.bf16.gmra.mrb[56].mxu0 %v4510_v32  ;;  %v5378_v32 = vrot.slane %v1480_v2, %v1559_v18 }
 0x13f   : > { %4251 = vmatprep.mubr.msk.bf16.mxu0 %vm4950_vm0, %v4949_v0 }
 0x146   : > { %4252 = vmatmul.mubr.bf16.gmra.mrb[60].mxu0 %v4511_v33 }
 0x147   : > { %4255 = vmatprep.mubr.msk.bf16.mxu0 %vm4950_vm0, %v4949_v0 }
 0x14e   : > { %4256 = vmatmul.mubr.bf16.gmra.mrb[64].mxu0 %v4512_v34 }
 0x14f   : > { %4259 = vmatprep.mubr.msk.bf16.mxu0 %vm4950_vm0, %v4949_v0 }
 0x156   : > { %4260 = vmatmul.mubr.bf16.gmra.mrb[68].mxu0 %v4513_v35 }
 0x1a1   : > { %v758_v44 = vpop.f32.mrb[0].mxu0  ;;  %v902_v46 = vpop.f32.mrb[0].mxu1 }
 0x1a2   : > { %v759_v47 = vadd.f32 %v5353_v42, %v758_v44  ;;  %v4193_v48 = vpop.f32.mrb[1].mxu0  ;;  %v903_v49 = vadd.f32 %v5353_v42, %v902_v46  ;;  %v4265_v50 = vpop.f32.mrb[1].mxu1 }
 0x1a3   : > { %v761_v51 = vpop.f32.mrb[2].mxu0  ;;  %v905_v52 = vpop.f32.mrb[2].mxu1 }
 0x1a4   : > { %v1027_v53 = vmul.f32 0.70710677, %v759_v47  ;;  %v762_v54 = vadd.f32 %v5353_v42, %v761_v51  ;;  %v4194_v55 = vpop.f32.mrb[3].mxu0  ;;  %v4266_v56 = vpop.f32.mrb[3].mxu1  ;;  %v1063_v58 = vmul.f32 0.70710677, %v903_v49  ;;  %v906_v59 = vadd.f32 %v5353_v42, %v905_v52 }
 0x1a5   : > { %v1009_v31 = vmul.f32 0.5, %v903_v49  ;;  %v973_v34 = vmul.f32 0.5, %v759_v47  ;;  %v5387_v47 = vld [vmem:[#allocation7] ss:$0 sm:$0xff]  ;;  %v5391_v56 = vld [vmem:[#allocation5 + $0x8] sm:$0xff] }
 0x1a6   : > { %4522 = verf.f32 %v1027_v53  ;;  %v1028_v60 = vmul.f32 0.70710677, %v762_v54  ;;  %v1064_v61 = vmul.f32 0.70710677, %v906_v59  ;;  %v974_v36 = vmul.f32 0.5, %v762_v54 }
 0x1a7   : > { %4524 = verf.f32 %v1063_v58  ;;  %v1010_v48 = vmul.f32 0.5, %v906_v59 }
 0x1a8   : > { %4526 = verf.f32 %v1028_v60 }
 0x1a9   : > { %v766_v0 = vpop.f32.mrb[4].mxu0  ;;  %4528 = verf.f32 %v1064_v61  ;;  %v910_v1 = vpop.f32.mrb[4].mxu1 }
 0x1aa   : > { %v767_v5 = vadd.f32 %v5353_v42, %v766_v0  ;;  %v4197_v6 = vpop.f32.mrb[5].mxu0  ;;  %v911_v7 = vadd.f32 %v5353_v42, %v910_v1  ;;  %v4269_v8 = vpop.f32.mrb[5].mxu1 }
 0x1ab   : > { %v769_v9 = vpop.f32.mrb[6].mxu0  ;;  %v913_v12 = vpop.f32.mrb[6].mxu1 }
 0x1ac   : > { %v1029_v13 = vmul.f32 0.70710677, %v767_v5  ;;  %v770_v14 = vadd.f32 %v5353_v42, %v769_v9  ;;  %v4198_v15 = vpop.f32.mrb[7].mxu0  ;;  %v4270_v17 = vpop.f32.mrb[7].mxu1  ;;  %v1065_v20 = vmul.f32 0.70710677, %v911_v7  ;;  %v914_v21 = vadd.f32 %v5353_v42, %v913_v12 }
 0x1ad   : > { %v5384_v43 = vmul.f32 0.5, %v767_v5  ;;  %v5389_v54 = vmul.f32 0.5, %v911_v7  ;;  %v5403_v9 = vld [vmem:[#allocation7 + $0xc] ss:$0 sm:$0xff]  ;;  %v5408_v12 = vld [vmem:[%s7200_s6] ss:$0 sm:$0xff] }
 0x1ae   : > { %4530 = verf.f32 %v1029_v13  ;;  %v1030_v25 = vmul.f32 0.70710677, %v770_v14  ;;  %v1066_v28 = vmul.f32 0.70710677, %v914_v21  ;;  %v976_v1 = vmul.f32 0.5, %v770_v14  ;;  %7291 = vst [vmem:[#allocation21_spill] sm:$0xff] %v5408_v12 }
 0x1af   : > { %4532 = verf.f32 %v1065_v20  ;;  %v5397_v5 = vmul.f32 0.5, %v914_v21 }
 0x1b0   : > { %v4523_v29 = vpop.eup %4522  ;;  %4534 = verf.f32 %v1030_v25 }
 0x1b1   : > { %v4525_v33 = vpop.eup %4524  ;;  %v1135_v35 = vadd.f32 1.0, %v4523_v29  ;;  %v774_v37 = vpop.f32.mrb[8].mxu0  ;;  %4536 = verf.f32 %v1066_v28 }
 0x1b2   : > { %v918_v38 = vpop.f32.mrb[8].mxu1  ;;  %v4527_v40 = vpop.eup %4526  ;;  %v775_v44 = vadd.f32 %v5353_v42, %v774_v37  ;;  %v1171_v46 = vadd.f32 1.0, %v4525_v33 }
 0x1b3   : > { %v4201_v45 = vpop.f32.mrb[9].mxu0  ;;  %v4273_v49 = vpop.f32.mrb[9].mxu1  ;;  %v1189_v51 = vmul.f32 %v1135_v35, %v973_v34  ;;  %v1136_v52 = vadd.f32 1.0, %v4527_v40  ;;  %v919_v59 = vadd.f32 %v5353_v42, %v918_v38  ;;  %v5435_v40 = vld [vmem:[#allocation5 + $0x10] sm:$0xff] }
 0x1b4   : > { %v4529_v50 = vpop.eup %4528  ;;  %v777_v53 = vpop.f32.mrb[10].mxu0  ;;  %v1031_v57 = vmul.f32 0.70710677, %v775_v44  ;;  %v1225_v61 = vmul.f32 %v1171_v46, %v1009_v31  ;;  %v5401_v8 = vmul.f32 0.5, %v775_v44 }
 0x1b5   : > { %v921_v55 = vpop.f32.mrb[10].mxu1  ;;  %v778_v58 = vadd.f32 %v5353_v42, %v777_v53  ;;  %v4202_v60 = vpop.f32.mrb[11].mxu0  ;;  %v1246_v63 = vmul.f32 %v5382_v41, %v1189_v51  ;;  %v1190_v0 = vmul.f32 %v1136_v52, %v974_v36  ;;  %v1172_v2 = vadd.f32 1.0, %v4529_v50 }
 0x1b6   : > { %v4274_v62 = vpop.f32.mrb[11].mxu1  ;;  %4538 = verf.f32 %v1031_v57  ;;  %v1282_v4 = vmul.f32 %v5382_v41, %v1225_v61  ;;  %v5412_v14 = vmul.f32 0.5, %v919_v59  ;;  %v5414_v15 = vmul.f32 0.70710677, %v919_v59 }
 0x1b7   : > { %v1032_v3 = vmul.f32 0.70710677, %v778_v58  ;;  %v1426_v6 = vmul.f32 %v5387_v47, %v1246_v63  ;;  %v1247_v7 = vmul.f32 %v5391_v56, %v1190_v0  ;;  %v1226_v10 = vmul.f32 %v1172_v2, %v1010_v48 }
 0x1b8   : > { %v4531_v11 = vpop.eup %4530  ;;  %v5410_v13 = vmul.f32 0.5, %v778_v58  ;;  %v5426_v34 = vmul.f32 %v5403_v9, %v1282_v4  ;;  %v5429_v35 = vadd.f32 %v5353_v42, %v921_v55 }
 0x1b9   : > { %4540 = verf.f32 %v1032_v3  ;;  %v4533_v16 = vpop.eup %4532  ;;  %v1493_v17 = vmul.f32 %v5365_v19, %v1426_v6  ;;  %v1697_v18 = vmul.f32 %v5368_v23, %v1426_v6  ;;  %v5419_v20 = vmul.f32 %v5370_v24, %v1426_v6  ;;  %v782_v22 = vpop.f32.mrb[12].mxu0 }
 0x1ba   : > { %v1427_v21 = vmul.f32 %v5387_v47, %v1247_v7  ;;  %v5422_v25 = vpop.f32.mrb[12].mxu1  ;;  %v4535_v28 = vpop.eup %4534  ;;  %v1137_v29 = vadd.f32 1.0, %v4531_v11  ;;  %v783_v31 = vadd.f32 %v5353_v42, %v782_v22  ;;  %7292 = vst [vmem:[#allocation22_spill] sm:$0xff] %v5426_v34  ;;  %v1283_v45 = vmul.f32 %v5391_v56, %v1226_v10  ;;  %v3924_v34 = vld [vmem:[#allocation7 + $0x2] ss:$0 sm:$0xff] }
 0x1bb   : > { %v4205_v33 = vpop.f32.mrb[13].mxu0  ;;  %v4277_v36 = vpop.f32.mrb[13].mxu1  ;;  %v5432_v37 = vadd.f32 %v5408_v12, %v1493_v17  ;;  %v1173_v46 = vadd.f32 1.0, %v4533_v16  ;;  %v1138_v52 = vadd.f32 1.0, %v4535_v28  ;;  %v1794_v58 = vrot.slane %v1697_v18, 1 }
 0x1bc   : > { %v1494_v38 = vmul.f32 %v5365_v19, %v1427_v21  ;;  %v785_v44 = vpop.f32.mrb[14].mxu0  ;;  %v5438_v48 = vpop.f32.mrb[14].mxu1  ;;  %v1698_v49 = vmul.f32 %v5368_v23, %v1427_v21  ;;  %v5442_v50 = vmul.f32 %v5370_v24, %v1427_v21  ;;  %v1191_v51 = vmul.f32 %v1137_v29, %v5384_v43  ;;  %v3923_v43 = vld [vmem:[#allocation7 + $0x1] ss:$0 sm:$0xff] }
 0x1bd   : > { %v4206_v53 = vpop.f32.mrb[15].mxu0  ;;  %v4278_v55 = vpop.f32.mrb[15].mxu1  ;;  %v1033_v61 = vmul.f32 0.70710677, %v783_v31  ;;  %v786_v59 = vadd.f32 %v5353_v42, %v785_v44  ;;  %v1192_v2 = vmul.f32 %v1138_v52, %v976_v1  ;;  %v5452_v4 = vmul.f32 0.5, %v783_v31 }
 0x1be   : > { %v4537_v57 = vpop.eup %4536  ;;  %v5448_v62 = vadd.f32 %v5408_v12, %v1494_v38  ;;  %v1795_v63 = vrot.slane %v1698_v49, 1  ;;  %v1248_v0 = vmul.f32 %v5435_v40, %v1191_v51  ;;  %v1227_v17 = vmul.f32 %v1173_v46, %v5389_v54 }
 0x1bf   : > { %4542 = verf.f32 %v1033_v61  ;;  %v1034_v6 = vmul.f32 0.70710677, %v786_v59  ;;  %v1249_v16 = vmul.f32 %v5382_v41, %v1192_v2  ;;  %v5460_v21 = vmul.f32 0.5, %v786_v59 }
 0x1c0   : > { %v4539_v7 = vpop.eup %4538  ;;  %v5455_v10 = vsel %vm1793_vm1, %v1794_v58, %v1795_v63  ;;  %v1428_v11 = vmul.f32 %v5387_v47, %v1248_v0  ;;  %v1174_v22 = vadd.f32 1.0, %v4537_v57  ;;  %v5473_v51 = vmul.f32 %v5403_v9, %v1283_v45 }
 0x1c1   : > { %v1139_v18 = vadd.f32 1.0, %v4539_v7  ;;  %4544 = verf.f32 %v1034_v6  ;;  %v790_v1 = vpop.f32.mrb[16].mxu0  ;;  %v5462_v28 = vpop.f32.mrb[16].mxu1  ;;  %v5468_v36 = vmul.f32 %v3923_v43, %v1249_v16  ;;  %v5476_v52 = vmul.f32 0.5, %v5429_v35 }
 0x1c2   : > { %v1699_v31 = vmul.f32 %v5368_v23, %v1428_v11  ;;  %v5466_v33 = vmul.f32 %v5370_v24, %v1428_v11  ;;  %v791_v47 = vadd.f32 %v5353_v42, %v790_v1  ;;  %v4209_v38 = vpop.f32.mrb[17].mxu0  ;;  %v4281_v54 = vpop.f32.mrb[17].mxu1  ;;  %7293 = vst [vmem:[#allocation23_spill] sm:$0xff] %v5473_v51  ;;  %v1228_v6 = vmul.f32 %v1174_v22, %v5397_v5 }
 0x1c3   : > { %v4541_v29 = vpop.eup %4540  ;;  %v1193_v44 = vmul.f32 %v1139_v18, %v5401_v8  ;;  %v793_v49 = vpop.f32.mrb[18].mxu0  ;;  %v1495_v57 = vmul.f32 %v5365_v19, %v5468_v36  ;;  %v5484_v58 = vmul.f32 %v5368_v23, %v5468_v36  ;;  %v1284_v8 = vmul.f32 %v5435_v40, %v1227_v17 }
 0x1c4   : > { %v1140_v46 = vadd.f32 1.0, %v4541_v29  ;;  %v5478_v53 = vpop.f32.mrb[18].mxu1  ;;  %v1797_v55 = vrot.slane %v1699_v31, 1  ;;  %v4210_v61 = vpop.f32.mrb[19].mxu0  ;;  %v5489_v45 = vmul.f32 %v5370_v24, %v5468_v36  ;;  %v5498_v16 = vmul.f32 0.5, %v791_v47 }
 0x1c5   : > { %7294 = vst [vmem:[#allocation24_spill] sm:$0xff] %v5484_v58  ;;  %v4282_v59 = vpop.f32.mrb[19].mxu1  ;;  %v1250_v0 = vmul.f32 %v5391_v56, %v1193_v44  ;;  %v1035_v18 = vmul.f32 0.70710677, %v791_v47  ;;  %v5501_v17 = vadd.f32 %v5408_v12, %v1495_v57  ;;  %v5510_v22 = vmul.f32 %v5403_v9, %v1284_v8  ;;  %v3925_v58 = vld [vmem:[#allocation7 + $0x3] ss:$0 sm:$0xff] }
 0x1c6   : > { %7295 = vst [vmem:[#allocation25_spill] sm:$0xff] %v5489_v45  ;;  %v1194_v2 = vmul.f32 %v1140_v46, %v5410_v13  ;;  %v5495_v7 = vsel %vm1793_vm1, %v1795_v63, %v1797_v55  ;;  %v794_v13 = vadd.f32 %v5353_v42, %v793_v49  ;;  %v1068_v46 = vmul.f32 0.70710677, %v5429_v35 }
 0x1c7   : > { %7296 = vst [vmem:[#allocation26_spill] sm:$0xff] %v5501_v17  ;;  %v5503_v1 = vmul.f32 %v3923_v43, %v1250_v0  ;;  %4546 = verf.f32 %v1035_v18  ;;  %7297 = vst [vmem:[#allocation27_spill] sm:$0xff] %v5510_v22  ;;  %v1285_v8 = vmul.f32 %v5382_v41, %v1228_v6 }
 0x1c8   : > { %v1251_v29 = vmul.f32 %v5435_v40, %v1194_v2  ;;  %v1036_v57 = vmul.f32 0.70710677, %v794_v13  ;;  %v5530_v18 = vmul.f32 0.5, %v794_v13 }
 0x1c9   : > { %v4543_v31 = vpop.eup %4542  ;;  %v1496_v47 = vmul.f32 %v5365_v19, %v5503_v1  ;;  %v5516_v54 = vmul.f32 %v5368_v23, %v5503_v1  ;;  %v798_v44 = vpop.f32.mrb[20].mxu0  ;;  %v5523_v55 = vmul.f32 %v5370_v24, %v5503_v1 }
 0x1ca   : > { %v1431_v38 = vmul.f32 %v3923_v43, %v1251_v29  ;;  %v5519_v49 = vpop.f32.mrb[20].mxu1  ;;  %v1141_v9 = vadd.f32 1.0, %v4543_v31  ;;  %v4213_v61 = vpop.f32.mrb[21].mxu0  ;;  %v799_v35 = vadd.f32 %v5353_v42, %v798_v44  ;;  %4548 = verf.f32 %v1036_v57 }
 0x1cb   : > { %7298 = vst [vmem:[#allocation28_spill] sm:$0xff] %v5516_v54  ;;  %7299 = vst [vmem:[#allocation29_spill] sm:$0xff] %v5523_v55  ;;  %v4285_v59 = vpop.f32.mrb[21].mxu1  ;;  %v4545_v43 = vpop.eup %4544  ;;  %v5536_v31 = vadd.f32 %v5408_v12, %v1496_v47  ;;  %v7219_v13 = vrot.slane %v5516_v54, 1  ;;  %v7218_v22 = vrot.slane %v5523_v55, 2  ;;  %4550 = verf.f32 %v5414_v15 }
 0x1cc   : > { %v1702_v0 = vmul.f32 %v5368_v23, %v1431_v38  ;;  %v5528_v2 = vmul.f32 %v5372_v26, %v1431_v38  ;;  %v801_v29 = vpop.f32.mrb[22].mxu0  ;;  %v5533_v63 = vpop.f32.mrb[22].mxu1  ;;  %v2435_v61 = vmul.f32 %v5370_v24, %v1431_v38  ;;  %v5540_v6 = vmul.f32 %v5374_v27, %v1431_v38 }
 0x1cd   : > { %7300 = vst [vmem:[#allocation30_spill] sm:$0xff] %v5536_v31  ;;  %v1195_v59 = vmul.f32 %v1141_v9, %v5452_v4  ;;  %v4214_v5 = vpop.f32.mrb[23].mxu0  ;;  %v4286_v11 = vpop.f32.mrb[23].mxu1  ;;  %v1142_v3 = vadd.f32 1.0, %v4545_v43  ;;  %v5560_v43 = vmul.f32 0.5, %v799_v35  ;;  %v930_v15 = vadd.f32 %v5353_v42, %v5438_v48 }
 0x1ce   : > { %v1802_v60 = vrot.slane %v1702_v0, 1  ;;  %v2535_v47 = vrot.slane %v2435_v61, 2  ;;  %v1037_v11 = vmul.f32 0.70710677, %v799_v35  ;;  %v802_v5 = vadd.f32 %v5353_v42, %v801_v29  ;;  %v5562_v0 = vld [vmem:[#allocation7 + $0xd] ss:$0 sm:$0xff] }
 0x1cf   : > { %v1252_v51 = vmul.f32 %v5382_v41, %v1195_v59  ;;  %v1196_v4 = vmul.f32 %v1142_v3, %v5460_v21  ;;  %v927_v35 = vadd.f32 %v5353_v42, %v5422_v25  ;;  %v935_v57 = vadd.f32 %v5353_v42, %v5462_v28 }
 0x1d0   : > { %v5550_v38 = vsel %vm1793_vm1, %v7219_v13, %v1802_v60  ;;  %v5557_v9 = vsel %vm2526_vm2, %v7218_v22, %v2535_v47  ;;  %4552 = verf.f32 %v1037_v11  ;;  %v1038_v21 = vmul.f32 0.70710677, %v802_v5 }
 0x1d1   : > { %7301 = vst [vmem:[#allocation31_spill] sm:$0xff] %v5550_v38  ;;  %7302 = vst [vmem:[#allocation32_spill] sm:$0xff] %v5557_v9  ;;  %v5565_v60 = vmul.f32 %v3924_v34, %v1252_v51  ;;  %v1253_v3 = vmul.f32 %v5391_v56, %v1196_v4  ;;  %v806_v29 = vpop.f32.mrb[24].mxu0  ;;  %v5568_v61 = vpop.f32.mrb[24].mxu1  ;;  %4554 = verf.f32 %v1068_v46  ;;  %v5576_v11 = vmul.f32 %v5562_v0, %v1285_v8 }
 0x1d2   : > { %v4547_v59 = vpop.eup %4546  ;;  %v807_v47 = vadd.f32 %v5353_v42, %v806_v29  ;;  %v4217_v22 = vpop.f32.mrb[25].mxu0  ;;  %4556 = verf.f32 %v1038_v21  ;;  %v5584_v46 = vmul.f32 0.5, %v802_v5  ;;  %v1069_v8 = vmul.f32 0.70710677, %v927_v35 }
 0x1d3   : > { %v4289_v51 = vpop.f32.mrb[25].mxu1  ;;  %v1143_v13 = vadd.f32 1.0, %v4547_v59  ;;  %v809_v4 = vpop.f32.mrb[26].mxu0  ;;  %7303 = vst [vmem:[#allocation33_spill] sm:$0xff] %v5576_v11  ;;  %v5582_v22 = vmul.f32 %v3924_v34, %v1253_v3  ;;  %v1070_v11 = vmul.f32 0.70710677, %v930_v15 }
 0x1d4   : > { %v5580_v44 = vpop.f32.mrb[26].mxu1  ;;  %v1039_v25 = vmul.f32 0.70710677, %v807_v47  ;;  %v810_v29 = vadd.f32 %v5353_v42, %v809_v4  ;;  %v4218_v48 = vpop.f32.mrb[27].mxu0  ;;  %v5588_v59 = vmul.f32 0.5, %v807_v47  ;;  %v5590_v28 = vmul.f32 0.5, %v927_v35 }
 0x1d5   : > { %v4290_v51 = vpop.f32.mrb[27].mxu1  ;;  %v1197_v21 = vmul.f32 %v1143_v13, %v5498_v16  ;;  %v5592_v9 = vmul.f32 0.5, %v930_v15  ;;  %v4549_v3 = vpop.eup %4548  ;;  %v1071_v45 = vmul.f32 0.70710677, %v935_v57  ;;  %v938_v4 = vadd.f32 %v5353_v42, %v5478_v53 }
 0x1d6   : > { %4558 = verf.f32 %v1039_v25  ;;  %v1040_v24 = vmul.f32 0.70710677, %v810_v29  ;;  %v1144_v48 = vadd.f32 1.0, %v4549_v3  ;;  %v5597_v16 = vmul.f32 0.5, %v810_v29 }
 0x1d7   : > { %v1254_v5 = vmul.f32 %v5435_v40, %v1197_v21  ;;  %4560 = verf.f32 %v1069_v8  ;;  %v943_v13 = vadd.f32 %v5353_v42, %v5519_v49  ;;  %v5603_v15 = vmul.f32 0.5, %v935_v57  ;;  %v4551_v21 = vpop.eup %4550 }
 0x1d8   : > { %4562 = verf.f32 %v1040_v24  ;;  %v1072_v25 = vmul.f32 0.70710677, %v938_v4  ;;  %v1198_v8 = vmul.f32 %v1144_v48, %v5530_v18  ;;  %v5611_v24 = vadd.f32 %v5353_v42, %v5533_v63 }
 0x1d9   : > { %v5601_v47 = vmul.f32 %v3924_v34, %v1254_v5  ;;  %v814_v35 = vpop.f32.mrb[28].mxu0  ;;  %4564 = verf.f32 %v1070_v11  ;;  %v5605_v51 = vpop.f32.mrb[28].mxu1  ;;  %v1175_v3 = vadd.f32 1.0, %v4551_v21  ;;  %v5617_v5 = vmul.f32 0.5, %v938_v4 }
 0x1da   : > { %v815_v53 = vadd.f32 %v5353_v42, %v814_v35  ;;  %v4221_v29 = vpop.f32.mrb[29].mxu0  ;;  %4566 = verf.f32 %v1071_v45  ;;  %v4293_v34 = vpop.f32.mrb[29].mxu1  ;;  %v1073_v55 = vmul.f32 0.70710677, %v943_v13  ;;  %v1255_v45 = vmul.f32 %v5382_v41, %v1198_v8 }
 0x1db   : > { %v4553_v49 = vpop.eup %4552  ;;  %v5615_v57 = vmul.f32 %v5372_v26, %v5601_v47  ;;  %v817_v11 = vpop.f32.mrb[30].mxu0  ;;  %4568 = verf.f32 %v1072_v25  ;;  %v1229_v31 = vmul.f32 %v1175_v3, %v5412_v14  ;;  %v5624_v4 = vmul.f32 0.5, %v943_v13 }
 0x1dc   : > { %v5619_v18 = vpop.f32.mrb[30].mxu1  ;;  %v4555_v48 = vpop.eup %4554  ;;  %v1145_v35 = vadd.f32 1.0, %v4553_v49  ;;  %v1041_v29 = vmul.f32 0.70710677, %v815_v53  ;;  %v818_v54 = vadd.f32 %v5353_v42, %v817_v11  ;;  %v5627_v23 = vmul.f32 0.5, %v815_v53 }
 0x1dd   : > { %7304 = vst [vmem:[#allocation34_spill] sm:$0xff] %v5615_v57  ;;  %v4222_v63 = vpop.f32.mrb[31].mxu0  ;;  %v4294_v34 = vpop.f32.mrb[31].mxu1  ;;  %v1176_v21 = vadd.f32 1.0, %v4555_v48  ;;  %v1286_v25 = vmul.f32 %v5391_v56, %v1229_v31  ;;  %v5632_v11 = vmul.f32 %v3925_v58, %v1255_v45 }
 0x1de   : > { %v4557_v38 = vpop.eup %4556  ;;  %v1199_v17 = vmul.f32 %v1145_v35, %v5560_v43  ;;  %4570 = verf.f32 %v1041_v29  ;;  %v1042_v49 = vmul.f32 0.70710677, %v818_v54  ;;  %v5636_v53 = vmul.f32 0.5, %v818_v54 }
 0x1df   : > { %v1146_v12 = vadd.f32 1.0, %v4557_v38  ;;  %v1230_v63 = vmul.f32 %v1176_v21, %v5476_v52  ;;  %4572 = verf.f32 %v1073_v55 }
 0x1e0   : > { %v4559_v34 = vpop.eup %4558  ;;  %v1256_v14 = vmul.f32 %v5391_v56, %v1199_v17  ;;  %4574 = verf.f32 %v1042_v49 }
 0x1e1   : > { %v1200_v13 = vmul.f32 %v1146_v12, %v5584_v46  ;;  %v4561_v43 = vpop.eup %4560  ;;  %v1147_v38 = vadd.f32 1.0, %v4559_v34  ;;  %v1287_v3 = vmul.f32 %v5435_v40, %v1230_v63  ;;  %v822_v48 = vpop.f32.mrb[32].mxu0  ;;  %v5644_v12 = vmul.f32 0.5, %v5611_v24 }
 0x1e2   : > { %v5639_v35 = vpop.f32.mrb[32].mxu1  ;;  %v4563_v31 = vpop.eup %4562  ;;  %v1177_v45 = vadd.f32 1.0, %v4561_v43  ;;  %v823_v29 = vadd.f32 %v5353_v42, %v822_v48  ;;  %v5646_v54 = vmul.f32 %v3925_v58, %v1256_v14  ;;  %v5650_v63 = vmul.f32 %v5562_v0, %v1286_v25  ;;  %v3926_v48 = vld [vmem:[#allocation7 + $0x4] ss:$0 sm:$0xff] }
 0x1e3   : > { %v1257_v52 = vmul.f32 %v5435_v40, %v1200_v13  ;;  %v4225_v17 = vpop.f32.mrb[33].mxu0  ;;  %v4297_v55 = vpop.f32.mrb[33].mxu1  ;;  %v1201_v21 = vmul.f32 %v1147_v38, %v5588_v59  ;;  %v1148_v49 = vadd.f32 1.0, %v4563_v31 }
 0x1e4   : > { %v4565_v46 = vpop.eup %4564  ;;  %7305 = vst [vmem:[#allocation35_spill] sm:$0xff] %v5646_v54  ;;  %7306 = vst [vmem:[#allocation36_spill] sm:$0xff] %v5650_v63  ;;  %v825_v34 = vpop.f32.mrb[34].mxu0  ;;  %v5657_v17 = vmul.f32 %v5562_v0, %v1287_v3  ;;  %v1231_v55 = vmul.f32 %v1177_v45, %v5590_v28  ;;  %v1043_v14 = vmul.f32 0.70710677, %v823_v29 }
 0x1e5   : > { %v5652_v8 = vpop.f32.mrb[34].mxu1  ;;  %v4567_v13 = vpop.eup %4566  ;;  %v5654_v43 = vmul.f32 %v3925_v58, %v1257_v52  ;;  %v1258_v59 = vmul.f32 %v5382_v41, %v1201_v21  ;;  %v1202_v25 = vmul.f32 %v1148_v49, %v5597_v16  ;;  %v1178_v38 = vadd.f32 1.0, %v4565_v46 }
 0x1e6   : > { %7307 = vst [vmem:[#allocation37_spill] sm:$0xff] %v5652_v8  ;;  %7308 = vst [vmem:[#allocation38_spill] sm:$0xff] %v5657_v17  ;;  %v4226_v57 = vpop.f32.mrb[35].mxu0  ;;  %v4298_v54 = vpop.f32.mrb[35].mxu1  ;;  %v826_v31 = vadd.f32 %v5353_v42, %v825_v34  ;;  %4576 = verf.f32 %v1043_v14  ;;  %v1179_v0 = vadd.f32 1.0, %v4567_v13  ;;  %v989_v52 = vmul.f32 0.5, %v823_v29 }
 0x1e7   : > { %v4569_v63 = vpop.eup %4568  ;;  %v5665_v58 = vmul.f32 %v5376_v30, %v5654_v43  ;;  %v1074_v3 = vmul.f32 0.70710677, %v5611_v24  ;;  %v5668_v28 = vmul.f32 %v3926_v48, %v1258_v59  ;;  %v1288_v57 = vmul.f32 %v5382_v41, %v1231_v55  ;;  %v3936_v54 = vld [vmem:[#allocation7 + $0xe] ss:$0 sm:$0xff] }
 0x1e8   : > { %v1232_v45 = vmul.f32 %v1178_v38, %v5592_v9  ;;  %v4571_v16 = vpop.eup %4570  ;;  %v1259_v46 = vmul.f32 %v5391_v56, %v1202_v25  ;;  %v5673_v21 = vmul.f32 0.5, %v826_v31  ;;  %v1044_v49 = vmul.f32 0.70710677, %v826_v31 }
 0x1e9   : > { %7309 = vst [vmem:[#allocation39_spill] sm:$0xff] %v5668_v28  ;;  %v1233_v34 = vmul.f32 %v1179_v0, %v5603_v15  ;;  %v1149_v14 = vadd.f32 1.0, %v4571_v16  ;;  %v1180_v59 = vadd.f32 1.0, %v4569_v63  ;;  %v830_v17 = vpop.f32.mrb[36].mxu0  ;;  %v4573_v55 = vpop.eup %4572  ;;  %v951_v38 = vadd.f32 %v5353_v42, %v5568_v61 }
 0x1ea   : > { %v1289_v24 = vmul.f32 %v5391_v56, %v1232_v45  ;;  %4578 = verf.f32 %v1044_v49  ;;  %v831_v29 = vadd.f32 %v5353_v42, %v830_v17  ;;  %v4229_v25 = vpop.f32.mrb[37].mxu0  ;;  %v4575_v31 = vpop.eup %4574  ;;  %v5683_v0 = vmul.f32 %v3936_v54, %v1288_v57 }
 0x1eb   : > { %v1290_v9 = vmul.f32 %v5435_v40, %v1233_v34  ;;  %v1203_v15 = vmul.f32 %v1149_v14, %v5627_v23  ;;  %v1234_v16 = vmul.f32 %v1180_v59, %v5617_v5  ;;  %v1181_v45 = vadd.f32 1.0, %v4573_v55  ;;  %v833_v63 = vpop.f32.mrb[38].mxu0  ;;  %v5690_v34 = vld [vmem:[#allocation7 + $0xf] ss:$0 sm:$0xff] }
 0x1ec   : > { %7310 = vst [vmem:[#allocation40_spill] sm:$0xff] %v5683_v0  ;;  %v5686_v13 = vmul.f32 %v3926_v48, %v1259_v46  ;;  %v1150_v49 = vadd.f32 1.0, %v4575_v31  ;;  %v5688_v28 = vmul.f32 %v3936_v54, %v1289_v24  ;;  %v1045_v17 = vmul.f32 0.70710677, %v831_v29  ;;  %v4230_v25 = vpop.f32.mrb[39].mxu0 }
 0x1ed   : > { %v1260_v61 = vmul.f32 %v5435_v40, %v1203_v15  ;;  %v1291_v8 = vmul.f32 %v5382_v41, %v1234_v16  ;;  %v1235_v23 = vmul.f32 %v1181_v45, %v5624_v4  ;;  %v834_v57 = vadd.f32 %v5353_v42, %v833_v63 }
 0x1ee   : > { %7311 = vst [vmem:[#allocation41_spill] sm:$0xff] %v5688_v28  ;;  %v1204_v5 = vmul.f32 %v1150_v49, %v5636_v53  ;;  %v5697_v14 = vmul.f32 %v3936_v54, %v1290_v9  ;;  %4580 = verf.f32 %v1045_v17  ;;  %v1075_v46 = vmul.f32 0.70710677, %v951_v38 }
 0x1ef   : > { %v5699_v24 = vmul.f32 %v3926_v48, %v1260_v61  ;;  %v5702_v59 = vmul.f32 %v5690_v34, %v1291_v8  ;;  %v991_v55 = vmul.f32 0.5, %v831_v29  ;;  %v5704_v31 = vmul.f32 0.5, %v951_v38 }
 0x1f0   : > { %7312 = vst [vmem:[#allocation42_spill] sm:$0xff] %v5697_v14  ;;  %v4577_v15 = vpop.eup %4576  ;;  %v1292_v16 = vmul.f32 %v5391_v56, %v1235_v23  ;;  %v1046_v4 = vmul.f32 0.70710677, %v834_v57  ;;  %4582 = verf.f32 %v1074_v3  ;;  %v1561_v53 = vmul.f32 %v5378_v32, %v5468_v36  ;;  %v3927_v3 = vld [vmem:[#allocation7 + $0x5] ss:$0 sm:$0xff] }
 0x1f1   : > { %7313 = vst [vmem:[#allocation43_spill] sm:$0xff] %v5699_v24  ;;  %7314 = vst [vmem:[#allocation44_spill] sm:$0xff] %v5702_v59  ;;  %v1151_v54 = vadd.f32 1.0, %v4577_v15  ;;  %v5709_v9 = vmul.f32 0.5, %v834_v57  ;;  %v838_v45 = vpop.f32.mrb[40].mxu0  ;;  %4584 = verf.f32 %v1075_v46  ;;  %v1562_v8 = vmul.f32 %v5378_v32, %v5503_v1 }
 0x1f2   : > { %v1261_v48 = vmul.f32 %v5382_v41, %v1204_v5  ;;  %4586 = verf.f32 %v1046_v4  ;;  %v839_v29 = vadd.f32 %v5353_v42, %v838_v45  ;;  %v4233_v38 = vpop.f32.mrb[41].mxu0  ;;  %v1593_v63 = vadd.f32 %v1561_v53, %v5432_v37  ;;  %v3928_v24 = vld [vmem:[#allocation7 + $0x6] ss:$0 sm:$0xff] }
 0x1f3   : > { %v1205_v49 = vmul.f32 %v1151_v54, %v989_v52  ;;  %v841_v17 = vpop.f32.mrb[42].mxu0  ;;  %v1594_v25 = vadd.f32 %v1562_v8, %v5448_v62  ;;  %v1629_v61 = vmul.f32 %v5380_v39, %v5565_v60  ;;  %v1630_v23 = vmul.f32 %v5380_v39, %v5582_v22 }
 0x1f4   : > { %v4579_v57 = vpop.eup %4578  ;;  %v5722_v5 = vmul.f32 %v5690_v34, %v1292_v16  ;;  %v1047_v46 = vmul.f32 0.70710677, %v839_v29  ;;  %v842_v15 = vadd.f32 %v5353_v42, %v841_v17  ;;  %v4234_v4 = vpop.f32.mrb[43].mxu0  ;;  %v1942_v37 = vmul.f32 %v5372_v26, %v5468_v36 }
 0x1f5   : > { %v1262_v52 = vmul.f32 %v5391_v56, %v1205_v49  ;;  %v1152_v62 = vadd.f32 1.0, %v4579_v57  ;;  %v1661_v53 = vadd.f32 %v1629_v61, %v1593_v63  ;;  %v1662_v54 = vadd.f32 %v1630_v23, %v1594_v25 }
 0x1f6   : > { %7315 = vst [vmem:[#allocation45_spill] sm:$0xff] %v5722_v5  ;;  %v5728_v45 = vmul.f32 %v3927_v3, %v1261_v48  ;;  %4588 = verf.f32 %v1047_v46  ;;  %v1048_v8 = vmul.f32 0.70710677, %v842_v15  ;;  %v1943_v16 = vmul.f32 %v5372_v26, %v5503_v1 }
 0x1f7   : > { %v1206_v38 = vmul.f32 %v1152_v62, %v5673_v21  ;;  %v993_v14 = vmul.f32 0.5, %v839_v29  ;;  %v1906_v17 = vadd.f32 %v5455_v10, %v1661_v53  ;;  %v1907_v4 = vadd.f32 %v5495_v7, %v1662_v54 }
 0x1f8   : > { %7316 = vst [vmem:[#allocation46_spill] sm:$0xff] %v5728_v45  ;;  %v4581_v28 = vpop.eup %4580  ;;  %4590 = verf.f32 %v1048_v8  ;;  %v2038_v49 = vrot.slane %v1942_v37, 1  ;;  %v2039_v57 = vrot.slane %v1943_v16, 1  ;;  %v2186_v48 = vmul.f32 %v5376_v30, %v5565_v60 }
 0x1f9   : > { %v5737_v63 = vmul.f32 %v3927_v3, %v1262_v52  ;;  %v1153_v25 = vadd.f32 1.0, %v4581_v28  ;;  %v5739_v61 = vmul.f32 0.5, %v842_v15  ;;  %v846_v23 = vpop.f32.mrb[44].mxu0  ;;  %v2187_v21 = vmul.f32 %v5376_v30, %v5582_v22 }
 0x1fa   : > { %v4583_v29 = vpop.eup %4582  ;;  %v847_v10 = vadd.f32 %v5353_v42, %v846_v23  ;;  %v2040_v7 = vsel %vm1793_vm1, %v2038_v49, %v2039_v57  ;;  %v7318_v46 = vrot.slane %v5528_v2, 1  ;;  %v2188_v52 = vmul.f32 %v5376_v30, %v5601_v47  ;;  %v4237_v62 = vpop.f32.mrb[45].mxu0 }
 0x1fb   : > { %7317 = vst [vmem:[#allocation47_spill] sm:$0xff] %v5737_v63  ;;  %v4585_v28 = vpop.eup %4584  ;;  %v1263_v15 = vmul.f32 %v5435_v40, %v1206_v38  ;;  %v1207_v53 = vmul.f32 %v1153_v25, %v991_v55  ;;  %v1182_v54 = vadd.f32 1.0, %v4583_v29  ;;  %v2150_v8 = vadd.f32 %v2040_v7, %v1906_v17  ;;  %v5751_v16 = vpop.f32.mrb[46].mxu0 }
 0x1fc   : > { %v2042_v37 = vsel %vm1793_vm1, %v2039_v57, %v7318_v46  ;;  %v4587_v0 = vpop.eup %4586  ;;  %v1183_v42 = vadd.f32 1.0, %v4585_v28  ;;  %v1049_v23 = vmul.f32 0.70710677, %v847_v10  ;;  %v2282_v63 = vrot.slane %v2186_v48, 1  ;;  %v4238_v2 = vpop.f32.mrb[47].mxu0 }
 0x1fd   : > { %v2151_v49 = vadd.f32 %v2042_v37, %v1907_v4  ;;  %v1264_v57 = vmul.f32 %v5382_v41, %v1207_v53  ;;  %v1154_v46 = vadd.f32 1.0, %v4587_v0  ;;  %v1236_v45 = vmul.f32 %v1182_v54, %v5644_v12 }
 0x1fe   : > { %v2283_v62 = vrot.slane %v2187_v21, 1  ;;  %v1237_v38 = vmul.f32 %v1183_v42, %v5704_v31  ;;  %4592 = verf.f32 %v1049_v23  ;;  %v2285_v55 = vrot.slane %v2188_v52, 1 }
 0x1ff   : > { %v7319_v17 = vrot.slane %v5442_v50, 2  ;;  %v7320_v25 = vrot.slane %v5419_v20, 2  ;;  %v5761_v4 = vmul.f32 %v3927_v3, %v1263_v15  ;;  %v1208_v48 = vmul.f32 %v1154_v46, %v5709_v9 }
 0x200   : > { %v1293_v0 = vmul.f32 %v5435_v40, %v1236_v45  ;;  %v2284_v12 = vsel %vm1793_vm1, %v2282_v63, %v2283_v62  ;;  %v4589_v21 = vpop.eup %4588  ;;  %v995_v7 = vmul.f32 0.5, %v847_v10  ;;  %v2286_v31 = vsel %vm1793_vm1, %v2283_v62, %v2285_v55  ;;  %v5778_v45 = vld [vmem:[%s7199_s5 + $0x8] ss:$0 sm:$0xff]  ;;  %v5792_v62 = vld [vmem:[#allocation7 + $0x10] ss:$0 sm:$0xff] }
 0x201   : > { %v2529_v29 = vsel %vm2526_vm2, %v7320_v25, %v7319_v17  ;;  %v2394_v37 = vadd.f32 %v2284_v12, %v2150_v8  ;;  %v7321_v52 = vrot.slane %v5466_v33, 2  ;;  %v7322_v28 = vmov %v7319_v17  ;;  %v5780_v10 = vpop.f32.mrb[48].mxu0 }
 0x202   : > { %v5772_v53 = vmul.f32 %v3928_v24, %v1264_v57  ;;  %v1155_v3 = vadd.f32 1.0, %v4589_v21  ;;  %v1294_v9 = vmul.f32 %v5382_v41, %v1237_v38  ;;  %v2395_v63 = vadd.f32 %v2286_v31, %v2151_v49  ;;  %v4591_v15 = vpop.eup %4590  ;;  %v4241_v42 = vpop.f32.mrb[49].mxu0 }
 0x203   : > { %v2531_v20 = vsel %vm2526_vm2, %v7322_v28, %v7321_v52  ;;  %v1265_v33 = vmul.f32 %v5391_v56, %v1208_v48  ;;  %v2639_v54 = vadd.f32 %v2529_v29, %v2394_v37  ;;  %v2675_v50 = vmul.f32 %v5374_v27, %v5468_v36  ;;  %v5790_v49 = vpop.f32.mrb[50].mxu0  ;;  %v5805_v29 = vld [vmem:[%s7198_s4] ss:$0 sm:$0xff] }
 0x204   : > { %7323 = vst [vmem:[#allocation48_spill] sm:$0xff] %v5772_v53  ;;  %v2676_v8 = vmul.f32 %v5374_v27, %v5503_v1  ;;  %v5788_v23 = vmul.f32 %v5690_v34, %v1293_v0  ;;  %v1209_v2 = vmul.f32 %v1155_v3, %v993_v14  ;;  %v1156_v57 = vadd.f32 1.0, %v4591_v15  ;;  %v4242_v1 = vpop.f32.mrb[51].mxu0  ;;  %v7369_v53 = vld [vmem:[#allocation20_spill] sm:$0xff] }
 0x205   : > { %v2640_v46 = vadd.f32 %v2531_v20, %v2395_v63  ;;  %v2771_v38 = vrot.slane %v2675_v50, 2  ;;  %v2919_v17 = vmul.f32 %v5778_v45, %v5565_v60  ;;  %v2920_v36 = vmul.f32 %v5778_v45, %v5582_v22 }
 0x206   : > { %7324 = vst [vmem:[#allocation49_spill] sm:$0xff] %v5788_v23  ;;  %v2772_v55 = vrot.slane %v2676_v8, 2  ;;  %v1266_v25 = vmul.f32 %v5435_v40, %v1209_v2  ;;  %v1210_v34 = vmul.f32 %v1156_v57, %v5739_v61  ;;  %v2921_v14 = vmul.f32 %v5778_v45, %v5601_v47 }
 0x207   : > { %v954_v48 = vadd.f32 %v5805_v29, %v5580_v44  ;;  %v7325_v12 = vrot.slane %v5540_v6, 2  ;;  %v3015_v31 = vrot.slane %v2919_v17, 2  ;;  %v3016_v37 = vrot.slane %v2920_v36, 2  ;;  %v5822_v6 = vld [vmem:[#allocation7 + $0x7] ss:$0 sm:$0xff] }
 0x208   : > { %v2773_v0 = vsel %vm2526_vm2, %v2771_v38, %v2772_v55  ;;  %v5813_v61 = vmul.f32 %v3928_v24, %v1265_v33  ;;  %v5816_v52 = vmul.f32 %v5792_v62, %v1294_v9  ;;  %v4593_v3 = vpop.eup %4592  ;;  %v1267_v63 = vmul.f32 %v5382_v41, %v1210_v34 }
 0x209   : > { %v2775_v21 = vsel %vm2526_vm2, %v2772_v55, %v7325_v12  ;;  %v2883_v28 = vadd.f32 %v2773_v0, %v2639_v54  ;;  %v3017_v44 = vsel %vm2526_vm2, %v3015_v31, %v3016_v37  ;;  %v3018_v15 = vrot.slane %v2921_v14, 2  ;;  %v5826_v9 = vpop.f32.mrb[52].mxu0 }
 0x20a   : > { %7326 = vst [vmem:[#allocation50_spill] sm:$0xff] %v5813_v61  ;;  %7327 = vst [vmem:[#allocation51_spill] sm:$0xff] %v5816_v52  ;;  %v2884_v20 = vadd.f32 %v2775_v21, %v2640_v46  ;;  %v1076_v50 = vmul.f32 0.70710677, %v954_v48  ;;  %v5820_v8 = vmul.f32 %v3928_v24, %v1266_v25  ;;  %v1157_v42 = vadd.f32 1.0, %v4593_v3  ;;  %v4245_v24 = vpop.f32.mrb[53].mxu0 }
 0x20b   : > { %v3127_v2 = vadd.f32 %v3017_v44, %v2883_v28  ;;  %v850_v33 = vadd.f32 %v5805_v29, %v5751_v16  ;;  %v3019_v54 = vsel %vm2526_vm2, %v3016_v37, %v3018_v15  ;;  %v959_v41 = vadd.f32 %v5805_v29, %v5605_v51  ;;  %v5833_v36 = vpop.f32.mrb[54].mxu0  ;;  %v7330_v37 = vld [vmem:[#allocation19_spill] sm:$0xff] }
 0x20c   : > { %7328 = vst [vmem:[#allocation52_spill] sm:$0xff] %v5820_v8  ;;  %4594 = verf.f32 %v1076_v50  ;;  %v962_v57 = vadd.f32 %v5805_v29, %v5619_v18  ;;  %v1211_v46 = vmul.f32 %v1157_v42, %v995_v7  ;;  %v3128_v38 = vadd.f32 %v3019_v54, %v2884_v20  ;;  %v4246_v18 = vpop.f32.mrb[55].mxu0  ;;  %v7331_v20 = vld [vmem:[#allocation21_spill] sm:$0xff] }
 0x20d   : > { %v3191_v55 = vmul.f32 0.70710677, %v3127_v2  ;;  %v1022_v17 = vmul.f32 0.5, %v954_v48  ;;  %v5836_v16 = vmul.f32 %v5822_v6, %v1267_v63  ;;  %v5838_v1 = vmul.f32 0.5, %v3127_v2 }
 0x20e   : > { %v1050_v25 = vmul.f32 0.70710677, %v850_v33  ;;  %v1077_v34 = vmul.f32 0.70710677, %v959_v41  ;;  %v3192_v14 = vmul.f32 0.70710677, %v3128_v38  ;;  %v1268_v7 = vmul.f32 %v5391_v56, %v1211_v46 }
 0x20f   : > { %7329 = vst [vmem:[#allocation53_spill] sm:$0xff] %v5836_v16  ;;  %4596 = verf.f32 %v3191_v55  ;;  %v5840_v51 = vmul.f32 0.5, %v850_v33  ;;  %v5842_v0 = vmul.f32 0.5, %v959_v41  ;;  %v1078_v48 = vmul.f32 0.70710677, %v962_v57 }
 0x210   : > { %4598 = verf.f32 %v1050_v25  ;;  %v1523_v12 = vmul.f32 %v5365_v19, %v5702_v59  ;;  %v5847_v21 = vmul.f32 0.5, %v3128_v38  ;;  %v1591_v31 = vmul.f32 %v5378_v32, %v5816_v52 }
 0x211   : > { %4600 = verf.f32 %v3192_v14  ;;  %v1742_v28 = vmul.f32 %v7330_v37, %v5702_v59  ;;  %v1743_v56 = vmul.f32 %v7330_v37, %v5722_v5  ;;  %v855_v63 = vadd.f32 %v5805_v29, %v5780_v10  ;;  %v5862_v42 = vpop.f32.mrb[56].mxu0 }
 0x212   : > { %4602 = verf.f32 %v1077_v34  ;;  %v1555_v3 = vadd.f32 %v7331_v20, %v1523_v12  ;;  %v5858_v44 = vmul.f32 0.5, %v962_v57  ;;  %v967_v50 = vadd.f32 %v5805_v29, %v5639_v35  ;;  %v4249_v24 = vpop.f32.mrb[57].mxu0 }
 0x213   : > { %4604 = verf.f32 %v1078_v48  ;;  %v1869_v15 = vrot.slane %v1742_v28, 1  ;;  %v5865_v2 = vmul.f32 %v5822_v6, %v1268_v7  ;;  %v1870_v54 = vrot.slane %v1743_v56, 1  ;;  %v5875_v35 = vpop.f32.mrb[58].mxu0  ;;  %v7334_v24 = vld [vmem:[#allocation30_spill] sm:$0xff] }
 0x214   : > { %v5867_v33 = vadd.f32 %v1591_v31, %v1555_v3  ;;  %v1051_v41 = vmul.f32 0.70710677, %v855_v63  ;;  %v5869_v46 = vmul.f32 0.5, %v855_v63  ;;  %v1079_v10 = vmul.f32 0.70710677, %v967_v50  ;;  %v4250_v18 = vpop.f32.mrb[59].mxu0 }
 0x215   : > { %7332 = vst [vmem:[#allocation19_spill] sm:$0xff] %v5865_v2  ;;  %v1524_v57 = vmul.f32 %v5365_v19, %v5722_v5  ;;  %v1744_v38 = vmul.f32 %v7330_v37, %v5788_v23  ;;  %v5878_v25 = vsel %vm1793_vm1, %v1869_v15, %v1870_v54  ;;  %v858_v34 = vadd.f32 %v5805_v29, %v5790_v49  ;;  %v7333_v3 = vld [vmem:[#allocation26_spill] sm:$0xff]  ;;  %v7336_v5 = vld [vmem:[#allocation28_spill] sm:$0xff] }
 0x216   : > { %v4595_v55 = vpop.eup %4594  ;;  %4606 = verf.f32 %v1051_v41  ;;  %v1563_v14 = vmul.f32 %v5378_v32, %v5565_v60  ;;  %v1564_v12 = vmul.f32 %v5378_v32, %v5582_v22  ;;  %v5886_v31 = vmul.f32 0.5, %v967_v50 }
 0x217   : > { %v1184_v7 = vadd.f32 1.0, %v4595_v55  ;;  %4608 = verf.f32 %v1079_v10  ;;  %v1872_v48 = vrot.slane %v1744_v38, 1  ;;  %v1052_v28 = vmul.f32 0.70710677, %v858_v34  ;;  %v7335_v10 = vld [vmem:[#allocation35_spill] sm:$0xff] }
 0x218   : > { %v1595_v56 = vadd.f32 %v1563_v14, %v7333_v3  ;;  %v1631_v63 = vmul.f32 %v5380_v39, %v5632_v11  ;;  %v1596_v55 = vadd.f32 %v1564_v12, %v7334_v24  ;;  %v1632_v38 = vmul.f32 %v5380_v39, %v7335_v10  ;;  %v7338_v3 = vld [vmem:[#allocation24_spill] sm:$0xff] }
 0x219   : > { %v4597_v15 = vpop.eup %4596  ;;  %v1238_v49 = vmul.f32 %v1184_v7, %v1022_v17  ;;  %v5892_v41 = vsel %vm1793_vm1, %v1870_v54, %v1872_v48  ;;  %v1556_v50 = vadd.f32 %v7331_v20, %v1524_v57  ;;  %v7337_v14 = vrot.slane %v7336_v5, 1  ;;  %v5903_v7 = vld [vmem:[#allocation5 + $0x8] sm:$0xff] }
 0x21a   : > { %v4599_v18 = vpop.eup %4598  ;;  %v3255_v52 = vadd.f32 1.0, %v4597_v15  ;;  %v1663_v23 = vadd.f32 %v1631_v63, %v1595_v56  ;;  %v7339_v59 = vrot.slane %v7338_v3, 1  ;;  %v1664_v12 = vadd.f32 %v1632_v38, %v1596_v55  ;;  %v5908_v15 = vpop.f32.mrb[60].mxu0  ;;  %v7341_v38 = vld [vmem:[#allocation31_spill] sm:$0xff] }
 0x21b   : > { %v4601_v17 = vpop.eup %4600  ;;  %v1295_v54 = vmul.f32 %v5903_v7, %v1238_v49  ;;  %v1158_v48 = vadd.f32 1.0, %v4599_v18  ;;  %v1945_v24 = vmul.f32 %v5372_v26, %v5565_v60  ;;  %4610 = verf.f32 %v1052_v28 }
 0x21c   : > { %v1801_v2 = vsel %vm1793_vm1, %v7339_v59, %v7337_v14  ;;  %v4603_v20 = vpop.eup %4602  ;;  %v3256_v57 = vadd.f32 1.0, %v4601_v17  ;;  %v1946_v56 = vmul.f32 %v5372_v26, %v5582_v22  ;;  %v4253_v59 = vpop.f32.mrb[61].mxu0  ;;  %v1909_v18 = vadd.f32 %v7341_v38, %v1664_v12 }
 0x21d   : > { %v1908_v5 = vadd.f32 %v1801_v2, %v1663_v23  ;;  %v4605_v63 = vpop.eup %4604  ;;  %v5913_v14 = vmul.f32 %v5792_v62, %v1295_v54  ;;  %v1212_v49 = vmul.f32 %v1158_v48, %v5840_v51  ;;  %v1185_v55 = vadd.f32 1.0, %v4603_v20  ;;  %v5917_v3 = vpop.f32.mrb[62].mxu0 }
 0x21e   : > { %v3287_v16 = vmul.f32 %v3255_v52, %v5838_v1  ;;  %v3288_v28 = vmul.f32 %v3256_v57, %v5847_v21  ;;  %v1186_v23 = vadd.f32 1.0, %v4605_v63  ;;  %v2044_v2 = vrot.slane %v1946_v56, 1  ;;  %v4254_v17 = vpop.f32.mrb[63].mxu0  ;;  %v5928_v21 = vld [vmem:[#allocation5 + $0x10] sm:$0xff] }
 0x21f   : > { %7340 = vst [vmem:[#allocation21_spill] sm:$0xff] %v5913_v14  ;;  %v1269_v59 = vmul.f32 %v5435_v40, %v1212_v49  ;;  %v1239_v8 = vmul.f32 %v1185_v55, %v5842_v0  ;;  %v1592_v54 = vmul.f32 %v5378_v32, %v5913_v14  ;;  %v2043_v51 = vrot.slane %v1945_v24, 1  ;;  %v5931_v40 = vld [vmem:[#allocation7 + $0x11] ss:$0 sm:$0xff] }
 0x220   : > { %v4607_v48 = vpop.eup %4606  ;;  %v3319_v20 = vpack.c.bf16 %v3288_v28, %v3287_v16  ;;  %v1240_v12 = vmul.f32 %v1186_v23, %v5858_v44  ;;  %v998_v38 = vmul.f32 0.5, %v858_v34  ;;  %v2189_v52 = vmul.f32 %v5376_v30, %v5632_v11  ;;  %v5937_v44 = vld [vmem:[#allocation5] sm:$0xff] }
 0x221   : > { %v4609_v1 = vpop.eup %4608  ;;  %v1296_v57 = vmul.f32 %v5928_v21, %v1239_v8  ;;  %v1159_v0 = vadd.f32 1.0, %v4607_v48  ;;  %v1624_v56 = vadd.f32 %v1592_v54, %v1556_v50  ;;  %v2045_v63 = vsel %vm1793_vm1, %v2043_v51, %v2044_v2  ;;  %v7343_v49 = vld [vmem:[#allocation34_spill] sm:$0xff]  ;;  %v5947_v54 = vpop.f32.mrb[64].mxu0  ;;  %v7347_v48 = vld [vmem:[#allocation29_spill] sm:$0xff] }
 0x222   : > { %4315 = vmatprep.mubr.bf16.mxu1 %v3319_v20  ;;  %v5935_v16 = vmul.f32 %v5822_v6, %v1269_v59  ;;  %v1297_v34 = vmul.f32 %v5937_v44, %v1240_v12  ;;  %v1187_v24 = vadd.f32 1.0, %v4609_v1  ;;  %v7344_v55 = vrot.slane %v7343_v49, 1  ;;  %7346 = vst [vmem:[#allocation35_spill] sm:$0xff] %v5947_v54  ;;  %v7349_v12 = vld [vmem:[#allocation25_spill] sm:$0xff]  ;;  %v4257_v1 = vpop.f32.mrb[65].mxu0 }
 0x223   : > { %v5944_v8 = vmul.f32 %v5792_v62, %v1296_v57  ;;  %v1213_v50 = vmul.f32 %v1159_v0, %v5869_v46  ;;  %v2152_v23 = vadd.f32 %v2045_v63, %v1908_v5  ;;  %v2190_v51 = vmul.f32 %v5376_v30, %v7335_v10  ;;  %v5969_v0 = vpop.f32.mrb[66].mxu0 }
 0x224   : > { %7342 = vst [vmem:[#allocation26_spill] sm:$0xff] %v5935_v16  ;;  %v2047_v28 = vsel %vm1793_vm1, %v2044_v2, %v7344_v55  ;;  %v1477_v6 = vmul.f32 %v5931_v40, %v1297_v34  ;;  %v1241_v59 = vmul.f32 %v1187_v24, %v5886_v31  ;;  %v7348_v20 = vrot.slane %v7347_v48, 2  ;;  %7353 = vst [vmem:[#allocation31_spill] sm:$0xff] %v5969_v0 }
 0x225   : > { %7345 = vst [vmem:[#allocation30_spill] sm:$0xff] %v5944_v8  ;;  %v2153_v17 = vadd.f32 %v2047_v28, %v1909_v18  ;;  %v7350_v2 = vrot.slane %v7349_v12, 2  ;;  %v5960_v46 = vmul.f32 %v5372_v26, %v5944_v8  ;;  %v5964_v5 = vmul.f32 %v5376_v30, %v5944_v8  ;;  %v5967_v18 = vld [vmem:[#allocation7 + $0x8] ss:$0 sm:$0xff]  ;;  %v4611_v63 = vpop.eup %4610  ;;  %v4258_v28 = vpop.f32.mrb[67].mxu0 }
 0x226   : > { %v1270_v31 = vmul.f32 %v5937_v44, %v1213_v50  ;;  %v2287_v57 = vrot.slane %v2189_v52, 1  ;;  %v1659_v34 = vmul.f32 %v5380_v39, %v1477_v6  ;;  %v5973_v24 = vmul.f32 %v5376_v30, %v1477_v6 }
 0x227   : > { %v2534_v62 = vsel %vm2526_vm2, %v7350_v2, %v7348_v20  ;;  %7351 = vst [vmem:[#allocation28_spill] sm:$0xff] %v5960_v46  ;;  %7352 = vst [vmem:[#allocation24_spill] sm:$0xff] %v5964_v5  ;;  %v5976_v49 = vmul.f32 %v5778_v45, %v1477_v6  ;;  %v1298_v55 = vmul.f32 %v5903_v7, %v1241_v59  ;;  %v1160_v1 = vadd.f32 1.0, %v4611_v63 }
 0x228   : > { %7354 = vst [vmem:[#allocation34_spill] sm:$0xff] %v5973_v24  ;;  %v5983_v52 = vmul.f32 %v5374_v27, %v5944_v8  ;;  %v2678_v20 = vmul.f32 %v5374_v27, %v5565_v60  ;;  %v1691_v12 = vadd.f32 %v1659_v34, %v5867_v33  ;;  %v5990_v6 = vmul.f32 %v5967_v18, %v1270_v31 }
 0x229   : > { %7355 = vst [vmem:[#allocation29_spill] sm:$0xff] %v5976_v49  ;;  %v1478_v59 = vmul.f32 %v5931_v40, %v1298_v55  ;;  %v2288_v28 = vrot.slane %v2190_v51, 1  ;;  %v2679_v48 = vmul.f32 %v5374_v27, %v5582_v22  ;;  %v2680_v50 = vmul.f32 %v5374_v27, %v5601_v47  ;;  %v6012_v24 = vpop.f32.mrb[68].mxu0 }
 0x22a   : > { %7356 = vst [vmem:[#allocation25_spill] sm:$0xff] %v5983_v52  ;;  %7357 = vst [vmem:[#allocation54_spill] sm:$0xff] %v5990_v6  ;;  %v5998_v46 = vadd.f32 %v5878_v25, %v1691_v12  ;;  %v1214_v51 = vmul.f32 %v1160_v1, %v998_v38  ;;  %v7360_v2 = vrot.slane %v5665_v58, 1  ;;  %v2776_v49 = vrot.slane %v2678_v20, 2  ;;  %v7364_v20 = vld [vmem:[#allocation32_spill] sm:$0xff] }
 0x22b   : > { %v1660_v34 = vmul.f32 %v5380_v39, %v1478_v59  ;;  %v6003_v31 = vmul.f32 %v5376_v30, %v1478_v59  ;;  %v6006_v55 = vmul.f32 %v5778_v45, %v1478_v59  ;;  %v2289_v63 = vsel %vm1793_vm1, %v2287_v57, %v2288_v28  ;;  %7361 = vst [vmem:[#allocation57_spill] sm:$0xff] %v6012_v24 }
 0x22c   : > { %7358 = vst [vmem:[#allocation55_spill] sm:$0xff] %v5998_v46  ;;  %v2291_v52 = vsel %vm1793_vm1, %v2288_v28, %v7360_v2  ;;  %v2396_v33 = vadd.f32 %v2289_v63, %v2152_v23  ;;  %v4261_v46 = vpop.f32.mrb[69].mxu0  ;;  %v1271_v8 = vmul.f32 %v5903_v7, %v1214_v51  ;;  %v2777_v59 = vrot.slane %v2679_v48, 2 }
 0x22d   : > { %7359 = vst [vmem:[#allocation56_spill] sm:$0xff] %v6006_v55  ;;  %v1692_v25 = vadd.f32 %v1660_v34, %v1624_v56  ;;  %v2397_v5 = vadd.f32 %v2291_v52, %v2153_v17  ;;  %v2779_v14 = vrot.slane %v2680_v50, 2  ;;  %v6016_v38 = vpop.f32.mrb[70].mxu0  ;;  %v2922_v2 = vmul.f32 %v5778_v45, %v5632_v11 }
 0x22e   : > { %7362 = vst [vmem:[#allocation58_spill] sm:$0xff] %v6016_v38  ;;  %v2641_v58 = vadd.f32 %v2534_v62, %v2396_v33  ;;  %v2923_v56 = vmul.f32 %v5778_v45, %v7335_v10  ;;  %v4262_v23 = vpop.f32.mrb[71].mxu0  ;;  %v2778_v17 = vsel %vm2526_vm2, %v2776_v49, %v2777_v59  ;;  %v7365_v33 = vld [vmem:[#allocation37_spill] sm:$0xff]  ;;  %v863_v51 = vadd.f32 %v5805_v29, %v5826_v9 }
 0x22f   : > { %v6019_v57 = vadd.f32 %v5892_v41, %v1692_v25  ;;  %v2642_v1 = vadd.f32 %v7364_v20, %v2397_v5  ;;  %v2780_v48 = vsel %vm2526_vm2, %v2777_v59, %v2779_v14  ;;  %v2924_v41 = vmul.f32 %v5778_v45, %v5654_v43 }
 0x230   : > { %v2885_v50 = vadd.f32 %v2778_v17, %v2641_v58  ;;  %v3020_v62 = vrot.slane %v2922_v2, 2  ;;  %v3021_v52 = vrot.slane %v2923_v56, 2  ;;  %v970_v34 = vadd.f32 %v5805_v29, %v7365_v33 }
 0x231   : > { %7363 = vst [vmem:[#allocation59_spill] sm:$0xff] %v6019_v57  ;;  %v2886_v28 = vadd.f32 %v2780_v48, %v2642_v1  ;;  %v866_v5 = vadd.f32 %v5805_v29, %v5833_v36  ;;  %v6038_v49 = vmul.f32 %v5967_v18, %v1271_v8  ;;  %v3023_v63 = vrot.slane %v2924_v41, 2  ;;  %v7368_v57 = vld [vmem:[#allocation43_spill] sm:$0xff] }
 0x232   : > { %v3022_v14 = vsel %vm2526_vm2, %v3020_v62, %v3021_v52  ;;  %v871_v25 = vadd.f32 %v5805_v29, %v5862_v42  ;;  %v6043_v58 = vmul.f32 0.5, %v970_v34  ;;  %v1080_v2 = vmul.f32 0.70710677, %v970_v34 }
 0x233   : > { %7366 = vst [vmem:[#allocation32_spill] sm:$0xff] %v6038_v49  ;;  %v3129_v59 = vadd.f32 %v3022_v14, %v2885_v50  ;;  %v1497_v56 = vmul.f32 %v5365_v19, %v5565_v60  ;;  %v3024_v9 = vsel %vm2526_vm2, %v3021_v52, %v3023_v63  ;;  %v6048_v23 = vmul.f32 0.5, %v863_v51  ;;  %v6064_v52 = vld [vmem:[%s7200_s6] ss:$0 sm:$0xff] }
 0x234   : > { %v1053_v36 = vmul.f32 0.70710677, %v863_v51  ;;  %v1054_v8 = vmul.f32 0.70710677, %v866_v5  ;;  %v6050_v20 = vadd.f32 %v3024_v9, %v2886_v28  ;;  %4612 = verf.f32 %v1080_v2 }
 0x235   : > { %v3193_v1 = vmul.f32 0.70710677, %v3129_v59  ;;  %v6052_v17 = vmul.f32 0.5, %v866_v5  ;;  %v6054_v42 = vmul.f32 0.5, %v3129_v59  ;;  %v1055_v48 = vmul.f32 0.70710677, %v871_v25 }
 0x236   : > { %4614 = verf.f32 %v1053_v36  ;;  %v1498_v50 = vmul.f32 %v5365_v19, %v5582_v22  ;;  %v3194_v41 = vmul.f32 0.70710677, %v6050_v20  ;;  %v6059_v62 = vmul.f32 0.5, %v871_v25  ;;  %v7367_v5 = vld [vmem:[#allocation39_spill] sm:$0xff] }
 0x237   : > { %4616 = verf.f32 %v3193_v1  ;;  %v1529_v28 = vadd.f32 %v6064_v52, %v1497_v56  ;;  %v1565_v34 = vmul.f32 %v5378_v32, %v5632_v11  ;;  %v1566_v51 = vmul.f32 %v5378_v32, %v7335_v10 }
 0x238   : > { %4618 = verf.f32 %v1054_v8  ;;  %v1530_v33 = vadd.f32 %v6064_v52, %v1498_v50  ;;  %v1633_v14 = vmul.f32 %v5380_v39, %v7367_v5  ;;  %v1634_v63 = vmul.f32 %v5380_v39, %v5686_v13 }
 0x239   : > { %4620 = verf.f32 %v3194_v41  ;;  %v1703_v25 = vmul.f32 %v7330_v37, %v5565_v60  ;;  %v1597_v59 = vadd.f32 %v1565_v34, %v1529_v28  ;;  %v1704_v56 = vmul.f32 %v7330_v37, %v5582_v22 }
 0x23a   : > { %4622 = verf.f32 %v1055_v48  ;;  %v1598_v2 = vadd.f32 %v1566_v51, %v1530_v33  ;;  %v1705_v9 = vmul.f32 %v7330_v37, %v5601_v47  ;;  %v1948_v8 = vmul.f32 %v5372_v26, %v5632_v11 }
 0x23b   : > { %v1804_v36 = vrot.slane %v1703_v25, 1  ;;  %v1949_v1 = vmul.f32 %v5372_v26, %v7335_v10  ;;  %v1665_v50 = vadd.f32 %v1633_v14, %v1597_v59  ;;  %v1805_v46 = vrot.slane %v1704_v56, 1 }
 0x23c   : > { %v1666_v41 = vadd.f32 %v1634_v63, %v1598_v2  ;;  %v1950_v48 = vmul.f32 %v5372_v26, %v5654_v43  ;;  %v1807_v28 = vrot.slane %v1705_v9, 1  ;;  %v2048_v33 = vrot.slane %v1948_v8, 1 }
 0x23d   : > { %v2049_v34 = vrot.slane %v1949_v1, 1  ;;  %v2192_v51 = vmul.f32 %v5376_v30, %v7367_v5  ;;  %v1806_v25 = vsel %vm1793_vm1, %v1804_v36, %v1805_v46  ;;  %v2193_v55 = vmul.f32 %v5376_v30, %v5686_v13 }
 0x23e   : > { %v2051_v12 = vrot.slane %v1950_v48, 1  ;;  %v2194_v14 = vmul.f32 %v5376_v30, %v7368_v57  ;;  %v4613_v63 = vpop.eup %4612  ;;  %v1808_v59 = vsel %vm1793_vm1, %v1805_v46, %v1807_v28  ;;  %v1910_v2 = vadd.f32 %v1806_v25, %v1665_v50 }
 0x23f   : > { %v2050_v56 = vsel %vm1793_vm1, %v2048_v33, %v2049_v34  ;;  %v2292_v9 = vrot.slane %v2192_v51, 1  ;;  %v1188_v1 = vadd.f32 1.0, %v4613_v63  ;;  %v1911_v49 = vadd.f32 %v1808_v59, %v1666_v41 }
 0x240   : > { %v4615_v8 = vpop.eup %4614  ;;  %v2052_v6 = vsel %vm1793_vm1, %v2049_v34, %v2051_v12  ;;  %v2293_v36 = vrot.slane %v2193_v55, 1  ;;  %v2154_v38 = vadd.f32 %v2050_v56, %v1910_v2  ;;  %v2295_v61 = vrot.slane %v2194_v14, 1 }
 0x241   : > { %v4617_v48 = vpop.eup %4616  ;;  %v1161_v16 = vadd.f32 1.0, %v4615_v8  ;;  %v2436_v24 = vmul.f32 %v7369_v53, %v5565_v60  ;;  %v1242_v46 = vmul.f32 %v1188_v1, %v6043_v58  ;;  %v2155_v50 = vadd.f32 %v2052_v6, %v1911_v49 }
 0x242   : > { %v4619_v0 = vpop.eup %4618  ;;  %v3257_v54 = vadd.f32 1.0, %v4617_v48  ;;  %v2294_v28 = vsel %vm1793_vm1, %v2292_v9, %v2293_v36  ;;  %v2296_v55 = vsel %vm1793_vm1, %v2293_v36, %v2295_v61  ;;  %v3162_v25 = vmul.f32 0.5, %v6050_v20  ;;  %v6115_v20 = vld [vmem:[#allocation7 + $0x9] ss:$0 sm:$0xff] }
 0x243   : > { %v4621_v33 = vpop.eup %4620  ;;  %v1215_v41 = vmul.f32 %v1161_v16, %v6048_v23  ;;  %v1162_v51 = vadd.f32 1.0, %v4619_v0  ;;  %v2398_v12 = vadd.f32 %v2294_v28, %v2154_v38  ;;  %v1299_v60 = vmul.f32 %v5928_v21, %v1242_v46 }
 0x244   : > { %v4623_v34 = vpop.eup %4622  ;;  %v3258_v14 = vadd.f32 1.0, %v4621_v33  ;;  %v2399_v63 = vadd.f32 %v2296_v55, %v2155_v50  ;;  %v2437_v58 = vmul.f32 %v7369_v53, %v5582_v22  ;;  %v3289_v16 = vmul.f32 %v3257_v54, %v6054_v42 }
 0x245   : > { %v1272_v59 = vmul.f32 %v5928_v21, %v1215_v41  ;;  %v1216_v6 = vmul.f32 %v1162_v51, %v6052_v17  ;;  %v1163_v49 = vadd.f32 1.0, %v4623_v34  ;;  %v1479_v61 = vmul.f32 %v5931_v40, %v1299_v60 }
 0x246   : > { %v3290_v0 = vmul.f32 %v3258_v14, %v3162_v25  ;;  %v2438_v38 = vmul.f32 %v7369_v53, %v5601_v47  ;;  %v2537_v56 = vrot.slane %v2436_v24, 2  ;;  %v2538_v17 = vrot.slane %v2437_v58, 2 }
 0x247   : > { %v1273_v23 = vmul.f32 %v5937_v44, %v1216_v6  ;;  %v1217_v2 = vmul.f32 %v1163_v49, %v6059_v62  ;;  %v2233_v8 = vmul.f32 %v5376_v30, %v1479_v61  ;;  %v6120_v22 = vmul.f32 %v5967_v18, %v1272_v59 }
 0x248   : > { %v3320_v9 = vpack.c.bf16 %v3290_v0, %v3289_v16  ;;  %v2540_v54 = vrot.slane %v2438_v38, 2  ;;  %v6123_v40 = vmul.f32 %v5778_v45, %v1479_v61  ;;  %v2539_v42 = vsel %vm2526_vm2, %v2537_v56, %v2538_v17 }
 0x249   : > { %v1274_v47 = vmul.f32 %v5903_v7, %v1217_v2  ;;  %v2681_v1 = vmul.f32 %v5374_v27, %v5632_v11  ;;  %v2360_v24 = vrot.slane %v2233_v8, 1  ;;  %v6130_v62 = vmul.f32 %v6115_v20, %v1273_v23 }
 0x24a   : > { %4316 = vmatmul.mubr.bf16.vlgmr.msra.gmra.mrb[36].mxu1 %v3320_v9  ;;  %v2541_v36 = vsel %vm2526_vm2, %v2538_v17, %v2540_v54  ;;  %v2643_v18 = vadd.f32 %v2539_v42, %v2398_v12  ;;  %v2682_v50 = vmul.f32 %v5374_v27, %v7335_v10  ;;  %v2683_v28 = vmul.f32 %v5374_v27, %v5654_v43 }
 0x24b   : > { %v6134_v48 = vmul.f32 %v6115_v20, %v1274_v47  ;;  %v2644_v46 = vadd.f32 %v2541_v36, %v2399_v63  ;;  %v7370_v33 = vrot.slane %v6003_v31, 1  ;;  %v2781_v51 = vrot.slane %v2681_v1, 2 }
 0x24c   : > { %v2925_v55 = vmul.f32 %v5778_v45, %v7367_v5  ;;  %v2926_v12 = vmul.f32 %v5778_v45, %v5686_v13  ;;  %v2782_v34 = vrot.slane %v2682_v50, 2  ;;  %v2784_v25 = vrot.slane %v2683_v28, 2 }
 0x24d   : > { %v6143_v41 = vsel %vm1793_vm1, %v7370_v33, %v2360_v24  ;;  %v2927_v14 = vmul.f32 %v5778_v45, %v7368_v57  ;;  %v874_v60 = vadd.f32 %v5805_v29, %v5875_v35  ;;  %v879_v6 = vadd.f32 %v5805_v29, %v5908_v15 }
 0x24e   : > { %v3025_v63 = vrot.slane %v2925_v55, 2  ;;  %v3026_v59 = vrot.slane %v2926_v12, 2  ;;  %v882_v49 = vadd.f32 %v5805_v29, %v5917_v3  ;;  %v2783_v58 = vsel %vm2526_vm2, %v2781_v51, %v2782_v34  ;;  %v7371_v51 = vld [vmem:[#allocation46_spill] sm:$0xff]  ;;  %v7372_v12 = vld [vmem:[#allocation47_spill] sm:$0xff] }
 0x24f   : > { %v2785_v16 = vsel %vm2526_vm2, %v2782_v34, %v2784_v25  ;;  %v3028_v0 = vrot.slane %v2927_v14, 2  ;;  %v6159_v61 = vmul.f32 0.5, %v874_v60  ;;  %v2887_v38 = vadd.f32 %v2783_v58, %v2643_v18 }
 0x250   : > { %v2888_v23 = vadd.f32 %v2785_v16, %v2644_v46  ;;  %v3027_v2 = vsel %vm2526_vm2, %v3025_v63, %v3026_v59  ;;  %v1056_v35 = vmul.f32 0.70710677, %v874_v60  ;;  %v6163_v17 = vmul.f32 0.5, %v879_v6 }
 0x251   : > { %v3029_v56 = vsel %vm2526_vm2, %v3026_v59, %v3028_v0  ;;  %v1057_v15 = vmul.f32 0.70710677, %v879_v6  ;;  %v6165_v9 = vmul.f32 0.5, %v882_v49  ;;  %v3131_v3 = vadd.f32 %v3027_v2, %v2887_v38 }
 0x252   : > { %v3132_v8 = vadd.f32 %v3029_v56, %v2888_v23  ;;  %4624 = verf.f32 %v1056_v35  ;;  %v1058_v54 = vmul.f32 0.70710677, %v882_v49  ;;  %v1499_v47 = vmul.f32 %v5365_v19, %v5632_v11 }
 0x253   : > { %4626 = verf.f32 %v1057_v15  ;;  %v1500_v42 = vmul.f32 %v5365_v19, %v7335_v10  ;;  %v1567_v1 = vmul.f32 %v5378_v32, %v7367_v5  ;;  %v6173_v24 = vmul.f32 0.5, %v3131_v3 }
 0x254   : > { %v6175_v36 = vmul.f32 0.5, %v3132_v8  ;;  %v3195_v18 = vmul.f32 0.70710677, %v3131_v3  ;;  %v3196_v46 = vmul.f32 0.70710677, %v3132_v8  ;;  %4628 = verf.f32 %v1058_v54 }
 0x255   : > { %v1531_v50 = vadd.f32 %v6064_v52, %v1499_v47  ;;  %v1532_v28 = vadd.f32 %v6064_v52, %v1500_v42  ;;  %v1568_v33 = vmul.f32 %v5378_v32, %v5686_v13  ;;  %v1635_v55 = vmul.f32 %v5380_v39, %v7371_v51 }
 0x256   : > { %4630 = verf.f32 %v3195_v18  ;;  %v1636_v34 = vmul.f32 %v5380_v39, %v7372_v12  ;;  %v1706_v25 = vmul.f32 %v7330_v37, %v5632_v11  ;;  %v1707_v63 = vmul.f32 %v7330_v37, %v7335_v10 }
 0x257   : > { %4632 = verf.f32 %v3196_v46  ;;  %v1599_v14 = vadd.f32 %v1567_v1, %v1531_v50  ;;  %v1600_v60 = vadd.f32 %v1568_v33, %v1532_v28  ;;  %v1708_v59 = vmul.f32 %v7330_v37, %v5654_v43 }
 0x258   : > { %v1809_v6 = vrot.slane %v1706_v25, 1  ;;  %v1951_v49 = vmul.f32 %v5372_v26, %v7367_v5  ;;  %v1952_v58 = vmul.f32 %v5372_v26, %v5686_v13  ;;  %v1810_v38 = vrot.slane %v1707_v63, 1 }
 0x259   : > { %v1667_v16 = vadd.f32 %v1635_v55, %v1599_v14  ;;  %v1668_v0 = vadd.f32 %v1636_v34, %v1600_v60  ;;  %v1953_v23 = vmul.f32 %v5372_v26, %v7368_v57  ;;  %v1812_v2 = vrot.slane %v1708_v59, 1 }
 0x25a   : > { %v2053_v35 = vrot.slane %v1951_v49, 1  ;;  %v2054_v56 = vrot.slane %v1952_v58, 1  ;;  %v2195_v15 = vmul.f32 %v5376_v30, %v7371_v51  ;;  %v1811_v3 = vsel %vm1793_vm1, %v1809_v6, %v1810_v38 }
 0x25b   : > { %v2056_v8 = vrot.slane %v1953_v23, 1  ;;  %v2196_v54 = vmul.f32 %v5376_v30, %v7372_v12  ;;  %v2197_v47 = vmul.f32 %v5376_v30, %v5761_v4  ;;  %v1813_v1 = vsel %vm1793_vm1, %v1810_v38, %v1812_v2 }
 0x25c   : > { %v4625_v42 = vpop.eup %4624  ;;  %v1912_v18 = vadd.f32 %v1811_v3, %v1667_v16  ;;  %v2055_v46 = vsel %vm1793_vm1, %v2053_v35, %v2054_v56  ;;  %v2297_v50 = vrot.slane %v2195_v15, 1  ;;  %v1913_v55 = vadd.f32 %v1813_v1, %v1668_v0 }
 0x25d   : > { %v4627_v28 = vpop.eup %4626  ;;  %v1164_v33 = vadd.f32 1.0, %v4625_v42  ;;  %v2057_v34 = vsel %vm1793_vm1, %v2054_v56, %v2056_v8  ;;  %v2298_v25 = vrot.slane %v2196_v54, 1  ;;  %v2300_v63 = vrot.slane %v2197_v47, 1  ;;  %v6216_v8 = vld [vmem:[#allocation7 + $0xa] ss:$0 sm:$0xff] }
 0x25e   : > { %v1165_v14 = vadd.f32 1.0, %v4627_v28  ;;  %v2156_v60 = vadd.f32 %v2055_v46, %v1912_v18  ;;  %v2439_v59 = vmul.f32 %v7369_v53, %v5632_v11  ;;  %v4629_v6 = vpop.eup %4628  ;;  %v2157_v58 = vadd.f32 %v2057_v34, %v1913_v55 }
 0x25f   : > { %v1218_v49 = vmul.f32 %v1164_v33, %v6159_v61  ;;  %v2299_v16 = vsel %vm1793_vm1, %v2297_v50, %v2298_v25  ;;  %v2440_v38 = vmul.f32 %v7369_v53, %v7335_v10  ;;  %v1166_v2 = vadd.f32 1.0, %v4629_v6 }
 0x260   : > { %v4631_v23 = vpop.eup %4630  ;;  %v1219_v0 = vmul.f32 %v1165_v14, %v6163_v17  ;;  %v2301_v35 = vsel %vm1793_vm1, %v2298_v25, %v2300_v63  ;;  %v2400_v56 = vadd.f32 %v2299_v16, %v2156_v60  ;;  %v2441_v54 = vmul.f32 %v7369_v53, %v5654_v43 }
 0x261   : > { %v4633_v15 = vpop.eup %4632  ;;  %v3259_v3 = vadd.f32 1.0, %v4631_v23  ;;  %v1275_v11 = vmul.f32 %v5928_v21, %v1218_v49  ;;  %v2401_v61 = vadd.f32 %v2301_v35, %v2157_v58  ;;  %v1220_v42 = vmul.f32 %v1166_v2, %v6165_v9 }
 0x262   : > { %v3260_v47 = vadd.f32 1.0, %v4633_v15  ;;  %v1276_v10 = vmul.f32 %v5937_v44, %v1219_v0  ;;  %v2542_v17 = vrot.slane %v2439_v59, 2  ;;  %v2543_v46 = vrot.slane %v2440_v38, 2  ;;  %v7373_v38 = vld [vmem:[#allocation35_spill] sm:$0xff] }
 0x263   : > { %v3291_v1 = vmul.f32 %v3259_v3, %v6173_v24  ;;  %v6224_v18 = vmul.f32 %v6115_v20, %v1275_v11  ;;  %v2545_v50 = vrot.slane %v2441_v54, 2  ;;  %v1277_v43 = vmul.f32 %v5903_v7, %v1220_v42  ;;  %v7374_v0 = vld [vmem:[#allocation31_spill] sm:$0xff]  ;;  %v7375_v3 = vld [vmem:[#allocation57_spill] sm:$0xff] }
 0x264   : > { %v3292_v28 = vmul.f32 %v3260_v47, %v6175_v36  ;;  %v6228_v33 = vmul.f32 %v6216_v8, %v1276_v10  ;;  %v2684_v55 = vmul.f32 %v5374_v27, %v7367_v5  ;;  %v2544_v9 = vsel %vm2526_vm2, %v2542_v17, %v2543_v46 }
 0x265   : > { %v2546_v34 = vsel %vm2526_vm2, %v2543_v46, %v2545_v50  ;;  %v2685_v20 = vmul.f32 %v5374_v27, %v5686_v13  ;;  %v2686_v24 = vmul.f32 %v5374_v27, %v7368_v57  ;;  %v6240_v36 = vmul.f32 %v6216_v8, %v1277_v43 }
 0x266   : > { %v3321_v25 = vpack.c.bf16 %v3292_v28, %v3291_v1  ;;  %v2645_v14 = vadd.f32 %v2544_v9, %v2400_v56  ;;  %v2646_v60 = vadd.f32 %v2546_v34, %v2401_v61  ;;  %v2786_v63 = vrot.slane %v2684_v55, 2 }
 0x267   : > { %v2787_v59 = vrot.slane %v2685_v20, 2  ;;  %v2789_v6 = vrot.slane %v2686_v24, 2  ;;  %v2928_v49 = vmul.f32 %v5778_v45, %v7371_v51  ;;  %v2929_v58 = vmul.f32 %v5778_v45, %v7372_v12 }
 0x268   : > { %4319 = vmatprep.mubr.bf16.mxu1 %v3321_v25  ;;  %v2930_v16 = vmul.f32 %v5778_v45, %v5761_v4  ;;  %v887_v23 = vadd.f32 %v5805_v29, %v7373_v38  ;;  %v890_v2 = vadd.f32 %v5805_v29, %v7374_v0  ;;  %v895_v11 = vadd.f32 %v5805_v29, %v7375_v3 }
 0x269   : > { %v2788_v35 = vsel %vm2526_vm2, %v2786_v63, %v2787_v59  ;;  %v2790_v56 = vsel %vm2526_vm2, %v2787_v59, %v2789_v6  ;;  %v3030_v15 = vrot.slane %v2928_v49, 2  ;;  %v3031_v47 = vrot.slane %v2929_v58, 2  ;;  %v7376_v49 = vld [vmem:[#allocation48_spill] sm:$0xff] }
 0x26a   : > { %v2889_v61 = vadd.f32 %v2788_v35, %v2645_v14  ;;  %v2890_v54 = vadd.f32 %v2790_v56, %v2646_v60  ;;  %v3033_v10 = vrot.slane %v2930_v16, 2  ;;  %v6256_v42 = vmul.f32 0.5, %v887_v23  ;;  %v7377_v16 = vld [vmem:[#allocation50_spill] sm:$0xff] }
 0x26b   : > { %v1059_v45 = vmul.f32 0.70710677, %v887_v23  ;;  %v6258_v17 = vmul.f32 0.5, %v890_v2  ;;  %v1060_v1 = vmul.f32 0.70710677, %v890_v2  ;;  %v3032_v46 = vsel %vm2526_vm2, %v3030_v15, %v3031_v47 }
 0x26c   : > { %v3034_v50 = vsel %vm2526_vm2, %v3031_v47, %v3033_v10  ;;  %v6262_v28 = vmul.f32 0.5, %v895_v11  ;;  %v1061_v43 = vmul.f32 0.70710677, %v895_v11  ;;  %v3133_v55 = vadd.f32 %v3032_v46, %v2889_v61 }
 0x26d   : > { %v3134_v9 = vadd.f32 %v3034_v50, %v2890_v54  ;;  %4634 = verf.f32 %v1059_v45  ;;  %v1501_v29 = vmul.f32 %v5365_v19, %v7367_v5  ;;  %v1502_v34 = vmul.f32 %v5365_v19, %v5686_v13 }
 0x26e   : > { %4636 = verf.f32 %v1060_v1  ;;  %v1569_v20 = vmul.f32 %v5378_v32, %v7371_v51  ;;  %v1570_v24 = vmul.f32 %v5378_v32, %v7372_v12  ;;  %v6272_v25 = vmul.f32 0.5, %v3133_v55 }
 0x26f   : > { %v6274_v14 = vmul.f32 0.5, %v3134_v9  ;;  %v3197_v60 = vmul.f32 0.70710677, %v3133_v55  ;;  %v3198_v63 = vmul.f32 0.70710677, %v3134_v9  ;;  %4638 = verf.f32 %v1061_v43 }
 0x270   : > { %v1533_v59 = vadd.f32 %v6064_v52, %v1501_v29  ;;  %v1534_v6 = vadd.f32 %v6064_v52, %v1502_v34  ;;  %v1637_v58 = vmul.f32 %v5380_v39, %v7376_v49  ;;  %v1638_v38 = vmul.f32 %v5380_v39, %v7377_v16 }
 0x271   : > { %4640 = verf.f32 %v3197_v60  ;;  %v1709_v23 = vmul.f32 %v7330_v37, %v7367_v5  ;;  %v1710_v0 = vmul.f32 %v7330_v37, %v5686_v13  ;;  %v1711_v56 = vmul.f32 %v7330_v37, %v7368_v57 }
 0x272   : > { %4642 = verf.f32 %v3198_v63  ;;  %v1601_v2 = vadd.f32 %v1569_v20, %v1533_v59  ;;  %v1602_v35 = vadd.f32 %v1570_v24, %v1534_v6  ;;  %v1954_v11 = vmul.f32 %v5372_v26, %v7371_v51  ;;  %v7378_v63 = vld [vmem:[#allocation52_spill] sm:$0xff] }
 0x273   : > { %v1814_v15 = vrot.slane %v1709_v23, 1  ;;  %v1815_v3 = vrot.slane %v1710_v0, 1  ;;  %v1955_v61 = vmul.f32 %v5372_v26, %v7372_v12  ;;  %v1817_v10 = vrot.slane %v1711_v56, 1 }
 0x274   : > { %v1669_v54 = vadd.f32 %v1637_v58, %v1601_v2  ;;  %v1670_v47 = vadd.f32 %v1638_v38, %v1602_v35  ;;  %v1956_v45 = vmul.f32 %v5372_v26, %v5761_v4  ;;  %v2058_v46 = vrot.slane %v1954_v11, 1 }
 0x275   : > { %v1816_v1 = vsel %vm1793_vm1, %v1814_v15, %v1815_v3  ;;  %v2059_v50 = vrot.slane %v1955_v61, 1  ;;  %v2198_v43 = vmul.f32 %v5376_v30, %v7376_v49  ;;  %v1818_v55 = vsel %vm1793_vm1, %v1815_v3, %v1817_v10 }
 0x276   : > { %v1914_v9 = vadd.f32 %v1816_v1, %v1669_v54  ;;  %v2061_v29 = vrot.slane %v1956_v45, 1  ;;  %v2199_v34 = vmul.f32 %v5376_v30, %v7377_v16  ;;  %v1915_v24 = vadd.f32 %v1818_v55, %v1670_v47 }
 0x277   : > { %v4635_v20 = vpop.eup %4634  ;;  %v2060_v60 = vsel %vm1793_vm1, %v2058_v46, %v2059_v50  ;;  %v2200_v59 = vmul.f32 %v5376_v30, %v7378_v63  ;;  %v2302_v6 = vrot.slane %v2198_v43, 1  ;;  %v2442_v3 = vmul.f32 %v7369_v53, %v7367_v5 }
 0x278   : > { %v4637_v58 = vpop.eup %4636  ;;  %v1167_v38 = vadd.f32 1.0, %v4635_v20  ;;  %v2062_v23 = vsel %vm1793_vm1, %v2059_v50, %v2061_v29  ;;  %v2158_v0 = vadd.f32 %v2060_v60, %v1914_v9  ;;  %v2303_v2 = vrot.slane %v2199_v34, 1 }
 0x279   : > { %v1168_v35 = vadd.f32 1.0, %v4637_v58  ;;  %v2159_v56 = vadd.f32 %v2062_v23, %v1915_v24  ;;  %v2305_v15 = vrot.slane %v2200_v59, 1  ;;  %v4639_v11 = vpop.eup %4638  ;;  %v2443_v47 = vmul.f32 %v7369_v53, %v5686_v13 }
 0x27a   : > { %v1221_v61 = vmul.f32 %v1167_v38, %v6256_v42  ;;  %v2304_v54 = vsel %vm1793_vm1, %v2302_v6, %v2303_v2  ;;  %v2444_v10 = vmul.f32 %v7369_v53, %v7368_v57  ;;  %v1169_v46 = vadd.f32 1.0, %v4639_v11  ;;  %v6315_v42 = vld [vmem:[#allocation7 + $0xb] ss:$0 sm:$0xff] }
 0x27b   : > { %v4641_v45 = vpop.eup %4640  ;;  %v1222_v1 = vmul.f32 %v1168_v35, %v6258_v17  ;;  %v2306_v50 = vsel %vm1793_vm1, %v2303_v2, %v2305_v15  ;;  %v2402_v43 = vadd.f32 %v2304_v54, %v2158_v0  ;;  %v2547_v34 = vrot.slane %v2442_v3, 2 }
 0x27c   : > { %v4643_v55 = vpop.eup %4642  ;;  %v3261_v5 = vadd.f32 1.0, %v4641_v45  ;;  %v1278_v9 = vmul.f32 %v5928_v21, %v1221_v61  ;;  %v2403_v29 = vadd.f32 %v2306_v50, %v2159_v56  ;;  %v1223_v57 = vmul.f32 %v1169_v46, %v6262_v28 }
 0x27d   : > { %v3262_v20 = vadd.f32 1.0, %v4643_v55  ;;  %v1279_v13 = vmul.f32 %v5937_v44, %v1222_v1  ;;  %v2548_v24 = vrot.slane %v2443_v47, 2  ;;  %v2550_v59 = vrot.slane %v2444_v10, 2  ;;  %v4700_v47 = vld [vmem:[%s7198_s4] ss:$0 sm:$0xff]  ;;  %v7379_v10 = vld [vmem:[#allocation58_spill] sm:$0xff] }
 0x27e   : > { %v3293_v17 = vmul.f32 %v3261_v5, %v6272_v25  ;;  %v6321_v60 = vmul.f32 %v6216_v8, %v1278_v9  ;;  %v2687_v6 = vmul.f32 %v5374_v27, %v7371_v51  ;;  %v1280_v23 = vmul.f32 %v5903_v7, %v1223_v57  ;;  %v6342_v7 = vld [vmem:[%s7199_s5 + $0x8] ss:$0 sm:$0xff] }
 0x27f   : > { %v3294_v58 = vmul.f32 %v3262_v20, %v6274_v14  ;;  %v6327_v38 = vmul.f32 %v6315_v42, %v1279_v13  ;;  %v2549_v44 = vsel %vm2526_vm2, %v2547_v34, %v2548_v24  ;;  %v2551_v28 = vsel %vm2526_vm2, %v2548_v24, %v2550_v59 }
 0x280   : > { %v2647_v0 = vadd.f32 %v2549_v44, %v2402_v43  ;;  %v2688_v8 = vmul.f32 %v5374_v27, %v7372_v12  ;;  %v2689_v25 = vmul.f32 %v5374_v27, %v5761_v4  ;;  %v6337_v35 = vmul.f32 %v6315_v42, %v1280_v23 }
 0x281   : > { %v3322_v2 = vpack.c.bf16 %v3294_v58, %v3293_v17  ;;  %v2648_v14 = vadd.f32 %v2551_v28, %v2403_v29  ;;  %v2791_v56 = vrot.slane %v2687_v6, 2  ;;  %v2931_v11 = vmul.f32 %v6342_v7, %v7376_v49  ;;  %v7380_v28 = vld [vmem:[#allocation53_spill] sm:$0xff] }
 0x282   : > { %v2792_v15 = vrot.slane %v2688_v8, 2  ;;  %v2794_v3 = vrot.slane %v2689_v25, 2  ;;  %v2932_v61 = vmul.f32 %v6342_v7, %v7377_v16  ;;  %v2933_v54 = vmul.f32 %v6342_v7, %v7378_v63  ;;  %v7381_v8 = vld [vmem:[#allocation19_spill] sm:$0xff] }
 0x283   : > { %4320 = vmatmul.mubr.bf16.gmra.mrb[40].mxu1 %v3322_v2  ;;  %v898_v45 = vadd.f32 %v4700_v47, %v7379_v10  ;;  %v1503_v1 = vmul.f32 %v5365_v19, %v7371_v51  ;;  %v1504_v46 = vmul.f32 %v5365_v19, %v7372_v12  ;;  %v3035_v55 = vrot.slane %v2931_v11, 2 }
 0x284   : > { %v2793_v50 = vsel %vm2526_vm2, %v2791_v56, %v2792_v15  ;;  %v2795_v43 = vsel %vm2526_vm2, %v2792_v15, %v2794_v3  ;;  %v3036_v5 = vrot.slane %v2932_v61, 2  ;;  %v3038_v34 = vrot.slane %v2933_v54, 2 }
 0x285   : > { %v2891_v9 = vadd.f32 %v2793_v50, %v2647_v0  ;;  %v2892_v29 = vadd.f32 %v2795_v43, %v2648_v14  ;;  %v6360_v20 = vmul.f32 0.5, %v898_v45  ;;  %v1062_v57 = vmul.f32 0.70710677, %v898_v45 }
 0x286   : > { %v3037_v13 = vsel %vm2526_vm2, %v3035_v55, %v3036_v5  ;;  %v1535_v24 = vadd.f32 %v6064_v52, %v1503_v1  ;;  %v1536_v17 = vadd.f32 %v6064_v52, %v1504_v46  ;;  %v3039_v59 = vsel %vm2526_vm2, %v3036_v5, %v3038_v34 }
 0x287   : > { %v3135_v6 = vadd.f32 %v3037_v13, %v2891_v9  ;;  %v1571_v58 = vmul.f32 %v5378_v32, %v7376_v49  ;;  %v1572_v23 = vmul.f32 %v5378_v32, %v7377_v16  ;;  %v3136_v44 = vadd.f32 %v3039_v59, %v2892_v29 }
 0x288   : > { %4644 = verf.f32 %v1062_v57  ;;  %v1639_v0 = vmul.f32 %v5380_v39, %v7380_v28  ;;  %v1640_v25 = vmul.f32 %v5380_v39, %v7381_v8  ;;  %v1712_v61 = vmul.f32 %v7330_v37, %v7371_v51  ;;  %v7382_v57 = vld [vmem:[#allocation26_spill] sm:$0xff] }
 0x289   : > { %v6374_v2 = vmul.f32 0.5, %v3135_v6  ;;  %v3199_v14 = vmul.f32 0.70710677, %v3135_v6  ;;  %v1603_v56 = vadd.f32 %v1571_v58, %v1535_v24  ;;  %v1604_v15 = vadd.f32 %v1572_v23, %v1536_v17 }
 0x28a   : > { %v6376_v3 = vmul.f32 0.5, %v3136_v44  ;;  %v3200_v11 = vmul.f32 0.70710677, %v3136_v44  ;;  %v1713_v54 = vmul.f32 %v7330_v37, %v7372_v12  ;;  %v1714_v45 = vmul.f32 %v7330_v37, %v5761_v4 }
 0x28b   : > { %4646 = verf.f32 %v3199_v14  ;;  %v1671_v47 = vadd.f32 %v1639_v0, %v1603_v56  ;;  %v1672_v10 = vadd.f32 %v1640_v25, %v1604_v15  ;;  %v1819_v1 = vrot.slane %v1712_v61, 1 }
 0x28c   : > { %4648 = verf.f32 %v3200_v11  ;;  %v1820_v46 = vrot.slane %v1713_v54, 1  ;;  %v1957_v50 = vmul.f32 %v5372_v26, %v7376_v49  ;;  %v1822_v43 = vrot.slane %v1714_v45, 1 }
 0x28d   : > { %v1958_v55 = vmul.f32 %v5372_v26, %v7377_v16  ;;  %v1959_v5 = vmul.f32 %v5372_v26, %v7378_v63  ;;  %v2201_v9 = vmul.f32 %v5376_v30, %v7380_v28  ;;  %v2202_v13 = vmul.f32 %v5376_v30, %v7381_v8 }
 0x28e   : > { %v1821_v29 = vsel %vm1793_vm1, %v1819_v1, %v1820_v46  ;;  %v2063_v34 = vrot.slane %v1957_v50, 1  ;;  %v2203_v24 = vmul.f32 %v5376_v30, %v7382_v57  ;;  %v1823_v17 = vsel %vm1793_vm1, %v1820_v46, %v1822_v43 }
 0x28f   : > { %v1916_v59 = vadd.f32 %v1821_v29, %v1671_v47  ;;  %v2064_v6 = vrot.slane %v1958_v55, 1  ;;  %v2066_v58 = vrot.slane %v1959_v5, 1  ;;  %v1917_v23 = vadd.f32 %v1823_v17, %v1672_v10 }
 0x290   : > { %v2307_v44 = vrot.slane %v2201_v9, 1  ;;  %v2308_v0 = vrot.slane %v2202_v13, 1  ;;  %v2310_v25 = vrot.slane %v2203_v24, 1  ;;  %v2445_v15 = vmul.f32 %v7369_v53, %v7371_v51 }
 0x291   : > { %v2065_v14 = vsel %vm1793_vm1, %v2063_v34, %v2064_v6  ;;  %v2067_v56 = vsel %vm1793_vm1, %v2064_v6, %v2066_v58  ;;  %v2446_v11 = vmul.f32 %v7369_v53, %v7372_v12  ;;  %v2447_v46 = vmul.f32 %v7369_v53, %v5761_v4 }
 0x292   : > { %v4645_v61 = vpop.eup %4644  ;;  %v2160_v54 = vadd.f32 %v2065_v14, %v1916_v59  ;;  %v2161_v45 = vadd.f32 %v2067_v56, %v1917_v23  ;;  %v2309_v47 = vsel %vm1793_vm1, %v2307_v44, %v2308_v0  ;;  %v2311_v10 = vsel %vm1793_vm1, %v2308_v0, %v2310_v25 }
 0x293   : > { %v1170_v1 = vadd.f32 1.0, %v4645_v61  ;;  %v2552_v50 = vrot.slane %v2445_v15, 2  ;;  %v2553_v43 = vrot.slane %v2446_v11, 2  ;;  %v2690_v51 = vmul.f32 %v5374_v27, %v7376_v49 }
 0x294   : > { %v2404_v55 = vadd.f32 %v2309_v47, %v2160_v54  ;;  %v2405_v5 = vadd.f32 %v2311_v10, %v2161_v45  ;;  %v2691_v12 = vmul.f32 %v5374_v27, %v7377_v16  ;;  %v2555_v13 = vrot.slane %v2447_v46, 2 }
 0x295   : > { %v4647_v9 = vpop.eup %4646  ;;  %v1224_v29 = vmul.f32 %v1170_v1, %v6360_v20  ;;  %v2554_v34 = vsel %vm2526_vm2, %v2552_v50, %v2553_v43  ;;  %v2692_v24 = vmul.f32 %v5374_v27, %v7378_v63  ;;  %v2796_v6 = vrot.slane %v2690_v51, 2 }
 0x296   : > { %v4649_v4 = vpop.eup %4648  ;;  %v3263_v17 = vadd.f32 1.0, %v4647_v9  ;;  %v2649_v59 = vadd.f32 %v2554_v34, %v2404_v55  ;;  %v2797_v58 = vrot.slane %v2691_v12, 2  ;;  %v2556_v0 = vsel %vm2526_vm2, %v2553_v43, %v2555_v13 }
 0x297   : > { %v3264_v23 = vadd.f32 1.0, %v4649_v4  ;;  %v1281_v44 = vmul.f32 %v5928_v21, %v1224_v29  ;;  %v2799_v25 = vrot.slane %v2692_v24, 2  ;;  %v2650_v20 = vadd.f32 %v2556_v0, %v2405_v5  ;;  %v7383_v5 = vld [vmem:[#allocation54_spill] sm:$0xff]  ;;  %v7384_v29 = vld [vmem:[#allocation32_spill] sm:$0xff] }
 0x298   : > { %v3295_v14 = vmul.f32 %v3263_v17, %v6374_v2  ;;  %v2798_v56 = vsel %vm2526_vm2, %v2796_v6, %v2797_v58  ;;  %v2934_v15 = vmul.f32 %v6342_v7, %v7380_v28  ;;  %v2935_v47 = vmul.f32 %v6342_v7, %v7381_v8 }
 0x299   : > { %v3296_v11 = vmul.f32 %v3264_v23, %v6376_v3  ;;  %v6424_v61 = vmul.f32 %v6315_v42, %v1281_v44  ;;  %v2800_v54 = vsel %vm2526_vm2, %v2797_v58, %v2799_v25  ;;  %v2893_v45 = vadd.f32 %v2798_v56, %v2649_v59 }
 0x29a   : > { %v2894_v21 = vadd.f32 %v2800_v54, %v2650_v20  ;;  %v2936_v2 = vmul.f32 %v6342_v7, %v7382_v57  ;;  %v3040_v10 = vrot.slane %v2934_v15, 2  ;;  %v1505_v46 = vmul.f32 %v5365_v19, %v7376_v49 }
 0x29b   : > { %v3323_v1 = vpack.c.bf16 %v3296_v11, %v3295_v14  ;;  %v1506_v3 = vmul.f32 %v5365_v19, %v7377_v16  ;;  %v1573_v42 = vmul.f32 %v5378_v32, %v7380_v28  ;;  %v3041_v50 = vrot.slane %v2935_v47, 2 }
 0x29c   : > { %v3043_v43 = vrot.slane %v2936_v2, 2  ;;  %v1574_v55 = vmul.f32 %v5378_v32, %v7381_v8  ;;  %v1641_v51 = vmul.f32 %v5380_v39, %v7383_v5  ;;  %v1537_v12 = vadd.f32 %v6064_v52, %v1505_v46 }
 0x29d   : > { %4323 = vmatprep.mubr.bf16.mxu1 %v3323_v1  ;;  %v1538_v9 = vadd.f32 %v6064_v52, %v1506_v3  ;;  %v1642_v34 = vmul.f32 %v5380_v39, %v7384_v29  ;;  %v1715_v13 = vmul.f32 %v7330_v37, %v7376_v49  ;;  %v3042_v24 = vsel %vm2526_vm2, %v3040_v10, %v3041_v50 }
 0x29e   : > { %v3044_v4 = vsel %vm2526_vm2, %v3041_v50, %v3043_v43  ;;  %v1716_v17 = vmul.f32 %v7330_v37, %v7377_v16  ;;  %v1717_v59 = vmul.f32 %v7330_v37, %v7378_v63  ;;  %v3137_v6 = vadd.f32 %v3042_v24, %v2893_v45 }
 0x29f   : > { %v3138_v58 = vadd.f32 %v3044_v4, %v2894_v21  ;;  %v1605_v23 = vadd.f32 %v1573_v42, %v1537_v12  ;;  %v1606_v52 = vadd.f32 %v1574_v55, %v1538_v9  ;;  %v1824_v44 = vrot.slane %v1715_v13, 1 }
 0x2a0   : > { %v1825_v0 = vrot.slane %v1716_v17, 1  ;;  %v1827_v25 = vrot.slane %v1717_v59, 1  ;;  %v1960_v14 = vmul.f32 %v5372_v26, %v7380_v28  ;;  %v3169_v20 = vmul.f32 0.5, %v3137_v6 }
 0x2a1   : > { %v6455_v56 = vmul.f32 0.5, %v3138_v58  ;;  %v3201_v15 = vmul.f32 0.70710677, %v3137_v6  ;;  %v3202_v11 = vmul.f32 0.70710677, %v3138_v58  ;;  %v1673_v54 = vadd.f32 %v1641_v51, %v1605_v23 }
 0x2a2   : > { %v1674_v47 = vadd.f32 %v1642_v34, %v1606_v52  ;;  %v1826_v2 = vsel %vm1793_vm1, %v1824_v44, %v1825_v0  ;;  %v1828_v45 = vsel %vm1793_vm1, %v1825_v0, %v1827_v25  ;;  %v1961_v21 = vmul.f32 %v5372_v26, %v7381_v8 }
 0x2a3   : > { %4650 = verf.f32 %v3201_v15  ;;  %v1962_v10 = vmul.f32 %v5372_v26, %v7382_v57  ;;  %v2068_v1 = vrot.slane %v1960_v14, 1  ;;  %v1918_v46 = vadd.f32 %v1826_v2, %v1673_v54 }
 0x2a4   : > { %4652 = verf.f32 %v3202_v11  ;;  %v1919_v3 = vadd.f32 %v1828_v45, %v1674_v47  ;;  %v2204_v42 = vmul.f32 %v5376_v30, %v7383_v5  ;;  %v2069_v50 = vrot.slane %v1961_v21, 1 }
 0x2a5   : > { %v2071_v43 = vrot.slane %v1962_v10, 1  ;;  %v2205_v55 = vmul.f32 %v5376_v30, %v7384_v29  ;;  %v2206_v51 = vmul.f32 %v5376_v30, %v6120_v22  ;;  %v2448_v9 = vmul.f32 %v7369_v53, %v7376_v49 }
 0x2a6   : > { %v2312_v12 = vrot.slane %v2204_v42, 1  ;;  %v2449_v34 = vmul.f32 %v7369_v53, %v7377_v16  ;;  %v2450_v13 = vmul.f32 %v7369_v53, %v7378_v63  ;;  %v2070_v24 = vsel %vm1793_vm1, %v2068_v1, %v2069_v50 }
 0x2a7   : > { %v2072_v4 = vsel %vm1793_vm1, %v2069_v50, %v2071_v43  ;;  %v2313_v17 = vrot.slane %v2205_v55, 1  ;;  %v2315_v59 = vrot.slane %v2206_v51, 1  ;;  %v2162_v6 = vadd.f32 %v2070_v24, %v1918_v46 }
 0x2a8   : > { %v2163_v58 = vadd.f32 %v2072_v4, %v1919_v3  ;;  %v2557_v23 = vrot.slane %v2448_v9, 2  ;;  %v2558_v52 = vrot.slane %v2449_v34, 2  ;;  %v2560_v0 = vrot.slane %v2450_v13, 2 }
 0x2a9   : > { %v2314_v44 = vsel %vm1793_vm1, %v2312_v12, %v2313_v17  ;;  %v2316_v49 = vsel %vm1793_vm1, %v2313_v17, %v2315_v59  ;;  %v2693_v16 = vmul.f32 %v5374_v27, %v7380_v28  ;;  %v2694_v15 = vmul.f32 %v5374_v27, %v7381_v8 }
 0x2aa   : > { %v2406_v25 = vadd.f32 %v2314_v44, %v2162_v6  ;;  %v2407_v63 = vadd.f32 %v2316_v49, %v2163_v58  ;;  %v2559_v14 = vsel %vm2526_vm2, %v2557_v23, %v2558_v52  ;;  %v2561_v11 = vsel %vm2526_vm2, %v2558_v52, %v2560_v0  ;;  %v6503_v23 = vld [vmem:[%s7200_s6] ss:$0 sm:$0xff] }
 0x2ab   : > { %v2695_v54 = vmul.f32 %v5374_v27, %v7382_v57  ;;  %v2801_v47 = vrot.slane %v2693_v16, 2  ;;  %v2937_v2 = vmul.f32 %v6342_v7, %v7383_v5  ;;  %v2802_v10 = vrot.slane %v2694_v15, 2 }
 0x2ac   : > { %v2651_v45 = vadd.f32 %v2559_v14, %v2406_v25  ;;  %v2652_v21 = vadd.f32 %v2561_v11, %v2407_v63  ;;  %v2938_v1 = vmul.f32 %v6342_v7, %v7384_v29  ;;  %v2939_v42 = vmul.f32 %v6342_v7, %v6120_v22 }
 0x2ad   : > { %v4651_v46 = vpop.eup %4650  ;;  %v2804_v3 = vrot.slane %v2695_v54, 2  ;;  %v3045_v50 = vrot.slane %v2937_v2, 2  ;;  %v1507_v43 = vmul.f32 %v5365_v19, %v7380_v28  ;;  %v2803_v12 = vsel %vm2526_vm2, %v2801_v47, %v2802_v10 }
 0x2ae   : > { %v4653_v55 = vpop.eup %4652  ;;  %v3265_v51 = vadd.f32 1.0, %v4651_v46  ;;  %v3046_v9 = vrot.slane %v2938_v1, 2  ;;  %v1508_v34 = vmul.f32 %v5365_v19, %v7381_v8  ;;  %v2895_v4 = vadd.f32 %v2803_v12, %v2651_v45 }
 0x2af   : > { %v3266_v13 = vadd.f32 1.0, %v4653_v55  ;;  %v2805_v24 = vsel %vm2526_vm2, %v2802_v10, %v2804_v3  ;;  %v3048_v17 = vrot.slane %v2939_v42, 2  ;;  %v1539_v52 = vadd.f32 %v6503_v23, %v1507_v43 }
 0x2b0   : > { %v3297_v59 = vmul.f32 %v3265_v51, %v3169_v20  ;;  %v2896_v6 = vadd.f32 %v2805_v24, %v2652_v21  ;;  %v3047_v58 = vsel %vm2526_vm2, %v3045_v50, %v3046_v9  ;;  %v1540_v16 = vadd.f32 %v6503_v23, %v1508_v34 }
 0x2b1   : > { %v3298_v44 = vmul.f32 %v3266_v13, %v6455_v56  ;;  %v3049_v49 = vsel %vm2526_vm2, %v3046_v9, %v3048_v17  ;;  %v3139_v0 = vadd.f32 %v3047_v58, %v2895_v4  ;;  %v1575_v20 = vmul.f32 %v5378_v32, %v7383_v5 }
 0x2b2   : > { %v3140_v25 = vadd.f32 %v3049_v49, %v2896_v6  ;;  %v1576_v63 = vmul.f32 %v5378_v32, %v7384_v29  ;;  %v1643_v14 = vmul.f32 %v5380_v39, %v6130_v62  ;;  %v1644_v56 = vmul.f32 %v5380_v39, %v6134_v48 }
 0x2b3   : > { %v3324_v15 = vpack.c.bf16 %v3298_v44, %v3297_v59  ;;  %v3171_v11 = vmul.f32 0.5, %v3139_v0  ;;  %v3203_v54 = vmul.f32 0.70710677, %v3139_v0  ;;  %v1607_v45 = vadd.f32 %v1575_v20, %v1539_v52 }
 0x2b4   : > { %v6517_v47 = vmul.f32 0.5, %v3140_v25  ;;  %v3204_v2 = vmul.f32 0.70710677, %v3140_v25  ;;  %v1608_v21 = vadd.f32 %v1576_v63, %v1540_v16  ;;  %v1718_v10 = vmul.f32 %v7330_v37, %v7380_v28 }
 0x2b5   : > { %4324 = vmatmul.mubr.bf16.gmra.mrb[44].mxu1 %v3324_v15  ;;  %4654 = verf.f32 %v3203_v54  ;;  %v1719_v1 = vmul.f32 %v7330_v37, %v7381_v8  ;;  %v1720_v46 = vmul.f32 %v7330_v37, %v7382_v57  ;;  %v1675_v3 = vadd.f32 %v1643_v14, %v1607_v45 }
 0x2b6   : > { %4656 = verf.f32 %v3204_v2  ;;  %v1676_v42 = vadd.f32 %v1644_v56, %v1608_v21  ;;  %v1963_v50 = vmul.f32 %v5372_v26, %v7383_v5  ;;  %v1829_v43 = vrot.slane %v1718_v10, 1 }
 0x2b7   : > { %v1830_v55 = vrot.slane %v1719_v1, 1  ;;  %v1832_v51 = vrot.slane %v1720_v46, 1  ;;  %v1964_v12 = vmul.f32 %v5372_v26, %v7384_v29  ;;  %v1965_v9 = vmul.f32 %v5372_v26, %v6120_v22 }
 0x2b8   : > { %v2073_v34 = vrot.slane %v1963_v50, 1  ;;  %v2207_v13 = vmul.f32 %v5376_v30, %v6130_v62  ;;  %v2208_v24 = vmul.f32 %v5376_v30, %v6134_v48  ;;  %v2209_v6 = vmul.f32 %v5376_v30, %v6224_v18 }
 0x2b9   : > { %v1831_v4 = vsel %vm1793_vm1, %v1829_v43, %v1830_v55  ;;  %v1833_v17 = vsel %vm1793_vm1, %v1830_v55, %v1832_v51  ;;  %v2074_v59 = vrot.slane %v1964_v12, 1  ;;  %v2076_v44 = vrot.slane %v1965_v9, 1 }
 0x2ba   : > { %v1920_v58 = vadd.f32 %v1831_v4, %v1675_v3  ;;  %v1921_v52 = vadd.f32 %v1833_v17, %v1676_v42  ;;  %v2317_v49 = vrot.slane %v2207_v13, 1  ;;  %v2318_v16 = vrot.slane %v2208_v24, 1 }
 0x2bb   : > { %v2075_v0 = vsel %vm1793_vm1, %v2073_v34, %v2074_v59  ;;  %v2320_v25 = vrot.slane %v2209_v6, 1  ;;  %v2451_v20 = vmul.f32 %v7369_v53, %v7380_v28  ;;  %v2077_v63 = vsel %vm1793_vm1, %v2074_v59, %v2076_v44 }
 0x2bc   : > { %v2164_v14 = vadd.f32 %v2075_v0, %v1920_v58  ;;  %v2452_v15 = vmul.f32 %v7369_v53, %v7381_v8  ;;  %v2453_v54 = vmul.f32 %v7369_v53, %v7382_v57  ;;  %v2165_v56 = vadd.f32 %v2077_v63, %v1921_v52 }
 0x2bd   : > { %v2319_v2 = vsel %vm1793_vm1, %v2317_v49, %v2318_v16  ;;  %v2321_v45 = vsel %vm1793_vm1, %v2318_v16, %v2320_v25  ;;  %v2562_v21 = vrot.slane %v2451_v20, 2  ;;  %v2696_v28 = vmul.f32 %v5374_v27, %v7383_v5 }
 0x2be   : > { %v2408_v10 = vadd.f32 %v2319_v2, %v2164_v14  ;;  %v2563_v1 = vrot.slane %v2452_v15, 2  ;;  %v2565_v46 = vrot.slane %v2453_v54, 2  ;;  %v2409_v42 = vadd.f32 %v2321_v45, %v2165_v56 }
 0x2bf   : > { %v4655_v3 = vpop.eup %4654  ;;  %v2697_v8 = vmul.f32 %v5374_v27, %v7384_v29  ;;  %v2698_v57 = vmul.f32 %v5374_v27, %v6120_v22  ;;  %v2940_v50 = vmul.f32 %v6342_v7, %v6130_v62  ;;  %v2806_v9 = vrot.slane %v2696_v28, 2 }
 0x2c0   : > { %v4657_v43 = vpop.eup %4656  ;;  %v3267_v55 = vadd.f32 1.0, %v4655_v3  ;;  %v2564_v51 = vsel %vm2526_vm2, %v2562_v21, %v2563_v1  ;;  %v2566_v12 = vsel %vm2526_vm2, %v2563_v1, %v2565_v46  ;;  %v2941_v6 = vmul.f32 %v6342_v7, %v6134_v48 }
 0x2c1   : > { %v3268_v34 = vadd.f32 1.0, %v4657_v43  ;;  %v2653_v13 = vadd.f32 %v2564_v51, %v2408_v10  ;;  %v2654_v24 = vadd.f32 %v2566_v12, %v2409_v42  ;;  %v2807_v4 = vrot.slane %v2697_v8, 2 }
 0x2c2   : > { %v3299_v17 = vmul.f32 %v3267_v55, %v3171_v11  ;;  %v2809_v59 = vrot.slane %v2698_v57, 2  ;;  %v2942_v58 = vmul.f32 %v6342_v7, %v6224_v18  ;;  %v3050_v49 = vrot.slane %v2940_v50, 2 }
 0x2c3   : > { %v3300_v52 = vmul.f32 %v3268_v34, %v6517_v47  ;;  %v2808_v44 = vsel %vm2526_vm2, %v2806_v9, %v2807_v4  ;;  %v1509_v0 = vmul.f32 %v5365_v19, %v7383_v5  ;;  %v3051_v20 = vrot.slane %v2941_v6, 2 }
 0x2c4   : > { %v2810_v16 = vsel %vm2526_vm2, %v2807_v4, %v2809_v59  ;;  %v2897_v25 = vadd.f32 %v2808_v44, %v2653_v13  ;;  %v3053_v11 = vrot.slane %v2942_v58, 2  ;;  %v1510_v15 = vmul.f32 %v5365_v19, %v7384_v29 }
 0x2c5   : > { %v3325_v63 = vpack.c.bf16 %v3300_v52, %v3299_v17  ;;  %v2898_v14 = vadd.f32 %v2810_v16, %v2654_v24  ;;  %v1541_v54 = vadd.f32 %v6503_v23, %v1509_v0  ;;  %v3052_v47 = vsel %vm2526_vm2, %v3050_v49, %v3051_v20 }
 0x2c6   : > { %v3054_v56 = vsel %vm2526_vm2, %v3051_v20, %v3053_v11  ;;  %v1577_v2 = vmul.f32 %v5378_v32, %v6130_v62  ;;  %v1578_v45 = vmul.f32 %v5378_v32, %v6134_v48  ;;  %v3141_v21 = vadd.f32 %v3052_v47, %v2897_v25 }
 0x2c7   : > { %4327 = vmatprep.mubr.bf16.mxu1 %v3325_v63  ;;  %v3142_v10 = vadd.f32 %v3054_v56, %v2898_v14  ;;  %v1542_v1 = vadd.f32 %v6503_v23, %v1510_v15  ;;  %v1645_v46 = vmul.f32 %v5380_v39, %v6228_v33  ;;  %v1646_v3 = vmul.f32 %v5380_v39, %v6240_v36 }
 0x2c8   : > { %v1609_v28 = vadd.f32 %v1577_v2, %v1541_v54  ;;  %v1721_v42 = vmul.f32 %v7330_v37, %v7383_v5  ;;  %v1722_v8 = vmul.f32 %v7330_v37, %v7384_v29  ;;  %v3173_v57 = vmul.f32 0.5, %v3141_v21 }
 0x2c9   : > { %v6586_v50 = vmul.f32 0.5, %v3142_v10  ;;  %v3205_v43 = vmul.f32 0.70710677, %v3141_v21  ;;  %v3206_v55 = vmul.f32 0.70710677, %v3142_v10  ;;  %v1610_v51 = vadd.f32 %v1578_v45, %v1542_v1 }
 0x2ca   : > { %v1677_v12 = vadd.f32 %v1645_v46, %v1609_v28  ;;  %v1723_v9 = vmul.f32 %v7330_v37, %v6120_v22  ;;  %v1834_v34 = vrot.slane %v1721_v42, 1  ;;  %v1835_v13 = vrot.slane %v1722_v8, 1 }
 0x2cb   : > { %4658 = verf.f32 %v3205_v43  ;;  %v1966_v24 = vmul.f32 %v5372_v26, %v6130_v62  ;;  %v1967_v4 = vmul.f32 %v5372_v26, %v6134_v48  ;;  %v1678_v17 = vadd.f32 %v1646_v3, %v1610_v51 }
 0x2cc   : > { %4660 = verf.f32 %v3206_v55  ;;  %v1837_v59 = vrot.slane %v1723_v9, 1  ;;  %v1968_v6 = vmul.f32 %v5372_v26, %v6224_v18  ;;  %v1836_v58 = vsel %vm1793_vm1, %v1834_v34, %v1835_v13 }
 0x2cd   : > { %v2078_v52 = vrot.slane %v1966_v24, 1  ;;  %v2079_v44 = vrot.slane %v1967_v4, 1  ;;  %v2210_v49 = vmul.f32 %v5376_v30, %v6228_v33  ;;  %v1922_v16 = vadd.f32 %v1836_v58, %v1677_v12 }
 0x2ce   : > { %v1838_v0 = vsel %vm1793_vm1, %v1835_v13, %v1837_v59  ;;  %v2081_v25 = vrot.slane %v1968_v6, 1  ;;  %v2211_v20 = vmul.f32 %v5376_v30, %v6240_v36  ;;  %v2212_v14 = vmul.f32 %v5376_v30, %v6321_v60 }
 0x2cf   : > { %v1923_v11 = vadd.f32 %v1838_v0, %v1678_v17  ;;  %v2080_v63 = vsel %vm1793_vm1, %v2078_v52, %v2079_v44  ;;  %v2322_v15 = vrot.slane %v2210_v49, 1  ;;  %v2454_v2 = vmul.f32 %v7369_v53, %v7383_v5 }
 0x2d0   : > { %v2082_v54 = vsel %vm1793_vm1, %v2079_v44, %v2081_v25  ;;  %v2166_v47 = vadd.f32 %v2080_v63, %v1922_v16  ;;  %v2323_v56 = vrot.slane %v2211_v20, 1  ;;  %v2325_v21 = vrot.slane %v2212_v14, 1 }
 0x2d1   : > { %v2167_v45 = vadd.f32 %v2082_v54, %v1923_v11  ;;  %v2455_v10 = vmul.f32 %v7369_v53, %v7384_v29  ;;  %v2456_v1 = vmul.f32 %v7369_v53, %v6120_v22  ;;  %v2567_v28 = vrot.slane %v2454_v2, 2 }
 0x2d2   : > { %v2324_v46 = vsel %vm1793_vm1, %v2322_v15, %v2323_v56  ;;  %v2699_v3 = vmul.f32 %v5374_v27, %v6130_v62  ;;  %v2700_v42 = vmul.f32 %v5374_v27, %v6134_v48  ;;  %v2326_v8 = vsel %vm1793_vm1, %v2323_v56, %v2325_v21 }
 0x2d3   : > { %v2410_v5 = vadd.f32 %v2324_v46, %v2166_v47  ;;  %v2568_v43 = vrot.slane %v2455_v10, 2  ;;  %v2570_v55 = vrot.slane %v2456_v1, 2  ;;  %v2411_v51 = vadd.f32 %v2326_v8, %v2167_v45 }
 0x2d4   : > { %v2701_v29 = vmul.f32 %v5374_v27, %v6224_v18  ;;  %v2811_v12 = vrot.slane %v2699_v3, 2  ;;  %v2812_v22 = vrot.slane %v2700_v42, 2  ;;  %v2943_v24 = vmul.f32 %v6342_v7, %v6228_v33 }
 0x2d5   : > { %v4659_v9 = vpop.eup %4658  ;;  %v2569_v34 = vsel %vm2526_vm2, %v2567_v28, %v2568_v43  ;;  %v2571_v13 = vsel %vm2526_vm2, %v2568_v43, %v2570_v55  ;;  %v2944_v4 = vmul.f32 %v6342_v7, %v6240_v36  ;;  %v2945_v0 = vmul.f32 %v6342_v7, %v6321_v60 }
 0x2d6   : > { %v4661_v17 = vpop.eup %4660  ;;  %v3269_v59 = vadd.f32 1.0, %v4659_v9  ;;  %v2655_v6 = vadd.f32 %v2569_v34, %v2410_v5  ;;  %v2656_v58 = vadd.f32 %v2571_v13, %v2411_v51  ;;  %v2813_v52 = vsel %vm2526_vm2, %v2811_v12, %v2812_v22 }
 0x2d7   : > { %v3270_v44 = vadd.f32 1.0, %v4661_v17  ;;  %v2814_v49 = vrot.slane %v2701_v29, 2  ;;  %v3055_v16 = vrot.slane %v2943_v24, 2  ;;  %v3056_v11 = vrot.slane %v2944_v4, 2 }
 0x2d8   : > { %v3301_v25 = vmul.f32 %v3269_v59, %v3173_v57  ;;  %v2899_v20 = vadd.f32 %v2813_v52, %v2655_v6  ;;  %v1511_v63 = vmul.f32 %v5365_v19, %v6130_v62  ;;  %v3058_v54 = vrot.slane %v2945_v0, 2 }
 0x2d9   : > { %v3302_v14 = vmul.f32 %v3270_v44, %v6586_v50  ;;  %v2815_v15 = vsel %vm2526_vm2, %v2812_v22, %v2814_v49  ;;  %v1512_v47 = vmul.f32 %v5365_v19, %v6134_v48  ;;  %v3057_v2 = vsel %vm2526_vm2, %v3055_v16, %v3056_v11 }
 0x2da   : > { %v2900_v56 = vadd.f32 %v2815_v15, %v2656_v58  ;;  %v1543_v45 = vadd.f32 %v6503_v23, %v1511_v63  ;;  %v1579_v57 = vmul.f32 %v5378_v32, %v6228_v33  ;;  %v3059_v10 = vsel %vm2526_vm2, %v3056_v11, %v3058_v54 }
 0x2db   : > { %v3326_v21 = vpack.c.bf16 %v3302_v14, %v3301_v25  ;;  %v3143_v1 = vadd.f32 %v3057_v2, %v2899_v20  ;;  %v1544_v50 = vadd.f32 %v6503_v23, %v1512_v47  ;;  %v1580_v28 = vmul.f32 %v5378_v32, %v6240_v36 }
 0x2dc   : > { %v3144_v46 = vadd.f32 %v3059_v10, %v2900_v56  ;;  %v1611_v3 = vadd.f32 %v1579_v57, %v1543_v45  ;;  %v1647_v42 = vmul.f32 %v5380_v39, %v6327_v38  ;;  %v1648_v43 = vmul.f32 %v5380_v39, %v6337_v35 }
 0x2dd   : > { %4328 = vmatmul.mubr.bf16.gmra.mrb[48].mxu1 %v3326_v21  ;;  %v3175_v8 = vmul.f32 0.5, %v3143_v1  ;;  %v3207_v5 = vmul.f32 0.70710677, %v3143_v1  ;;  %v1724_v55 = vmul.f32 %v7330_v37, %v6130_v62  ;;  %v1612_v12 = vadd.f32 %v1580_v28, %v1544_v50 }
 0x2de   : > { %v3176_v51 = vmul.f32 0.5, %v3144_v46  ;;  %v3208_v29 = vmul.f32 0.70710677, %v3144_v46  ;;  %v1679_v22 = vadd.f32 %v1647_v42, %v1611_v3  ;;  %v1725_v9 = vmul.f32 %v7330_v37, %v6134_v48 }
 0x2df   : > { %4662 = verf.f32 %v3207_v5  ;;  %v1726_v34 = vmul.f32 %v7330_v37, %v6224_v18  ;;  %v1839_v13 = vrot.slane %v1724_v55, 1  ;;  %v1680_v24 = vadd.f32 %v1648_v43, %v1612_v12 }
 0x2e0   : > { %4664 = verf.f32 %v3208_v29  ;;  %v1969_v4 = vmul.f32 %v5372_v26, %v6228_v33  ;;  %v1970_v17 = vmul.f32 %v5372_v26, %v6240_v36  ;;  %v1840_v59 = vrot.slane %v1725_v9, 1 }
 0x2e1   : > { %v1842_v6 = vrot.slane %v1726_v34, 1  ;;  %v1971_v58 = vmul.f32 %v5372_v26, %v6321_v60  ;;  %v2213_v52 = vmul.f32 %v5376_v30, %v6327_v38  ;;  %v2214_v0 = vmul.f32 %v5376_v30, %v6337_v35 }
 0x2e2   : > { %v2083_v44 = vrot.slane %v1969_v4, 1  ;;  %v2084_v49 = vrot.slane %v1970_v17, 1  ;;  %v2215_v16 = vmul.f32 %v5376_v30, %v6424_v61  ;;  %v1841_v25 = vsel %vm1793_vm1, %v1839_v13, %v1840_v59 }
 0x2e3   : > { %v1843_v20 = vsel %vm1793_vm1, %v1840_v59, %v1842_v6  ;;  %v2086_v11 = vrot.slane %v1971_v58, 1  ;;  %v2327_v63 = vrot.slane %v2213_v52, 1  ;;  %v1924_v14 = vadd.f32 %v1841_v25, %v1679_v22 }
 0x2e4   : > { %v1925_v15 = vadd.f32 %v1843_v20, %v1680_v24  ;;  %v2085_v54 = vsel %vm1793_vm1, %v2083_v44, %v2084_v49  ;;  %v2328_v47 = vrot.slane %v2214_v0, 1  ;;  %v2330_v2 = vrot.slane %v2215_v16, 1 }
 0x2e5   : > { %v2087_v56 = vsel %vm1793_vm1, %v2084_v49, %v2086_v11  ;;  %v2457_v45 = vmul.f32 %v7369_v53, %v6130_v62  ;;  %v2458_v57 = vmul.f32 %v7369_v53, %v6134_v48  ;;  %v2168_v21 = vadd.f32 %v2085_v54, %v1924_v14 }
 0x2e6   : > { %v2169_v10 = vadd.f32 %v2087_v56, %v1925_v15  ;;  %v2329_v1 = vsel %vm1793_vm1, %v2327_v63, %v2328_v47  ;;  %v2459_v50 = vmul.f32 %v7369_v53, %v6224_v18  ;;  %v2331_v46 = vsel %vm1793_vm1, %v2328_v47, %v2330_v2 }
 0x2e7   : > { %v2572_v28 = vrot.slane %v2457_v45, 2  ;;  %v2573_v3 = vrot.slane %v2458_v57, 2  ;;  %v2702_v42 = vmul.f32 %v5374_v27, %v6228_v33  ;;  %v2412_v5 = vadd.f32 %v2329_v1, %v2168_v21 }
 0x2e8   : > { %v2413_v43 = vadd.f32 %v2331_v46, %v2169_v10  ;;  %v2575_v62 = vrot.slane %v2459_v50, 2  ;;  %v2703_v48 = vmul.f32 %v5374_v27, %v6240_v36  ;;  %v2704_v12 = vmul.f32 %v5374_v27, %v6321_v60  ;;  %v7385_v10 = vld [vmem:[#allocation22_spill] sm:$0xff]  ;;  %v7386_v50 = vld [vmem:[#allocation23_spill] sm:$0xff] }
 0x2e9   : > { %v4663_v55 = vpop.eup %4662  ;;  %v2574_v29 = vsel %vm2526_vm2, %v2572_v28, %v2573_v3  ;;  %v2816_v18 = vrot.slane %v2702_v42, 2  ;;  %v2946_v22 = vmul.f32 %v6342_v7, %v6327_v38  ;;  %v2947_v58 = vmul.f32 %v6342_v7, %v6337_v35 }
 0x2ea   : > { %v4665_v9 = vpop.eup %4664  ;;  %v3271_v34 = vadd.f32 1.0, %v4663_v55  ;;  %v2576_v13 = vsel %vm2526_vm2, %v2573_v3, %v2575_v62  ;;  %v2657_v24 = vadd.f32 %v2574_v29, %v2412_v5  ;;  %v2817_v4 = vrot.slane %v2703_v48, 2 }
 0x2eb   : > { %v3272_v17 = vadd.f32 1.0, %v4665_v9  ;;  %v2658_v59 = vadd.f32 %v2576_v13, %v2413_v43  ;;  %v2819_v6 = vrot.slane %v2704_v12, 2  ;;  %v2948_v49 = vmul.f32 %v6342_v7, %v6424_v61 }
 0x2ec   : > { %v3303_v52 = vmul.f32 %v3271_v34, %v3175_v8  ;;  %v2818_v44 = vsel %vm2526_vm2, %v2816_v18, %v2817_v4  ;;  %v3060_v0 = vrot.slane %v2946_v22, 2  ;;  %v3061_v11 = vrot.slane %v2947_v58, 2 }
 0x2ed   : > { %v3304_v16 = vmul.f32 %v3272_v17, %v3176_v51  ;;  %v2820_v25 = vsel %vm2526_vm2, %v2817_v4, %v2819_v6  ;;  %v2901_v20 = vadd.f32 %v2818_v44, %v2657_v24  ;;  %v3063_v14 = vrot.slane %v2948_v49, 2  ;;  %v7387_v44 = vld [vmem:[#allocation27_spill] sm:$0xff] }
 0x2ee   : > { %v2902_v63 = vadd.f32 %v2820_v25, %v2658_v59  ;;  %v1513_v15 = vmul.f32 %v5365_v19, %v6228_v33  ;;  %v1514_v54 = vmul.f32 %v5365_v19, %v6240_v36  ;;  %v3062_v47 = vsel %vm2526_vm2, %v3060_v0, %v3061_v11 }
 0x2ef   : > { %v3327_v8 = vpack.c.bf16 %v3304_v16, %v3303_v52  ;;  %v1581_v7 = vmul.f32 %v5378_v32, %v6327_v38  ;;  %v1582_v51 = vmul.f32 %v5378_v32, %v6337_v35  ;;  %v3064_v56 = vsel %vm2526_vm2, %v3061_v11, %v3063_v14 }
 0x2f0   : > { %v3145_v2 = vadd.f32 %v3062_v47, %v2901_v20  ;;  %v1545_v45 = vadd.f32 %v6503_v23, %v1513_v15  ;;  %v1546_v57 = vadd.f32 %v6503_v23, %v1514_v54  ;;  %v3146_v21 = vadd.f32 %v3064_v56, %v2902_v63 }
 0x2f1   : > { %4331 = vmatprep.mubr.bf16.mxu1 %v3327_v8  ;;  %v1649_v1 = vmul.f32 %v5380_v39, %v7385_v10  ;;  %v1650_v46 = vmul.f32 %v5380_v39, %v7386_v50  ;;  %v1727_v28 = vmul.f32 %v7330_v37, %v6228_v33  ;;  %v1728_v55 = vmul.f32 %v7330_v37, %v6240_v36 }
 0x2f2   : > { %v6711_v3 = vmul.f32 0.5, %v3145_v2  ;;  %v3209_v42 = vmul.f32 0.70710677, %v3145_v2  ;;  %v1613_v5 = vadd.f32 %v1581_v7, %v1545_v45  ;;  %v1614_v43 = vadd.f32 %v1582_v51, %v1546_v57 }
 0x2f3   : > { %v6713_v62 = vmul.f32 0.5, %v3146_v21  ;;  %v3210_v48 = vmul.f32 0.70710677, %v3146_v21  ;;  %v1729_v29 = vmul.f32 %v7330_v37, %v6321_v60  ;;  %v1844_v22 = vrot.slane %v1727_v28, 1 }
 0x2f4   : > { %4666 = verf.f32 %v3209_v42  ;;  %v1681_v12 = vadd.f32 %v1649_v1, %v1613_v5  ;;  %v1682_v18 = vadd.f32 %v1650_v46, %v1614_v43  ;;  %v1845_v9 = vrot.slane %v1728_v55, 1  ;;  %v6754_v55 = vld [vmem:[%s7199_s5 + $0x8] ss:$0 sm:$0xff] }
 0x2f5   : > { %4668 = verf.f32 %v3210_v48  ;;  %v1847_v34 = vrot.slane %v1729_v29, 1  ;;  %v1972_v13 = vmul.f32 %v5372_v26, %v6327_v38  ;;  %v1973_v24 = vmul.f32 %v5372_v26, %v6337_v35 }
 0x2f6   : > { %v1974_v4 = vmul.f32 %v5372_v26, %v6424_v61  ;;  %v2216_v17 = vmul.f32 %v5376_v30, %v7385_v10  ;;  %v2217_v59 = vmul.f32 %v5376_v30, %v7386_v50  ;;  %v1846_v6 = vsel %vm1793_vm1, %v1844_v22, %v1845_v9 }
 0x2f7   : > { %v1848_v58 = vsel %vm1793_vm1, %v1845_v9, %v1847_v34  ;;  %v2088_v52 = vrot.slane %v1972_v13, 1  ;;  %v2218_v49 = vmul.f32 %v5376_v30, %v7387_v44  ;;  %v1926_v0 = vadd.f32 %v1846_v6, %v1681_v12 }
 0x2f8   : > { %v1927_v16 = vadd.f32 %v1848_v58, %v1682_v18  ;;  %v2089_v25 = vrot.slane %v1973_v24, 1  ;;  %v2091_v20 = vrot.slane %v1974_v4, 1  ;;  %v2332_v11 = vrot.slane %v2216_v17, 1 }
 0x2f9   : > { %v2333_v63 = vrot.slane %v2217_v59, 1  ;;  %v2335_v14 = vrot.slane %v2218_v49, 1  ;;  %v2460_v15 = vmul.f32 %v7369_v53, %v6228_v33  ;;  %v2461_v47 = vmul.f32 %v7369_v53, %v6240_v36 }
 0x2fa   : > { %v2090_v54 = vsel %vm1793_vm1, %v2088_v52, %v2089_v25  ;;  %v2092_v8 = vsel %vm1793_vm1, %v2089_v25, %v2091_v20  ;;  %v2462_v7 = vmul.f32 %v7369_v53, %v6321_v60  ;;  %v2705_v33 = vmul.f32 %v5374_v27, %v6327_v38 }
 0x2fb   : > { %v2170_v51 = vadd.f32 %v2090_v54, %v1926_v0  ;;  %v2171_v56 = vadd.f32 %v2092_v8, %v1927_v16  ;;  %v2334_v2 = vsel %vm1793_vm1, %v2332_v11, %v2333_v63  ;;  %v2336_v45 = vsel %vm1793_vm1, %v2333_v63, %v2335_v14 }
 0x2fc   : > { %v2577_v57 = vrot.slane %v2460_v15, 2  ;;  %v2578_v21 = vrot.slane %v2461_v47, 2  ;;  %v2580_v1 = vrot.slane %v2462_v7, 2  ;;  %v2706_v36 = vmul.f32 %v5374_v27, %v6337_v35 }
 0x2fd   : > { %v2414_v46 = vadd.f32 %v2334_v2, %v2170_v51  ;;  %v2415_v28 = vadd.f32 %v2336_v45, %v2171_v56  ;;  %v2707_v60 = vmul.f32 %v5374_v27, %v6424_v61  ;;  %v2821_v48 = vrot.slane %v2705_v33, 2  ;;  %v7388_v51 = vld [vmem:[#allocation33_spill] sm:$0xff] }
 0x2fe   : > { %v4667_v42 = vpop.eup %4666  ;;  %v2579_v5 = vsel %vm2526_vm2, %v2577_v57, %v2578_v21  ;;  %v2581_v43 = vsel %vm2526_vm2, %v2578_v21, %v2580_v1  ;;  %v2949_v29 = vmul.f32 %v6754_v55, %v7385_v10  ;;  %v2822_v34 = vrot.slane %v2706_v36, 2  ;;  %v7389_v57 = vld [vmem:[#allocation36_spill] sm:$0xff] }
 0x2ff   : > { %v4669_v12 = vpop.eup %4668  ;;  %v3273_v18 = vadd.f32 1.0, %v4667_v42  ;;  %v2659_v22 = vadd.f32 %v2579_v5, %v2414_v46  ;;  %v2660_v9 = vadd.f32 %v2581_v43, %v2415_v28  ;;  %v2824_v24 = vrot.slane %v2707_v60, 2 }
 0x300   : > { %v3274_v13 = vadd.f32 1.0, %v4669_v12  ;;  %v2950_v4 = vmul.f32 %v6754_v55, %v7386_v50  ;;  %v2951_v17 = vmul.f32 %v6754_v55, %v7387_v44  ;;  %v2823_v6 = vsel %vm2526_vm2, %v2821_v48, %v2822_v34 }
 0x301   : > { %v3305_v59 = vmul.f32 %v3273_v18, %v6711_v3  ;;  %v3065_v58 = vrot.slane %v2949_v29, 2  ;;  %v1515_v52 = vmul.f32 %v5365_v19, %v6327_v38  ;;  %v2825_v0 = vsel %vm2526_vm2, %v2822_v34, %v2824_v24 }
 0x302   : > { %v3306_v49 = vmul.f32 %v3274_v13, %v6713_v62  ;;  %v2903_v16 = vadd.f32 %v2823_v6, %v2659_v22  ;;  %v3066_v25 = vrot.slane %v2950_v4, 2  ;;  %v2904_v20 = vadd.f32 %v2825_v0, %v2660_v9  ;;  %v7390_v0 = vld [vmem:[#allocation38_spill] sm:$0xff] }
 0x303   : > { %v3068_v11 = vrot.slane %v2951_v17, 2  ;;  %v1516_v63 = vmul.f32 %v5365_v19, %v6337_v35  ;;  %v1547_v14 = vadd.f32 %v6503_v23, %v1515_v52  ;;  %v1583_v54 = vmul.f32 %v5378_v32, %v7385_v10 }
 0x304   : > { %v3328_v3 = vpack.c.bf16 %v3306_v49, %v3305_v59  ;;  %v3067_v15 = vsel %vm2526_vm2, %v3065_v58, %v3066_v25  ;;  %v1584_v62 = vmul.f32 %v5378_v32, %v7386_v50  ;;  %v1651_v56 = vmul.f32 %v5380_v39, %v7388_v51 }
 0x305   : > { %v3069_v8 = vsel %vm2526_vm2, %v3066_v25, %v3068_v11  ;;  %v3147_v47 = vadd.f32 %v3067_v15, %v2903_v16  ;;  %v1548_v7 = vadd.f32 %v6503_v23, %v1516_v63  ;;  %v1615_v45 = vadd.f32 %v1583_v54, %v1547_v14 }
 0x306   : > { %4332 = vmatmul.mubr.bf16.gmra.mrb[52].mxu1 %v3328_v3  ;;  %v3148_v2 = vadd.f32 %v3069_v8, %v2904_v20  ;;  %v1652_v21 = vmul.f32 %v5380_v39, %v7389_v57  ;;  %v1730_v1 = vmul.f32 %v7330_v37, %v6327_v38  ;;  %v1731_v36 = vmul.f32 %v7330_v37, %v6337_v35 }
 0x307   : > { %v3179_v33 = vmul.f32 0.5, %v3147_v47  ;;  %v3211_v46 = vmul.f32 0.70710677, %v3147_v47  ;;  %v1616_v28 = vadd.f32 %v1584_v62, %v1548_v7  ;;  %v1683_v5 = vadd.f32 %v1651_v56, %v1615_v45 }
 0x308   : > { %v3180_v60 = vmul.f32 0.5, %v3148_v2  ;;  %v3212_v42 = vmul.f32 0.70710677, %v3148_v2  ;;  %v1732_v43 = vmul.f32 %v7330_v37, %v6424_v61  ;;  %v1849_v29 = vrot.slane %v1730_v1, 1 }
 0x309   : > { %4670 = verf.f32 %v3211_v46  ;;  %v1684_v48 = vadd.f32 %v1652_v21, %v1616_v28  ;;  %v1850_v12 = vrot.slane %v1731_v36, 1  ;;  %v1975_v22 = vmul.f32 %v5372_v26, %v7385_v10 }
 0x30a   : > { %4672 = verf.f32 %v3212_v42  ;;  %v1852_v18 = vrot.slane %v1732_v43, 1  ;;  %v1976_v9 = vmul.f32 %v5372_v26, %v7386_v50  ;;  %v1977_v13 = vmul.f32 %v5372_v26, %v7387_v44 }
 0x30b   : > { %v1851_v34 = vsel %vm1793_vm1, %v1849_v29, %v1850_v12  ;;  %v2219_v24 = vmul.f32 %v5376_v30, %v7388_v51  ;;  %v2220_v4 = vmul.f32 %v5376_v30, %v7389_v57  ;;  %v2093_v6 = vrot.slane %v1975_v22, 1 }
 0x30c   : > { %v1853_v17 = vsel %vm1793_vm1, %v1850_v12, %v1852_v18  ;;  %v1928_v59 = vadd.f32 %v1851_v34, %v1683_v5  ;;  %v2094_v58 = vrot.slane %v1976_v9, 1  ;;  %v2096_v49 = vrot.slane %v1977_v13, 1 }
 0x30d   : > { %v1929_v52 = vadd.f32 %v1853_v17, %v1684_v48  ;;  %v2221_v16 = vmul.f32 %v5376_v30, %v7390_v0  ;;  %v2337_v25 = vrot.slane %v2219_v24, 1  ;;  %v2338_v11 = vrot.slane %v2220_v4, 1 }
 0x30e   : > { %v2095_v20 = vsel %vm1793_vm1, %v2093_v6, %v2094_v58  ;;  %v2463_v63 = vmul.f32 %v7369_v53, %v6327_v38  ;;  %v2464_v14 = vmul.f32 %v7369_v53, %v6337_v35  ;;  %v2097_v3 = vsel %vm1793_vm1, %v2094_v58, %v2096_v49 }
 0x30f   : > { %v2172_v15 = vadd.f32 %v2095_v20, %v1928_v59  ;;  %v2340_v54 = vrot.slane %v2221_v16, 1  ;;  %v2465_v62 = vmul.f32 %v7369_v53, %v6424_v61  ;;  %v2173_v8 = vadd.f32 %v2097_v3, %v1929_v52 }
 0x310   : > { %v2339_v47 = vsel %vm1793_vm1, %v2337_v25, %v2338_v11  ;;  %v2582_v7 = vrot.slane %v2463_v63, 2  ;;  %v2583_v56 = vrot.slane %v2464_v14, 2  ;;  %v2708_v38 = vmul.f32 %v5374_v27, %v7385_v10 }
 0x311   : > { %v2341_v2 = vsel %vm1793_vm1, %v2338_v11, %v2340_v54  ;;  %v2416_v45 = vadd.f32 %v2339_v47, %v2172_v15  ;;  %v2585_v21 = vrot.slane %v2465_v62, 2  ;;  %v2709_v46 = vmul.f32 %v5374_v27, %v7386_v50  ;;  %v7391_v15 = vld [vmem:[#allocation40_spill] sm:$0xff] }
 0x312   : > { %v2417_v35 = vadd.f32 %v2341_v2, %v2173_v8  ;;  %v2584_v1 = vsel %vm2526_vm2, %v2582_v7, %v2583_v56  ;;  %v2710_v61 = vmul.f32 %v5374_v27, %v7387_v44  ;;  %v2826_v5 = vrot.slane %v2708_v38, 2 }
 0x313   : > { %v4671_v28 = vpop.eup %4670  ;;  %v2586_v36 = vsel %vm2526_vm2, %v2583_v56, %v2585_v21  ;;  %v2661_v42 = vadd.f32 %v2584_v1, %v2416_v45  ;;  %v2952_v43 = vmul.f32 %v6754_v55, %v7388_v51  ;;  %v2827_v18 = vrot.slane %v2709_v46, 2  ;;  %v7392_v56 = vld [vmem:[#allocation41_spill] sm:$0xff] }
 0x314   : > { %v4673_v48 = vpop.eup %4672  ;;  %v3275_v29 = vadd.f32 1.0, %v4671_v28  ;;  %v2662_v12 = vadd.f32 %v2586_v36, %v2417_v35  ;;  %v2829_v22 = vrot.slane %v2710_v61, 2  ;;  %v2953_v34 = vmul.f32 %v6754_v55, %v7389_v57 }
 0x315   : > { %v3276_v9 = vadd.f32 1.0, %v4673_v48  ;;  %v2954_v13 = vmul.f32 %v6754_v55, %v7390_v0  ;;  %v3070_v24 = vrot.slane %v2952_v43, 2  ;;  %v2828_v17 = vsel %vm2526_vm2, %v2826_v5, %v2827_v18 }
 0x316   : > { %v3307_v4 = vmul.f32 %v3275_v29, %v3179_v33  ;;  %v2830_v59 = vsel %vm2526_vm2, %v2827_v18, %v2829_v22  ;;  %v1517_v6 = vmul.f32 %v5365_v19, %v7385_v10  ;;  %v2905_v52 = vadd.f32 %v2828_v17, %v2661_v42 }
 0x317   : > { %v3308_v58 = vmul.f32 %v3276_v9, %v3180_v60  ;;  %v2906_v49 = vadd.f32 %v2830_v59, %v2662_v12  ;;  %v3071_v16 = vrot.slane %v2953_v34, 2  ;;  %v3073_v25 = vrot.slane %v2954_v13, 2 }
 0x318   : > { %v1518_v20 = vmul.f32 %v5365_v19, %v7386_v50  ;;  %v1549_v11 = vadd.f32 %v6503_v23, %v1517_v6  ;;  %v1585_v33 = vmul.f32 %v5378_v32, %v7388_v51  ;;  %v1586_v3 = vmul.f32 %v5378_v32, %v7389_v57 }
 0x319   : > { %v3329_v63 = vpack.c.bf16 %v3308_v58, %v3307_v4  ;;  %v3072_v14 = vsel %vm2526_vm2, %v3070_v24, %v3071_v16  ;;  %v1653_v60 = vmul.f32 %v5380_v39, %v7391_v15  ;;  %v3074_v54 = vsel %vm2526_vm2, %v3071_v16, %v3073_v25  ;;  %v7393_v16 = vld [vmem:[#allocation42_spill] sm:$0xff] }
 0x31a   : > { %v3149_v62 = vadd.f32 %v3072_v14, %v2905_v52  ;;  %v1550_v8 = vadd.f32 %v6503_v23, %v1518_v20  ;;  %v1617_v47 = vadd.f32 %v1585_v33, %v1549_v11  ;;  %v3150_v7 = vadd.f32 %v3074_v54, %v2906_v49 }
 0x31b   : > { %4335 = vmatprep.mubr.bf16.mxu1 %v3329_v63  ;;  %v1654_v2 = vmul.f32 %v5380_v39, %v7392_v56  ;;  %v1733_v45 = vmul.f32 %v7330_v37, %v7385_v10  ;;  %v1734_v21 = vmul.f32 %v7330_v37, %v7386_v50  ;;  %v1735_v28 = vmul.f32 %v7330_v37, %v7387_v44 }
 0x31c   : > { %v6848_v38 = vmul.f32 0.5, %v3149_v62  ;;  %v3213_v35 = vmul.f32 0.70710677, %v3149_v62  ;;  %v1618_v1 = vadd.f32 %v1586_v3, %v1550_v8  ;;  %v1685_v46 = vadd.f32 %v1653_v60, %v1617_v47 }
 0x31d   : > { %v6850_v61 = vmul.f32 0.5, %v3150_v7  ;;  %v3214_v23 = vmul.f32 0.70710677, %v3150_v7  ;;  %v1854_v36 = vrot.slane %v1733_v45, 1  ;;  %v6854_v42 = vpop.f32.mrb[36].mxu1  ;;  %v1855_v43 = vrot.slane %v1734_v21, 1 }
 0x31e   : > { %4674 = verf.f32 %v3213_v35  ;;  %v1686_v5 = vadd.f32 %v1654_v2, %v1618_v1  ;;  %v1978_v48 = vmul.f32 %v5372_v26, %v7388_v51  ;;  %v6858_v29 = vpop.f32.mrb[37].mxu1  ;;  %v1857_v12 = vrot.slane %v1735_v28, 1 }
 0x31f   : > { %4676 = verf.f32 %v3214_v23  ;;  %v1979_v18 = vmul.f32 %v5372_v26, %v7389_v57  ;;  %v1980_v22 = vmul.f32 %v5372_v26, %v7390_v0  ;;  %v6864_v9 = vpop.f32.mrb[38].mxu1  ;;  %v1856_v34 = vsel %vm1793_vm1, %v1854_v36, %v1855_v43 }
 0x320   : > { %v2098_v13 = vrot.slane %v1978_v48, 1  ;;  %v2222_v24 = vmul.f32 %v5376_v30, %v7391_v15  ;;  %v2223_v4 = vmul.f32 %v5376_v30, %v7392_v56  ;;  %v6871_v17 = vpop.f32.mrb[39].mxu1  ;;  %v1858_v59 = vsel %vm1793_vm1, %v1855_v43, %v1857_v12 }
 0x321   : > { %v1930_v6 = vadd.f32 %v1856_v34, %v1685_v46  ;;  %v2099_v58 = vrot.slane %v1979_v18, 1  ;;  %v2101_v52 = vrot.slane %v1980_v22, 1  ;;  %v1931_v49 = vadd.f32 %v1858_v59, %v1686_v5 }
 0x322   : > { %v2224_v25 = vmul.f32 %v5376_v30, %v7393_v16  ;;  %v2342_v20 = vrot.slane %v2222_v24, 1  ;;  %v2343_v11 = vrot.slane %v2223_v4, 1  ;;  %v2466_v14 = vmul.f32 %v7369_v53, %v7385_v10 }
 0x323   : > { %v2100_v33 = vsel %vm1793_vm1, %v2098_v13, %v2099_v58  ;;  %v2102_v63 = vsel %vm1793_vm1, %v2099_v58, %v2101_v52  ;;  %v2467_v3 = vmul.f32 %v7369_v53, %v7386_v50  ;;  %v2468_v47 = vmul.f32 %v7369_v53, %v7387_v44 }
 0x324   : > { %v2174_v60 = vadd.f32 %v2100_v33, %v1930_v6  ;;  %v2175_v54 = vadd.f32 %v2102_v63, %v1931_v49  ;;  %v2344_v62 = vsel %vm1793_vm1, %v2342_v20, %v2343_v11  ;;  %v2345_v8 = vrot.slane %v2224_v25, 1 }
 0x325   : > { %v2587_v7 = vrot.slane %v2466_v14, 2  ;;  %v2588_v2 = vrot.slane %v2467_v3, 2  ;;  %v2711_v45 = vmul.f32 %v5374_v27, %v7388_v51  ;;  %v2712_v10 = vmul.f32 %v5374_v27, %v7389_v57 }
 0x326   : > { %v2346_v21 = vsel %vm1793_vm1, %v2343_v11, %v2345_v8  ;;  %v2418_v35 = vadd.f32 %v2344_v62, %v2174_v60  ;;  %v2713_v50 = vmul.f32 %v5374_v27, %v7390_v0  ;;  %v2590_v23 = vrot.slane %v2468_v47, 2  ;;  %v6917_v8 = vld [vmem:[%s7200_s6] ss:$0 sm:$0xff] }
 0x327   : > { %v2419_v1 = vadd.f32 %v2346_v21, %v2175_v54  ;;  %v2589_v46 = vsel %vm2526_vm2, %v2587_v7, %v2588_v2  ;;  %v2831_v28 = vrot.slane %v2711_v45, 2  ;;  %v2832_v5 = vrot.slane %v2712_v10, 2  ;;  %v7394_v45 = vld [vmem:[#allocation44_spill] sm:$0xff] }
 0x328   : > { %v4675_v44 = vpop.eup %4674  ;;  %v2663_v36 = vadd.f32 %v2589_v46, %v2418_v35  ;;  %v2834_v43 = vrot.slane %v2713_v50, 2  ;;  %v2955_v48 = vmul.f32 %v6754_v55, %v7391_v15  ;;  %v2591_v22 = vsel %vm2526_vm2, %v2588_v2, %v2590_v23  ;;  %v7395_v35 = vld [vmem:[#allocation45_spill] sm:$0xff] }
 0x329   : > { %v4677_v12 = vpop.eup %4676  ;;  %v3277_v18 = vadd.f32 1.0, %v4675_v44  ;;  %v2956_v34 = vmul.f32 %v6754_v55, %v7392_v56  ;;  %v2957_v13 = vmul.f32 %v6754_v55, %v7393_v16  ;;  %v2664_v4 = vadd.f32 %v2591_v22, %v2419_v1 }
 0x32a   : > { %v3278_v24 = vadd.f32 1.0, %v4677_v12  ;;  %v2833_v59 = vsel %vm2526_vm2, %v2831_v28, %v2832_v5  ;;  %v2835_v6 = vsel %vm2526_vm2, %v2832_v5, %v2834_v43  ;;  %v3075_v49 = vrot.slane %v2955_v48, 2 }
 0x32b   : > { %v3309_v58 = vmul.f32 %v3277_v18, %v6848_v38  ;;  %v2907_v52 = vadd.f32 %v2833_v59, %v2663_v36  ;;  %v3076_v25 = vrot.slane %v2956_v34, 2  ;;  %v2908_v11 = vadd.f32 %v2835_v6, %v2664_v4 }
 0x32c   : > { %v3310_v20 = vmul.f32 %v3278_v24, %v6850_v61  ;;  %v3078_v33 = vrot.slane %v2957_v13, 2  ;;  %v1519_v63 = vmul.f32 %v5365_v19, %v7388_v51  ;;  %v1520_v3 = vmul.f32 %v5365_v19, %v7389_v57 }
 0x32d   : > { %v3077_v14 = vsel %vm2526_vm2, %v3075_v49, %v3076_v25  ;;  %v1587_v60 = vmul.f32 %v5378_v32, %v7391_v15  ;;  %v1588_v38 = vmul.f32 %v5378_v32, %v7392_v56  ;;  %v1655_v21 = vmul.f32 %v5380_v39, %v7394_v45  ;;  %v7396_v49 = vld [vmem:[#allocation49_spill] sm:$0xff] }
 0x32e   : > { %v3330_v54 = vpack.c.bf16 %v3310_v20, %v3309_v58  ;;  %v3079_v62 = vsel %vm2526_vm2, %v3076_v25, %v3078_v33  ;;  %v3151_v61 = vadd.f32 %v3077_v14, %v2907_v52  ;;  %v1551_v47 = vadd.f32 %v6917_v8, %v1519_v63 }
 0x32f   : > { %v3152_v7 = vadd.f32 %v3079_v62, %v2908_v11  ;;  %v1552_v2 = vadd.f32 %v6917_v8, %v1520_v3  ;;  %v1656_v10 = vmul.f32 %v5380_v39, %v7395_v35  ;;  %v1736_v23 = vmul.f32 %v7330_v37, %v7388_v51 }
 0x330   : > { %4336 = vmatmul.mubr.bf16.gmra.mrb[56].mxu1 %v3330_v54  ;;  %v3183_v50 = vmul.f32 0.5, %v3151_v61  ;;  %v3215_v1 = vmul.f32 0.70710677, %v3151_v61  ;;  %v1619_v46 = vadd.f32 %v1587_v60, %v1551_v47  ;;  %v1737_v5 = vmul.f32 %v7330_v37, %v7389_v57 }
 0x331   : > { %v6927_v28 = vmul.f32 0.5, %v3152_v7  ;;  %v3216_v44 = vmul.f32 0.70710677, %v3152_v7  ;;  %v1620_v36 = vadd.f32 %v1588_v38, %v1552_v2  ;;  %v1738_v48 = vmul.f32 %v7330_v37, %v7390_v0 }
 0x332   : > { %4678 = verf.f32 %v3215_v1  ;;  %v1687_v43 = vadd.f32 %v1655_v21, %v1619_v46  ;;  %v1859_v12 = vrot.slane %v1736_v23, 1  ;;  %v1860_v22 = vrot.slane %v1737_v5, 1 }
 0x333   : > { %4680 = verf.f32 %v3216_v44  ;;  %v1688_v18 = vadd.f32 %v1656_v10, %v1620_v36  ;;  %v1981_v34 = vmul.f32 %v5372_v26, %v7391_v15  ;;  %v1862_v13 = vrot.slane %v1738_v48, 1 }
 0x334   : > { %v1982_v24 = vmul.f32 %v5372_v26, %v7392_v56  ;;  %v1983_v4 = vmul.f32 %v5372_v26, %v7393_v16  ;;  %v2225_v59 = vmul.f32 %v5376_v30, %v7394_v45  ;;  %v1861_v6 = vsel %vm1793_vm1, %v1859_v12, %v1860_v22 }
 0x335   : > { %v2103_v58 = vrot.slane %v1981_v34, 1  ;;  %v2226_v52 = vmul.f32 %v5376_v30, %v7395_v35  ;;  %v2227_v25 = vmul.f32 %v5376_v30, %v7396_v49  ;;  %v1863_v20 = vsel %vm1793_vm1, %v1860_v22, %v1862_v13 }
 0x336   : > { %v1932_v11 = vadd.f32 %v1861_v6, %v1687_v43  ;;  %v2104_v33 = vrot.slane %v1982_v24, 1  ;;  %v2106_v63 = vrot.slane %v1983_v4, 1  ;;  %v1933_v14 = vadd.f32 %v1863_v20, %v1688_v18 }
 0x337   : > { %v2347_v3 = vrot.slane %v2225_v59, 1  ;;  %v2348_v60 = vrot.slane %v2226_v52, 1  ;;  %v2350_v38 = vrot.slane %v2227_v25, 1  ;;  %v2469_v61 = vmul.f32 %v7369_v53, %v7388_v51 }
 0x338   : > { %v2105_v54 = vsel %vm1793_vm1, %v2103_v58, %v2104_v33  ;;  %v2107_v62 = vsel %vm1793_vm1, %v2104_v33, %v2106_v63  ;;  %v2470_v47 = vmul.f32 %v7369_v53, %v7389_v57  ;;  %v2471_v1 = vmul.f32 %v7369_v53, %v7390_v0 }
 0x339   : > { %v2176_v7 = vadd.f32 %v2105_v54, %v1932_v11  ;;  %v2177_v2 = vadd.f32 %v2107_v62, %v1933_v14  ;;  %v2349_v21 = vsel %vm1793_vm1, %v2347_v3, %v2348_v60  ;;  %v2351_v10 = vsel %vm1793_vm1, %v2348_v60, %v2350_v38 }
 0x33a   : > { %v2592_v46 = vrot.slane %v2469_v61, 2  ;;  %v2593_v23 = vrot.slane %v2470_v47, 2  ;;  %v2714_v44 = vmul.f32 %v5374_v27, %v7391_v15  ;;  %v2715_v51 = vmul.f32 %v5374_v27, %v7392_v56 }
 0x33b   : > { %v2420_v36 = vadd.f32 %v2349_v21, %v2176_v7  ;;  %v2421_v5 = vadd.f32 %v2351_v10, %v2177_v2  ;;  %v2716_v57 = vmul.f32 %v5374_v27, %v7393_v16  ;;  %v2595_v12 = vrot.slane %v2471_v1, 2 }
 0x33c   : > { %v4679_v43 = vpop.eup %4678  ;;  %v2594_v48 = vsel %vm2526_vm2, %v2592_v46, %v2593_v23  ;;  %v2836_v18 = vrot.slane %v2714_v44, 2  ;;  %v2958_v0 = vmul.f32 %v6754_v55, %v7394_v45  ;;  %v2837_v24 = vrot.slane %v2715_v51, 2  ;;  %v7398_v44 = vld [vmem:[#allocation21_spill] sm:$0xff] }
 0x33d   : > { %v4681_v22 = vpop.eup %4680  ;;  %v3279_v34 = vadd.f32 1.0, %v4679_v43  ;;  %v2665_v13 = vadd.f32 %v2594_v48, %v2420_v36  ;;  %v2839_v4 = vrot.slane %v2716_v57, 2  ;;  %v2596_v6 = vsel %vm2526_vm2, %v2593_v23, %v2595_v12  ;;  %v7397_v23 = vld [vmem:[#allocation51_spill] sm:$0xff] }
 0x33e   : > { %v3280_v59 = vadd.f32 1.0, %v4681_v22  ;;  %v2959_v58 = vmul.f32 %v6754_v55, %v7395_v35  ;;  %v2960_v52 = vmul.f32 %v6754_v55, %v7396_v49  ;;  %v2666_v20 = vadd.f32 %v2596_v6, %v2421_v5 }
 0x33f   : > { %v3311_v25 = vmul.f32 %v3279_v34, %v3183_v50  ;;  %v2838_v11 = vsel %vm2526_vm2, %v2836_v18, %v2837_v24  ;;  %v2840_v33 = vsel %vm2526_vm2, %v2837_v24, %v2839_v4  ;;  %v3080_v3 = vrot.slane %v2958_v0, 2 }
 0x340   : > { %v3312_v63 = vmul.f32 %v3280_v59, %v6927_v28  ;;  %v2909_v14 = vadd.f32 %v2838_v11, %v2665_v13  ;;  %v3081_v60 = vrot.slane %v2959_v58, 2  ;;  %v2910_v38 = vadd.f32 %v2840_v33, %v2666_v20 }
 0x341   : > { %v3083_v54 = vrot.slane %v2960_v52, 2  ;;  %v1521_v62 = vmul.f32 %v5365_v19, %v7391_v15  ;;  %v1522_v61 = vmul.f32 %v5365_v19, %v7392_v56  ;;  %v1589_v7 = vmul.f32 %v5378_v32, %v7394_v45 }
 0x342   : > { %v3331_v47 = vpack.c.bf16 %v3312_v63, %v3311_v25  ;;  %v3082_v50 = vsel %vm2526_vm2, %v3080_v3, %v3081_v60  ;;  %v1590_v28 = vmul.f32 %v5378_v32, %v7395_v35  ;;  %v1657_v19 = vmul.f32 %v5380_v39, %v7397_v23 }
 0x343   : > { %v3084_v2 = vsel %vm2526_vm2, %v3081_v60, %v3083_v54  ;;  %v3153_v21 = vadd.f32 %v3082_v50, %v2909_v14  ;;  %v1553_v10 = vadd.f32 %v6917_v8, %v1521_v62  ;;  %v1554_v1 = vadd.f32 %v6917_v8, %v1522_v61 }
 0x344   : > { %4339 = vmatprep.mubr.bf16.mxu1 %v3331_v47  ;;  %v3154_v46 = vadd.f32 %v3084_v2, %v2910_v38  ;;  %v1658_v36 = vmul.f32 %v5380_v39, %v7398_v44  ;;  %v1739_v5 = vmul.f32 %v7330_v37, %v7391_v15  ;;  %v1740_v8 = vmul.f32 %v7330_v37, %v7392_v56 }
 0x345   : > { %v3185_v51 = vmul.f32 0.5, %v3153_v21  ;;  %v3217_v32 = vmul.f32 0.70710677, %v3153_v21  ;;  %v1621_v57 = vadd.f32 %v1589_v7, %v1553_v10  ;;  %v1622_v43 = vadd.f32 %v1590_v28, %v1554_v1  ;;  %v7399_v28 = vld [vmem:[#allocation24_spill] sm:$0xff] }
 0x346   : > { %v3186_v48 = vmul.f32 0.5, %v3154_v46  ;;  %v3218_v12 = vmul.f32 0.70710677, %v3154_v46  ;;  %v1741_v18 = vmul.f32 %v7330_v37, %v7393_v16  ;;  %v1864_v34 = vrot.slane %v1739_v5, 1 }
 0x347   : > { %4682 = verf.f32 %v3217_v32  ;;  %v1689_v0 = vadd.f32 %v1657_v19, %v1621_v57  ;;  %v1690_v22 = vadd.f32 %v1658_v36, %v1622_v43  ;;  %v1865_v39 = vrot.slane %v1740_v8, 1 }
 0x348   : > { %4684 = verf.f32 %v3218_v12  ;;  %v1867_v13 = vrot.slane %v1741_v18, 1  ;;  %v1984_v24 = vmul.f32 %v5372_v26, %v7394_v45  ;;  %v1985_v4 = vmul.f32 %v5372_v26, %v7395_v35 }
 0x349   : > { %v1986_v59 = vmul.f32 %v5372_v26, %v7396_v49  ;;  %v2228_v6 = vmul.f32 %v5376_v30, %v7397_v23  ;;  %v2229_v37 = vmul.f32 %v5376_v30, %v7398_v44  ;;  %v1866_v58 = vsel %vm1793_vm1, %v1864_v34, %v1865_v39 }
 0x34a   : > { %v1868_v52 = vsel %vm1793_vm1, %v1865_v39, %v1867_v13  ;;  %v2108_v25 = vrot.slane %v1984_v24, 1  ;;  %v2472_v20 = vmul.f32 %v7369_v53, %v7391_v15  ;;  %v1934_v11 = vadd.f32 %v1866_v58, %v1689_v0 }
 0x34b   : > { %v1935_v33 = vadd.f32 %v1868_v52, %v1690_v22  ;;  %v2109_v63 = vrot.slane %v1985_v4, 1  ;;  %v2111_v14 = vrot.slane %v1986_v59, 1  ;;  %v2352_v3 = vrot.slane %v2228_v6, 1  ;;  %v7401_v59 = vld [vmem:[#allocation30_spill] sm:$0xff] }
 0x34c   : > { %v2353_v60 = vrot.slane %v2229_v37, 1  ;;  %v2473_v38 = vmul.f32 %v7369_v53, %v7392_v56  ;;  %v2474_v30 = vmul.f32 %v7369_v53, %v7393_v16  ;;  %v2597_v61 = vrot.slane %v2472_v20, 2 }
 0x34d   : > { %v2110_v54 = vsel %vm1793_vm1, %v2108_v25, %v2109_v63  ;;  %v2112_v62 = vsel %vm1793_vm1, %v2109_v63, %v2111_v14  ;;  %v2717_v15 = vmul.f32 %v5374_v27, %v7394_v45  ;;  %v7400_v2 = vrot.slane %v7399_v28, 1 }
 0x34e   : > { %v2178_v47 = vadd.f32 %v2110_v54, %v1934_v11  ;;  %v2179_v50 = vadd.f32 %v2112_v62, %v1935_v33  ;;  %v2354_v7 = vsel %vm1793_vm1, %v2352_v3, %v2353_v60  ;;  %v2598_v56 = vrot.slane %v2473_v38, 2 }
 0x34f   : > { %v2356_v21 = vsel %vm1793_vm1, %v2353_v60, %v7400_v2  ;;  %v2600_v10 = vrot.slane %v2474_v30, 2  ;;  %v2718_v16 = vmul.f32 %v5374_v27, %v7395_v35  ;;  %v2719_v1 = vmul.f32 %v5374_v27, %v7396_v49  ;;  %v7403_v60 = vld [vmem:[#allocation34_spill] sm:$0xff] }
 0x350   : > { %v2422_v46 = vadd.f32 %v2354_v7, %v2178_v47  ;;  %v2423_v19 = vadd.f32 %v2356_v21, %v2179_v50  ;;  %v2841_v36 = vrot.slane %v2717_v15, 2  ;;  %v2961_v5 = vmul.f32 %v6754_v55, %v7397_v23 }
 0x351   : > { %v4683_v32 = vpop.eup %4682  ;;  %v2599_v57 = vsel %vm2526_vm2, %v2597_v61, %v2598_v56  ;;  %v2601_v43 = vsel %vm2526_vm2, %v2598_v56, %v2600_v10  ;;  %v2842_v12 = vrot.slane %v2718_v16, 2  ;;  %v2844_v8 = vrot.slane %v2719_v1, 2  ;;  %v7405_v10 = vld [vmem:[#allocation25_spill] sm:$0xff] }
 0x352   : > { %v4685_v18 = vpop.eup %4684  ;;  %v3281_v0 = vadd.f32 1.0, %v4683_v32  ;;  %v2667_v22 = vadd.f32 %v2599_v57, %v2422_v46  ;;  %v2668_v34 = vadd.f32 %v2601_v43, %v2423_v19  ;;  %v2962_v39 = vmul.f32 %v6754_v55, %v7398_v44  ;;  %v7410_v57 = vld [vmem:[#allocation59_spill] sm:$0xff] }
 0x353   : > { %v3282_v13 = vadd.f32 1.0, %v4685_v18  ;;  %v2843_v24 = vsel %vm2526_vm2, %v2841_v36, %v2842_v12  ;;  %v2845_v4 = vsel %vm2526_vm2, %v2842_v12, %v2844_v8  ;;  %v2963_v6 = vmul.f32 %v6754_v55, %v7401_v59 }
 0x354   : > { %v3313_v37 = vmul.f32 %v3281_v0, %v3185_v51  ;;  %v2911_v58 = vadd.f32 %v2843_v24, %v2667_v22  ;;  %v2912_v52 = vadd.f32 %v2845_v4, %v2668_v34  ;;  %v3085_v25 = vrot.slane %v2961_v5, 2  ;;  %v7411_v0 = vld [vmem:[#allocation56_spill] sm:$0xff]  ;;  %v7413_v34 = vld [vmem:[#allocation29_spill] sm:$0xff] }
 0x355   : > { %v3314_v20 = vmul.f32 %v3282_v13, %v3186_v48  ;;  %v3086_v11 = vrot.slane %v2962_v39, 2  ;;  %v3088_v33 = vrot.slane %v2963_v6, 2  ;;  %v1987_v63 = vmul.f32 %v5372_v26, %v7397_v23 }
 0x356   : > { %v1988_v14 = vmul.f32 %v5372_v26, %v7398_v44  ;;  %v7402_v3 = vrot.slane %v6003_v31, 1  ;;  %v7404_v38 = vrot.slane %v7403_v60, 1  ;;  %v2475_v55 = vmul.f32 %v7369_v53, %v7394_v45  ;;  %v4321_v48 = vpop.f32.mrb[40].mxu1 }
 0x357   : > { %v2476_v51 = vmul.f32 %v7369_v53, %v7395_v35  ;;  %v3332_v54 = vpack.c.bf16 %v3314_v20, %v3313_v37  ;;  %v3087_v62 = vsel %vm2526_vm2, %v3085_v25, %v3086_v11  ;;  %v3089_v61 = vsel %vm2526_vm2, %v3086_v11, %v3088_v33  ;;  %v3456_v26 = vpop.f32.mrb[41].mxu1 }
 0x358   : > { %v2359_v30 = vsel %vm1793_vm1, %v7404_v38, %v7402_v3  ;;  %v2113_v15 = vrot.slane %v1987_v63, 1  ;;  %v3155_v47 = vadd.f32 %v3087_v62, %v2911_v58  ;;  %v3156_v31 = vadd.f32 %v3089_v61, %v2912_v52  ;;  %v4322_v28 = vpop.f32.mrb[42].mxu1 }
 0x359   : > { %v2114_v50 = vrot.slane %v1988_v14, 1  ;;  %v2477_v7 = vmul.f32 %v7369_v53, %v7396_v49  ;;  %4340 = vmatmul.mubr.bf16.gmra.mrb[60].mxu1 %v3332_v54  ;;  %v2602_v45 = vrot.slane %v2475_v55, 2  ;;  %v2603_v2 = vrot.slane %v2476_v51, 2  ;;  %v3459_v56 = vpop.f32.mrb[43].mxu1  ;;  %v7406_v49 = vld [vmem:[#allocation28_spill] sm:$0xff] }
 0x35a   : > { %v2720_v35 = vmul.f32 %v5374_v27, %v7397_v23  ;;  %v2721_v21 = vmul.f32 %v5374_v27, %v7398_v44  ;;  %v2849_v16 = vrot.slane %v7405_v10, 2  ;;  %v3093_v1 = vrot.slane %v6123_v40, 2  ;;  %v7067_v27 = vld [vmem:[%s7408_s8] ss:$0 sm:$0xff] }
 0x35b   : > { %v3219_v46 = vmul.f32 0.70710677, %v3155_v47  ;;  %v3220_v19 = vmul.f32 0.70710677, %v3156_v31  ;;  %v2115_v53 = vsel %vm1793_vm1, %v2113_v15, %v2114_v50  ;;  %v7407_v36 = vrot.slane %v7406_v49, 1  ;;  %v7409_v44 = vld [vmem:[#allocation55_spill] sm:$0xff] }
 0x35c   : > { %v2604_v32 = vsel %vm2526_vm2, %v2602_v45, %v2603_v2  ;;  %v2605_v23 = vrot.slane %v2477_v7, 2  ;;  %v2180_v40 = vadd.f32 %v2115_v53, %v7409_v44  ;;  %v2846_v12 = vrot.slane %v2720_v35, 2 }
 0x35d   : > { %v2117_v5 = vsel %vm1793_vm1, %v2114_v50, %v7407_v36  ;;  %4686 = verf.f32 %v3219_v46  ;;  %v2847_v18 = vrot.slane %v2721_v21, 2  ;;  %v7412_v22 = vrot.slane %v7411_v0, 2 }
 0x35e   : > { %v2181_v43 = vadd.f32 %v2117_v5, %v7410_v57  ;;  %4688 = verf.f32 %v3220_v19  ;;  %v2606_v8 = vsel %vm2526_vm2, %v2603_v2, %v2605_v23  ;;  %v7414_v39 = vrot.slane %v7413_v34, 2 }
 0x35f   : > { %v2424_v24 = vadd.f32 %v2359_v30, %v2180_v40  ;;  %v7415_v59 = vmov %v7412_v22  ;;  %v3449_v37 = vadd.f32 %v6854_v42, %v7067_v27  ;;  %v2848_v58 = vsel %vm2526_vm2, %v2846_v12, %v2847_v18 }
 0x360   : > { %v3092_v13 = vsel %vm2526_vm2, %v7414_v39, %v7412_v22  ;;  %v2425_v4 = vadd.f32 %v6143_v41, %v2181_v43  ;;  %v3094_v6 = vsel %vm2526_vm2, %v7415_v59, %v3093_v1  ;;  %v2850_v52 = vsel %vm2526_vm2, %v2847_v18, %v2849_v16 }
 0x361   : > { %v3441_v25 = vadd.f32 %v7067_v27, %v6858_v29  ;;  %v3452_v20 = vadd.f32 %v6864_v9, %v7067_v27  ;;  %v2669_v11 = vadd.f32 %v2604_v32, %v2424_v24  ;;  %v3444_v41 = vadd.f32 %v7067_v27, %v6871_v17 }
 0x362   : > { %v2670_v33 = vadd.f32 %v2606_v8, %v2425_v4  ;;  %v3465_v63 = vadd.f32 %v4321_v48, %v7067_v27  ;;  %v3457_v42 = vadd.f32 %v7067_v27, %v3456_v26  ;;  %v3468_v3 = vadd.f32 %v4322_v28, %v7067_v27 }
 0x363   : > { %v4029_v14 = vpack.c.bf16 %v3452_v20, %v3449_v37  ;;  %v3460_v60 = vadd.f32 %v7067_v27, %v3459_v56  ;;  %v2913_v38 = vadd.f32 %v2848_v58, %v2669_v11  ;;  %v4024_v29 = vpack.c.bf16 %v3444_v41, %v3441_v25 }
 0x364   : > { %v2914_v30 = vadd.f32 %v2850_v52, %v2670_v33  ;;  %v4039_v9 = vpack.c.bf16 %v3468_v3, %v3465_v63  ;;  %v3187_v48 = vmul.f32 0.5, %v3155_v47  ;;  %v3188_v62 = vmul.f32 0.5, %v3156_v31 }
 0x365   : > { %4101 = vst [vmem:[%s7096_s20 + $0x8] sm:$0xff] %v4029_v14   ;;  %v4034_v17 = vpack.c.bf16 %v3460_v60, %v3457_v42  ;;  %v3157_v55 = vadd.f32 %v3092_v13, %v2913_v38  ;;  %4025 = vst [vmem:[%s7096_s20] sm:$0xff] %v4024_v29  }
 0x366   : > { %v3158_v51 = vadd.f32 %v3094_v6, %v2914_v30  ;;  %4103 = vst [vmem:[%s7096_s20 + $0x18] sm:$0xff] %v4039_v9  }
 0x367   : > { %4102 = vst [vmem:[%s7096_s20 + $0x10] sm:$0xff] %v4034_v17   ;;  %v4687_v54 = vpop.eup %4686  ;;  %v3221_v61 = vmul.f32 0.70710677, %v3157_v55  ;;  %v3189_v35 = vmul.f32 0.5, %v3157_v55 }
 0x368   : > { %v3222_v15 = vmul.f32 0.70710677, %v3158_v51  ;;  %v4689_v26 = vpop.eup %4688  ;;  %v3283_v50 = vadd.f32 1.0, %v4687_v54  ;;  %v3190_v56 = vmul.f32 0.5, %v3158_v51 }
 0x369   : > { %v3284_v7 = vadd.f32 1.0, %v4689_v26  ;;  %4690 = verf.f32 %v3221_v61 }
 0x36a   : > { %v3315_v28 = vmul.f32 %v3283_v50, %v3187_v48  ;;  %4692 = verf.f32 %v3222_v15 }
 0x36b   : > { %v3316_v45 = vmul.f32 %v3284_v7, %v3188_v62 }
 0x36d   : > { %v3333_v2 = vpack.c.bf16 %v3316_v45, %v3315_v28 }
 0x36f   : > { %4343 = vmatprep.mubr.bf16.mxu1 %v3333_v2 }
 0x373   : > { %v4691_v21 = vpop.eup %4690 }
 0x374   : > { %v4693_v10 = vpop.eup %4692  ;;  %v3285_v47 = vadd.f32 1.0, %v4691_v21 }
 0x375   : > { %v3286_v16 = vadd.f32 1.0, %v4693_v10 }
 0x376   : > { %v3317_v31 = vmul.f32 %v3285_v47, %v3189_v35 }
 0x377   : > { %v3318_v1 = vmul.f32 %v3286_v16, %v3190_v56 }
 0x379   : > { %v3334_v46 = vpack.c.bf16 %v3318_v1, %v3317_v31 }
 0x37b   : > { %4344 = vmatmul.mubr.bf16.gmra.mrb[64].mxu1 %v3334_v46 }
 0x388   : > { %v4325_v19 = vpop.f32.mrb[44].mxu1 }
 0x389   : > { %v3472_v53 = vpop.f32.mrb[45].mxu1  ;;  %v3481_v36 = vadd.f32 %v4325_v19, %v7067_v27 }
 0x38a   : > { %v4326_v49 = vpop.f32.mrb[46].mxu1  ;;  %v3473_v23 = vadd.f32 %v7067_v27, %v3472_v53 }
 0x38b   : > { %v3484_v5 = vadd.f32 %v4326_v49, %v7067_v27  ;;  %v3475_v32 = vpop.f32.mrb[47].mxu1 }
 0x38c   : > { %v3476_v44 = vadd.f32 %v7067_v27, %v3475_v32 }
 0x38d   : > { %v4049_v40 = vpack.c.bf16 %v3484_v5, %v3481_v36 }
 0x38e   : > { %v4044_v57 = vpack.c.bf16 %v3476_v44, %v3473_v23 }
 0x38f   : > { %4105 = vst [vmem:[%s7096_s20 + $0x28] sm:$0xff] %v4049_v40  }
 0x390   : > { %4104 = vst [vmem:[%s7096_s20 + $0x20] sm:$0xff] %v4044_v57  }
 0x3b0   : > { %v4329_v43 = vpop.f32.mrb[48].mxu1 }
 0x3b1   : > { %v3488_v12 = vpop.f32.mrb[49].mxu1  ;;  %v3497_v18 = vadd.f32 %v4329_v43, %v7067_v27 }
 0x3b2   : > { %v4330_v8 = vpop.f32.mrb[50].mxu1  ;;  %v3489_v34 = vadd.f32 %v7067_v27, %v3488_v12 }
 0x3b3   : > { %v3500_v0 = vadd.f32 %v4330_v8, %v7067_v27  ;;  %v3491_v22 = vpop.f32.mrb[51].mxu1 }
 0x3b4   : > { %v3492_v39 = vadd.f32 %v7067_v27, %v3491_v22 }
 0x3b5   : > { %v4059_v13 = vpack.c.bf16 %v3500_v0, %v3497_v18 }
 0x3b6   : > { %v4054_v24 = vpack.c.bf16 %v3492_v39, %v3489_v34 }
 0x3b7   : > { %4107 = vst [vmem:[%s7096_s20 + $0x38] sm:$0xff] %v4059_v13  }
 0x3b8   : > { %4106 = vst [vmem:[%s7096_s20 + $0x30] sm:$0xff] %v4054_v24  }
 0x3d9   : > { %v4333_v4 = vpop.f32.mrb[52].mxu1 }
 0x3da   : > { %v3504_v59 = vpop.f32.mrb[53].mxu1  ;;  %v3513_v37 = vadd.f32 %v4333_v4, %v7067_v27 }
 0x3db   : > { %v4334_v6 = vpop.f32.mrb[54].mxu1  ;;  %v3505_v25 = vadd.f32 %v7067_v27, %v3504_v59 }
 0x3dc   : > { %v3516_v58 = vadd.f32 %v4334_v6, %v7067_v27  ;;  %v3507_v52 = vpop.f32.mrb[55].mxu1 }
 0x3dd   : > { %v3508_v20 = vadd.f32 %v7067_v27, %v3507_v52 }
 0x3de   : > { %v4069_v11 = vpack.c.bf16 %v3516_v58, %v3513_v37 }
 0x3df   : > { %v4064_v33 = vpack.c.bf16 %v3508_v20, %v3505_v25 }
 0x3e0   : > { %4109 = vst [vmem:[%s7096_s20 + $0x48] sm:$0xff] %v4069_v11  }
 0x3e1   : > { %4108 = vst [vmem:[%s7096_s20 + $0x40] sm:$0xff] %v4064_v33  }
 0x403   : > { %v4337_v41 = vpop.f32.mrb[56].mxu1 }
 0x404   : > { %v3520_v63 = vpop.f32.mrb[57].mxu1  ;;  %v3529_v42 = vadd.f32 %v4337_v41, %v7067_v27 }
 0x405   : > { %v4338_v14 = vpop.f32.mrb[58].mxu1  ;;  %v3521_v38 = vadd.f32 %v7067_v27, %v3520_v63 }
 0x406   : > { %v3532_v3 = vadd.f32 %v4338_v14, %v7067_v27  ;;  %v3523_v60 = vpop.f32.mrb[59].mxu1 }
 0x407   : > { %v3524_v30 = vadd.f32 %v7067_v27, %v3523_v60 }
 0x408   : > { %v4079_v29 = vpack.c.bf16 %v3532_v3, %v3529_v42 }
 0x409   : > { %v4074_v9 = vpack.c.bf16 %v3524_v30, %v3521_v38 }
 0x40a   : > { %4111 = vst [vmem:[%s7096_s20 + $0x58] sm:$0xff] %v4079_v29  }
 0x40b   : > { %4110 = vst [vmem:[%s7096_s20 + $0x50] sm:$0xff] %v4074_v9  }
 0x42c   : > { %v4341_v17 = vpop.f32.mrb[60].mxu1 }
 0x42d   : > { %v3536_v55 = vpop.f32.mrb[61].mxu1  ;;  %v3545_v48 = vadd.f32 %v4341_v17, %v7067_v27 }
 0x42e   : > { %v4342_v51 = vpop.f32.mrb[62].mxu1  ;;  %v3537_v61 = vadd.f32 %v7067_v27, %v3536_v55 }
 0x42f   : > { %v3548_v54 = vadd.f32 %v4342_v51, %v7067_v27  ;;  %v3539_v62 = vpop.f32.mrb[63].mxu1 }
 0x430   : > { %v3540_v15 = vadd.f32 %v7067_v27, %v3539_v62 }
 0x431   : > { %v4089_v26 = vpack.c.bf16 %v3548_v54, %v3545_v48 }
 0x432   : > { %v4084_v50 = vpack.c.bf16 %v3540_v15, %v3537_v61 }
 0x433   : > { %4113 = vst [vmem:[%s7096_s20 + $0x68] sm:$0xff] %v4089_v26  }
 0x434   : > { %4112 = vst [vmem:[%s7096_s20 + $0x60] sm:$0xff] %v4084_v50  }
 0x44e   : > { %v4345_v7 = vpop.f32.mrb[64].mxu1 }
 0x44f   : > { %v3552_v28 = vpop.f32.mrb[65].mxu1  ;;  %v3561_v2 = vadd.f32 %v4345_v7, %v7067_v27 }
 0x450   : > { %v4346_v45 = vpop.f32.mrb[66].mxu1  ;;  %v3553_v56 = vadd.f32 %v7067_v27, %v3552_v28 }
 0x451   : > { %v3564_v35 = vadd.f32 %v4346_v45, %v7067_v27  ;;  %v3555_v21 = vpop.f32.mrb[67].mxu1 }
 0x452   : > { %v3556_v10 = vadd.f32 %v7067_v27, %v3555_v21 }
 0x453   : > { %v4099_v47 = vpack.c.bf16 %v3564_v35, %v3561_v2 }
 0x454   : > { %v4094_v16 = vpack.c.bf16 %v3556_v10, %v3553_v56 }
 0x455   : > { %4115 = vst [vmem:[%s7096_s20 + $0x78] sm:$0xff] %v4099_v47  }
 0x456   : > { %4114 = vst [vmem:[%s7096_s20 + $0x70] sm:$0xff] %v4094_v16  }
 0x457   : > { %4859 = shalt.err (!%p4856_p0)
}
 0x458   : > { %s4860_s9 = scalar_lea.hbm %s7141_s19, 2048  ;;  %s4864_s20 = scalar_lea.hbm %s7417_s17, 4096 }
 0x459   : > { %p4861_p4 = scmp.ne.s32.totalorder %s7141_s19, %s4860_s9  ;;  %p4865_p12 = scmp.lt.u32.totalorder %s7141_s19, %s7417_s17 }
 0x45a   : > { %p4866_p1 = scmp.lt.u32.totalorder %s4864_s20, %s4860_s9  ;;  %p4868_p8 = scmp.lt.u32.totalorder %s4860_s9, %s7141_s19 }
 0x45b   : > { %p4862_p13 = pnand %p4861_p4, %p5179_p5 }
 0x45c   : > { %p4867_p11 = por %p4866_p1, %p4865_p12 }
 0x45d   : > { %p4863_p2 = pneg %p4862_p13 }
 0x45e   : > { %p4869_p6 = por %p4868_p8, %p4867_p11 }
 0x460   : > { %p4870_p10 = pnand %p4869_p6, %p4863_p2 }
 0x462   : > { %4873 = shalt.err (!%p4870_p10)
}
 0x463   : > { %s4952_s23 = smov 64   ;;  %s4953_s18 = smov 4  }
 0x464   : > { %4384 = dma.vmem_to_hbm [thread:$0]  (%p5179_p5), %s7143_s27, 2048, %s7141_s19, %s3728_s21, %s4952_s23, %s4952_s23, %s4953_s18  }
 0x465 PF: > { %s7418_s30 = sld [smem:[#allocation16_spill]]  ;;  %s7419_s12 = sld [smem:[#allocation18_spill]] }
 0x466   : > { %p7421_p7 = scmp.ge.s32.totalorder %s4936_s14, 2 }
 0x46b   : > { %s3759_s16 = sand.u32 1, %s7418_s30   ;;  %p7420_p3 = scmp.ne.s32.totalorder %s7419_s12, 0 }
 0x46c   : > { %s3760_s26 = scalar_lea.sflag [#allocation4], %s3759_s16 }
 0x46d   : > { %p4404_p9 = pnand %p7421_p7, %p7420_p3 }
 0x46f   : > { %4911 = dma.done.wait (!%p4404_p9), %s3760_s26, 2048  }
 0x470   : > { %4913 = vsyncadd (!%p4404_p9), %s3760_s26, 4294965248  ;;  %s27_s14 = sadd.s32 1, %s4936_s14   ;;  %s7422_s30 = smov %s4920_s10 }
 0x471   : > { %p24_p0 = scmp.ge.s32.totalorder %s27_s14, 4   ;;  %s7423_s10 = smov %s4924_s11 }
 0x472   : > { %s7424_s11 = smov %s5191_s25  ;;  %s7425_s12 = smov %s4932_s13 }
 0x473   : > { %s7426_s13 = smov %s7428_s22  ;;  %26 = sbr.rel (!%p24_p0) target bundleno = 12 (0xc), region = 118 }
 0x47a   :  { %3765 = vsyncpa [#allocation3], 1 }
 0x47b   :  { %3767 = vsyncpa [#allocation3 + $0x1], 1 }
 0x47c   :  { %3768 = vsyncpa [#allocation6], 1 }
 0x47d   :  { %3769 = vsyncpa [#allocation9], 1 }
 0x47e   :  { %3770 = vsyncpa [#allocation4], 1 }
 0x47f   :  { %3772 = vsyncpa [#allocation4 + $0x1], 1 }

// kernel: tpu_custom_call.1
= control target key start
LH: loop header
LB: loop body
LE: loop exit
PB: predicated region body
PF: predicated region fallthrough
CT: control target
= control target key end

     0   :  { %s7194_s0 = inlined_call_operand.hbm [shape: bf16[2,1,432,128], index: 0, kind: input, shape index: {}]   ;;  %s7195_s1 = inlined_call_operand.hbm [shape: f32[1,24,128], index: 1, kind: input, shape index: {}]   ;;  %s7196_s2 = inlined_call_operand.hbm [shape: f32[1,18,1,128], index: 2, kind: input, shape index: {}]   ;;  %s7197_s3 = inlined_call_operand.hbm [shape: bf16[128,128], index: 3, kind: input, shape index: {}]   ;;  %s7198_s4 = inlined_call_operand.vmem [shape: f32[1,128], index: 4, kind: input, shape index: {}]   ;;  %s7199_s5 = inlined_call_operand.vmem [shape: f32[9,128], index: 5, kind: input, shape index: {}]   ;;  %s7200_s6 = inlined_call_operand.vmem [shape: f32[1,128], index: 6, kind: input, shape index: {}]   ;;  %s7201_s7 = inlined_call_operand.hbm [shape: bf16[128,128], index: 7, kind: input, shape index: {}]   ;;  %s7202_s8 = inlined_call_operand.vmem [shape: f32[1,128], index: 8, kind: input, shape index: {}]   ;;  %s7203_s9 = inlined_call_operand.hbm [shape: bf16[2,16,16,128], index: 9, kind: output, shape index: {}]  }
   0x1   :  { %7267 = sst [smem:[#allocation60_spill]] %s7195_s1 }
   0x2   :  { %7268 = sst [smem:[#allocation61_spill]] %s7202_s8 }
   0x3   :  { %7269 = sst [smem:[#allocation62_spill]] %s7203_s9 }
   0x4   :  { %14 = vsyncpa [#allocation3], 0 }
   0x5   :  { %16 = vsyncpa [#allocation3 + $0x1], 0 }
   0x6   :  { %17 = vsyncpa [#allocation6], 0 }
   0x7   :  { %18 = vsyncpa [#allocation9], 0 }
   0x8   :  { %19 = vsyncpa [#allocation4], 0 }
   0x9   :  { %21 = vsyncpa [#allocation4 + $0x1], 0  ;;  %s5004_s30 = smov 0   ;;  %s5006_s10 = smov 0  }
   0xa   :  { %s5008_s11 = smov 0   ;;  %s5010_s12 = smov 0  }
   0xb   :  { %s5012_s13 = smov 0   ;;  %s5014_s14 = smov 0  }
   0xc LB: > { %7270 = sst [smem:[#allocation16_spill]] %s4916_s30  ;;  %s3871_s15 = sadd.s32 4294967295, %s4936_s14   ;;  %s4936_s14 = sphi %s5014_s14, %s27_s14   ;;  %s4932_s13 = sphi %s5012_s13, %s7426_s13   ;;  %s4928_s12 = sphi %s5010_s12, %s7425_s12   ;;  %s4924_s11 = sphi %s5008_s11, %s7424_s11   ;;  %s4920_s10 = sphi %s5006_s10, %s7423_s10   ;;  %s4916_s30 = sphi %s5004_s30, %s7422_s30  }
   0xd   : > { %7271 = sst [smem:[#allocation17_spill]] %s4928_s12  ;;  %s3872_s16 = sadd.s32 4294967294, %s4936_s14  }
   0xe   : > { %p61_p0 = scmp.ne.s32.totalorder %s4920_s10, %s4916_s30  ;;  %p5038_p1 = scmp.eq.s32.totalorder %s3871_s15, 0 }
   0xf   : > { %p5042_p2 = scmp.eq.s32.totalorder %s3871_s15, 1  ;;  %p266_p3 = scmp.eq.s32.totalorder %s3872_s16, 1 }
  0x10   : > { %s7272_s17 = scalar_select %p5038_p1, 1, 0 }
  0x11   : > { %s7273_s18 = scalar_select %p5042_p2, 1, 0 }
  0x12   : > { %p5048_p4 = por %p5038_p1, %p61_p0  ;;  %p3873_p5 = scmp.ge.s32.totalorder %s4936_s14, 1 }
  0x13   : > { %p5053_p6 = por %p266_p3, %p61_p0  ;;  %p273_p7 = scmp.lt.s32.totalorder %s4936_s14, 3 }
  0x14   : > { %s7274_s19 = scalar_select %p5048_p4, 1, 0 }
  0x15   : > { %s7275_s20 = scalar_select %p5053_p6, 1, 0 }
  0x16   : > { %p5058_p8 = pnand %p3873_p5, %p273_p7  ;;  %s4938_s22 = smov [#allocation5]  }
  0x17   : > { %7276 = sst [smem:[#allocation18_spill]] %s7275_s20  ;;  %s285_s23 = sshll.u32 %s4938_s22, 4  ;;  %s5062_s23 = int_to_ptr.vmem [resolvable:$true] %s285_s23 }
  0x18   : > { %s7277_s21 = scalar_select %p5058_p8, 1, 0 }
  0x19   : > { %p4386_p9 = pneg %p5058_p8  ;;  %s4939_s25 = smov [#allocation8]  }
  0x1a   : > { %s314_s26 = sshll.u32 %s4939_s25, 4  ;;  %s7279_s1 = sld [smem:[#allocation60_spill]]  ;;  %s5073_s26 = int_to_ptr.vmem [resolvable:$true] %s314_s26 }
  0x1b   : > { %p5069_p11 = pnand %p4386_p9, %p5038_p1 }
  0x1d   : > { %p5083_p13 = pneg %p5069_p11 }
  0x20   : > { %s4704_s29 = scalar_lea.hbm %s7279_s1, 384 }
  0x21   : > { %p4705_p12 = scmp.ne.s32.totalorder %s7279_s1, %s4704_s29  ;;  %p4711_p5 = scmp.lt.u32.totalorder %s4704_s29, %s7279_s1 }
  0x23   : > { %p4707_p0 = pnand %p5083_p13, %p4705_p12 }
  0x25   : > { %p4708_p3 = pneg %p4707_p0 }
  0x27   : > { %p4713_p7 = pnand %p4711_p5, %p4708_p3 }
  0x29   : > { %4716 = shalt.err (!%p4713_p7)
}
  0x2a   : > { %s4717_s27 = scalar_lea.vmem %s5062_s23, 384  ;;  %p4725_p1 = scmp.lt.s32.totalorder %s5062_s23, %s5062_s23 }
  0x2b   : > { %p4718_p9 = scmp.ne.s32.totalorder %s5062_s23, %s4717_s27  ;;  %p4726_p4 = scmp.lt.s32.totalorder %s4717_s27, %s4717_s27 }
  0x2d   : > { %p4720_p10 = pnand %p4718_p9, %p5083_p13  ;;  %p4727_p12 = por %p4726_p4, %p4725_p1 }
  0x2f   : > { %p4721_p6 = pneg %p4720_p10 }
  0x31   : > { %p4728_p0 = pnand %p4727_p12, %p4721_p6 }
  0x33   : > { %4731 = shalt.err (!%p4728_p0)
}
  0x34   : > { %s4940_s28 = smov 128   ;;  %s4941_s20 = smov 8  }
  0x35   : > { %4389 = dma.hbm_to_vmem [thread:$0]  (!%p5069_p11), %s7279_s1, 384, %s5062_s23, [#allocation6], %s4940_s28, %s4940_s28, %s4941_s20  }
  0x36   : > { %s4732_s30 = scalar_lea.hbm %s7197_s3, 1024 }
  0x37   : > { %p4733_p1 = scmp.ne.s32.totalorder %s7197_s3, %s4732_s30  ;;  %p4739_p10 = scmp.lt.u32.totalorder %s4732_s30, %s7197_s3 }
  0x39   : > { %p4735_p4 = pnand %p4733_p1, %p5083_p13 }
  0x3b   : > { %p4736_p6 = pneg %p4735_p4 }
  0x3d   : > { %p4741_p3 = pnand %p4739_p10, %p4736_p6 }
  0x3f   : > { %4744 = shalt.err (!%p4741_p3)
}
  0x40   : > { %s4745_s23 = scalar_lea.vmem %s5073_s26, 1024  ;;  %p4753_p12 = scmp.lt.s32.totalorder %s5073_s26, %s5073_s26 }
  0x41   : > { %p4746_p5 = scmp.ne.s32.totalorder %s5073_s26, %s4745_s23  ;;  %p4754_p0 = scmp.lt.s32.totalorder %s4745_s23, %s4745_s23 }
  0x43   : > { %p4748_p7 = pnand %p4746_p5, %p5083_p13  ;;  %p4755_p1 = por %p4754_p0, %p4753_p12 }
  0x45   : > { %p4749_p9 = pneg %p4748_p7 }
  0x47   : > { %p4756_p4 = pnand %p4755_p1, %p4749_p9 }
  0x49   : > { %4759 = shalt.err (!%p4756_p4)
}
  0x4a   : > { %s7211_s9 = smov 64   ;;  %s7213_s8 = smov 4  }
  0x4b   : > { %4395 = dma.hbm_to_vmem [thread:$0]  (!%p5069_p11), %s7197_s3, 1024, %s5073_s26, [#allocation9], %s7211_s9, %s7211_s9, %s7213_s8  }
  0x4c   : > { %s4944_s28 = smov [#allocation7]   ;;  %s4760_s16 = scalar_lea.hbm %s7196_s2, 288 }
  0x4d   : > { %s301_s20 = sshll.u32 %s4944_s28, 4  ;;  %p4761_p6 = scmp.ne.s32.totalorder %s7196_s2, %s4760_s16  ;;  %s302_s20 = int_to_ptr.vmem [resolvable:$true] %s301_s20 }
  0x4e   : > { %p4767_p5 = scmp.lt.u32.totalorder %s4760_s16, %s7196_s2 }
  0x4f   : > { %p4763_p10 = pnand %p4761_p6, %p5083_p13 }
  0x51   : > { %p4764_p3 = pneg %p4763_p10 }
  0x53   : > { %p4769_p7 = pnand %p4767_p5, %p4764_p3 }
  0x55   : > { %4772 = shalt.err (!%p4769_p7)
}
  0x56   : > { %s4773_s26 = scalar_lea.vmem %s302_s20, 288  ;;  %p4781_p1 = scmp.lt.s32.totalorder %s302_s20, %s302_s20 }
  0x57   : > { %p4774_p9 = scmp.ne.s32.totalorder %s302_s20, %s4773_s26  ;;  %p4782_p4 = scmp.lt.s32.totalorder %s4773_s26, %s4773_s26 }
  0x59   : > { %p4776_p12 = pnand %p4774_p9, %p5083_p13  ;;  %p4783_p8 = por %p4782_p4, %p4781_p1 }
  0x5b   : > { %p4777_p0 = pneg %p4776_p12 }
  0x5d   : > { %p4784_p2 = pnand %p4783_p8, %p4777_p0 }
  0x5f   : > { %4787 = shalt.err (!%p4784_p2)
}
  0x60   : > { %s4945_s30 = smov 16   ;;  %s4946_s12 = smov 1  }
  0x61   : > { %4392 = dma.hbm_to_vmem [thread:$0]  (!%p5069_p11), %s7196_s2, 288, %s302_s20, [#allocation6], %s4945_s30, %s4945_s30, %s4946_s12  }
  0x62   : > { %s4947_s29 = smov [#allocation10]   ;;  %s4788_s27 = scalar_lea.hbm %s7201_s7, 1024 }
  0x63   : > { %s336_s15 = sshll.u32 %s4947_s29, 4  ;;  %p4789_p2 = scmp.ne.s32.totalorder %s7201_s7, %s4788_s27  ;;  %s337_s15 = int_to_ptr.vmem [resolvable:$true] %s336_s15 }
  0x64   : > { %p4795_p10 = scmp.lt.u32.totalorder %s4788_s27, %s7201_s7 }
  0x65   : > { %p4791_p8 = pnand %p4789_p2, %p5083_p13 }
  0x67   : > { %p4792_p6 = pneg %p4791_p8 }
  0x69   : > { %p4797_p3 = pnand %p4795_p10, %p4792_p6 }
  0x6b   : > { %4800 = shalt.err (!%p4797_p3)
}
  0x6c   : > { %s4801_s20 = scalar_lea.vmem %s337_s15, 1024  ;;  %p4809_p12 = scmp.lt.s32.totalorder %s337_s15, %s337_s15 }
  0x6d   : > { %p4802_p5 = scmp.ne.s32.totalorder %s337_s15, %s4801_s20  ;;  %p4810_p0 = scmp.lt.s32.totalorder %s4801_s20, %s4801_s20 }
  0x6f   : > { %p4804_p7 = pnand %p4802_p5, %p5083_p13  ;;  %p4811_p1 = por %p4810_p0, %p4809_p12 }
  0x71   : > { %p4805_p9 = pneg %p4804_p7 }
  0x73   : > { %p4812_p4 = pnand %p4811_p1, %p4805_p9 }
  0x75   : > { %4815 = shalt.err (!%p4812_p4)
}
  0x76   : > { %s7281_s30 = smov 4   ;;  %s7282_s12 = smov 64  }
  0x77   : > { %4398 = dma.hbm_to_vmem [thread:$0]  (!%p5069_p11), %s7201_s7, 1024, %s337_s15, [#allocation9], %s7282_s12, %s7282_s12, %s7281_s30  }
  0x78   : > { %s39_s22 = sadd.s32 1, %s4932_s13  ;;  %s48_s24 = sadd.s32 1, %s4924_s11 }
  0x79   : > { %p41_p13 = scmp.ge.s32.totalorder %s39_s22, 2  ;;  %p55_p2 = scmp.ne.s32.totalorder %s4924_s11, %s4920_s10 }
  0x7a   : > { %p56_p8 = scmp.eq.s32.totalorder %s4936_s14, 0  ;;  %p4411_p6 = scmp.lt.s32.totalorder %s4936_s14, 2 }
  0x7b   : > { %s7428_s22 = smov (%p41_p13, %s39_s22), 0  ;;  %p7283_p3 = scmp.ne.s32.totalorder %s7273_s18, 0 }
  0x7c   : > { %p57_p10 = por %p56_p8, %p55_p2  ;;  %s43_s28 = ssub.s32 %s4932_s13, %s7428_s22 }
  0x7d   : > { %p5179_p5 = por %p7283_p3, %p55_p2  ;;  %s353_s29 = sand.u32 1, %s4924_s11  }
  0x7e   : > { %p46_p7 = scmp.eq.s32.totalorder %s43_s28, 0  ;;  %s4363_s15 = smul.u32 216, %s353_s29 }
  0x7f   : > { %p5186_p11 = pnand %p4411_p6, %p57_p10  ;;  %s4364_s27 = smul.u32 3456, %s4932_s13 }
  0x80   : > { %s5191_s25 = scalar_select %p46_p7, %s4924_s11, %s48_s24  }
  0x81   : > { %s357_s23 = scalar_lea.vmem [#allocation2], %s4363_s15  ;;  %s5197_s9 = scalar_lea.hbm %s7194_s0, %s4364_s27 }
  0x82   : > { %s366_s26 = sshll.u32 %s357_s23, 4  ;;  %s5201_s8 = scalar_lea.sflag [#allocation3], %s353_s29  ;;  %s5199_s26 = int_to_ptr.vmem [resolvable:$true] %s366_s26 }
  0x83   : > { %s4816_s28 = scalar_lea.hbm %s5197_s9, 3456  ;;  %p4818_p12 = pneg %p5186_p11 }
  0x84   : > { %p4817_p9 = scmp.ne.s32.totalorder %s5197_s9, %s4816_s28  ;;  %s4821_s27 = scalar_lea.hbm %s7194_s0, 6912 }
  0x85   : > { %p4822_p4 = scmp.lt.u32.totalorder %s5197_s9, %s7194_s0  ;;  %p4823_p13 = scmp.lt.u32.totalorder %s4821_s27, %s4816_s28 }
  0x86   : > { %p4819_p0 = pnand %p4818_p12, %p4817_p9  ;;  %p4825_p8 = scmp.lt.u32.totalorder %s4816_s28, %s5197_s9 }
  0x87   : > { %p4824_p2 = por %p4823_p13, %p4822_p4 }
  0x88   : > { %p4820_p1 = pneg %p4819_p0 }
  0x89   : > { %p4826_p6 = por %p4825_p8, %p4824_p2 }
  0x8b   : > { %p4827_p10 = pnand %p4826_p6, %p4820_p1 }
  0x8d   : > { %4830 = shalt.err (!%p4827_p10)
}
  0x8e   : > { %s4831_s29 = scalar_lea.vmem %s5199_s26, 3456  ;;  %s4948_s20 = smov [#allocation2]  }
  0x8f   : > { %p4832_p3 = scmp.ne.s32.totalorder %s5199_s26, %s4831_s29  ;;  %s4836_s24 = sshll.u32 %s4948_s20, 4  ;;  %s4837_s24 = int_to_ptr.vmem [resolvable:$false] %s4836_s24 }
  0x90   : > { %s4838_s15 = scalar_lea.vmem %s4837_s24, 6912  ;;  %p4839_p0 = scmp.lt.s32.totalorder %s5199_s26, %s4837_s24 }
  0x91   : > { %p4834_p7 = pnand %p4832_p3, %p4818_p12  ;;  %p4840_p4 = scmp.lt.s32.totalorder %s4838_s15, %s4831_s29 }
  0x93   : > { %p4835_p9 = pneg %p4834_p7  ;;  %p4841_p13 = por %p4840_p4, %p4839_p0 }
  0x95   : > { %p4842_p2 = pnand %p4841_p13, %p4835_p9 }
  0x97   : > { %4845 = shalt.err (!%p4842_p2)
}
  0x98   : > { %4402 = dma.hbm_to_vmem [thread:$0]  (!%p5186_p11), %s5197_s9, 3456, %s5199_s26, %s5201_s8, %s7282_s12, %s7282_s12, %s7281_s30  }
  0x99   : > { %p7286_p12 = scmp.ne.s32.totalorder %s7277_s21, 0 }
  0x9b   : > { %378 = sbr.rel (%p7286_p12) target bundleno = 1125 (0x465), region = 56 }
  0xa2   : > { %s5235_s28 = sand.u32 1, %s4920_s10   ;;  %p7287_p1 = scmp.ne.s32.totalorder %s7274_s19, 0 }
  0xa3   : > { %s4365_s27 = smul.u32 216, %s5235_s28  ;;  %s381_s23 = scalar_lea.sflag [#allocation3], %s5235_s28 }
  0xa5   : > { %s5239_s18 = scalar_lea.vmem [#allocation2], %s4365_s27 }
  0xa6   : > { %4899 = dma.done.wait (%p7287_p1), %s381_s23, 3456  }
  0xa7   : > { %4901 = vsyncadd (%p7287_p1), %s381_s23, 4294963840  ;;  %p7288_p11 = scmp.ne.s32.totalorder %s7272_s17, 0 }
  0xa9   : > { %4903 = dma.done.wait (%p7288_p11), [#allocation6], 672  }
  0xaa   : > { %4905 = vsyncadd (%p7288_p11), [#allocation6], 4294966624 }
  0xab   : > { %4907 = dma.done.wait (%p7288_p11), [#allocation9], 2048  }
  0xac   : > { %4909 = vsyncadd (%p7288_p11), [#allocation9], 4294965248  ;;  %v4949_v0 = vmov 0.0   ;;  %vm4950_vm0 = vmmov 0   ;;  %v4479_v1 = vld [vmem:[#allocation8] sm:$0xff]   ;;  %v4480_v2 = vld [vmem:[#allocation8 + $0x8] sm:$0xff]   ;;  %v1489_v45 = vlaneseq }
  0xad   : > { %4175 = vmatprep.subr.bf16.mxu0 %v4949_v0  ;;  %4191 = vmatprep.mubr.msk.bf16.mxu0 %vm4950_vm0, %v4949_v0  ;;  %v4481_v3 = vld [vmem:[#allocation8 + $0x10] sm:$0xff]   ;;  %v4482_v4 = vld [vmem:[#allocation8 + $0x18] sm:$0xff]   ;;  %v4483_v5 = vld [vmem:[#allocation8 + $0x20] sm:$0xff]   ;;  %vm1793_vm1 = vcmask 1046528   ;;  %vm2526_vm2 = vcmask 1045504   ;;  %s7408_s8 = sld [smem:[#allocation61_spill]] }
  0xae   : > { %4347 = vmatprep.subr.bf16.mxu1 %v4949_v0  ;;  %4263 = vmatprep.mubr.msk.bf16.mxu1 %vm4950_vm0, %v4949_v0  ;;  %v4484_v6 = vld [vmem:[#allocation8 + $0x28] sm:$0xff]   ;;  %v4485_v7 = vld [vmem:[#allocation8 + $0x30] sm:$0xff]   ;;  %v4486_v8 = vld [vmem:[#allocation8 + $0x38] sm:$0xff]   ;;  %v1490_v57 = vshrl.u32 %v1489_v45, 7  ;;  %s3885_s29 = sshll.u32 %s5235_s28, 7  ;;  %s7416_s24 = sld [smem:[#allocation17_spill]] }
  0xaf   : > { %4176 = vmatpush3.bf16.msra.mxu0 %v4479_v1  ;;  %4355 = vmatpush3.bf16.msra.mxu1 %v4479_v1  ;;  %v4487_v9 = vld [vmem:[%s5239_s18] sm:$0xff]   ;;  %v4492_v10 = vld [vmem:[%s5239_s18 + $0x90] sm:$0xff]   ;;  %v4488_v11 = vld [vmem:[%s5239_s18 + $0x8] sm:$0xff]   ;;  %s7096_s20 = scalar_lea.vmem [#allocation11], %s3885_s29  ;;  %s7417_s17 = sld [smem:[#allocation62_spill]] }
  0xb0   : > { %4177 = vmatprep.subr.bf16.mxu0 %v4949_v0  ;;  %4348 = vmatprep.subr.bf16.mxu1 %v4949_v0  ;;  %v4494_v12 = vld [vmem:[%s5239_s18 + $0x98] sm:$0xff]   ;;  %v4489_v13 = vld [vmem:[%s5239_s18 + $0x10] sm:$0xff]   ;;  %v4496_v14 = vld [vmem:[%s5239_s18 + $0xa0] sm:$0xff]   ;;  %v1491_v63 = vsub.s32 0, %v1490_v57  ;;  %s3744_s27 = sshll.u32 %s7096_s20, 4  ;;  %s3728_s21 = scalar_lea.sflag [#allocation4], %s5235_s28  ;;  %s7143_s27 = int_to_ptr.vmem [resolvable:$true] %s3744_s27 }
  0xb1   : > { %v4490_v15 = vld [vmem:[%s5239_s18 + $0x18] sm:$0xff]   ;;  %v4498_v16 = vld [vmem:[%s5239_s18 + $0xa8] sm:$0xff]   ;;  %v4491_v17 = vld [vmem:[%s5239_s18 + $0x20] sm:$0xff]   ;;  %s4846_s30 = scalar_lea.vmem %s7143_s27, 2048  ;;  %s4951_s12 = smov [#allocation11]  }
  0xb2   : > { %v4500_v18 = vld [vmem:[%s5239_s18 + $0xb0] sm:$0xff]   ;;  %v4493_v19 = vld [vmem:[%s5239_s18 + $0x28] sm:$0xff]   ;;  %v4502_v20 = vld [vmem:[%s5239_s18 + $0xb8] sm:$0xff]   ;;  %p4847_p8 = scmp.ne.s32.totalorder %s7143_s27, %s4846_s30  ;;  %s4850_s16 = sshll.u32 %s4951_s12, 4  ;;  %s4851_s16 = int_to_ptr.vmem [resolvable:$false] %s4850_s16 }
  0xb3   : > { %4178 = vmatpush3.bf16.msra.mxu0 %v4480_v2  ;;  %4356 = vmatpush3.bf16.msra.mxu1 %v4480_v2  ;;  %v4495_v21 = vld [vmem:[%s5239_s18 + $0x30] sm:$0xff]   ;;  %v4504_v22 = vld [vmem:[%s5239_s18 + $0xc0] sm:$0xff]   ;;  %v4497_v23 = vld [vmem:[%s5239_s18 + $0x38] sm:$0xff]   ;;  %s4852_s26 = scalar_lea.vmem %s4851_s16, 4096  ;;  %p4853_p3 = scmp.lt.s32.totalorder %s7143_s27, %s4851_s16 }
  0xb4   : > { %4179 = vmatprep.subr.bf16.mxu0 %v4949_v0  ;;  %4349 = vmatprep.subr.bf16.mxu1 %v4949_v0  ;;  %v4506_v24 = vld [vmem:[%s5239_s18 + $0xc8] sm:$0xff]   ;;  %v4499_v25 = vld [vmem:[%s5239_s18 + $0x40] sm:$0xff]   ;;  %v4508_v26 = vld [vmem:[%s5239_s18 + $0xd0] sm:$0xff]   ;;  %s4020_s15 = sshll.u32 %s7416_s24, 11  ;;  %p4848_p6 = pnand %p4847_p8, %p5179_p5 }
  0xb5   : > { %v4501_v27 = vld [vmem:[%s5239_s18 + $0x48] sm:$0xff]   ;;  %v4503_v28 = vld [vmem:[%s5239_s18 + $0x50] sm:$0xff]   ;;  %v4505_v29 = vld [vmem:[%s5239_s18 + $0x58] sm:$0xff]   ;;  %s7141_s19 = scalar_lea.hbm %s7417_s17, %s4020_s15  ;;  %p4854_p7 = scmp.lt.s32.totalorder %s4852_s26, %s4846_s30 }
  0xb6   : > { %v4507_v30 = vld [vmem:[%s5239_s18 + $0x60] sm:$0xff]   ;;  %v4509_v31 = vld [vmem:[%s5239_s18 + $0x68] sm:$0xff]   ;;  %v4510_v32 = vld [vmem:[%s5239_s18 + $0x70] sm:$0xff]   ;;  %p4849_p10 = pneg %p4848_p6 }
  0xb7   : > { %4180 = vmatpush3.bf16.msra.mxu0 %v4481_v3  ;;  %4357 = vmatpush3.bf16.msra.mxu1 %v4481_v3  ;;  %v4511_v33 = vld [vmem:[%s5239_s18 + $0x78] sm:$0xff]   ;;  %v4512_v34 = vld [vmem:[%s5239_s18 + $0x80] sm:$0xff]   ;;  %v4513_v35 = vld [vmem:[%s5239_s18 + $0x88] sm:$0xff]   ;;  %v1695_v3 = vsub.s32 1, %v1490_v57  ;;  %p4855_p9 = por %p4854_p7, %p4853_p3 }
  0xb8   : > { %4181 = vmatprep.subr.bf16.mxu0 %v4949_v0  ;;  %4350 = vmatprep.subr.bf16.mxu1 %v4949_v0  ;;  %v4514_v36 = vld [vmem:[#allocation10] sm:$0xff]   ;;  %v4515_v37 = vld [vmem:[#allocation10 + $0x8] sm:$0xff]   ;;  %v4516_v38 = vld [vmem:[#allocation10 + $0x10] sm:$0xff]  }
  0xb9   : > { %v4517_v39 = vld [vmem:[#allocation10 + $0x18] sm:$0xff]   ;;  %v4518_v40 = vld [vmem:[#allocation10 + $0x20] sm:$0xff]   ;;  %v4519_v41 = vld [vmem:[#allocation10 + $0x28] sm:$0xff]   ;;  %p4856_p0 = pnand %p4855_p9, %p4849_p10 }
  0xba   : > { %v5353_v42 = vld [vmem:[%s7198_s4] ss:$0 sm:$0xff]  ;;  %v4520_v43 = vld [vmem:[#allocation10 + $0x30] sm:$0xff]   ;;  %v4521_v62 = vld [vmem:[#allocation10 + $0x38] sm:$0xff]  }
  0xbb   : > { %4182 = vmatpush3.bf16.msra.mxu0 %v4482_v4  ;;  %4358 = vmatpush3.bf16.msra.mxu1 %v4482_v4  ;;  %v1480_v2 = vld [vmem:[%s7199_s5] sm:$0xff]  ;;  %v2428_v4 = vsub.s32 2, %v1490_v57 }
  0xbc   : > { %4183 = vmatprep.subr.bf16.mxu0 %v4949_v0  ;;  %4351 = vmatprep.subr.bf16.mxu1 %v4949_v0 }
  0xbf   : > { %4184 = vmatpush3.bf16.msra.mxu0 %v4483_v5  ;;  %4359 = vmatpush3.bf16.msra.mxu1 %v4483_v5 }
  0xc0   : > { %4185 = vmatprep.subr.bf16.mxu0 %v4949_v0  ;;  %4352 = vmatprep.subr.bf16.mxu1 %v4949_v0 }
  0xc3   : > { %4186 = vmatpush3.bf16.msra.mxu0 %v4484_v6  ;;  %4360 = vmatpush3.bf16.msra.mxu1 %v4484_v6 }
  0xc4   : > { %4187 = vmatprep.subr.bf16.mxu0 %v4949_v0  ;;  %4353 = vmatprep.subr.bf16.mxu1 %v4949_v0 }
  0xc7   : > { %4188 = vmatpush3.bf16.msra.mxu0 %v4485_v7  ;;  %4361 = vmatpush3.bf16.msra.mxu1 %v4485_v7 }
  0xc8   : > { %4189 = vmatprep.subr.bf16.mxu0 %v4949_v0  ;;  %4354 = vmatprep.subr.bf16.mxu1 %v4949_v0 }
  0xcb   : > { %4190 = vmatpush3.bf16.msra.mxu0 %v4486_v8  ;;  %4362 = vmatpush3.bf16.msra.mxu1 %v4486_v8 }
  0xcc   : > { %4299 = vmatprep.subr.bf16.mxu1 %v4514_v36 }
  0xce   : > { %4192 = vmatmul.mubr.bf16.vlgmr.msra.gmra.mrb[0].mxu0 %v4487_v9  ;;  %4264 = vmatmul.mubr.bf16.vlgmr.msra.gmra.mrb[0].mxu1 %v4492_v10  ;;  %v1940_v10 = vsub.s32 4, %v1490_v57 }
  0xcf   : > { %4195 = vmatprep.mubr.msk.bf16.mxu0 %vm4950_vm0, %v4949_v0  ;;  %4267 = vmatprep.mubr.msk.bf16.mxu1 %vm4950_vm0, %v4949_v0 }
  0xd0   : > { %4300 = vmatpush3.bf16.msra.mxu1 %v4514_v36 }
  0xd1   : > { %4301 = vmatprep.subr.bf16.mxu1 %v4515_v37 }
  0xd4   : > { %4302 = vmatpush3.bf16.msra.mxu1 %v4515_v37 }
  0xd5   : > { %4303 = vmatprep.subr.bf16.mxu1 %v4516_v38 }
  0xd6   : > { %4196 = vmatmul.mubr.bf16.gmra.mrb[4].mxu0 %v4488_v11  ;;  %4268 = vmatmul.mubr.bf16.gmra.mrb[4].mxu1 %v4494_v12  ;;  %v2673_v11 = vsub.s32 5, %v1490_v57 }
  0xd7   : > { %4199 = vmatprep.mubr.msk.bf16.mxu0 %vm4950_vm0, %v4949_v0  ;;  %4271 = vmatprep.mubr.msk.bf16.mxu1 %vm4950_vm0, %v4949_v0 }
  0xd8   : > { %4304 = vmatpush3.bf16.msra.mxu1 %v4516_v38 }
  0xd9   : > { %4305 = vmatprep.subr.bf16.mxu1 %v4517_v39 }
  0xdc   : > { %4306 = vmatpush3.bf16.msra.mxu1 %v4517_v39 }
  0xdd   : > { %4307 = vmatprep.subr.bf16.mxu1 %v4518_v40 }
  0xde   : > { %4200 = vmatmul.mubr.bf16.gmra.mrb[8].mxu0 %v4489_v13  ;;  %4272 = vmatmul.mubr.bf16.gmra.mrb[8].mxu1 %v4496_v14 }
  0xdf   : > { %4203 = vmatprep.mubr.msk.bf16.mxu0 %vm4950_vm0, %v4949_v0  ;;  %4275 = vmatprep.mubr.msk.bf16.mxu1 %vm4950_vm0, %v4949_v0 }
  0xe0   : > { %4308 = vmatpush3.bf16.msra.mxu1 %v4518_v40 }
  0xe1   : > { %4309 = vmatprep.subr.bf16.mxu1 %v4519_v41 }
  0xe4   : > { %4310 = vmatpush3.bf16.msra.mxu1 %v4519_v41  ;;  %v5382_v41 = vld [vmem:[#allocation5] sm:$0xff] }
  0xe5   : > { %4311 = vmatprep.subr.bf16.mxu1 %v4520_v43 }
  0xe6   : > { %4204 = vmatmul.mubr.bf16.gmra.mrb[12].mxu0 %v4490_v15  ;;  %4276 = vmatmul.mubr.bf16.gmra.mrb[12].mxu1 %v4498_v16  ;;  %v2184_v16 = vsub.s32 7, %v1490_v57 }
  0xe7   : > { %4207 = vmatprep.mubr.msk.bf16.mxu0 %vm4950_vm0, %v4949_v0  ;;  %4279 = vmatprep.mubr.msk.bf16.mxu1 %vm4950_vm0, %v4949_v0 }
  0xe8   : > { %4312 = vmatpush3.bf16.msra.mxu1 %v4520_v43 }
  0xe9   : > { %4313 = vmatprep.subr.bf16.mxu1 %v4521_v62 }
  0xec   : > { %4314 = vmatpush3.bf16.msra.mxu1 %v4521_v62 }
  0xee   : > { %4208 = vmatmul.mubr.bf16.gmra.mrb[16].mxu0 %v4491_v17  ;;  %4280 = vmatmul.mubr.bf16.gmra.mrb[16].mxu1 %v4500_v18  ;;  %v1559_v18 = vsub.s32 3, %v1490_v57 }
  0xef   : > { %4211 = vmatprep.mubr.msk.bf16.mxu0 %vm4950_vm0, %v4949_v0  ;;  %4283 = vmatprep.mubr.msk.bf16.mxu1 %vm4950_vm0, %v4949_v0 }
  0xf6   : > { %4212 = vmatmul.mubr.bf16.gmra.mrb[20].mxu0 %v4493_v19  ;;  %4284 = vmatmul.mubr.bf16.gmra.mrb[20].mxu1 %v4502_v20  ;;  %v5365_v19 = vrot.slane %v1480_v2, %v1491_v63 }
  0xf7   : > { %4215 = vmatprep.mubr.msk.bf16.mxu0 %vm4950_vm0, %v4949_v0  ;;  %4287 = vmatprep.mubr.msk.bf16.mxu1 %vm4950_vm0, %v4949_v0 }
  0xfe   : > { %4216 = vmatmul.mubr.bf16.gmra.mrb[24].mxu0 %v4495_v21  ;;  %4288 = vmatmul.mubr.bf16.gmra.mrb[24].mxu1 %v4504_v22  ;;  %v1627_v22 = vsub.s32 6, %v1490_v57 }
  0xff   : > { %4219 = vmatprep.mubr.msk.bf16.mxu0 %vm4950_vm0, %v4949_v0  ;;  %4291 = vmatprep.mubr.msk.bf16.mxu1 %vm4950_vm0, %v4949_v0 }
 0x100   : > { %v5380_v39 = vrot.slane %v1480_v2, %v1627_v22 }
 0x106   : > { %4220 = vmatmul.mubr.bf16.gmra.mrb[28].mxu0 %v4497_v23  ;;  %4292 = vmatmul.mubr.bf16.gmra.mrb[28].mxu1 %v4506_v24  ;;  %v5368_v23 = vrot.slane %v1480_v2, %v1695_v3  ;;  %v5370_v24 = vrot.slane %v1480_v2, %v2428_v4 }
 0x107   : > { %4223 = vmatprep.mubr.msk.bf16.mxu0 %vm4950_vm0, %v4949_v0  ;;  %4295 = vmatprep.mubr.msk.bf16.mxu1 %vm4950_vm0, %v4949_v0 }
 0x108   : > { %7289 = vst [vmem:[#allocation19_spill] sm:$0xff] %v5368_v23  ;;  %7290 = vst [vmem:[#allocation20_spill] sm:$0xff] %v5370_v24 }
 0x10e   : > { %4224 = vmatmul.mubr.bf16.gmra.mrb[32].mxu0 %v4499_v25  ;;  %4296 = vmatmul.mubr.bf16.gmra.mrb[32].mxu1 %v4508_v26  ;;  %v5372_v26 = vrot.slane %v1480_v2, %v1940_v10 }
 0x10f   : > { %4227 = vmatprep.mubr.msk.bf16.mxu0 %vm4950_vm0, %v4949_v0 }
 0x116   : > { %4228 = vmatmul.mubr.bf16.gmra.mrb[36].mxu0 %v4501_v27  ;;  %v5374_v27 = vrot.slane %v1480_v2, %v2673_v11 }
 0x117   : > { %4231 = vmatprep.mubr.msk.bf16.mxu0 %vm4950_vm0, %v4949_v0 }
 0x11e   : > { %4232 = vmatmul.mubr.bf16.gmra.mrb[40].mxu0 %v4503_v28 }
 0x11f   : > { %4235 = vmatprep.mubr.msk.bf16.mxu0 %vm4950_vm0, %v4949_v0 }
 0x126   : > { %4236 = vmatmul.mubr.bf16.gmra.mrb[44].mxu0 %v4505_v29 }
 0x127   : > { %4239 = vmatprep.mubr.msk.bf16.mxu0 %vm4950_vm0, %v4949_v0 }
 0x12e   : > { %4240 = vmatmul.mubr.bf16.gmra.mrb[48].mxu0 %v4507_v30  ;;  %v5376_v30 = vrot.slane %v1480_v2, %v2184_v16 }
 0x12f   : > { %4243 = vmatprep.mubr.msk.bf16.mxu0 %vm4950_vm0, %v4949_v0 }
 0x136   : > { %4244 = vmatmul.mubr.bf16.gmra.mrb[52].mxu0 %v4509_v31 }
 0x137   : > { %4247 = vmatprep.mubr.msk.bf16.mxu0 %vm4950_vm0, %v4949_v0 }
 0x13e   : > { %4248 = vmatmul.mubr.bf16.gmra.mrb[56].mxu0 %v4510_v32  ;;  %v5378_v32 = vrot.slane %v1480_v2, %v1559_v18 }
 0x13f   : > { %4251 = vmatprep.mubr.msk.bf16.mxu0 %vm4950_vm0, %v4949_v0 }
 0x146   : > { %4252 = vmatmul.mubr.bf16.gmra.mrb[60].mxu0 %v4511_v33 }
 0x147   : > { %4255 = vmatprep.mubr.msk.bf16.mxu0 %vm4950_vm0, %v4949_v0 }
 0x14e   : > { %4256 = vmatmul.mubr.bf16.gmra.mrb[64].mxu0 %v4512_v34 }
 0x14f   : > { %4259 = vmatprep.mubr.msk.bf16.mxu0 %vm4950_vm0, %v4949_v0 }
 0x156   : > { %4260 = vmatmul.mubr.bf16.gmra.mrb[68].mxu0 %v4513_v35 }
 0x1a1   : > { %v758_v44 = vpop.f32.mrb[0].mxu0  ;;  %v902_v46 = vpop.f32.mrb[0].mxu1 }
 0x1a2   : > { %v759_v47 = vadd.f32 %v5353_v42, %v758_v44  ;;  %v4193_v48 = vpop.f32.mrb[1].mxu0  ;;  %v903_v49 = vadd.f32 %v5353_v42, %v902_v46  ;;  %v4265_v50 = vpop.f32.mrb[1].mxu1 }
 0x1a3   : > { %v761_v51 = vpop.f32.mrb[2].mxu0  ;;  %v905_v52 = vpop.f32.mrb[2].mxu1 }
 0x1a4   : > { %v1027_v53 = vmul.f32 0.70710677, %v759_v47  ;;  %v762_v54 = vadd.f32 %v5353_v42, %v761_v51  ;;  %v4194_v55 = vpop.f32.mrb[3].mxu0  ;;  %v4266_v56 = vpop.f32.mrb[3].mxu1  ;;  %v1063_v58 = vmul.f32 0.70710677, %v903_v49  ;;  %v906_v59 = vadd.f32 %v5353_v42, %v905_v52 }
 0x1a5   : > { %v1009_v31 = vmul.f32 0.5, %v903_v49  ;;  %v973_v34 = vmul.f32 0.5, %v759_v47  ;;  %v5387_v47 = vld [vmem:[#allocation7] ss:$0 sm:$0xff]  ;;  %v5391_v56 = vld [vmem:[#allocation5 + $0x8] sm:$0xff] }
 0x1a6   : > { %4522 = verf.f32 %v1027_v53  ;;  %v1028_v60 = vmul.f32 0.70710677, %v762_v54  ;;  %v1064_v61 = vmul.f32 0.70710677, %v906_v59  ;;  %v974_v36 = vmul.f32 0.5, %v762_v54 }
 0x1a7   : > { %4524 = verf.f32 %v1063_v58  ;;  %v1010_v48 = vmul.f32 0.5, %v906_v59 }
 0x1a8   : > { %4526 = verf.f32 %v1028_v60 }
 0x1a9   : > { %v766_v0 = vpop.f32.mrb[4].mxu0  ;;  %4528 = verf.f32 %v1064_v61  ;;  %v910_v1 = vpop.f32.mrb[4].mxu1 }
 0x1aa   : > { %v767_v5 = vadd.f32 %v5353_v42, %v766_v0  ;;  %v4197_v6 = vpop.f32.mrb[5].mxu0  ;;  %v911_v7 = vadd.f32 %v5353_v42, %v910_v1  ;;  %v4269_v8 = vpop.f32.mrb[5].mxu1 }
 0x1ab   : > { %v769_v9 = vpop.f32.mrb[6].mxu0  ;;  %v913_v12 = vpop.f32.mrb[6].mxu1 }
 0x1ac   : > { %v1029_v13 = vmul.f32 0.70710677, %v767_v5  ;;  %v770_v14 = vadd.f32 %v5353_v42, %v769_v9  ;;  %v4198_v15 = vpop.f32.mrb[7].mxu0  ;;  %v4270_v17 = vpop.f32.mrb[7].mxu1  ;;  %v1065_v20 = vmul.f32 0.70710677, %v911_v7  ;;  %v914_v21 = vadd.f32 %v5353_v42, %v913_v12 }
 0x1ad   : > { %v5384_v43 = vmul.f32 0.5, %v767_v5  ;;  %v5389_v54 = vmul.f32 0.5, %v911_v7  ;;  %v5403_v9 = vld [vmem:[#allocation7 + $0xc] ss:$0 sm:$0xff]  ;;  %v5408_v12 = vld [vmem:[%s7200_s6] ss:$0 sm:$0xff] }
 0x1ae   : > { %4530 = verf.f32 %v1029_v13  ;;  %v1030_v25 = vmul.f32 0.70710677, %v770_v14  ;;  %v1066_v28 = vmul.f32 0.70710677, %v914_v21  ;;  %v976_v1 = vmul.f32 0.5, %v770_v14  ;;  %7291 = vst [vmem:[#allocation21_spill] sm:$0xff] %v5408_v12 }
 0x1af   : > { %4532 = verf.f32 %v1065_v20  ;;  %v5397_v5 = vmul.f32 0.5, %v914_v21 }
 0x1b0   : > { %v4523_v29 = vpop.eup %4522  ;;  %4534 = verf.f32 %v1030_v25 }
 0x1b1   : > { %v4525_v33 = vpop.eup %4524  ;;  %v1135_v35 = vadd.f32 1.0, %v4523_v29  ;;  %v774_v37 = vpop.f32.mrb[8].mxu0  ;;  %4536 = verf.f32 %v1066_v28 }
 0x1b2   : > { %v918_v38 = vpop.f32.mrb[8].mxu1  ;;  %v4527_v40 = vpop.eup %4526  ;;  %v775_v44 = vadd.f32 %v5353_v42, %v774_v37  ;;  %v1171_v46 = vadd.f32 1.0, %v4525_v33 }
 0x1b3   : > { %v4201_v45 = vpop.f32.mrb[9].mxu0  ;;  %v4273_v49 = vpop.f32.mrb[9].mxu1  ;;  %v1189_v51 = vmul.f32 %v1135_v35, %v973_v34  ;;  %v1136_v52 = vadd.f32 1.0, %v4527_v40  ;;  %v919_v59 = vadd.f32 %v5353_v42, %v918_v38  ;;  %v5435_v40 = vld [vmem:[#allocation5 + $0x10] sm:$0xff] }
 0x1b4   : > { %v4529_v50 = vpop.eup %4528  ;;  %v777_v53 = vpop.f32.mrb[10].mxu0  ;;  %v1031_v57 = vmul.f32 0.70710677, %v775_v44  ;;  %v1225_v61 = vmul.f32 %v1171_v46, %v1009_v31  ;;  %v5401_v8 = vmul.f32 0.5, %v775_v44 }
 0x1b5   : > { %v921_v55 = vpop.f32.mrb[10].mxu1  ;;  %v778_v58 = vadd.f32 %v5353_v42, %v777_v53  ;;  %v4202_v60 = vpop.f32.mrb[11].mxu0  ;;  %v1246_v63 = vmul.f32 %v5382_v41, %v1189_v51  ;;  %v1190_v0 = vmul.f32 %v1136_v52, %v974_v36  ;;  %v1172_v2 = vadd.f32 1.0, %v4529_v50 }
 0x1b6   : > { %v4274_v62 = vpop.f32.mrb[11].mxu1  ;;  %4538 = verf.f32 %v1031_v57  ;;  %v1282_v4 = vmul.f32 %v5382_v41, %v1225_v61  ;;  %v5412_v14 = vmul.f32 0.5, %v919_v59  ;;  %v5414_v15 = vmul.f32 0.70710677, %v919_v59 }
 0x1b7   : > { %v1032_v3 = vmul.f32 0.70710677, %v778_v58  ;;  %v1426_v6 = vmul.f32 %v5387_v47, %v1246_v63  ;;  %v1247_v7 = vmul.f32 %v5391_v56, %v1190_v0  ;;  %v1226_v10 = vmul.f32 %v1172_v2, %v1010_v48 }
 0x1b8   : > { %v4531_v11 = vpop.eup %4530  ;;  %v5410_v13 = vmul.f32 0.5, %v778_v58  ;;  %v5426_v34 = vmul.f32 %v5403_v9, %v1282_v4  ;;  %v5429_v35 = vadd.f32 %v5353_v42, %v921_v55 }
 0x1b9   : > { %4540 = verf.f32 %v1032_v3  ;;  %v4533_v16 = vpop.eup %4532  ;;  %v1493_v17 = vmul.f32 %v5365_v19, %v1426_v6  ;;  %v1697_v18 = vmul.f32 %v5368_v23, %v1426_v6  ;;  %v5419_v20 = vmul.f32 %v5370_v24, %v1426_v6  ;;  %v782_v22 = vpop.f32.mrb[12].mxu0 }
 0x1ba   : > { %v1427_v21 = vmul.f32 %v5387_v47, %v1247_v7  ;;  %v5422_v25 = vpop.f32.mrb[12].mxu1  ;;  %v4535_v28 = vpop.eup %4534  ;;  %v1137_v29 = vadd.f32 1.0, %v4531_v11  ;;  %v783_v31 = vadd.f32 %v5353_v42, %v782_v22  ;;  %7292 = vst [vmem:[#allocation22_spill] sm:$0xff] %v5426_v34  ;;  %v1283_v45 = vmul.f32 %v5391_v56, %v1226_v10  ;;  %v3924_v34 = vld [vmem:[#allocation7 + $0x2] ss:$0 sm:$0xff] }
 0x1bb   : > { %v4205_v33 = vpop.f32.mrb[13].mxu0  ;;  %v4277_v36 = vpop.f32.mrb[13].mxu1  ;;  %v5432_v37 = vadd.f32 %v5408_v12, %v1493_v17  ;;  %v1173_v46 = vadd.f32 1.0, %v4533_v16  ;;  %v1138_v52 = vadd.f32 1.0, %v4535_v28  ;;  %v1794_v58 = vrot.slane %v1697_v18, 1 }
 0x1bc   : > { %v1494_v38 = vmul.f32 %v5365_v19, %v1427_v21  ;;  %v785_v44 = vpop.f32.mrb[14].mxu0  ;;  %v5438_v48 = vpop.f32.mrb[14].mxu1  ;;  %v1698_v49 = vmul.f32 %v5368_v23, %v1427_v21  ;;  %v5442_v50 = vmul.f32 %v5370_v24, %v1427_v21  ;;  %v1191_v51 = vmul.f32 %v1137_v29, %v5384_v43  ;;  %v3923_v43 = vld [vmem:[#allocation7 + $0x1] ss:$0 sm:$0xff] }
 0x1bd   : > { %v4206_v53 = vpop.f32.mrb[15].mxu0  ;;  %v4278_v55 = vpop.f32.mrb[15].mxu1  ;;  %v1033_v61 = vmul.f32 0.70710677, %v783_v31  ;;  %v786_v59 = vadd.f32 %v5353_v42, %v785_v44  ;;  %v1192_v2 = vmul.f32 %v1138_v52, %v976_v1  ;;  %v5452_v4 = vmul.f32 0.5, %v783_v31 }
 0x1be   : > { %v4537_v57 = vpop.eup %4536  ;;  %v5448_v62 = vadd.f32 %v5408_v12, %v1494_v38  ;;  %v1795_v63 = vrot.slane %v1698_v49, 1  ;;  %v1248_v0 = vmul.f32 %v5435_v40, %v1191_v51  ;;  %v1227_v17 = vmul.f32 %v1173_v46, %v5389_v54 }
 0x1bf   : > { %4542 = verf.f32 %v1033_v61  ;;  %v1034_v6 = vmul.f32 0.70710677, %v786_v59  ;;  %v1249_v16 = vmul.f32 %v5382_v41, %v1192_v2  ;;  %v5460_v21 = vmul.f32 0.5, %v786_v59 }
 0x1c0   : > { %v4539_v7 = vpop.eup %4538  ;;  %v5455_v10 = vsel %vm1793_vm1, %v1794_v58, %v1795_v63  ;;  %v1428_v11 = vmul.f32 %v5387_v47, %v1248_v0  ;;  %v1174_v22 = vadd.f32 1.0, %v4537_v57  ;;  %v5473_v51 = vmul.f32 %v5403_v9, %v1283_v45 }
 0x1c1   : > { %v1139_v18 = vadd.f32 1.0, %v4539_v7  ;;  %4544 = verf.f32 %v1034_v6  ;;  %v790_v1 = vpop.f32.mrb[16].mxu0  ;;  %v5462_v28 = vpop.f32.mrb[16].mxu1  ;;  %v5468_v36 = vmul.f32 %v3923_v43, %v1249_v16  ;;  %v5476_v52 = vmul.f32 0.5, %v5429_v35 }
 0x1c2   : > { %v1699_v31 = vmul.f32 %v5368_v23, %v1428_v11  ;;  %v5466_v33 = vmul.f32 %v5370_v24, %v1428_v11  ;;  %v791_v47 = vadd.f32 %v5353_v42, %v790_v1  ;;  %v4209_v38 = vpop.f32.mrb[17].mxu0  ;;  %v4281_v54 = vpop.f32.mrb[17].mxu1  ;;  %7293 = vst [vmem:[#allocation23_spill] sm:$0xff] %v5473_v51  ;;  %v1228_v6 = vmul.f32 %v1174_v22, %v5397_v5 }
 0x1c3   : > { %v4541_v29 = vpop.eup %4540  ;;  %v1193_v44 = vmul.f32 %v1139_v18, %v5401_v8  ;;  %v793_v49 = vpop.f32.mrb[18].mxu0  ;;  %v1495_v57 = vmul.f32 %v5365_v19, %v5468_v36  ;;  %v5484_v58 = vmul.f32 %v5368_v23, %v5468_v36  ;;  %v1284_v8 = vmul.f32 %v5435_v40, %v1227_v17 }
 0x1c4   : > { %v1140_v46 = vadd.f32 1.0, %v4541_v29  ;;  %v5478_v53 = vpop.f32.mrb[18].mxu1  ;;  %v1797_v55 = vrot.slane %v1699_v31, 1  ;;  %v4210_v61 = vpop.f32.mrb[19].mxu0  ;;  %v5489_v45 = vmul.f32 %v5370_v24, %v5468_v36  ;;  %v5498_v16 = vmul.f32 0.5, %v791_v47 }
 0x1c5   : > { %7294 = vst [vmem:[#allocation24_spill] sm:$0xff] %v5484_v58  ;;  %v4282_v59 = vpop.f32.mrb[19].mxu1  ;;  %v1250_v0 = vmul.f32 %v5391_v56, %v1193_v44  ;;  %v1035_v18 = vmul.f32 0.70710677, %v791_v47  ;;  %v5501_v17 = vadd.f32 %v5408_v12, %v1495_v57  ;;  %v5510_v22 = vmul.f32 %v5403_v9, %v1284_v8  ;;  %v3925_v58 = vld [vmem:[#allocation7 + $0x3] ss:$0 sm:$0xff] }
 0x1c6   : > { %7295 = vst [vmem:[#allocation25_spill] sm:$0xff] %v5489_v45  ;;  %v1194_v2 = vmul.f32 %v1140_v46, %v5410_v13  ;;  %v5495_v7 = vsel %vm1793_vm1, %v1795_v63, %v1797_v55  ;;  %v794_v13 = vadd.f32 %v5353_v42, %v793_v49  ;;  %v1068_v46 = vmul.f32 0.70710677, %v5429_v35 }
 0x1c7   : > { %7296 = vst [vmem:[#allocation26_spill] sm:$0xff] %v5501_v17  ;;  %v5503_v1 = vmul.f32 %v3923_v43, %v1250_v0  ;;  %4546 = verf.f32 %v1035_v18  ;;  %7297 = vst [vmem:[#allocation27_spill] sm:$0xff] %v5510_v22  ;;  %v1285_v8 = vmul.f32 %v5382_v41, %v1228_v6 }
 0x1c8   : > { %v1251_v29 = vmul.f32 %v5435_v40, %v1194_v2  ;;  %v1036_v57 = vmul.f32 0.70710677, %v794_v13  ;;  %v5530_v18 = vmul.f32 0.5, %v794_v13 }
 0x1c9   : > { %v4543_v31 = vpop.eup %4542  ;;  %v1496_v47 = vmul.f32 %v5365_v19, %v5503_v1  ;;  %v5516_v54 = vmul.f32 %v5368_v23, %v5503_v1  ;;  %v798_v44 = vpop.f32.mrb[20].mxu0  ;;  %v5523_v55 = vmul.f32 %v5370_v24, %v5503_v1 }
 0x1ca   : > { %v1431_v38 = vmul.f32 %v3923_v43, %v1251_v29  ;;  %v5519_v49 = vpop.f32.mrb[20].mxu1  ;;  %v1141_v9 = vadd.f32 1.0, %v4543_v31  ;;  %v4213_v61 = vpop.f32.mrb[21].mxu0  ;;  %v799_v35 = vadd.f32 %v5353_v42, %v798_v44  ;;  %4548 = verf.f32 %v1036_v57 }
 0x1cb   : > { %7298 = vst [vmem:[#allocation28_spill] sm:$0xff] %v5516_v54  ;;  %7299 = vst [vmem:[#allocation29_spill] sm:$0xff] %v5523_v55  ;;  %v4285_v59 = vpop.f32.mrb[21].mxu1  ;;  %v4545_v43 = vpop.eup %4544  ;;  %v5536_v31 = vadd.f32 %v5408_v12, %v1496_v47  ;;  %v7219_v13 = vrot.slane %v5516_v54, 1  ;;  %v7218_v22 = vrot.slane %v5523_v55, 2  ;;  %4550 = verf.f32 %v5414_v15 }
 0x1cc   : > { %v1702_v0 = vmul.f32 %v5368_v23, %v1431_v38  ;;  %v5528_v2 = vmul.f32 %v5372_v26, %v1431_v38  ;;  %v801_v29 = vpop.f32.mrb[22].mxu0  ;;  %v5533_v63 = vpop.f32.mrb[22].mxu1  ;;  %v2435_v61 = vmul.f32 %v5370_v24, %v1431_v38  ;;  %v5540_v6 = vmul.f32 %v5374_v27, %v1431_v38 }
 0x1cd   : > { %7300 = vst [vmem:[#allocation30_spill] sm:$0xff] %v5536_v31  ;;  %v1195_v59 = vmul.f32 %v1141_v9, %v5452_v4  ;;  %v4214_v5 = vpop.f32.mrb[23].mxu0  ;;  %v4286_v11 = vpop.f32.mrb[23].mxu1  ;;  %v1142_v3 = vadd.f32 1.0, %v4545_v43  ;;  %v5560_v43 = vmul.f32 0.5, %v799_v35  ;;  %v930_v15 = vadd.f32 %v5353_v42, %v5438_v48 }
 0x1ce   : > { %v1802_v60 = vrot.slane %v1702_v0, 1  ;;  %v2535_v47 = vrot.slane %v2435_v61, 2  ;;  %v1037_v11 = vmul.f32 0.70710677, %v799_v35  ;;  %v802_v5 = vadd.f32 %v5353_v42, %v801_v29  ;;  %v5562_v0 = vld [vmem:[#allocation7 + $0xd] ss:$0 sm:$0xff] }
 0x1cf   : > { %v1252_v51 = vmul.f32 %v5382_v41, %v1195_v59  ;;  %v1196_v4 = vmul.f32 %v1142_v3, %v5460_v21  ;;  %v927_v35 = vadd.f32 %v5353_v42, %v5422_v25  ;;  %v935_v57 = vadd.f32 %v5353_v42, %v5462_v28 }
 0x1d0   : > { %v5550_v38 = vsel %vm1793_vm1, %v7219_v13, %v1802_v60  ;;  %v5557_v9 = vsel %vm2526_vm2, %v7218_v22, %v2535_v47  ;;  %4552 = verf.f32 %v1037_v11  ;;  %v1038_v21 = vmul.f32 0.70710677, %v802_v5 }
 0x1d1   : > { %7301 = vst [vmem:[#allocation31_spill] sm:$0xff] %v5550_v38  ;;  %7302 = vst [vmem:[#allocation32_spill] sm:$0xff] %v5557_v9  ;;  %v5565_v60 = vmul.f32 %v3924_v34, %v1252_v51  ;;  %v1253_v3 = vmul.f32 %v5391_v56, %v1196_v4  ;;  %v806_v29 = vpop.f32.mrb[24].mxu0  ;;  %v5568_v61 = vpop.f32.mrb[24].mxu1  ;;  %4554 = verf.f32 %v1068_v46  ;;  %v5576_v11 = vmul.f32 %v5562_v0, %v1285_v8 }
 0x1d2   : > { %v4547_v59 = vpop.eup %4546  ;;  %v807_v47 = vadd.f32 %v5353_v42, %v806_v29  ;;  %v4217_v22 = vpop.f32.mrb[25].mxu0  ;;  %4556 = verf.f32 %v1038_v21  ;;  %v5584_v46 = vmul.f32 0.5, %v802_v5  ;;  %v1069_v8 = vmul.f32 0.70710677, %v927_v35 }
 0x1d3   : > { %v4289_v51 = vpop.f32.mrb[25].mxu1  ;;  %v1143_v13 = vadd.f32 1.0, %v4547_v59  ;;  %v809_v4 = vpop.f32.mrb[26].mxu0  ;;  %7303 = vst [vmem:[#allocation33_spill] sm:$0xff] %v5576_v11  ;;  %v5582_v22 = vmul.f32 %v3924_v34, %v1253_v3  ;;  %v1070_v11 = vmul.f32 0.70710677, %v930_v15 }
 0x1d4   : > { %v5580_v44 = vpop.f32.mrb[26].mxu1  ;;  %v1039_v25 = vmul.f32 0.70710677, %v807_v47  ;;  %v810_v29 = vadd.f32 %v5353_v42, %v809_v4  ;;  %v4218_v48 = vpop.f32.mrb[27].mxu0  ;;  %v5588_v59 = vmul.f32 0.5, %v807_v47  ;;  %v5590_v28 = vmul.f32 0.5, %v927_v35 }
 0x1d5   : > { %v4290_v51 = vpop.f32.mrb[27].mxu1  ;;  %v1197_v21 = vmul.f32 %v1143_v13, %v5498_v16  ;;  %v5592_v9 = vmul.f32 0.5, %v930_v15  ;;  %v4549_v3 = vpop.eup %4548  ;;  %v1071_v45 = vmul.f32 0.70710677, %v935_v57  ;;  %v938_v4 = vadd.f32 %v5353_v42, %v5478_v53 }
 0x1d6   : > { %4558 = verf.f32 %v1039_v25  ;;  %v1040_v24 = vmul.f32 0.70710677, %v810_v29  ;;  %v1144_v48 = vadd.f32 1.0, %v4549_v3  ;;  %v5597_v16 = vmul.f32 0.5, %v810_v29 }
 0x1d7   : > { %v1254_v5 = vmul.f32 %v5435_v40, %v1197_v21  ;;  %4560 = verf.f32 %v1069_v8  ;;  %v943_v13 = vadd.f32 %v5353_v42, %v5519_v49  ;;  %v5603_v15 = vmul.f32 0.5, %v935_v57  ;;  %v4551_v21 = vpop.eup %4550 }
 0x1d8   : > { %4562 = verf.f32 %v1040_v24  ;;  %v1072_v25 = vmul.f32 0.70710677, %v938_v4  ;;  %v1198_v8 = vmul.f32 %v1144_v48, %v5530_v18  ;;  %v5611_v24 = vadd.f32 %v5353_v42, %v5533_v63 }
 0x1d9   : > { %v5601_v47 = vmul.f32 %v3924_v34, %v1254_v5  ;;  %v814_v35 = vpop.f32.mrb[28].mxu0  ;;  %4564 = verf.f32 %v1070_v11  ;;  %v5605_v51 = vpop.f32.mrb[28].mxu1  ;;  %v1175_v3 = vadd.f32 1.0, %v4551_v21  ;;  %v5617_v5 = vmul.f32 0.5, %v938_v4 }
 0x1da   : > { %v815_v53 = vadd.f32 %v5353_v42, %v814_v35  ;;  %v4221_v29 = vpop.f32.mrb[29].mxu0  ;;  %4566 = verf.f32 %v1071_v45  ;;  %v4293_v34 = vpop.f32.mrb[29].mxu1  ;;  %v1073_v55 = vmul.f32 0.70710677, %v943_v13  ;;  %v1255_v45 = vmul.f32 %v5382_v41, %v1198_v8 }
 0x1db   : > { %v4553_v49 = vpop.eup %4552  ;;  %v5615_v57 = vmul.f32 %v5372_v26, %v5601_v47  ;;  %v817_v11 = vpop.f32.mrb[30].mxu0  ;;  %4568 = verf.f32 %v1072_v25  ;;  %v1229_v31 = vmul.f32 %v1175_v3, %v5412_v14  ;;  %v5624_v4 = vmul.f32 0.5, %v943_v13 }
 0x1dc   : > { %v5619_v18 = vpop.f32.mrb[30].mxu1  ;;  %v4555_v48 = vpop.eup %4554  ;;  %v1145_v35 = vadd.f32 1.0, %v4553_v49  ;;  %v1041_v29 = vmul.f32 0.70710677, %v815_v53  ;;  %v818_v54 = vadd.f32 %v5353_v42, %v817_v11  ;;  %v5627_v23 = vmul.f32 0.5, %v815_v53 }
 0x1dd   : > { %7304 = vst [vmem:[#allocation34_spill] sm:$0xff] %v5615_v57  ;;  %v4222_v63 = vpop.f32.mrb[31].mxu0  ;;  %v4294_v34 = vpop.f32.mrb[31].mxu1  ;;  %v1176_v21 = vadd.f32 1.0, %v4555_v48  ;;  %v1286_v25 = vmul.f32 %v5391_v56, %v1229_v31  ;;  %v5632_v11 = vmul.f32 %v3925_v58, %v1255_v45 }
 0x1de   : > { %v4557_v38 = vpop.eup %4556  ;;  %v1199_v17 = vmul.f32 %v1145_v35, %v5560_v43  ;;  %4570 = verf.f32 %v1041_v29  ;;  %v1042_v49 = vmul.f32 0.70710677, %v818_v54  ;;  %v5636_v53 = vmul.f32 0.5, %v818_v54 }
 0x1df   : > { %v1146_v12 = vadd.f32 1.0, %v4557_v38  ;;  %v1230_v63 = vmul.f32 %v1176_v21, %v5476_v52  ;;  %4572 = verf.f32 %v1073_v55 }
 0x1e0   : > { %v4559_v34 = vpop.eup %4558  ;;  %v1256_v14 = vmul.f32 %v5391_v56, %v1199_v17  ;;  %4574 = verf.f32 %v1042_v49 }
 0x1e1   : > { %v1200_v13 = vmul.f32 %v1146_v12, %v5584_v46  ;;  %v4561_v43 = vpop.eup %4560  ;;  %v1147_v38 = vadd.f32 1.0, %v4559_v34  ;;  %v1287_v3 = vmul.f32 %v5435_v40, %v1230_v63  ;;  %v822_v48 = vpop.f32.mrb[32].mxu0  ;;  %v5644_v12 = vmul.f32 0.5, %v5611_v24 }
 0x1e2   : > { %v5639_v35 = vpop.f32.mrb[32].mxu1  ;;  %v4563_v31 = vpop.eup %4562  ;;  %v1177_v45 = vadd.f32 1.0, %v4561_v43  ;;  %v823_v29 = vadd.f32 %v5353_v42, %v822_v48  ;;  %v5646_v54 = vmul.f32 %v3925_v58, %v1256_v14  ;;  %v5650_v63 = vmul.f32 %v5562_v0, %v1286_v25  ;;  %v3926_v48 = vld [vmem:[#allocation7 + $0x4] ss:$0 sm:$0xff] }
 0x1e3   : > { %v1257_v52 = vmul.f32 %v5435_v40, %v1200_v13  ;;  %v4225_v17 = vpop.f32.mrb[33].mxu0  ;;  %v4297_v55 = vpop.f32.mrb[33].mxu1  ;;  %v1201_v21 = vmul.f32 %v1147_v38, %v5588_v59  ;;  %v1148_v49 = vadd.f32 1.0, %v4563_v31 }
 0x1e4   : > { %v4565_v46 = vpop.eup %4564  ;;  %7305 = vst [vmem:[#allocation35_spill] sm:$0xff] %v5646_v54  ;;  %7306 = vst [vmem:[#allocation36_spill] sm:$0xff] %v5650_v63  ;;  %v825_v34 = vpop.f32.mrb[34].mxu0  ;;  %v5657_v17 = vmul.f32 %v5562_v0, %v1287_v3  ;;  %v1231_v55 = vmul.f32 %v1177_v45, %v5590_v28  ;;  %v1043_v14 = vmul.f32 0.70710677, %v823_v29 }
 0x1e5   : > { %v5652_v8 = vpop.f32.mrb[34].mxu1  ;;  %v4567_v13 = vpop.eup %4566  ;;  %v5654_v43 = vmul.f32 %v3925_v58, %v1257_v52  ;;  %v1258_v59 = vmul.f32 %v5382_v41, %v1201_v21  ;;  %v1202_v25 = vmul.f32 %v1148_v49, %v5597_v16  ;;  %v1178_v38 = vadd.f32 1.0, %v4565_v46 }
 0x1e6   : > { %7307 = vst [vmem:[#allocation37_spill] sm:$0xff] %v5652_v8  ;;  %7308 = vst [vmem:[#allocation38_spill] sm:$0xff] %v5657_v17  ;;  %v4226_v57 = vpop.f32.mrb[35].mxu0  ;;  %v4298_v54 = vpop.f32.mrb[35].mxu1  ;;  %v826_v31 = vadd.f32 %v5353_v42, %v825_v34  ;;  %4576 = verf.f32 %v1043_v14  ;;  %v1179_v0 = vadd.f32 1.0, %v4567_v13  ;;  %v989_v52 = vmul.f32 0.5, %v823_v29 }
 0x1e7   : > { %v4569_v63 = vpop.eup %4568  ;;  %v5665_v58 = vmul.f32 %v5376_v30, %v5654_v43  ;;  %v1074_v3 = vmul.f32 0.70710677, %v5611_v24  ;;  %v5668_v28 = vmul.f32 %v3926_v48, %v1258_v59  ;;  %v1288_v57 = vmul.f32 %v5382_v41, %v1231_v55  ;;  %v3936_v54 = vld [vmem:[#allocation7 + $0xe] ss:$0 sm:$0xff] }
 0x1e8   : > { %v1232_v45 = vmul.f32 %v1178_v38, %v5592_v9  ;;  %v4571_v16 = vpop.eup %4570  ;;  %v1259_v46 = vmul.f32 %v5391_v56, %v1202_v25  ;;  %v5673_v21 = vmul.f32 0.5, %v826_v31  ;;  %v1044_v49 = vmul.f32 0.70710677, %v826_v31 }
 0x1e9   : > { %7309 = vst [vmem:[#allocation39_spill] sm:$0xff] %v5668_v28  ;;  %v1233_v34 = vmul.f32 %v1179_v0, %v5603_v15  ;;  %v1149_v14 = vadd.f32 1.0, %v4571_v16  ;;  %v1180_v59 = vadd.f32 1.0, %v4569_v63  ;;  %v830_v17 = vpop.f32.mrb[36].mxu0  ;;  %v4573_v55 = vpop.eup %4572  ;;  %v951_v38 = vadd.f32 %v5353_v42, %v5568_v61 }
 0x1ea   : > { %v1289_v24 = vmul.f32 %v5391_v56, %v1232_v45  ;;  %4578 = verf.f32 %v1044_v49  ;;  %v831_v29 = vadd.f32 %v5353_v42, %v830_v17  ;;  %v4229_v25 = vpop.f32.mrb[37].mxu0  ;;  %v4575_v31 = vpop.eup %4574  ;;  %v5683_v0 = vmul.f32 %v3936_v54, %v1288_v57 }
 0x1eb   : > { %v1290_v9 = vmul.f32 %v5435_v40, %v1233_v34  ;;  %v1203_v15 = vmul.f32 %v1149_v14, %v5627_v23  ;;  %v1234_v16 = vmul.f32 %v1180_v59, %v5617_v5  ;;  %v1181_v45 = vadd.f32 1.0, %v4573_v55  ;;  %v833_v63 = vpop.f32.mrb[38].mxu0  ;;  %v5690_v34 = vld [vmem:[#allocation7 + $0xf] ss:$0 sm:$0xff] }
 0x1ec   : > { %7310 = vst [vmem:[#allocation40_spill] sm:$0xff] %v5683_v0  ;;  %v5686_v13 = vmul.f32 %v3926_v48, %v1259_v46  ;;  %v1150_v49 = vadd.f32 1.0, %v4575_v31  ;;  %v5688_v28 = vmul.f32 %v3936_v54, %v1289_v24  ;;  %v1045_v17 = vmul.f32 0.70710677, %v831_v29  ;;  %v4230_v25 = vpop.f32.mrb[39].mxu0 }
 0x1ed   : > { %v1260_v61 = vmul.f32 %v5435_v40, %v1203_v15  ;;  %v1291_v8 = vmul.f32 %v5382_v41, %v1234_v16  ;;  %v1235_v23 = vmul.f32 %v1181_v45, %v5624_v4  ;;  %v834_v57 = vadd.f32 %v5353_v42, %v833_v63 }
 0x1ee   : > { %7311 = vst [vmem:[#allocation41_spill] sm:$0xff] %v5688_v28  ;;  %v1204_v5 = vmul.f32 %v1150_v49, %v5636_v53  ;;  %v5697_v14 = vmul.f32 %v3936_v54, %v1290_v9  ;;  %4580 = verf.f32 %v1045_v17  ;;  %v1075_v46 = vmul.f32 0.70710677, %v951_v38 }
 0x1ef   : > { %v5699_v24 = vmul.f32 %v3926_v48, %v1260_v61  ;;  %v5702_v59 = vmul.f32 %v5690_v34, %v1291_v8  ;;  %v991_v55 = vmul.f32 0.5, %v831_v29  ;;  %v5704_v31 = vmul.f32 0.5, %v951_v38 }
 0x1f0   : > { %7312 = vst [vmem:[#allocation42_spill] sm:$0xff] %v5697_v14  ;;  %v4577_v15 = vpop.eup %4576  ;;  %v1292_v16 = vmul.f32 %v5391_v56, %v1235_v23  ;;  %v1046_v4 = vmul.f32 0.70710677, %v834_v57  ;;  %4582 = verf.f32 %v1074_v3  ;;  %v1561_v53 = vmul.f32 %v5378_v32, %v5468_v36  ;;  %v3927_v3 = vld [vmem:[#allocation7 + $0x5] ss:$0 sm:$0xff] }
 0x1f1   : > { %7313 = vst [vmem:[#allocation43_spill] sm:$0xff] %v5699_v24  ;;  %7314 = vst [vmem:[#allocation44_spill] sm:$0xff] %v5702_v59  ;;  %v1151_v54 = vadd.f32 1.0, %v4577_v15  ;;  %v5709_v9 = vmul.f32 0.5, %v834_v57  ;;  %v838_v45 = vpop.f32.mrb[40].mxu0  ;;  %4584 = verf.f32 %v1075_v46  ;;  %v1562_v8 = vmul.f32 %v5378_v32, %v5503_v1 }
 0x1f2   : > { %v1261_v48 = vmul.f32 %v5382_v41, %v1204_v5  ;;  %4586 = verf.f32 %v1046_v4  ;;  %v839_v29 = vadd.f32 %v5353_v42, %v838_v45  ;;  %v4233_v38 = vpop.f32.mrb[41].mxu0  ;;  %v1593_v63 = vadd.f32 %v1561_v53, %v5432_v37  ;;  %v3928_v24 = vld [vmem:[#allocation7 + $0x6] ss:$0 sm:$0xff] }
 0x1f3   : > { %v1205_v49 = vmul.f32 %v1151_v54, %v989_v52  ;;  %v841_v17 = vpop.f32.mrb[42].mxu0  ;;  %v1594_v25 = vadd.f32 %v1562_v8, %v5448_v62  ;;  %v1629_v61 = vmul.f32 %v5380_v39, %v5565_v60  ;;  %v1630_v23 = vmul.f32 %v5380_v39, %v5582_v22 }
 0x1f4   : > { %v4579_v57 = vpop.eup %4578  ;;  %v5722_v5 = vmul.f32 %v5690_v34, %v1292_v16  ;;  %v1047_v46 = vmul.f32 0.70710677, %v839_v29  ;;  %v842_v15 = vadd.f32 %v5353_v42, %v841_v17  ;;  %v4234_v4 = vpop.f32.mrb[43].mxu0  ;;  %v1942_v37 = vmul.f32 %v5372_v26, %v5468_v36 }
 0x1f5   : > { %v1262_v52 = vmul.f32 %v5391_v56, %v1205_v49  ;;  %v1152_v62 = vadd.f32 1.0, %v4579_v57  ;;  %v1661_v53 = vadd.f32 %v1629_v61, %v1593_v63  ;;  %v1662_v54 = vadd.f32 %v1630_v23, %v1594_v25 }
 0x1f6   : > { %7315 = vst [vmem:[#allocation45_spill] sm:$0xff] %v5722_v5  ;;  %v5728_v45 = vmul.f32 %v3927_v3, %v1261_v48  ;;  %4588 = verf.f32 %v1047_v46  ;;  %v1048_v8 = vmul.f32 0.70710677, %v842_v15  ;;  %v1943_v16 = vmul.f32 %v5372_v26, %v5503_v1 }
 0x1f7   : > { %v1206_v38 = vmul.f32 %v1152_v62, %v5673_v21  ;;  %v993_v14 = vmul.f32 0.5, %v839_v29  ;;  %v1906_v17 = vadd.f32 %v5455_v10, %v1661_v53  ;;  %v1907_v4 = vadd.f32 %v5495_v7, %v1662_v54 }
 0x1f8   : > { %7316 = vst [vmem:[#allocation46_spill] sm:$0xff] %v5728_v45  ;;  %v4581_v28 = vpop.eup %4580  ;;  %4590 = verf.f32 %v1048_v8  ;;  %v2038_v49 = vrot.slane %v1942_v37, 1  ;;  %v2039_v57 = vrot.slane %v1943_v16, 1  ;;  %v2186_v48 = vmul.f32 %v5376_v30, %v5565_v60 }
 0x1f9   : > { %v5737_v63 = vmul.f32 %v3927_v3, %v1262_v52  ;;  %v1153_v25 = vadd.f32 1.0, %v4581_v28  ;;  %v5739_v61 = vmul.f32 0.5, %v842_v15  ;;  %v846_v23 = vpop.f32.mrb[44].mxu0  ;;  %v2187_v21 = vmul.f32 %v5376_v30, %v5582_v22 }
 0x1fa   : > { %v4583_v29 = vpop.eup %4582  ;;  %v847_v10 = vadd.f32 %v5353_v42, %v846_v23  ;;  %v2040_v7 = vsel %vm1793_vm1, %v2038_v49, %v2039_v57  ;;  %v7318_v46 = vrot.slane %v5528_v2, 1  ;;  %v2188_v52 = vmul.f32 %v5376_v30, %v5601_v47  ;;  %v4237_v62 = vpop.f32.mrb[45].mxu0 }
 0x1fb   : > { %7317 = vst [vmem:[#allocation47_spill] sm:$0xff] %v5737_v63  ;;  %v4585_v28 = vpop.eup %4584  ;;  %v1263_v15 = vmul.f32 %v5435_v40, %v1206_v38  ;;  %v1207_v53 = vmul.f32 %v1153_v25, %v991_v55  ;;  %v1182_v54 = vadd.f32 1.0, %v4583_v29  ;;  %v2150_v8 = vadd.f32 %v2040_v7, %v1906_v17  ;;  %v5751_v16 = vpop.f32.mrb[46].mxu0 }
 0x1fc   : > { %v2042_v37 = vsel %vm1793_vm1, %v2039_v57, %v7318_v46  ;;  %v4587_v0 = vpop.eup %4586  ;;  %v1183_v42 = vadd.f32 1.0, %v4585_v28  ;;  %v1049_v23 = vmul.f32 0.70710677, %v847_v10  ;;  %v2282_v63 = vrot.slane %v2186_v48, 1  ;;  %v4238_v2 = vpop.f32.mrb[47].mxu0 }
 0x1fd   : > { %v2151_v49 = vadd.f32 %v2042_v37, %v1907_v4  ;;  %v1264_v57 = vmul.f32 %v5382_v41, %v1207_v53  ;;  %v1154_v46 = vadd.f32 1.0, %v4587_v0  ;;  %v1236_v45 = vmul.f32 %v1182_v54, %v5644_v12 }
 0x1fe   : > { %v2283_v62 = vrot.slane %v2187_v21, 1  ;;  %v1237_v38 = vmul.f32 %v1183_v42, %v5704_v31  ;;  %4592 = verf.f32 %v1049_v23  ;;  %v2285_v55 = vrot.slane %v2188_v52, 1 }
 0x1ff   : > { %v7319_v17 = vrot.slane %v5442_v50, 2  ;;  %v7320_v25 = vrot.slane %v5419_v20, 2  ;;  %v5761_v4 = vmul.f32 %v3927_v3, %v1263_v15  ;;  %v1208_v48 = vmul.f32 %v1154_v46, %v5709_v9 }
 0x200   : > { %v1293_v0 = vmul.f32 %v5435_v40, %v1236_v45  ;;  %v2284_v12 = vsel %vm1793_vm1, %v2282_v63, %v2283_v62  ;;  %v4589_v21 = vpop.eup %4588  ;;  %v995_v7 = vmul.f32 0.5, %v847_v10  ;;  %v2286_v31 = vsel %vm1793_vm1, %v2283_v62, %v2285_v55  ;;  %v5778_v45 = vld [vmem:[%s7199_s5 + $0x8] ss:$0 sm:$0xff]  ;;  %v5792_v62 = vld [vmem:[#allocation7 + $0x10] ss:$0 sm:$0xff] }
 0x201   : > { %v2529_v29 = vsel %vm2526_vm2, %v7320_v25, %v7319_v17  ;;  %v2394_v37 = vadd.f32 %v2284_v12, %v2150_v8  ;;  %v7321_v52 = vrot.slane %v5466_v33, 2  ;;  %v7322_v28 = vmov %v7319_v17  ;;  %v5780_v10 = vpop.f32.mrb[48].mxu0 }
 0x202   : > { %v5772_v53 = vmul.f32 %v3928_v24, %v1264_v57  ;;  %v1155_v3 = vadd.f32 1.0, %v4589_v21  ;;  %v1294_v9 = vmul.f32 %v5382_v41, %v1237_v38  ;;  %v2395_v63 = vadd.f32 %v2286_v31, %v2151_v49  ;;  %v4591_v15 = vpop.eup %4590  ;;  %v4241_v42 = vpop.f32.mrb[49].mxu0 }
 0x203   : > { %v2531_v20 = vsel %vm2526_vm2, %v7322_v28, %v7321_v52  ;;  %v1265_v33 = vmul.f32 %v5391_v56, %v1208_v48  ;;  %v2639_v54 = vadd.f32 %v2529_v29, %v2394_v37  ;;  %v2675_v50 = vmul.f32 %v5374_v27, %v5468_v36  ;;  %v5790_v49 = vpop.f32.mrb[50].mxu0  ;;  %v5805_v29 = vld [vmem:[%s7198_s4] ss:$0 sm:$0xff] }
 0x204   : > { %7323 = vst [vmem:[#allocation48_spill] sm:$0xff] %v5772_v53  ;;  %v2676_v8 = vmul.f32 %v5374_v27, %v5503_v1  ;;  %v5788_v23 = vmul.f32 %v5690_v34, %v1293_v0  ;;  %v1209_v2 = vmul.f32 %v1155_v3, %v993_v14  ;;  %v1156_v57 = vadd.f32 1.0, %v4591_v15  ;;  %v4242_v1 = vpop.f32.mrb[51].mxu0  ;;  %v7369_v53 = vld [vmem:[#allocation20_spill] sm:$0xff] }
 0x205   : > { %v2640_v46 = vadd.f32 %v2531_v20, %v2395_v63  ;;  %v2771_v38 = vrot.slane %v2675_v50, 2  ;;  %v2919_v17 = vmul.f32 %v5778_v45, %v5565_v60  ;;  %v2920_v36 = vmul.f32 %v5778_v45, %v5582_v22 }
 0x206   : > { %7324 = vst [vmem:[#allocation49_spill] sm:$0xff] %v5788_v23  ;;  %v2772_v55 = vrot.slane %v2676_v8, 2  ;;  %v1266_v25 = vmul.f32 %v5435_v40, %v1209_v2  ;;  %v1210_v34 = vmul.f32 %v1156_v57, %v5739_v61  ;;  %v2921_v14 = vmul.f32 %v5778_v45, %v5601_v47 }
 0x207   : > { %v954_v48 = vadd.f32 %v5805_v29, %v5580_v44  ;;  %v7325_v12 = vrot.slane %v5540_v6, 2  ;;  %v3015_v31 = vrot.slane %v2919_v17, 2  ;;  %v3016_v37 = vrot.slane %v2920_v36, 2  ;;  %v5822_v6 = vld [vmem:[#allocation7 + $0x7] ss:$0 sm:$0xff] }
 0x208   : > { %v2773_v0 = vsel %vm2526_vm2, %v2771_v38, %v2772_v55  ;;  %v5813_v61 = vmul.f32 %v3928_v24, %v1265_v33  ;;  %v5816_v52 = vmul.f32 %v5792_v62, %v1294_v9  ;;  %v4593_v3 = vpop.eup %4592  ;;  %v1267_v63 = vmul.f32 %v5382_v41, %v1210_v34 }
 0x209   : > { %v2775_v21 = vsel %vm2526_vm2, %v2772_v55, %v7325_v12  ;;  %v2883_v28 = vadd.f32 %v2773_v0, %v2639_v54  ;;  %v3017_v44 = vsel %vm2526_vm2, %v3015_v31, %v3016_v37  ;;  %v3018_v15 = vrot.slane %v2921_v14, 2  ;;  %v5826_v9 = vpop.f32.mrb[52].mxu0 }
 0x20a   : > { %7326 = vst [vmem:[#allocation50_spill] sm:$0xff] %v5813_v61  ;;  %7327 = vst [vmem:[#allocation51_spill] sm:$0xff] %v5816_v52  ;;  %v2884_v20 = vadd.f32 %v2775_v21, %v2640_v46  ;;  %v1076_v50 = vmul.f32 0.70710677, %v954_v48  ;;  %v5820_v8 = vmul.f32 %v3928_v24, %v1266_v25  ;;  %v1157_v42 = vadd.f32 1.0, %v4593_v3  ;;  %v4245_v24 = vpop.f32.mrb[53].mxu0 }
 0x20b   : > { %v3127_v2 = vadd.f32 %v3017_v44, %v2883_v28  ;;  %v850_v33 = vadd.f32 %v5805_v29, %v5751_v16  ;;  %v3019_v54 = vsel %vm2526_vm2, %v3016_v37, %v3018_v15  ;;  %v959_v41 = vadd.f32 %v5805_v29, %v5605_v51  ;;  %v5833_v36 = vpop.f32.mrb[54].mxu0  ;;  %v7330_v37 = vld [vmem:[#allocation19_spill] sm:$0xff] }
 0x20c   : > { %7328 = vst [vmem:[#allocation52_spill] sm:$0xff] %v5820_v8  ;;  %4594 = verf.f32 %v1076_v50  ;;  %v962_v57 = vadd.f32 %v5805_v29, %v5619_v18  ;;  %v1211_v46 = vmul.f32 %v1157_v42, %v995_v7  ;;  %v3128_v38 = vadd.f32 %v3019_v54, %v2884_v20  ;;  %v4246_v18 = vpop.f32.mrb[55].mxu0  ;;  %v7331_v20 = vld [vmem:[#allocation21_spill] sm:$0xff] }
 0x20d   : > { %v3191_v55 = vmul.f32 0.70710677, %v3127_v2  ;;  %v1022_v17 = vmul.f32 0.5, %v954_v48  ;;  %v5836_v16 = vmul.f32 %v5822_v6, %v1267_v63  ;;  %v5838_v1 = vmul.f32 0.5, %v3127_v2 }
 0x20e   : > { %v1050_v25 = vmul.f32 0.70710677, %v850_v33  ;;  %v1077_v34 = vmul.f32 0.70710677, %v959_v41  ;;  %v3192_v14 = vmul.f32 0.70710677, %v3128_v38  ;;  %v1268_v7 = vmul.f32 %v5391_v56, %v1211_v46 }
 0x20f   : > { %7329 = vst [vmem:[#allocation53_spill] sm:$0xff] %v5836_v16  ;;  %4596 = verf.f32 %v3191_v55  ;;  %v5840_v51 = vmul.f32 0.5, %v850_v33  ;;  %v5842_v0 = vmul.f32 0.5, %v959_v41  ;;  %v1078_v48 = vmul.f32 0.70710677, %v962_v57 }
 0x210   : > { %4598 = verf.f32 %v1050_v25  ;;  %v1523_v12 = vmul.f32 %v5365_v19, %v5702_v59  ;;  %v5847_v21 = vmul.f32 0.5, %v3128_v38  ;;  %v1591_v31 = vmul.f32 %v5378_v32, %v5816_v52 }
 0x211   : > { %4600 = verf.f32 %v3192_v14  ;;  %v1742_v28 = vmul.f32 %v7330_v37, %v5702_v59  ;;  %v1743_v56 = vmul.f32 %v7330_v37, %v5722_v5  ;;  %v855_v63 = vadd.f32 %v5805_v29, %v5780_v10  ;;  %v5862_v42 = vpop.f32.mrb[56].mxu0 }
 0x212   : > { %4602 = verf.f32 %v1077_v34  ;;  %v1555_v3 = vadd.f32 %v7331_v20, %v1523_v12  ;;  %v5858_v44 = vmul.f32 0.5, %v962_v57  ;;  %v967_v50 = vadd.f32 %v5805_v29, %v5639_v35  ;;  %v4249_v24 = vpop.f32.mrb[57].mxu0 }
 0x213   : > { %4604 = verf.f32 %v1078_v48  ;;  %v1869_v15 = vrot.slane %v1742_v28, 1  ;;  %v5865_v2 = vmul.f32 %v5822_v6, %v1268_v7  ;;  %v1870_v54 = vrot.slane %v1743_v56, 1  ;;  %v5875_v35 = vpop.f32.mrb[58].mxu0  ;;  %v7334_v24 = vld [vmem:[#allocation30_spill] sm:$0xff] }
 0x214   : > { %v5867_v33 = vadd.f32 %v1591_v31, %v1555_v3  ;;  %v1051_v41 = vmul.f32 0.70710677, %v855_v63  ;;  %v5869_v46 = vmul.f32 0.5, %v855_v63  ;;  %v1079_v10 = vmul.f32 0.70710677, %v967_v50  ;;  %v4250_v18 = vpop.f32.mrb[59].mxu0 }
 0x215   : > { %7332 = vst [vmem:[#allocation19_spill] sm:$0xff] %v5865_v2  ;;  %v1524_v57 = vmul.f32 %v5365_v19, %v5722_v5  ;;  %v1744_v38 = vmul.f32 %v7330_v37, %v5788_v23  ;;  %v5878_v25 = vsel %vm1793_vm1, %v1869_v15, %v1870_v54  ;;  %v858_v34 = vadd.f32 %v5805_v29, %v5790_v49  ;;  %v7333_v3 = vld [vmem:[#allocation26_spill] sm:$0xff]  ;;  %v7336_v5 = vld [vmem:[#allocation28_spill] sm:$0xff] }
 0x216   : > { %v4595_v55 = vpop.eup %4594  ;;  %4606 = verf.f32 %v1051_v41  ;;  %v1563_v14 = vmul.f32 %v5378_v32, %v5565_v60  ;;  %v1564_v12 = vmul.f32 %v5378_v32, %v5582_v22  ;;  %v5886_v31 = vmul.f32 0.5, %v967_v50 }
 0x217   : > { %v1184_v7 = vadd.f32 1.0, %v4595_v55  ;;  %4608 = verf.f32 %v1079_v10  ;;  %v1872_v48 = vrot.slane %v1744_v38, 1  ;;  %v1052_v28 = vmul.f32 0.70710677, %v858_v34  ;;  %v7335_v10 = vld [vmem:[#allocation35_spill] sm:$0xff] }
 0x218   : > { %v1595_v56 = vadd.f32 %v1563_v14, %v7333_v3  ;;  %v1631_v63 = vmul.f32 %v5380_v39, %v5632_v11  ;;  %v1596_v55 = vadd.f32 %v1564_v12, %v7334_v24  ;;  %v1632_v38 = vmul.f32 %v5380_v39, %v7335_v10  ;;  %v7338_v3 = vld [vmem:[#allocation24_spill] sm:$0xff] }
 0x219   : > { %v4597_v15 = vpop.eup %4596  ;;  %v1238_v49 = vmul.f32 %v1184_v7, %v1022_v17  ;;  %v5892_v41 = vsel %vm1793_vm1, %v1870_v54, %v1872_v48  ;;  %v1556_v50 = vadd.f32 %v7331_v20, %v1524_v57  ;;  %v7337_v14 = vrot.slane %v7336_v5, 1  ;;  %v5903_v7 = vld [vmem:[#allocation5 + $0x8] sm:$0xff] }
 0x21a   : > { %v4599_v18 = vpop.eup %4598  ;;  %v3255_v52 = vadd.f32 1.0, %v4597_v15  ;;  %v1663_v23 = vadd.f32 %v1631_v63, %v1595_v56  ;;  %v7339_v59 = vrot.slane %v7338_v3, 1  ;;  %v1664_v12 = vadd.f32 %v1632_v38, %v1596_v55  ;;  %v5908_v15 = vpop.f32.mrb[60].mxu0  ;;  %v7341_v38 = vld [vmem:[#allocation31_spill] sm:$0xff] }
 0x21b   : > { %v4601_v17 = vpop.eup %4600  ;;  %v1295_v54 = vmul.f32 %v5903_v7, %v1238_v49  ;;  %v1158_v48 = vadd.f32 1.0, %v4599_v18  ;;  %v1945_v24 = vmul.f32 %v5372_v26, %v5565_v60  ;;  %4610 = verf.f32 %v1052_v28 }
 0x21c   : > { %v1801_v2 = vsel %vm1793_vm1, %v7339_v59, %v7337_v14  ;;  %v4603_v20 = vpop.eup %4602  ;;  %v3256_v57 = vadd.f32 1.0, %v4601_v17  ;;  %v1946_v56 = vmul.f32 %v5372_v26, %v5582_v22  ;;  %v4253_v59 = vpop.f32.mrb[61].mxu0  ;;  %v1909_v18 = vadd.f32 %v7341_v38, %v1664_v12 }
 0x21d   : > { %v1908_v5 = vadd.f32 %v1801_v2, %v1663_v23  ;;  %v4605_v63 = vpop.eup %4604  ;;  %v5913_v14 = vmul.f32 %v5792_v62, %v1295_v54  ;;  %v1212_v49 = vmul.f32 %v1158_v48, %v5840_v51  ;;  %v1185_v55 = vadd.f32 1.0, %v4603_v20  ;;  %v5917_v3 = vpop.f32.mrb[62].mxu0 }
 0x21e   : > { %v3287_v16 = vmul.f32 %v3255_v52, %v5838_v1  ;;  %v3288_v28 = vmul.f32 %v3256_v57, %v5847_v21  ;;  %v1186_v23 = vadd.f32 1.0, %v4605_v63  ;;  %v2044_v2 = vrot.slane %v1946_v56, 1  ;;  %v4254_v17 = vpop.f32.mrb[63].mxu0  ;;  %v5928_v21 = vld [vmem:[#allocation5 + $0x10] sm:$0xff] }
 0x21f   : > { %7340 = vst [vmem:[#allocation21_spill] sm:$0xff] %v5913_v14  ;;  %v1269_v59 = vmul.f32 %v5435_v40, %v1212_v49  ;;  %v1239_v8 = vmul.f32 %v1185_v55, %v5842_v0  ;;  %v1592_v54 = vmul.f32 %v5378_v32, %v5913_v14  ;;  %v2043_v51 = vrot.slane %v1945_v24, 1  ;;  %v5931_v40 = vld [vmem:[#allocation7 + $0x11] ss:$0 sm:$0xff] }
 0x220   : > { %v4607_v48 = vpop.eup %4606  ;;  %v3319_v20 = vpack.c.bf16 %v3288_v28, %v3287_v16  ;;  %v1240_v12 = vmul.f32 %v1186_v23, %v5858_v44  ;;  %v998_v38 = vmul.f32 0.5, %v858_v34  ;;  %v2189_v52 = vmul.f32 %v5376_v30, %v5632_v11  ;;  %v5937_v44 = vld [vmem:[#allocation5] sm:$0xff] }
 0x221   : > { %v4609_v1 = vpop.eup %4608  ;;  %v1296_v57 = vmul.f32 %v5928_v21, %v1239_v8  ;;  %v1159_v0 = vadd.f32 1.0, %v4607_v48  ;;  %v1624_v56 = vadd.f32 %v1592_v54, %v1556_v50  ;;  %v2045_v63 = vsel %vm1793_vm1, %v2043_v51, %v2044_v2  ;;  %v7343_v49 = vld [vmem:[#allocation34_spill] sm:$0xff]  ;;  %v5947_v54 = vpop.f32.mrb[64].mxu0  ;;  %v7347_v48 = vld [vmem:[#allocation29_spill] sm:$0xff] }
 0x222   : > { %4315 = vmatprep.mubr.bf16.mxu1 %v3319_v20  ;;  %v5935_v16 = vmul.f32 %v5822_v6, %v1269_v59  ;;  %v1297_v34 = vmul.f32 %v5937_v44, %v1240_v12  ;;  %v1187_v24 = vadd.f32 1.0, %v4609_v1  ;;  %v7344_v55 = vrot.slane %v7343_v49, 1  ;;  %7346 = vst [vmem:[#allocation35_spill] sm:$0xff] %v5947_v54  ;;  %v7349_v12 = vld [vmem:[#allocation25_spill] sm:$0xff]  ;;  %v4257_v1 = vpop.f32.mrb[65].mxu0 }
 0x223   : > { %v5944_v8 = vmul.f32 %v5792_v62, %v1296_v57  ;;  %v1213_v50 = vmul.f32 %v1159_v0, %v5869_v46  ;;  %v2152_v23 = vadd.f32 %v2045_v63, %v1908_v5  ;;  %v2190_v51 = vmul.f32 %v5376_v30, %v7335_v10  ;;  %v5969_v0 = vpop.f32.mrb[66].mxu0 }
 0x224   : > { %7342 = vst [vmem:[#allocation26_spill] sm:$0xff] %v5935_v16  ;;  %v2047_v28 = vsel %vm1793_vm1, %v2044_v2, %v7344_v55  ;;  %v1477_v6 = vmul.f32 %v5931_v40, %v1297_v34  ;;  %v1241_v59 = vmul.f32 %v1187_v24, %v5886_v31  ;;  %v7348_v20 = vrot.slane %v7347_v48, 2  ;;  %7353 = vst [vmem:[#allocation31_spill] sm:$0xff] %v5969_v0 }
 0x225   : > { %7345 = vst [vmem:[#allocation30_spill] sm:$0xff] %v5944_v8  ;;  %v2153_v17 = vadd.f32 %v2047_v28, %v1909_v18  ;;  %v7350_v2 = vrot.slane %v7349_v12, 2  ;;  %v5960_v46 = vmul.f32 %v5372_v26, %v5944_v8  ;;  %v5964_v5 = vmul.f32 %v5376_v30, %v5944_v8  ;;  %v5967_v18 = vld [vmem:[#allocation7 + $0x8] ss:$0 sm:$0xff]  ;;  %v4611_v63 = vpop.eup %4610  ;;  %v4258_v28 = vpop.f32.mrb[67].mxu0 }
 0x226   : > { %v1270_v31 = vmul.f32 %v5937_v44, %v1213_v50  ;;  %v2287_v57 = vrot.slane %v2189_v52, 1  ;;  %v1659_v34 = vmul.f32 %v5380_v39, %v1477_v6  ;;  %v5973_v24 = vmul.f32 %v5376_v30, %v1477_v6 }
 0x227   : > { %v2534_v62 = vsel %vm2526_vm2, %v7350_v2, %v7348_v20  ;;  %7351 = vst [vmem:[#allocation28_spill] sm:$0xff] %v5960_v46  ;;  %7352 = vst [vmem:[#allocation24_spill] sm:$0xff] %v5964_v5  ;;  %v5976_v49 = vmul.f32 %v5778_v45, %v1477_v6  ;;  %v1298_v55 = vmul.f32 %v5903_v7, %v1241_v59  ;;  %v1160_v1 = vadd.f32 1.0, %v4611_v63 }
 0x228   : > { %7354 = vst [vmem:[#allocation34_spill] sm:$0xff] %v5973_v24  ;;  %v5983_v52 = vmul.f32 %v5374_v27, %v5944_v8  ;;  %v2678_v20 = vmul.f32 %v5374_v27, %v5565_v60  ;;  %v1691_v12 = vadd.f32 %v1659_v34, %v5867_v33  ;;  %v5990_v6 = vmul.f32 %v5967_v18, %v1270_v31 }
 0x229   : > { %7355 = vst [vmem:[#allocation29_spill] sm:$0xff] %v5976_v49  ;;  %v1478_v59 = vmul.f32 %v5931_v40, %v1298_v55  ;;  %v2288_v28 = vrot.slane %v2190_v51, 1  ;;  %v2679_v48 = vmul.f32 %v5374_v27, %v5582_v22  ;;  %v2680_v50 = vmul.f32 %v5374_v27, %v5601_v47  ;;  %v6012_v24 = vpop.f32.mrb[68].mxu0 }
 0x22a   : > { %7356 = vst [vmem:[#allocation25_spill] sm:$0xff] %v5983_v52  ;;  %7357 = vst [vmem:[#allocation54_spill] sm:$0xff] %v5990_v6  ;;  %v5998_v46 = vadd.f32 %v5878_v25, %v1691_v12  ;;  %v1214_v51 = vmul.f32 %v1160_v1, %v998_v38  ;;  %v7360_v2 = vrot.slane %v5665_v58, 1  ;;  %v2776_v49 = vrot.slane %v2678_v20, 2  ;;  %v7364_v20 = vld [vmem:[#allocation32_spill] sm:$0xff] }
 0x22b   : > { %v1660_v34 = vmul.f32 %v5380_v39, %v1478_v59  ;;  %v6003_v31 = vmul.f32 %v5376_v30, %v1478_v59  ;;  %v6006_v55 = vmul.f32 %v5778_v45, %v1478_v59  ;;  %v2289_v63 = vsel %vm1793_vm1, %v2287_v57, %v2288_v28  ;;  %7361 = vst [vmem:[#allocation57_spill] sm:$0xff] %v6012_v24 }
 0x22c   : > { %7358 = vst [vmem:[#allocation55_spill] sm:$0xff] %v5998_v46  ;;  %v2291_v52 = vsel %vm1793_vm1, %v2288_v28, %v7360_v2  ;;  %v2396_v33 = vadd.f32 %v2289_v63, %v2152_v23  ;;  %v4261_v46 = vpop.f32.mrb[69].mxu0  ;;  %v1271_v8 = vmul.f32 %v5903_v7, %v1214_v51  ;;  %v2777_v59 = vrot.slane %v2679_v48, 2 }
 0x22d   : > { %7359 = vst [vmem:[#allocation56_spill] sm:$0xff] %v6006_v55  ;;  %v1692_v25 = vadd.f32 %v1660_v34, %v1624_v56  ;;  %v2397_v5 = vadd.f32 %v2291_v52, %v2153_v17  ;;  %v2779_v14 = vrot.slane %v2680_v50, 2  ;;  %v6016_v38 = vpop.f32.mrb[70].mxu0  ;;  %v2922_v2 = vmul.f32 %v5778_v45, %v5632_v11 }
 0x22e   : > { %7362 = vst [vmem:[#allocation58_spill] sm:$0xff] %v6016_v38  ;;  %v2641_v58 = vadd.f32 %v2534_v62, %v2396_v33  ;;  %v2923_v56 = vmul.f32 %v5778_v45, %v7335_v10  ;;  %v4262_v23 = vpop.f32.mrb[71].mxu0  ;;  %v2778_v17 = vsel %vm2526_vm2, %v2776_v49, %v2777_v59  ;;  %v7365_v33 = vld [vmem:[#allocation37_spill] sm:$0xff]  ;;  %v863_v51 = vadd.f32 %v5805_v29, %v5826_v9 }
 0x22f   : > { %v6019_v57 = vadd.f32 %v5892_v41, %v1692_v25  ;;  %v2642_v1 = vadd.f32 %v7364_v20, %v2397_v5  ;;  %v2780_v48 = vsel %vm2526_vm2, %v2777_v59, %v2779_v14  ;;  %v2924_v41 = vmul.f32 %v5778_v45, %v5654_v43 }
 0x230   : > { %v2885_v50 = vadd.f32 %v2778_v17, %v2641_v58  ;;  %v3020_v62 = vrot.slane %v2922_v2, 2  ;;  %v3021_v52 = vrot.slane %v2923_v56, 2  ;;  %v970_v34 = vadd.f32 %v5805_v29, %v7365_v33 }
 0x231   : > { %7363 = vst [vmem:[#allocation59_spill] sm:$0xff] %v6019_v57  ;;  %v2886_v28 = vadd.f32 %v2780_v48, %v2642_v1  ;;  %v866_v5 = vadd.f32 %v5805_v29, %v5833_v36  ;;  %v6038_v49 = vmul.f32 %v5967_v18, %v1271_v8  ;;  %v3023_v63 = vrot.slane %v2924_v41, 2  ;;  %v7368_v57 = vld [vmem:[#allocation43_spill] sm:$0xff] }
 0x232   : > { %v3022_v14 = vsel %vm2526_vm2, %v3020_v62, %v3021_v52  ;;  %v871_v25 = vadd.f32 %v5805_v29, %v5862_v42  ;;  %v6043_v58 = vmul.f32 0.5, %v970_v34  ;;  %v1080_v2 = vmul.f32 0.70710677, %v970_v34 }
 0x233   : > { %7366 = vst [vmem:[#allocation32_spill] sm:$0xff] %v6038_v49  ;;  %v3129_v59 = vadd.f32 %v3022_v14, %v2885_v50  ;;  %v1497_v56 = vmul.f32 %v5365_v19, %v5565_v60  ;;  %v3024_v9 = vsel %vm2526_vm2, %v3021_v52, %v3023_v63  ;;  %v6048_v23 = vmul.f32 0.5, %v863_v51  ;;  %v6064_v52 = vld [vmem:[%s7200_s6] ss:$0 sm:$0xff] }
 0x234   : > { %v1053_v36 = vmul.f32 0.70710677, %v863_v51  ;;  %v1054_v8 = vmul.f32 0.70710677, %v866_v5  ;;  %v6050_v20 = vadd.f32 %v3024_v9, %v2886_v28  ;;  %4612 = verf.f32 %v1080_v2 }
 0x235   : > { %v3193_v1 = vmul.f32 0.70710677, %v3129_v59  ;;  %v6052_v17 = vmul.f32 0.5, %v866_v5  ;;  %v6054_v42 = vmul.f32 0.5, %v3129_v59  ;;  %v1055_v48 = vmul.f32 0.70710677, %v871_v25 }
 0x236   : > { %4614 = verf.f32 %v1053_v36  ;;  %v1498_v50 = vmul.f32 %v5365_v19, %v5582_v22  ;;  %v3194_v41 = vmul.f32 0.70710677, %v6050_v20  ;;  %v6059_v62 = vmul.f32 0.5, %v871_v25  ;;  %v7367_v5 = vld [vmem:[#allocation39_spill] sm:$0xff] }
 0x237   : > { %4616 = verf.f32 %v3193_v1  ;;  %v1529_v28 = vadd.f32 %v6064_v52, %v1497_v56  ;;  %v1565_v34 = vmul.f32 %v5378_v32, %v5632_v11  ;;  %v1566_v51 = vmul.f32 %v5378_v32, %v7335_v10 }
 0x238   : > { %4618 = verf.f32 %v1054_v8  ;;  %v1530_v33 = vadd.f32 %v6064_v52, %v1498_v50  ;;  %v1633_v14 = vmul.f32 %v5380_v39, %v7367_v5  ;;  %v1634_v63 = vmul.f32 %v5380_v39, %v5686_v13 }
 0x239   : > { %4620 = verf.f32 %v3194_v41  ;;  %v1703_v25 = vmul.f32 %v7330_v37, %v5565_v60  ;;  %v1597_v59 = vadd.f32 %v1565_v34, %v1529_v28  ;;  %v1704_v56 = vmul.f32 %v7330_v37, %v5582_v22 }
 0x23a   : > { %4622 = verf.f32 %v1055_v48  ;;  %v1598_v2 = vadd.f32 %v1566_v51, %v1530_v33  ;;  %v1705_v9 = vmul.f32 %v7330_v37, %v5601_v47  ;;  %v1948_v8 = vmul.f32 %v5372_v26, %v5632_v11 }
 0x23b   : > { %v1804_v36 = vrot.slane %v1703_v25, 1  ;;  %v1949_v1 = vmul.f32 %v5372_v26, %v7335_v10  ;;  %v1665_v50 = vadd.f32 %v1633_v14, %v1597_v59  ;;  %v1805_v46 = vrot.slane %v1704_v56, 1 }
 0x23c   : > { %v1666_v41 = vadd.f32 %v1634_v63, %v1598_v2  ;;  %v1950_v48 = vmul.f32 %v5372_v26, %v5654_v43  ;;  %v1807_v28 = vrot.slane %v1705_v9, 1  ;;  %v2048_v33 = vrot.slane %v1948_v8, 1 }
 0x23d   : > { %v2049_v34 = vrot.slane %v1949_v1, 1  ;;  %v2192_v51 = vmul.f32 %v5376_v30, %v7367_v5  ;;  %v1806_v25 = vsel %vm1793_vm1, %v1804_v36, %v1805_v46  ;;  %v2193_v55 = vmul.f32 %v5376_v30, %v5686_v13 }
 0x23e   : > { %v2051_v12 = vrot.slane %v1950_v48, 1  ;;  %v2194_v14 = vmul.f32 %v5376_v30, %v7368_v57  ;;  %v4613_v63 = vpop.eup %4612  ;;  %v1808_v59 = vsel %vm1793_vm1, %v1805_v46, %v1807_v28  ;;  %v1910_v2 = vadd.f32 %v1806_v25, %v1665_v50 }
 0x23f   : > { %v2050_v56 = vsel %vm1793_vm1, %v2048_v33, %v2049_v34  ;;  %v2292_v9 = vrot.slane %v2192_v51, 1  ;;  %v1188_v1 = vadd.f32 1.0, %v4613_v63  ;;  %v1911_v49 = vadd.f32 %v1808_v59, %v1666_v41 }
 0x240   : > { %v4615_v8 = vpop.eup %4614  ;;  %v2052_v6 = vsel %vm1793_vm1, %v2049_v34, %v2051_v12  ;;  %v2293_v36 = vrot.slane %v2193_v55, 1  ;;  %v2154_v38 = vadd.f32 %v2050_v56, %v1910_v2  ;;  %v2295_v61 = vrot.slane %v2194_v14, 1 }
 0x241   : > { %v4617_v48 = vpop.eup %4616  ;;  %v1161_v16 = vadd.f32 1.0, %v4615_v8  ;;  %v2436_v24 = vmul.f32 %v7369_v53, %v5565_v60  ;;  %v1242_v46 = vmul.f32 %v1188_v1, %v6043_v58  ;;  %v2155_v50 = vadd.f32 %v2052_v6, %v1911_v49 }
 0x242   : > { %v4619_v0 = vpop.eup %4618  ;;  %v3257_v54 = vadd.f32 1.0, %v4617_v48  ;;  %v2294_v28 = vsel %vm1793_vm1, %v2292_v9, %v2293_v36  ;;  %v2296_v55 = vsel %vm1793_vm1, %v2293_v36, %v2295_v61  ;;  %v3162_v25 = vmul.f32 0.5, %v6050_v20  ;;  %v6115_v20 = vld [vmem:[#allocation7 + $0x9] ss:$0 sm:$0xff] }
 0x243   : > { %v4621_v33 = vpop.eup %4620  ;;  %v1215_v41 = vmul.f32 %v1161_v16, %v6048_v23  ;;  %v1162_v51 = vadd.f32 1.0, %v4619_v0  ;;  %v2398_v12 = vadd.f32 %v2294_v28, %v2154_v38  ;;  %v1299_v60 = vmul.f32 %v5928_v21, %v1242_v46 }
 0x244   : > { %v4623_v34 = vpop.eup %4622  ;;  %v3258_v14 = vadd.f32 1.0, %v4621_v33  ;;  %v2399_v63 = vadd.f32 %v2296_v55, %v2155_v50  ;;  %v2437_v58 = vmul.f32 %v7369_v53, %v5582_v22  ;;  %v3289_v16 = vmul.f32 %v3257_v54, %v6054_v42 }
 0x245   : > { %v1272_v59 = vmul.f32 %v5928_v21, %v1215_v41  ;;  %v1216_v6 = vmul.f32 %v1162_v51, %v6052_v17  ;;  %v1163_v49 = vadd.f32 1.0, %v4623_v34  ;;  %v1479_v61 = vmul.f32 %v5931_v40, %v1299_v60 }
 0x246   : > { %v3290_v0 = vmul.f32 %v3258_v14, %v3162_v25  ;;  %v2438_v38 = vmul.f32 %v7369_v53, %v5601_v47  ;;  %v2537_v56 = vrot.slane %v2436_v24, 2  ;;  %v2538_v17 = vrot.slane %v2437_v58, 2 }
 0x247   : > { %v1273_v23 = vmul.f32 %v5937_v44, %v1216_v6  ;;  %v1217_v2 = vmul.f32 %v1163_v49, %v6059_v62  ;;  %v2233_v8 = vmul.f32 %v5376_v30, %v1479_v61  ;;  %v6120_v22 = vmul.f32 %v5967_v18, %v1272_v59 }
 0x248   : > { %v3320_v9 = vpack.c.bf16 %v3290_v0, %v3289_v16  ;;  %v2540_v54 = vrot.slane %v2438_v38, 2  ;;  %v6123_v40 = vmul.f32 %v5778_v45, %v1479_v61  ;;  %v2539_v42 = vsel %vm2526_vm2, %v2537_v56, %v2538_v17 }
 0x249   : > { %v1274_v47 = vmul.f32 %v5903_v7, %v1217_v2  ;;  %v2681_v1 = vmul.f32 %v5374_v27, %v5632_v11  ;;  %v2360_v24 = vrot.slane %v2233_v8, 1  ;;  %v6130_v62 = vmul.f32 %v6115_v20, %v1273_v23 }
 0x24a   : > { %4316 = vmatmul.mubr.bf16.vlgmr.msra.gmra.mrb[36].mxu1 %v3320_v9  ;;  %v2541_v36 = vsel %vm2526_vm2, %v2538_v17, %v2540_v54  ;;  %v2643_v18 = vadd.f32 %v2539_v42, %v2398_v12  ;;  %v2682_v50 = vmul.f32 %v5374_v27, %v7335_v10  ;;  %v2683_v28 = vmul.f32 %v5374_v27, %v5654_v43 }
 0x24b   : > { %v6134_v48 = vmul.f32 %v6115_v20, %v1274_v47  ;;  %v2644_v46 = vadd.f32 %v2541_v36, %v2399_v63  ;;  %v7370_v33 = vrot.slane %v6003_v31, 1  ;;  %v2781_v51 = vrot.slane %v2681_v1, 2 }
 0x24c   : > { %v2925_v55 = vmul.f32 %v5778_v45, %v7367_v5  ;;  %v2926_v12 = vmul.f32 %v5778_v45, %v5686_v13  ;;  %v2782_v34 = vrot.slane %v2682_v50, 2  ;;  %v2784_v25 = vrot.slane %v2683_v28, 2 }
 0x24d   : > { %v6143_v41 = vsel %vm1793_vm1, %v7370_v33, %v2360_v24  ;;  %v2927_v14 = vmul.f32 %v5778_v45, %v7368_v57  ;;  %v874_v60 = vadd.f32 %v5805_v29, %v5875_v35  ;;  %v879_v6 = vadd.f32 %v5805_v29, %v5908_v15 }
 0x24e   : > { %v3025_v63 = vrot.slane %v2925_v55, 2  ;;  %v3026_v59 = vrot.slane %v2926_v12, 2  ;;  %v882_v49 = vadd.f32 %v5805_v29, %v5917_v3  ;;  %v2783_v58 = vsel %vm2526_vm2, %v2781_v51, %v2782_v34  ;;  %v7371_v51 = vld [vmem:[#allocation46_spill] sm:$0xff]  ;;  %v7372_v12 = vld [vmem:[#allocation47_spill] sm:$0xff] }
 0x24f   : > { %v2785_v16 = vsel %vm2526_vm2, %v2782_v34, %v2784_v25  ;;  %v3028_v0 = vrot.slane %v2927_v14, 2  ;;  %v6159_v61 = vmul.f32 0.5, %v874_v60  ;;  %v2887_v38 = vadd.f32 %v2783_v58, %v2643_v18 }
 0x250   : > { %v2888_v23 = vadd.f32 %v2785_v16, %v2644_v46  ;;  %v3027_v2 = vsel %vm2526_vm2, %v3025_v63, %v3026_v59  ;;  %v1056_v35 = vmul.f32 0.70710677, %v874_v60  ;;  %v6163_v17 = vmul.f32 0.5, %v879_v6 }
 0x251   : > { %v3029_v56 = vsel %vm2526_vm2, %v3026_v59, %v3028_v0  ;;  %v1057_v15 = vmul.f32 0.70710677, %v879_v6  ;;  %v6165_v9 = vmul.f32 0.5, %v882_v49  ;;  %v3131_v3 = vadd.f32 %v3027_v2, %v2887_v38 }
 0x252   : > { %v3132_v8 = vadd.f32 %v3029_v56, %v2888_v23  ;;  %4624 = verf.f32 %v1056_v35  ;;  %v1058_v54 = vmul.f32 0.70710677, %v882_v49  ;;  %v1499_v47 = vmul.f32 %v5365_v19, %v5632_v11 }
 0x253   : > { %4626 = verf.f32 %v1057_v15  ;;  %v1500_v42 = vmul.f32 %v5365_v19, %v7335_v10  ;;  %v1567_v1 = vmul.f32 %v5378_v32, %v7367_v5  ;;  %v6173_v24 = vmul.f32 0.5, %v3131_v3 }
 0x254   : > { %v6175_v36 = vmul.f32 0.5, %v3132_v8  ;;  %v3195_v18 = vmul.f32 0.70710677, %v3131_v3  ;;  %v3196_v46 = vmul.f32 0.70710677, %v3132_v8  ;;  %4628 = verf.f32 %v1058_v54 }
 0x255   : > { %v1531_v50 = vadd.f32 %v6064_v52, %v1499_v47  ;;  %v1532_v28 = vadd.f32 %v6064_v52, %v1500_v42  ;;  %v1568_v33 = vmul.f32 %v5378_v32, %v5686_v13  ;;  %v1635_v55 = vmul.f32 %v5380_v39, %v7371_v51 }
 0x256   : > { %4630 = verf.f32 %v3195_v18  ;;  %v1636_v34 = vmul.f32 %v5380_v39, %v7372_v12  ;;  %v1706_v25 = vmul.f32 %v7330_v37, %v5632_v11  ;;  %v1707_v63 = vmul.f32 %v7330_v37, %v7335_v10 }
 0x257   : > { %4632 = verf.f32 %v3196_v46  ;;  %v1599_v14 = vadd.f32 %v1567_v1, %v1531_v50  ;;  %v1600_v60 = vadd.f32 %v1568_v33, %v1532_v28  ;;  %v1708_v59 = vmul.f32 %v7330_v37, %v5654_v43 }
 0x258   : > { %v1809_v6 = vrot.slane %v1706_v25, 1  ;;  %v1951_v49 = vmul.f32 %v5372_v26, %v7367_v5  ;;  %v1952_v58 = vmul.f32 %v5372_v26, %v5686_v13  ;;  %v1810_v38 = vrot.slane %v1707_v63, 1 }
 0x259   : > { %v1667_v16 = vadd.f32 %v1635_v55, %v1599_v14  ;;  %v1668_v0 = vadd.f32 %v1636_v34, %v1600_v60  ;;  %v1953_v23 = vmul.f32 %v5372_v26, %v7368_v57  ;;  %v1812_v2 = vrot.slane %v1708_v59, 1 }
 0x25a   : > { %v2053_v35 = vrot.slane %v1951_v49, 1  ;;  %v2054_v56 = vrot.slane %v1952_v58, 1  ;;  %v2195_v15 = vmul.f32 %v5376_v30, %v7371_v51  ;;  %v1811_v3 = vsel %vm1793_vm1, %v1809_v6, %v1810_v38 }
 0x25b   : > { %v2056_v8 = vrot.slane %v1953_v23, 1  ;;  %v2196_v54 = vmul.f32 %v5376_v30, %v7372_v12  ;;  %v2197_v47 = vmul.f32 %v5376_v30, %v5761_v4  ;;  %v1813_v1 = vsel %vm1793_vm1, %v1810_v38, %v1812_v2 }
 0x25c   : > { %v4625_v42 = vpop.eup %4624  ;;  %v1912_v18 = vadd.f32 %v1811_v3, %v1667_v16  ;;  %v2055_v46 = vsel %vm1793_vm1, %v2053_v35, %v2054_v56  ;;  %v2297_v50 = vrot.slane %v2195_v15, 1  ;;  %v1913_v55 = vadd.f32 %v1813_v1, %v1668_v0 }
 0x25d   : > { %v4627_v28 = vpop.eup %4626  ;;  %v1164_v33 = vadd.f32 1.0, %v4625_v42  ;;  %v2057_v34 = vsel %vm1793_vm1, %v2054_v56, %v2056_v8  ;;  %v2298_v25 = vrot.slane %v2196_v54, 1  ;;  %v2300_v63 = vrot.slane %v2197_v47, 1  ;;  %v6216_v8 = vld [vmem:[#allocation7 + $0xa] ss:$0 sm:$0xff] }
 0x25e   : > { %v1165_v14 = vadd.f32 1.0, %v4627_v28  ;;  %v2156_v60 = vadd.f32 %v2055_v46, %v1912_v18  ;;  %v2439_v59 = vmul.f32 %v7369_v53, %v5632_v11  ;;  %v4629_v6 = vpop.eup %4628  ;;  %v2157_v58 = vadd.f32 %v2057_v34, %v1913_v55 }
 0x25f   : > { %v1218_v49 = vmul.f32 %v1164_v33, %v6159_v61  ;;  %v2299_v16 = vsel %vm1793_vm1, %v2297_v50, %v2298_v25  ;;  %v2440_v38 = vmul.f32 %v7369_v53, %v7335_v10  ;;  %v1166_v2 = vadd.f32 1.0, %v4629_v6 }
 0x260   : > { %v4631_v23 = vpop.eup %4630  ;;  %v1219_v0 = vmul.f32 %v1165_v14, %v6163_v17  ;;  %v2301_v35 = vsel %vm1793_vm1, %v2298_v25, %v2300_v63  ;;  %v2400_v56 = vadd.f32 %v2299_v16, %v2156_v60  ;;  %v2441_v54 = vmul.f32 %v7369_v53, %v5654_v43 }
 0x261   : > { %v4633_v15 = vpop.eup %4632  ;;  %v3259_v3 = vadd.f32 1.0, %v4631_v23  ;;  %v1275_v11 = vmul.f32 %v5928_v21, %v1218_v49  ;;  %v2401_v61 = vadd.f32 %v2301_v35, %v2157_v58  ;;  %v1220_v42 = vmul.f32 %v1166_v2, %v6165_v9 }
 0x262   : > { %v3260_v47 = vadd.f32 1.0, %v4633_v15  ;;  %v1276_v10 = vmul.f32 %v5937_v44, %v1219_v0  ;;  %v2542_v17 = vrot.slane %v2439_v59, 2  ;;  %v2543_v46 = vrot.slane %v2440_v38, 2  ;;  %v7373_v38 = vld [vmem:[#allocation35_spill] sm:$0xff] }
 0x263   : > { %v3291_v1 = vmul.f32 %v3259_v3, %v6173_v24  ;;  %v6224_v18 = vmul.f32 %v6115_v20, %v1275_v11  ;;  %v2545_v50 = vrot.slane %v2441_v54, 2  ;;  %v1277_v43 = vmul.f32 %v5903_v7, %v1220_v42  ;;  %v7374_v0 = vld [vmem:[#allocation31_spill] sm:$0xff]  ;;  %v7375_v3 = vld [vmem:[#allocation57_spill] sm:$0xff] }
 0x264   : > { %v3292_v28 = vmul.f32 %v3260_v47, %v6175_v36  ;;  %v6228_v33 = vmul.f32 %v6216_v8, %v1276_v10  ;;  %v2684_v55 = vmul.f32 %v5374_v27, %v7367_v5  ;;  %v2544_v9 = vsel %vm2526_vm2, %v2542_v17, %v2543_v46 }
 0x265   : > { %v2546_v34 = vsel %vm2526_vm2, %v2543_v46, %v2545_v50  ;;  %v2685_v20 = vmul.f32 %v5374_v27, %v5686_v13  ;;  %v2686_v24 = vmul.f32 %v5374_v27, %v7368_v57  ;;  %v6240_v36 = vmul.f32 %v6216_v8, %v1277_v43 }
 0x266   : > { %v3321_v25 = vpack.c.bf16 %v3292_v28, %v3291_v1  ;;  %v2645_v14 = vadd.f32 %v2544_v9, %v2400_v56  ;;  %v2646_v60 = vadd.f32 %v2546_v34, %v2401_v61  ;;  %v2786_v63 = vrot.slane %v2684_v55, 2 }
 0x267   : > { %v2787_v59 = vrot.slane %v2685_v20, 2  ;;  %v2789_v6 = vrot.slane %v2686_v24, 2  ;;  %v2928_v49 = vmul.f32 %v5778_v45, %v7371_v51  ;;  %v2929_v58 = vmul.f32 %v5778_v45, %v7372_v12 }
 0x268   : > { %4319 = vmatprep.mubr.bf16.mxu1 %v3321_v25  ;;  %v2930_v16 = vmul.f32 %v5778_v45, %v5761_v4  ;;  %v887_v23 = vadd.f32 %v5805_v29, %v7373_v38  ;;  %v890_v2 = vadd.f32 %v5805_v29, %v7374_v0  ;;  %v895_v11 = vadd.f32 %v5805_v29, %v7375_v3 }
 0x269   : > { %v2788_v35 = vsel %vm2526_vm2, %v2786_v63, %v2787_v59  ;;  %v2790_v56 = vsel %vm2526_vm2, %v2787_v59, %v2789_v6  ;;  %v3030_v15 = vrot.slane %v2928_v49, 2  ;;  %v3031_v47 = vrot.slane %v2929_v58, 2  ;;  %v7376_v49 = vld [vmem:[#allocation48_spill] sm:$0xff] }
 0x26a   : > { %v2889_v61 = vadd.f32 %v2788_v35, %v2645_v14  ;;  %v2890_v54 = vadd.f32 %v2790_v56, %v2646_v60  ;;  %v3033_v10 = vrot.slane %v2930_v16, 2  ;;  %v6256_v42 = vmul.f32 0.5, %v887_v23  ;;  %v7377_v16 = vld [vmem:[#allocation50_spill] sm:$0xff] }
 0x26b   : > { %v1059_v45 = vmul.f32 0.70710677, %v887_v23  ;;  %v6258_v17 = vmul.f32 0.5, %v890_v2  ;;  %v1060_v1 = vmul.f32 0.70710677, %v890_v2  ;;  %v3032_v46 = vsel %vm2526_vm2, %v3030_v15, %v3031_v47 }
 0x26c   : > { %v3034_v50 = vsel %vm2526_vm2, %v3031_v47, %v3033_v10  ;;  %v6262_v28 = vmul.f32 0.5, %v895_v11  ;;  %v1061_v43 = vmul.f32 0.70710677, %v895_v11  ;;  %v3133_v55 = vadd.f32 %v3032_v46, %v2889_v61 }
 0x26d   : > { %v3134_v9 = vadd.f32 %v3034_v50, %v2890_v54  ;;  %4634 = verf.f32 %v1059_v45  ;;  %v1501_v29 = vmul.f32 %v5365_v19, %v7367_v5  ;;  %v1502_v34 = vmul.f32 %v5365_v19, %v5686_v13 }
 0x26e   : > { %4636 = verf.f32 %v1060_v1  ;;  %v1569_v20 = vmul.f32 %v5378_v32, %v7371_v51  ;;  %v1570_v24 = vmul.f32 %v5378_v32, %v7372_v12  ;;  %v6272_v25 = vmul.f32 0.5, %v3133_v55 }
 0x26f   : > { %v6274_v14 = vmul.f32 0.5, %v3134_v9  ;;  %v3197_v60 = vmul.f32 0.70710677, %v3133_v55  ;;  %v3198_v63 = vmul.f32 0.70710677, %v3134_v9  ;;  %4638 = verf.f32 %v1061_v43 }
 0x270   : > { %v1533_v59 = vadd.f32 %v6064_v52, %v1501_v29  ;;  %v1534_v6 = vadd.f32 %v6064_v52, %v1502_v34  ;;  %v1637_v58 = vmul.f32 %v5380_v39, %v7376_v49  ;;  %v1638_v38 = vmul.f32 %v5380_v39, %v7377_v16 }
 0x271   : > { %4640 = verf.f32 %v3197_v60  ;;  %v1709_v23 = vmul.f32 %v7330_v37, %v7367_v5  ;;  %v1710_v0 = vmul.f32 %v7330_v37, %v5686_v13  ;;  %v1711_v56 = vmul.f32 %v7330_v37, %v7368_v57 }
 0x272   : > { %4642 = verf.f32 %v3198_v63  ;;  %v1601_v2 = vadd.f32 %v1569_v20, %v1533_v59  ;;  %v1602_v35 = vadd.f32 %v1570_v24, %v1534_v6  ;;  %v1954_v11 = vmul.f32 %v5372_v26, %v7371_v51  ;;  %v7378_v63 = vld [vmem:[#allocation52_spill] sm:$0xff] }
 0x273   : > { %v1814_v15 = vrot.slane %v1709_v23, 1  ;;  %v1815_v3 = vrot.slane %v1710_v0, 1  ;;  %v1955_v61 = vmul.f32 %v5372_v26, %v7372_v12  ;;  %v1817_v10 = vrot.slane %v1711_v56, 1 }
 0x274   : > { %v1669_v54 = vadd.f32 %v1637_v58, %v1601_v2  ;;  %v1670_v47 = vadd.f32 %v1638_v38, %v1602_v35  ;;  %v1956_v45 = vmul.f32 %v5372_v26, %v5761_v4  ;;  %v2058_v46 = vrot.slane %v1954_v11, 1 }
 0x275   : > { %v1816_v1 = vsel %vm1793_vm1, %v1814_v15, %v1815_v3  ;;  %v2059_v50 = vrot.slane %v1955_v61, 1  ;;  %v2198_v43 = vmul.f32 %v5376_v30, %v7376_v49  ;;  %v1818_v55 = vsel %vm1793_vm1, %v1815_v3, %v1817_v10 }
 0x276   : > { %v1914_v9 = vadd.f32 %v1816_v1, %v1669_v54  ;;  %v2061_v29 = vrot.slane %v1956_v45, 1  ;;  %v2199_v34 = vmul.f32 %v5376_v30, %v7377_v16  ;;  %v1915_v24 = vadd.f32 %v1818_v55, %v1670_v47 }
 0x277   : > { %v4635_v20 = vpop.eup %4634  ;;  %v2060_v60 = vsel %vm1793_vm1, %v2058_v46, %v2059_v50  ;;  %v2200_v59 = vmul.f32 %v5376_v30, %v7378_v63  ;;  %v2302_v6 = vrot.slane %v2198_v43, 1  ;;  %v2442_v3 = vmul.f32 %v7369_v53, %v7367_v5 }
 0x278   : > { %v4637_v58 = vpop.eup %4636  ;;  %v1167_v38 = vadd.f32 1.0, %v4635_v20  ;;  %v2062_v23 = vsel %vm1793_vm1, %v2059_v50, %v2061_v29  ;;  %v2158_v0 = vadd.f32 %v2060_v60, %v1914_v9  ;;  %v2303_v2 = vrot.slane %v2199_v34, 1 }
 0x279   : > { %v1168_v35 = vadd.f32 1.0, %v4637_v58  ;;  %v2159_v56 = vadd.f32 %v2062_v23, %v1915_v24  ;;  %v2305_v15 = vrot.slane %v2200_v59, 1  ;;  %v4639_v11 = vpop.eup %4638  ;;  %v2443_v47 = vmul.f32 %v7369_v53, %v5686_v13 }
 0x27a   : > { %v1221_v61 = vmul.f32 %v1167_v38, %v6256_v42  ;;  %v2304_v54 = vsel %vm1793_vm1, %v2302_v6, %v2303_v2  ;;  %v2444_v10 = vmul.f32 %v7369_v53, %v7368_v57  ;;  %v1169_v46 = vadd.f32 1.0, %v4639_v11  ;;  %v6315_v42 = vld [vmem:[#allocation7 + $0xb] ss:$0 sm:$0xff] }
 0x27b   : > { %v4641_v45 = vpop.eup %4640  ;;  %v1222_v1 = vmul.f32 %v1168_v35, %v6258_v17  ;;  %v2306_v50 = vsel %vm1793_vm1, %v2303_v2, %v2305_v15  ;;  %v2402_v43 = vadd.f32 %v2304_v54, %v2158_v0  ;;  %v2547_v34 = vrot.slane %v2442_v3, 2 }
 0x27c   : > { %v4643_v55 = vpop.eup %4642  ;;  %v3261_v5 = vadd.f32 1.0, %v4641_v45  ;;  %v1278_v9 = vmul.f32 %v5928_v21, %v1221_v61  ;;  %v2403_v29 = vadd.f32 %v2306_v50, %v2159_v56  ;;  %v1223_v57 = vmul.f32 %v1169_v46, %v6262_v28 }
 0x27d   : > { %v3262_v20 = vadd.f32 1.0, %v4643_v55  ;;  %v1279_v13 = vmul.f32 %v5937_v44, %v1222_v1  ;;  %v2548_v24 = vrot.slane %v2443_v47, 2  ;;  %v2550_v59 = vrot.slane %v2444_v10, 2  ;;  %v4700_v47 = vld [vmem:[%s7198_s4] ss:$0 sm:$0xff]  ;;  %v7379_v10 = vld [vmem:[#allocation58_spill] sm:$0xff] }
 0x27e   : > { %v3293_v17 = vmul.f32 %v3261_v5, %v6272_v25  ;;  %v6321_v60 = vmul.f32 %v6216_v8, %v1278_v9  ;;  %v2687_v6 = vmul.f32 %v5374_v27, %v7371_v51  ;;  %v1280_v23 = vmul.f32 %v5903_v7, %v1223_v57  ;;  %v6342_v7 = vld [vmem:[%s7199_s5 + $0x8] ss:$0 sm:$0xff] }
 0x27f   : > { %v3294_v58 = vmul.f32 %v3262_v20, %v6274_v14  ;;  %v6327_v38 = vmul.f32 %v6315_v42, %v1279_v13  ;;  %v2549_v44 = vsel %vm2526_vm2, %v2547_v34, %v2548_v24  ;;  %v2551_v28 = vsel %vm2526_vm2, %v2548_v24, %v2550_v59 }
 0x280   : > { %v2647_v0 = vadd.f32 %v2549_v44, %v2402_v43  ;;  %v2688_v8 = vmul.f32 %v5374_v27, %v7372_v12  ;;  %v2689_v25 = vmul.f32 %v5374_v27, %v5761_v4  ;;  %v6337_v35 = vmul.f32 %v6315_v42, %v1280_v23 }
 0x281   : > { %v3322_v2 = vpack.c.bf16 %v3294_v58, %v3293_v17  ;;  %v2648_v14 = vadd.f32 %v2551_v28, %v2403_v29  ;;  %v2791_v56 = vrot.slane %v2687_v6, 2  ;;  %v2931_v11 = vmul.f32 %v6342_v7, %v7376_v49  ;;  %v7380_v28 = vld [vmem:[#allocation53_spill] sm:$0xff] }
 0x282   : > { %v2792_v15 = vrot.slane %v2688_v8, 2  ;;  %v2794_v3 = vrot.slane %v2689_v25, 2  ;;  %v2932_v61 = vmul.f32 %v6342_v7, %v7377_v16  ;;  %v2933_v54 = vmul.f32 %v6342_v7, %v7378_v63  ;;  %v7381_v8 = vld [vmem:[#allocation19_spill] sm:$0xff] }
 0x283   : > { %4320 = vmatmul.mubr.bf16.gmra.mrb[40].mxu1 %v3322_v2  ;;  %v898_v45 = vadd.f32 %v4700_v47, %v7379_v10  ;;  %v1503_v1 = vmul.f32 %v5365_v19, %v7371_v51  ;;  %v1504_v46 = vmul.f32 %v5365_v19, %v7372_v12  ;;  %v3035_v55 = vrot.slane %v2931_v11, 2 }
 0x284   : > { %v2793_v50 = vsel %vm2526_vm2, %v2791_v56, %v2792_v15  ;;  %v2795_v43 = vsel %vm2526_vm2, %v2792_v15, %v2794_v3  ;;  %v3036_v5 = vrot.slane %v2932_v61, 2  ;;  %v3038_v34 = vrot.slane %v2933_v54, 2 }
 0x285   : > { %v2891_v9 = vadd.f32 %v2793_v50, %v2647_v0  ;;  %v2892_v29 = vadd.f32 %v2795_v43, %v2648_v14  ;;  %v6360_v20 = vmul.f32 0.5, %v898_v45  ;;  %v1062_v57 = vmul.f32 0.70710677, %v898_v45 }
 0x286   : > { %v3037_v13 = vsel %vm2526_vm2, %v3035_v55, %v3036_v5  ;;  %v1535_v24 = vadd.f32 %v6064_v52, %v1503_v1  ;;  %v1536_v17 = vadd.f32 %v6064_v52, %v1504_v46  ;;  %v3039_v59 = vsel %vm2526_vm2, %v3036_v5, %v3038_v34 }
 0x287   : > { %v3135_v6 = vadd.f32 %v3037_v13, %v2891_v9  ;;  %v1571_v58 = vmul.f32 %v5378_v32, %v7376_v49  ;;  %v1572_v23 = vmul.f32 %v5378_v32, %v7377_v16  ;;  %v3136_v44 = vadd.f32 %v3039_v59, %v2892_v29 }
 0x288   : > { %4644 = verf.f32 %v1062_v57  ;;  %v1639_v0 = vmul.f32 %v5380_v39, %v7380_v28  ;;  %v1640_v25 = vmul.f32 %v5380_v39, %v7381_v8  ;;  %v1712_v61 = vmul.f32 %v7330_v37, %v7371_v51  ;;  %v7382_v57 = vld [vmem:[#allocation26_spill] sm:$0xff] }
 0x289   : > { %v6374_v2 = vmul.f32 0.5, %v3135_v6  ;;  %v3199_v14 = vmul.f32 0.70710677, %v3135_v6  ;;  %v1603_v56 = vadd.f32 %v1571_v58, %v1535_v24  ;;  %v1604_v15 = vadd.f32 %v1572_v23, %v1536_v17 }
 0x28a   : > { %v6376_v3 = vmul.f32 0.5, %v3136_v44  ;;  %v3200_v11 = vmul.f32 0.70710677, %v3136_v44  ;;  %v1713_v54 = vmul.f32 %v7330_v37, %v7372_v12  ;;  %v1714_v45 = vmul.f32 %v7330_v37, %v5761_v4 }
 0x28b   : > { %4646 = verf.f32 %v3199_v14  ;;  %v1671_v47 = vadd.f32 %v1639_v0, %v1603_v56  ;;  %v1672_v10 = vadd.f32 %v1640_v25, %v1604_v15  ;;  %v1819_v1 = vrot.slane %v1712_v61, 1 }
 0x28c   : > { %4648 = verf.f32 %v3200_v11  ;;  %v1820_v46 = vrot.slane %v1713_v54, 1  ;;  %v1957_v50 = vmul.f32 %v5372_v26, %v7376_v49  ;;  %v1822_v43 = vrot.slane %v1714_v45, 1 }
 0x28d   : > { %v1958_v55 = vmul.f32 %v5372_v26, %v7377_v16  ;;  %v1959_v5 = vmul.f32 %v5372_v26, %v7378_v63  ;;  %v2201_v9 = vmul.f32 %v5376_v30, %v7380_v28  ;;  %v2202_v13 = vmul.f32 %v5376_v30, %v7381_v8 }
 0x28e   : > { %v1821_v29 = vsel %vm1793_vm1, %v1819_v1, %v1820_v46  ;;  %v2063_v34 = vrot.slane %v1957_v50, 1  ;;  %v2203_v24 = vmul.f32 %v5376_v30, %v7382_v57  ;;  %v1823_v17 = vsel %vm1793_vm1, %v1820_v46, %v1822_v43 }
 0x28f   : > { %v1916_v59 = vadd.f32 %v1821_v29, %v1671_v47  ;;  %v2064_v6 = vrot.slane %v1958_v55, 1  ;;  %v2066_v58 = vrot.slane %v1959_v5, 1  ;;  %v1917_v23 = vadd.f32 %v1823_v17, %v1672_v10 }
 0x290   : > { %v2307_v44 = vrot.slane %v2201_v9, 1  ;;  %v2308_v0 = vrot.slane %v2202_v13, 1  ;;  %v2310_v25 = vrot.slane %v2203_v24, 1  ;;  %v2445_v15 = vmul.f32 %v7369_v53, %v7371_v51 }
 0x291   : > { %v2065_v14 = vsel %vm1793_vm1, %v2063_v34, %v2064_v6  ;;  %v2067_v56 = vsel %vm1793_vm1, %v2064_v6, %v2066_v58  ;;  %v2446_v11 = vmul.f32 %v7369_v53, %v7372_v12  ;;  %v2447_v46 = vmul.f32 %v7369_v53, %v5761_v4 }
 0x292   : > { %v4645_v61 = vpop.eup %4644  ;;  %v2160_v54 = vadd.f32 %v2065_v14, %v1916_v59  ;;  %v2161_v45 = vadd.f32 %v2067_v56, %v1917_v23  ;;  %v2309_v47 = vsel %vm1793_vm1, %v2307_v44, %v2308_v0  ;;  %v2311_v10 = vsel %vm1793_vm1, %v2308_v0, %v2310_v25 }
 0x293   : > { %v1170_v1 = vadd.f32 1.0, %v4645_v61  ;;  %v2552_v50 = vrot.slane %v2445_v15, 2  ;;  %v2553_v43 = vrot.slane %v2446_v11, 2  ;;  %v2690_v51 = vmul.f32 %v5374_v27, %v7376_v49 }
 0x294   : > { %v2404_v55 = vadd.f32 %v2309_v47, %v2160_v54  ;;  %v2405_v5 = vadd.f32 %v2311_v10, %v2161_v45  ;;  %v2691_v12 = vmul.f32 %v5374_v27, %v7377_v16  ;;  %v2555_v13 = vrot.slane %v2447_v46, 2 }
 0x295   : > { %v4647_v9 = vpop.eup %4646  ;;  %v1224_v29 = vmul.f32 %v1170_v1, %v6360_v20  ;;  %v2554_v34 = vsel %vm2526_vm2, %v2552_v50, %v2553_v43  ;;  %v2692_v24 = vmul.f32 %v5374_v27, %v7378_v63  ;;  %v2796_v6 = vrot.slane %v2690_v51, 2 }
 0x296   : > { %v4649_v4 = vpop.eup %4648  ;;  %v3263_v17 = vadd.f32 1.0, %v4647_v9  ;;  %v2649_v59 = vadd.f32 %v2554_v34, %v2404_v55  ;;  %v2797_v58 = vrot.slane %v2691_v12, 2  ;;  %v2556_v0 = vsel %vm2526_vm2, %v2553_v43, %v2555_v13 }
 0x297   : > { %v3264_v23 = vadd.f32 1.0, %v4649_v4  ;;  %v1281_v44 = vmul.f32 %v5928_v21, %v1224_v29  ;;  %v2799_v25 = vrot.slane %v2692_v24, 2  ;;  %v2650_v20 = vadd.f32 %v2556_v0, %v2405_v5  ;;  %v7383_v5 = vld [vmem:[#allocation54_spill] sm:$0xff]  ;;  %v7384_v29 = vld [vmem:[#allocation32_spill] sm:$0xff] }
 0x298   : > { %v3295_v14 = vmul.f32 %v3263_v17, %v6374_v2  ;;  %v2798_v56 = vsel %vm2526_vm2, %v2796_v6, %v2797_v58  ;;  %v2934_v15 = vmul.f32 %v6342_v7, %v7380_v28  ;;  %v2935_v47 = vmul.f32 %v6342_v7, %v7381_v8 }
 0x299   : > { %v3296_v11 = vmul.f32 %v3264_v23, %v6376_v3  ;;  %v6424_v61 = vmul.f32 %v6315_v42, %v1281_v44  ;;  %v2800_v54 = vsel %vm2526_vm2, %v2797_v58, %v2799_v25  ;;  %v2893_v45 = vadd.f32 %v2798_v56, %v2649_v59 }
 0x29a   : > { %v2894_v21 = vadd.f32 %v2800_v54, %v2650_v20  ;;  %v2936_v2 = vmul.f32 %v6342_v7, %v7382_v57  ;;  %v3040_v10 = vrot.slane %v2934_v15, 2  ;;  %v1505_v46 = vmul.f32 %v5365_v19, %v7376_v49 }
 0x29b   : > { %v3323_v1 = vpack.c.bf16 %v3296_v11, %v3295_v14  ;;  %v1506_v3 = vmul.f32 %v5365_v19, %v7377_v16  ;;  %v1573_v42 = vmul.f32 %v5378_v32, %v7380_v28  ;;  %v3041_v50 = vrot.slane %v2935_v47, 2 }
 0x29c   : > { %v3043_v43 = vrot.slane %v2936_v2, 2  ;;  %v1574_v55 = vmul.f32 %v5378_v32, %v7381_v8  ;;  %v1641_v51 = vmul.f32 %v5380_v39, %v7383_v5  ;;  %v1537_v12 = vadd.f32 %v6064_v52, %v1505_v46 }
 0x29d   : > { %4323 = vmatprep.mubr.bf16.mxu1 %v3323_v1  ;;  %v1538_v9 = vadd.f32 %v6064_v52, %v1506_v3  ;;  %v1642_v34 = vmul.f32 %v5380_v39, %v7384_v29  ;;  %v1715_v13 = vmul.f32 %v7330_v37, %v7376_v49  ;;  %v3042_v24 = vsel %vm2526_vm2, %v3040_v10, %v3041_v50 }
 0x29e   : > { %v3044_v4 = vsel %vm2526_vm2, %v3041_v50, %v3043_v43  ;;  %v1716_v17 = vmul.f32 %v7330_v37, %v7377_v16  ;;  %v1717_v59 = vmul.f32 %v7330_v37, %v7378_v63  ;;  %v3137_v6 = vadd.f32 %v3042_v24, %v2893_v45 }
 0x29f   : > { %v3138_v58 = vadd.f32 %v3044_v4, %v2894_v21  ;;  %v1605_v23 = vadd.f32 %v1573_v42, %v1537_v12  ;;  %v1606_v52 = vadd.f32 %v1574_v55, %v1538_v9  ;;  %v1824_v44 = vrot.slane %v1715_v13, 1 }
 0x2a0   : > { %v1825_v0 = vrot.slane %v1716_v17, 1  ;;  %v1827_v25 = vrot.slane %v1717_v59, 1  ;;  %v1960_v14 = vmul.f32 %v5372_v26, %v7380_v28  ;;  %v3169_v20 = vmul.f32 0.5, %v3137_v6 }
 0x2a1   : > { %v6455_v56 = vmul.f32 0.5, %v3138_v58  ;;  %v3201_v15 = vmul.f32 0.70710677, %v3137_v6  ;;  %v3202_v11 = vmul.f32 0.70710677, %v3138_v58  ;;  %v1673_v54 = vadd.f32 %v1641_v51, %v1605_v23 }
 0x2a2   : > { %v1674_v47 = vadd.f32 %v1642_v34, %v1606_v52  ;;  %v1826_v2 = vsel %vm1793_vm1, %v1824_v44, %v1825_v0  ;;  %v1828_v45 = vsel %vm1793_vm1, %v1825_v0, %v1827_v25  ;;  %v1961_v21 = vmul.f32 %v5372_v26, %v7381_v8 }
 0x2a3   : > { %4650 = verf.f32 %v3201_v15  ;;  %v1962_v10 = vmul.f32 %v5372_v26, %v7382_v57  ;;  %v2068_v1 = vrot.slane %v1960_v14, 1  ;;  %v1918_v46 = vadd.f32 %v1826_v2, %v1673_v54 }
 0x2a4   : > { %4652 = verf.f32 %v3202_v11  ;;  %v1919_v3 = vadd.f32 %v1828_v45, %v1674_v47  ;;  %v2204_v42 = vmul.f32 %v5376_v30, %v7383_v5  ;;  %v2069_v50 = vrot.slane %v1961_v21, 1 }
 0x2a5   : > { %v2071_v43 = vrot.slane %v1962_v10, 1  ;;  %v2205_v55 = vmul.f32 %v5376_v30, %v7384_v29  ;;  %v2206_v51 = vmul.f32 %v5376_v30, %v6120_v22  ;;  %v2448_v9 = vmul.f32 %v7369_v53, %v7376_v49 }
 0x2a6   : > { %v2312_v12 = vrot.slane %v2204_v42, 1  ;;  %v2449_v34 = vmul.f32 %v7369_v53, %v7377_v16  ;;  %v2450_v13 = vmul.f32 %v7369_v53, %v7378_v63  ;;  %v2070_v24 = vsel %vm1793_vm1, %v2068_v1, %v2069_v50 }
 0x2a7   : > { %v2072_v4 = vsel %vm1793_vm1, %v2069_v50, %v2071_v43  ;;  %v2313_v17 = vrot.slane %v2205_v55, 1  ;;  %v2315_v59 = vrot.slane %v2206_v51, 1  ;;  %v2162_v6 = vadd.f32 %v2070_v24, %v1918_v46 }
 0x2a8   : > { %v2163_v58 = vadd.f32 %v2072_v4, %v1919_v3  ;;  %v2557_v23 = vrot.slane %v2448_v9, 2  ;;  %v2558_v52 = vrot.slane %v2449_v34, 2  ;;  %v2560_v0 = vrot.slane %v2450_v13, 2 }
 0x2a9   : > { %v2314_v44 = vsel %vm1793_vm1, %v2312_v12, %v2313_v17  ;;  %v2316_v49 = vsel %vm1793_vm1, %v2313_v17, %v2315_v59  ;;  %v2693_v16 = vmul.f32 %v5374_v27, %v7380_v28  ;;  %v2694_v15 = vmul.f32 %v5374_v27, %v7381_v8 }
 0x2aa   : > { %v2406_v25 = vadd.f32 %v2314_v44, %v2162_v6  ;;  %v2407_v63 = vadd.f32 %v2316_v49, %v2163_v58  ;;  %v2559_v14 = vsel %vm2526_vm2, %v2557_v23, %v2558_v52  ;;  %v2561_v11 = vsel %vm2526_vm2, %v2558_v52, %v2560_v0  ;;  %v6503_v23 = vld [vmem:[%s7200_s6] ss:$0 sm:$0xff] }
 0x2ab   : > { %v2695_v54 = vmul.f32 %v5374_v27, %v7382_v57  ;;  %v2801_v47 = vrot.slane %v2693_v16, 2  ;;  %v2937_v2 = vmul.f32 %v6342_v7, %v7383_v5  ;;  %v2802_v10 = vrot.slane %v2694_v15, 2 }
 0x2ac   : > { %v2651_v45 = vadd.f32 %v2559_v14, %v2406_v25  ;;  %v2652_v21 = vadd.f32 %v2561_v11, %v2407_v63  ;;  %v2938_v1 = vmul.f32 %v6342_v7, %v7384_v29  ;;  %v2939_v42 = vmul.f32 %v6342_v7, %v6120_v22 }
 0x2ad   : > { %v4651_v46 = vpop.eup %4650  ;;  %v2804_v3 = vrot.slane %v2695_v54, 2  ;;  %v3045_v50 = vrot.slane %v2937_v2, 2  ;;  %v1507_v43 = vmul.f32 %v5365_v19, %v7380_v28  ;;  %v2803_v12 = vsel %vm2526_vm2, %v2801_v47, %v2802_v10 }
 0x2ae   : > { %v4653_v55 = vpop.eup %4652  ;;  %v3265_v51 = vadd.f32 1.0, %v4651_v46  ;;  %v3046_v9 = vrot.slane %v2938_v1, 2  ;;  %v1508_v34 = vmul.f32 %v5365_v19, %v7381_v8  ;;  %v2895_v4 = vadd.f32 %v2803_v12, %v2651_v45 }
 0x2af   : > { %v3266_v13 = vadd.f32 1.0, %v4653_v55  ;;  %v2805_v24 = vsel %vm2526_vm2, %v2802_v10, %v2804_v3  ;;  %v3048_v17 = vrot.slane %v2939_v42, 2  ;;  %v1539_v52 = vadd.f32 %v6503_v23, %v1507_v43 }
 0x2b0   : > { %v3297_v59 = vmul.f32 %v3265_v51, %v3169_v20  ;;  %v2896_v6 = vadd.f32 %v2805_v24, %v2652_v21  ;;  %v3047_v58 = vsel %vm2526_vm2, %v3045_v50, %v3046_v9  ;;  %v1540_v16 = vadd.f32 %v6503_v23, %v1508_v34 }
 0x2b1   : > { %v3298_v44 = vmul.f32 %v3266_v13, %v6455_v56  ;;  %v3049_v49 = vsel %vm2526_vm2, %v3046_v9, %v3048_v17  ;;  %v3139_v0 = vadd.f32 %v3047_v58, %v2895_v4  ;;  %v1575_v20 = vmul.f32 %v5378_v32, %v7383_v5 }
 0x2b2   : > { %v3140_v25 = vadd.f32 %v3049_v49, %v2896_v6  ;;  %v1576_v63 = vmul.f32 %v5378_v32, %v7384_v29  ;;  %v1643_v14 = vmul.f32 %v5380_v39, %v6130_v62  ;;  %v1644_v56 = vmul.f32 %v5380_v39, %v6134_v48 }
 0x2b3   : > { %v3324_v15 = vpack.c.bf16 %v3298_v44, %v3297_v59  ;;  %v3171_v11 = vmul.f32 0.5, %v3139_v0  ;;  %v3203_v54 = vmul.f32 0.70710677, %v3139_v0  ;;  %v1607_v45 = vadd.f32 %v1575_v20, %v1539_v52 }
 0x2b4   : > { %v6517_v47 = vmul.f32 0.5, %v3140_v25  ;;  %v3204_v2 = vmul.f32 0.70710677, %v3140_v25  ;;  %v1608_v21 = vadd.f32 %v1576_v63, %v1540_v16  ;;  %v1718_v10 = vmul.f32 %v7330_v37, %v7380_v28 }
 0x2b5   : > { %4324 = vmatmul.mubr.bf16.gmra.mrb[44].mxu1 %v3324_v15  ;;  %4654 = verf.f32 %v3203_v54  ;;  %v1719_v1 = vmul.f32 %v7330_v37, %v7381_v8  ;;  %v1720_v46 = vmul.f32 %v7330_v37, %v7382_v57  ;;  %v1675_v3 = vadd.f32 %v1643_v14, %v1607_v45 }
 0x2b6   : > { %4656 = verf.f32 %v3204_v2  ;;  %v1676_v42 = vadd.f32 %v1644_v56, %v1608_v21  ;;  %v1963_v50 = vmul.f32 %v5372_v26, %v7383_v5  ;;  %v1829_v43 = vrot.slane %v1718_v10, 1 }
 0x2b7   : > { %v1830_v55 = vrot.slane %v1719_v1, 1  ;;  %v1832_v51 = vrot.slane %v1720_v46, 1  ;;  %v1964_v12 = vmul.f32 %v5372_v26, %v7384_v29  ;;  %v1965_v9 = vmul.f32 %v5372_v26, %v6120_v22 }
 0x2b8   : > { %v2073_v34 = vrot.slane %v1963_v50, 1  ;;  %v2207_v13 = vmul.f32 %v5376_v30, %v6130_v62  ;;  %v2208_v24 = vmul.f32 %v5376_v30, %v6134_v48  ;;  %v2209_v6 = vmul.f32 %v5376_v30, %v6224_v18 }
 0x2b9   : > { %v1831_v4 = vsel %vm1793_vm1, %v1829_v43, %v1830_v55  ;;  %v1833_v17 = vsel %vm1793_vm1, %v1830_v55, %v1832_v51  ;;  %v2074_v59 = vrot.slane %v1964_v12, 1  ;;  %v2076_v44 = vrot.slane %v1965_v9, 1 }
 0x2ba   : > { %v1920_v58 = vadd.f32 %v1831_v4, %v1675_v3  ;;  %v1921_v52 = vadd.f32 %v1833_v17, %v1676_v42  ;;  %v2317_v49 = vrot.slane %v2207_v13, 1  ;;  %v2318_v16 = vrot.slane %v2208_v24, 1 }
 0x2bb   : > { %v2075_v0 = vsel %vm1793_vm1, %v2073_v34, %v2074_v59  ;;  %v2320_v25 = vrot.slane %v2209_v6, 1  ;;  %v2451_v20 = vmul.f32 %v7369_v53, %v7380_v28  ;;  %v2077_v63 = vsel %vm1793_vm1, %v2074_v59, %v2076_v44 }
 0x2bc   : > { %v2164_v14 = vadd.f32 %v2075_v0, %v1920_v58  ;;  %v2452_v15 = vmul.f32 %v7369_v53, %v7381_v8  ;;  %v2453_v54 = vmul.f32 %v7369_v53, %v7382_v57  ;;  %v2165_v56 = vadd.f32 %v2077_v63, %v1921_v52 }
 0x2bd   : > { %v2319_v2 = vsel %vm1793_vm1, %v2317_v49, %v2318_v16  ;;  %v2321_v45 = vsel %vm1793_vm1, %v2318_v16, %v2320_v25  ;;  %v2562_v21 = vrot.slane %v2451_v20, 2  ;;  %v2696_v28 = vmul.f32 %v5374_v27, %v7383_v5 }
 0x2be   : > { %v2408_v10 = vadd.f32 %v2319_v2, %v2164_v14  ;;  %v2563_v1 = vrot.slane %v2452_v15, 2  ;;  %v2565_v46 = vrot.slane %v2453_v54, 2  ;;  %v2409_v42 = vadd.f32 %v2321_v45, %v2165_v56 }
 0x2bf   : > { %v4655_v3 = vpop.eup %4654  ;;  %v2697_v8 = vmul.f32 %v5374_v27, %v7384_v29  ;;  %v2698_v57 = vmul.f32 %v5374_v27, %v6120_v22  ;;  %v2940_v50 = vmul.f32 %v6342_v7, %v6130_v62  ;;  %v2806_v9 = vrot.slane %v2696_v28, 2 }
 0x2c0   : > { %v4657_v43 = vpop.eup %4656  ;;  %v3267_v55 = vadd.f32 1.0, %v4655_v3  ;;  %v2564_v51 = vsel %vm2526_vm2, %v2562_v21, %v2563_v1  ;;  %v2566_v12 = vsel %vm2526_vm2, %v2563_v1, %v2565_v46  ;;  %v2941_v6 = vmul.f32 %v6342_v7, %v6134_v48 }
 0x2c1   : > { %v3268_v34 = vadd.f32 1.0, %v4657_v43  ;;  %v2653_v13 = vadd.f32 %v2564_v51, %v2408_v10  ;;  %v2654_v24 = vadd.f32 %v2566_v12, %v2409_v42  ;;  %v2807_v4 = vrot.slane %v2697_v8, 2 }
 0x2c2   : > { %v3299_v17 = vmul.f32 %v3267_v55, %v3171_v11  ;;  %v2809_v59 = vrot.slane %v2698_v57, 2  ;;  %v2942_v58 = vmul.f32 %v6342_v7, %v6224_v18  ;;  %v3050_v49 = vrot.slane %v2940_v50, 2 }
 0x2c3   : > { %v3300_v52 = vmul.f32 %v3268_v34, %v6517_v47  ;;  %v2808_v44 = vsel %vm2526_vm2, %v2806_v9, %v2807_v4  ;;  %v1509_v0 = vmul.f32 %v5365_v19, %v7383_v5  ;;  %v3051_v20 = vrot.slane %v2941_v6, 2 }
 0x2c4   : > { %v2810_v16 = vsel %vm2526_vm2, %v2807_v4, %v2809_v59  ;;  %v2897_v25 = vadd.f32 %v2808_v44, %v2653_v13  ;;  %v3053_v11 = vrot.slane %v2942_v58, 2  ;;  %v1510_v15 = vmul.f32 %v5365_v19, %v7384_v29 }
 0x2c5   : > { %v3325_v63 = vpack.c.bf16 %v3300_v52, %v3299_v17  ;;  %v2898_v14 = vadd.f32 %v2810_v16, %v2654_v24  ;;  %v1541_v54 = vadd.f32 %v6503_v23, %v1509_v0  ;;  %v3052_v47 = vsel %vm2526_vm2, %v3050_v49, %v3051_v20 }
 0x2c6   : > { %v3054_v56 = vsel %vm2526_vm2, %v3051_v20, %v3053_v11  ;;  %v1577_v2 = vmul.f32 %v5378_v32, %v6130_v62  ;;  %v1578_v45 = vmul.f32 %v5378_v32, %v6134_v48  ;;  %v3141_v21 = vadd.f32 %v3052_v47, %v2897_v25 }
 0x2c7   : > { %4327 = vmatprep.mubr.bf16.mxu1 %v3325_v63  ;;  %v3142_v10 = vadd.f32 %v3054_v56, %v2898_v14  ;;  %v1542_v1 = vadd.f32 %v6503_v23, %v1510_v15  ;;  %v1645_v46 = vmul.f32 %v5380_v39, %v6228_v33  ;;  %v1646_v3 = vmul.f32 %v5380_v39, %v6240_v36 }
 0x2c8   : > { %v1609_v28 = vadd.f32 %v1577_v2, %v1541_v54  ;;  %v1721_v42 = vmul.f32 %v7330_v37, %v7383_v5  ;;  %v1722_v8 = vmul.f32 %v7330_v37, %v7384_v29  ;;  %v3173_v57 = vmul.f32 0.5, %v3141_v21 }
 0x2c9   : > { %v6586_v50 = vmul.f32 0.5, %v3142_v10  ;;  %v3205_v43 = vmul.f32 0.70710677, %v3141_v21  ;;  %v3206_v55 = vmul.f32 0.70710677, %v3142_v10  ;;  %v1610_v51 = vadd.f32 %v1578_v45, %v1542_v1 }
 0x2ca   : > { %v1677_v12 = vadd.f32 %v1645_v46, %v1609_v28  ;;  %v1723_v9 = vmul.f32 %v7330_v37, %v6120_v22  ;;  %v1834_v34 = vrot.slane %v1721_v42, 1  ;;  %v1835_v13 = vrot.slane %v1722_v8, 1 }
 0x2cb   : > { %4658 = verf.f32 %v3205_v43  ;;  %v1966_v24 = vmul.f32 %v5372_v26, %v6130_v62  ;;  %v1967_v4 = vmul.f32 %v5372_v26, %v6134_v48  ;;  %v1678_v17 = vadd.f32 %v1646_v3, %v1610_v51 }
 0x2cc   : > { %4660 = verf.f32 %v3206_v55  ;;  %v1837_v59 = vrot.slane %v1723_v9, 1  ;;  %v1968_v6 = vmul.f32 %v5372_v26, %v6224_v18  ;;  %v1836_v58 = vsel %vm1793_vm1, %v1834_v34, %v1835_v13 }
 0x2cd   : > { %v2078_v52 = vrot.slane %v1966_v24, 1  ;;  %v2079_v44 = vrot.slane %v1967_v4, 1  ;;  %v2210_v49 = vmul.f32 %v5376_v30, %v6228_v33  ;;  %v1922_v16 = vadd.f32 %v1836_v58, %v1677_v12 }
 0x2ce   : > { %v1838_v0 = vsel %vm1793_vm1, %v1835_v13, %v1837_v59  ;;  %v2081_v25 = vrot.slane %v1968_v6, 1  ;;  %v2211_v20 = vmul.f32 %v5376_v30, %v6240_v36  ;;  %v2212_v14 = vmul.f32 %v5376_v30, %v6321_v60 }
 0x2cf   : > { %v1923_v11 = vadd.f32 %v1838_v0, %v1678_v17  ;;  %v2080_v63 = vsel %vm1793_vm1, %v2078_v52, %v2079_v44  ;;  %v2322_v15 = vrot.slane %v2210_v49, 1  ;;  %v2454_v2 = vmul.f32 %v7369_v53, %v7383_v5 }
 0x2d0   : > { %v2082_v54 = vsel %vm1793_vm1, %v2079_v44, %v2081_v25  ;;  %v2166_v47 = vadd.f32 %v2080_v63, %v1922_v16  ;;  %v2323_v56 = vrot.slane %v2211_v20, 1  ;;  %v2325_v21 = vrot.slane %v2212_v14, 1 }
 0x2d1   : > { %v2167_v45 = vadd.f32 %v2082_v54, %v1923_v11  ;;  %v2455_v10 = vmul.f32 %v7369_v53, %v7384_v29  ;;  %v2456_v1 = vmul.f32 %v7369_v53, %v6120_v22  ;;  %v2567_v28 = vrot.slane %v2454_v2, 2 }
 0x2d2   : > { %v2324_v46 = vsel %vm1793_vm1, %v2322_v15, %v2323_v56  ;;  %v2699_v3 = vmul.f32 %v5374_v27, %v6130_v62  ;;  %v2700_v42 = vmul.f32 %v5374_v27, %v6134_v48  ;;  %v2326_v8 = vsel %vm1793_vm1, %v2323_v56, %v2325_v21 }
 0x2d3   : > { %v2410_v5 = vadd.f32 %v2324_v46, %v2166_v47  ;;  %v2568_v43 = vrot.slane %v2455_v10, 2  ;;  %v2570_v55 = vrot.slane %v2456_v1, 2  ;;  %v2411_v51 = vadd.f32 %v2326_v8, %v2167_v45 }
 0x2d4   : > { %v2701_v29 = vmul.f32 %v5374_v27, %v6224_v18  ;;  %v2811_v12 = vrot.slane %v2699_v3, 2  ;;  %v2812_v22 = vrot.slane %v2700_v42, 2  ;;  %v2943_v24 = vmul.f32 %v6342_v7, %v6228_v33 }
 0x2d5   : > { %v4659_v9 = vpop.eup %4658  ;;  %v2569_v34 = vsel %vm2526_vm2, %v2567_v28, %v2568_v43  ;;  %v2571_v13 = vsel %vm2526_vm2, %v2568_v43, %v2570_v55  ;;  %v2944_v4 = vmul.f32 %v6342_v7, %v6240_v36  ;;  %v2945_v0 = vmul.f32 %v6342_v7, %v6321_v60 }
 0x2d6   : > { %v4661_v17 = vpop.eup %4660  ;;  %v3269_v59 = vadd.f32 1.0, %v4659_v9  ;;  %v2655_v6 = vadd.f32 %v2569_v34, %v2410_v5  ;;  %v2656_v58 = vadd.f32 %v2571_v13, %v2411_v51  ;;  %v2813_v52 = vsel %vm2526_vm2, %v2811_v12, %v2812_v22 }
 0x2d7   : > { %v3270_v44 = vadd.f32 1.0, %v4661_v17  ;;  %v2814_v49 = vrot.slane %v2701_v29, 2  ;;  %v3055_v16 = vrot.slane %v2943_v24, 2  ;;  %v3056_v11 = vrot.slane %v2944_v4, 2 }
 0x2d8   : > { %v3301_v25 = vmul.f32 %v3269_v59, %v3173_v57  ;;  %v2899_v20 = vadd.f32 %v2813_v52, %v2655_v6  ;;  %v1511_v63 = vmul.f32 %v5365_v19, %v6130_v62  ;;  %v3058_v54 = vrot.slane %v2945_v0, 2 }
 0x2d9   : > { %v3302_v14 = vmul.f32 %v3270_v44, %v6586_v50  ;;  %v2815_v15 = vsel %vm2526_vm2, %v2812_v22, %v2814_v49  ;;  %v1512_v47 = vmul.f32 %v5365_v19, %v6134_v48  ;;  %v3057_v2 = vsel %vm2526_vm2, %v3055_v16, %v3056_v11 }
 0x2da   : > { %v2900_v56 = vadd.f32 %v2815_v15, %v2656_v58  ;;  %v1543_v45 = vadd.f32 %v6503_v23, %v1511_v63  ;;  %v1579_v57 = vmul.f32 %v5378_v32, %v6228_v33  ;;  %v3059_v10 = vsel %vm2526_vm2, %v3056_v11, %v3058_v54 }
 0x2db   : > { %v3326_v21 = vpack.c.bf16 %v3302_v14, %v3301_v25  ;;  %v3143_v1 = vadd.f32 %v3057_v2, %v2899_v20  ;;  %v1544_v50 = vadd.f32 %v6503_v23, %v1512_v47  ;;  %v1580_v28 = vmul.f32 %v5378_v32, %v6240_v36 }
 0x2dc   : > { %v3144_v46 = vadd.f32 %v3059_v10, %v2900_v56  ;;  %v1611_v3 = vadd.f32 %v1579_v57, %v1543_v45  ;;  %v1647_v42 = vmul.f32 %v5380_v39, %v6327_v38  ;;  %v1648_v43 = vmul.f32 %v5380_v39, %v6337_v35 }
 0x2dd   : > { %4328 = vmatmul.mubr.bf16.gmra.mrb[48].mxu1 %v3326_v21  ;;  %v3175_v8 = vmul.f32 0.5, %v3143_v1  ;;  %v3207_v5 = vmul.f32 0.70710677, %v3143_v1  ;;  %v1724_v55 = vmul.f32 %v7330_v37, %v6130_v62  ;;  %v1612_v12 = vadd.f32 %v1580_v28, %v1544_v50 }
 0x2de   : > { %v3176_v51 = vmul.f32 0.5, %v3144_v46  ;;  %v3208_v29 = vmul.f32 0.70710677, %v3144_v46  ;;  %v1679_v22 = vadd.f32 %v1647_v42, %v1611_v3  ;;  %v1725_v9 = vmul.f32 %v7330_v37, %v6134_v48 }
 0x2df   : > { %4662 = verf.f32 %v3207_v5  ;;  %v1726_v34 = vmul.f32 %v7330_v37, %v6224_v18  ;;  %v1839_v13 = vrot.slane %v1724_v55, 1  ;;  %v1680_v24 = vadd.f32 %v1648_v43, %v1612_v12 }
 0x2e0   : > { %4664 = verf.f32 %v3208_v29  ;;  %v1969_v4 = vmul.f32 %v5372_v26, %v6228_v33  ;;  %v1970_v17 = vmul.f32 %v5372_v26, %v6240_v36  ;;  %v1840_v59 = vrot.slane %v1725_v9, 1 }
 0x2e1   : > { %v1842_v6 = vrot.slane %v1726_v34, 1  ;;  %v1971_v58 = vmul.f32 %v5372_v26, %v6321_v60  ;;  %v2213_v52 = vmul.f32 %v5376_v30, %v6327_v38  ;;  %v2214_v0 = vmul.f32 %v5376_v30, %v6337_v35 }
 0x2e2   : > { %v2083_v44 = vrot.slane %v1969_v4, 1  ;;  %v2084_v49 = vrot.slane %v1970_v17, 1  ;;  %v2215_v16 = vmul.f32 %v5376_v30, %v6424_v61  ;;  %v1841_v25 = vsel %vm1793_vm1, %v1839_v13, %v1840_v59 }
 0x2e3   : > { %v1843_v20 = vsel %vm1793_vm1, %v1840_v59, %v1842_v6  ;;  %v2086_v11 = vrot.slane %v1971_v58, 1  ;;  %v2327_v63 = vrot.slane %v2213_v52, 1  ;;  %v1924_v14 = vadd.f32 %v1841_v25, %v1679_v22 }
 0x2e4   : > { %v1925_v15 = vadd.f32 %v1843_v20, %v1680_v24  ;;  %v2085_v54 = vsel %vm1793_vm1, %v2083_v44, %v2084_v49  ;;  %v2328_v47 = vrot.slane %v2214_v0, 1  ;;  %v2330_v2 = vrot.slane %v2215_v16, 1 }
 0x2e5   : > { %v2087_v56 = vsel %vm1793_vm1, %v2084_v49, %v2086_v11  ;;  %v2457_v45 = vmul.f32 %v7369_v53, %v6130_v62  ;;  %v2458_v57 = vmul.f32 %v7369_v53, %v6134_v48  ;;  %v2168_v21 = vadd.f32 %v2085_v54, %v1924_v14 }
 0x2e6   : > { %v2169_v10 = vadd.f32 %v2087_v56, %v1925_v15  ;;  %v2329_v1 = vsel %vm1793_vm1, %v2327_v63, %v2328_v47  ;;  %v2459_v50 = vmul.f32 %v7369_v53, %v6224_v18  ;;  %v2331_v46 = vsel %vm1793_vm1, %v2328_v47, %v2330_v2 }
 0x2e7   : > { %v2572_v28 = vrot.slane %v2457_v45, 2  ;;  %v2573_v3 = vrot.slane %v2458_v57, 2  ;;  %v2702_v42 = vmul.f32 %v5374_v27, %v6228_v33  ;;  %v2412_v5 = vadd.f32 %v2329_v1, %v2168_v21 }
 0x2e8   : > { %v2413_v43 = vadd.f32 %v2331_v46, %v2169_v10  ;;  %v2575_v62 = vrot.slane %v2459_v50, 2  ;;  %v2703_v48 = vmul.f32 %v5374_v27, %v6240_v36  ;;  %v2704_v12 = vmul.f32 %v5374_v27, %v6321_v60  ;;  %v7385_v10 = vld [vmem:[#allocation22_spill] sm:$0xff]  ;;  %v7386_v50 = vld [vmem:[#allocation23_spill] sm:$0xff] }
 0x2e9   : > { %v4663_v55 = vpop.eup %4662  ;;  %v2574_v29 = vsel %vm2526_vm2, %v2572_v28, %v2573_v3  ;;  %v2816_v18 = vrot.slane %v2702_v42, 2  ;;  %v2946_v22 = vmul.f32 %v6342_v7, %v6327_v38  ;;  %v2947_v58 = vmul.f32 %v6342_v7, %v6337_v35 }
 0x2ea   : > { %v4665_v9 = vpop.eup %4664  ;;  %v3271_v34 = vadd.f32 1.0, %v4663_v55  ;;  %v2576_v13 = vsel %vm2526_vm2, %v2573_v3, %v2575_v62  ;;  %v2657_v24 = vadd.f32 %v2574_v29, %v2412_v5  ;;  %v2817_v4 = vrot.slane %v2703_v48, 2 }
 0x2eb   : > { %v3272_v17 = vadd.f32 1.0, %v4665_v9  ;;  %v2658_v59 = vadd.f32 %v2576_v13, %v2413_v43  ;;  %v2819_v6 = vrot.slane %v2704_v12, 2  ;;  %v2948_v49 = vmul.f32 %v6342_v7, %v6424_v61 }
 0x2ec   : > { %v3303_v52 = vmul.f32 %v3271_v34, %v3175_v8  ;;  %v2818_v44 = vsel %vm2526_vm2, %v2816_v18, %v2817_v4  ;;  %v3060_v0 = vrot.slane %v2946_v22, 2  ;;  %v3061_v11 = vrot.slane %v2947_v58, 2 }
 0x2ed   : > { %v3304_v16 = vmul.f32 %v3272_v17, %v3176_v51  ;;  %v2820_v25 = vsel %vm2526_vm2, %v2817_v4, %v2819_v6  ;;  %v2901_v20 = vadd.f32 %v2818_v44, %v2657_v24  ;;  %v3063_v14 = vrot.slane %v2948_v49, 2  ;;  %v7387_v44 = vld [vmem:[#allocation27_spill] sm:$0xff] }
 0x2ee   : > { %v2902_v63 = vadd.f32 %v2820_v25, %v2658_v59  ;;  %v1513_v15 = vmul.f32 %v5365_v19, %v6228_v33  ;;  %v1514_v54 = vmul.f32 %v5365_v19, %v6240_v36  ;;  %v3062_v47 = vsel %vm2526_vm2, %v3060_v0, %v3061_v11 }
 0x2ef   : > { %v3327_v8 = vpack.c.bf16 %v3304_v16, %v3303_v52  ;;  %v1581_v7 = vmul.f32 %v5378_v32, %v6327_v38  ;;  %v1582_v51 = vmul.f32 %v5378_v32, %v6337_v35  ;;  %v3064_v56 = vsel %vm2526_vm2, %v3061_v11, %v3063_v14 }
 0x2f0   : > { %v3145_v2 = vadd.f32 %v3062_v47, %v2901_v20  ;;  %v1545_v45 = vadd.f32 %v6503_v23, %v1513_v15  ;;  %v1546_v57 = vadd.f32 %v6503_v23, %v1514_v54  ;;  %v3146_v21 = vadd.f32 %v3064_v56, %v2902_v63 }
 0x2f1   : > { %4331 = vmatprep.mubr.bf16.mxu1 %v3327_v8  ;;  %v1649_v1 = vmul.f32 %v5380_v39, %v7385_v10  ;;  %v1650_v46 = vmul.f32 %v5380_v39, %v7386_v50  ;;  %v1727_v28 = vmul.f32 %v7330_v37, %v6228_v33  ;;  %v1728_v55 = vmul.f32 %v7330_v37, %v6240_v36 }
 0x2f2   : > { %v6711_v3 = vmul.f32 0.5, %v3145_v2  ;;  %v3209_v42 = vmul.f32 0.70710677, %v3145_v2  ;;  %v1613_v5 = vadd.f32 %v1581_v7, %v1545_v45  ;;  %v1614_v43 = vadd.f32 %v1582_v51, %v1546_v57 }
 0x2f3   : > { %v6713_v62 = vmul.f32 0.5, %v3146_v21  ;;  %v3210_v48 = vmul.f32 0.70710677, %v3146_v21  ;;  %v1729_v29 = vmul.f32 %v7330_v37, %v6321_v60  ;;  %v1844_v22 = vrot.slane %v1727_v28, 1 }
 0x2f4   : > { %4666 = verf.f32 %v3209_v42  ;;  %v1681_v12 = vadd.f32 %v1649_v1, %v1613_v5  ;;  %v1682_v18 = vadd.f32 %v1650_v46, %v1614_v43  ;;  %v1845_v9 = vrot.slane %v1728_v55, 1  ;;  %v6754_v55 = vld [vmem:[%s7199_s5 + $0x8] ss:$0 sm:$0xff] }
 0x2f5   : > { %4668 = verf.f32 %v3210_v48  ;;  %v1847_v34 = vrot.slane %v1729_v29, 1  ;;  %v1972_v13 = vmul.f32 %v5372_v26, %v6327_v38  ;;  %v1973_v24 = vmul.f32 %v5372_v26, %v6337_v35 }
 0x2f6   : > { %v1974_v4 = vmul.f32 %v5372_v26, %v6424_v61  ;;  %v2216_v17 = vmul.f32 %v5376_v30, %v7385_v10  ;;  %v2217_v59 = vmul.f32 %v5376_v30, %v7386_v50  ;;  %v1846_v6 = vsel %vm1793_vm1, %v1844_v22, %v1845_v9 }
 0x2f7   : > { %v1848_v58 = vsel %vm1793_vm1, %v1845_v9, %v1847_v34  ;;  %v2088_v52 = vrot.slane %v1972_v13, 1  ;;  %v2218_v49 = vmul.f32 %v5376_v30, %v7387_v44  ;;  %v1926_v0 = vadd.f32 %v1846_v6, %v1681_v12 }
 0x2f8   : > { %v1927_v16 = vadd.f32 %v1848_v58, %v1682_v18  ;;  %v2089_v25 = vrot.slane %v1973_v24, 1  ;;  %v2091_v20 = vrot.slane %v1974_v4, 1  ;;  %v2332_v11 = vrot.slane %v2216_v17, 1 }
 0x2f9   : > { %v2333_v63 = vrot.slane %v2217_v59, 1  ;;  %v2335_v14 = vrot.slane %v2218_v49, 1  ;;  %v2460_v15 = vmul.f32 %v7369_v53, %v6228_v33  ;;  %v2461_v47 = vmul.f32 %v7369_v53, %v6240_v36 }
 0x2fa   : > { %v2090_v54 = vsel %vm1793_vm1, %v2088_v52, %v2089_v25  ;;  %v2092_v8 = vsel %vm1793_vm1, %v2089_v25, %v2091_v20  ;;  %v2462_v7 = vmul.f32 %v7369_v53, %v6321_v60  ;;  %v2705_v33 = vmul.f32 %v5374_v27, %v6327_v38 }
 0x2fb   : > { %v2170_v51 = vadd.f32 %v2090_v54, %v1926_v0  ;;  %v2171_v56 = vadd.f32 %v2092_v8, %v1927_v16  ;;  %v2334_v2 = vsel %vm1793_vm1, %v2332_v11, %v2333_v63  ;;  %v2336_v45 = vsel %vm1793_vm1, %v2333_v63, %v2335_v14 }
 0x2fc   : > { %v2577_v57 = vrot.slane %v2460_v15, 2  ;;  %v2578_v21 = vrot.slane %v2461_v47, 2  ;;  %v2580_v1 = vrot.slane %v2462_v7, 2  ;;  %v2706_v36 = vmul.f32 %v5374_v27, %v6337_v35 }
 0x2fd   : > { %v2414_v46 = vadd.f32 %v2334_v2, %v2170_v51  ;;  %v2415_v28 = vadd.f32 %v2336_v45, %v2171_v56  ;;  %v2707_v60 = vmul.f32 %v5374_v27, %v6424_v61  ;;  %v2821_v48 = vrot.slane %v2705_v33, 2  ;;  %v7388_v51 = vld [vmem:[#allocation33_spill] sm:$0xff] }
 0x2fe   : > { %v4667_v42 = vpop.eup %4666  ;;  %v2579_v5 = vsel %vm2526_vm2, %v2577_v57, %v2578_v21  ;;  %v2581_v43 = vsel %vm2526_vm2, %v2578_v21, %v2580_v1  ;;  %v2949_v29 = vmul.f32 %v6754_v55, %v7385_v10  ;;  %v2822_v34 = vrot.slane %v2706_v36, 2  ;;  %v7389_v57 = vld [vmem:[#allocation36_spill] sm:$0xff] }
 0x2ff   : > { %v4669_v12 = vpop.eup %4668  ;;  %v3273_v18 = vadd.f32 1.0, %v4667_v42  ;;  %v2659_v22 = vadd.f32 %v2579_v5, %v2414_v46  ;;  %v2660_v9 = vadd.f32 %v2581_v43, %v2415_v28  ;;  %v2824_v24 = vrot.slane %v2707_v60, 2 }
 0x300   : > { %v3274_v13 = vadd.f32 1.0, %v4669_v12  ;;  %v2950_v4 = vmul.f32 %v6754_v55, %v7386_v50  ;;  %v2951_v17 = vmul.f32 %v6754_v55, %v7387_v44  ;;  %v2823_v6 = vsel %vm2526_vm2, %v2821_v48, %v2822_v34 }
 0x301   : > { %v3305_v59 = vmul.f32 %v3273_v18, %v6711_v3  ;;  %v3065_v58 = vrot.slane %v2949_v29, 2  ;;  %v1515_v52 = vmul.f32 %v5365_v19, %v6327_v38  ;;  %v2825_v0 = vsel %vm2526_vm2, %v2822_v34, %v2824_v24 }
 0x302   : > { %v3306_v49 = vmul.f32 %v3274_v13, %v6713_v62  ;;  %v2903_v16 = vadd.f32 %v2823_v6, %v2659_v22  ;;  %v3066_v25 = vrot.slane %v2950_v4, 2  ;;  %v2904_v20 = vadd.f32 %v2825_v0, %v2660_v9  ;;  %v7390_v0 = vld [vmem:[#allocation38_spill] sm:$0xff] }
 0x303   : > { %v3068_v11 = vrot.slane %v2951_v17, 2  ;;  %v1516_v63 = vmul.f32 %v5365_v19, %v6337_v35  ;;  %v1547_v14 = vadd.f32 %v6503_v23, %v1515_v52  ;;  %v1583_v54 = vmul.f32 %v5378_v32, %v7385_v10 }
 0x304   : > { %v3328_v3 = vpack.c.bf16 %v3306_v49, %v3305_v59  ;;  %v3067_v15 = vsel %vm2526_vm2, %v3065_v58, %v3066_v25  ;;  %v1584_v62 = vmul.f32 %v5378_v32, %v7386_v50  ;;  %v1651_v56 = vmul.f32 %v5380_v39, %v7388_v51 }
 0x305   : > { %v3069_v8 = vsel %vm2526_vm2, %v3066_v25, %v3068_v11  ;;  %v3147_v47 = vadd.f32 %v3067_v15, %v2903_v16  ;;  %v1548_v7 = vadd.f32 %v6503_v23, %v1516_v63  ;;  %v1615_v45 = vadd.f32 %v1583_v54, %v1547_v14 }
 0x306   : > { %4332 = vmatmul.mubr.bf16.gmra.mrb[52].mxu1 %v3328_v3  ;;  %v3148_v2 = vadd.f32 %v3069_v8, %v2904_v20  ;;  %v1652_v21 = vmul.f32 %v5380_v39, %v7389_v57  ;;  %v1730_v1 = vmul.f32 %v7330_v37, %v6327_v38  ;;  %v1731_v36 = vmul.f32 %v7330_v37, %v6337_v35 }
 0x307   : > { %v3179_v33 = vmul.f32 0.5, %v3147_v47  ;;  %v3211_v46 = vmul.f32 0.70710677, %v3147_v47  ;;  %v1616_v28 = vadd.f32 %v1584_v62, %v1548_v7  ;;  %v1683_v5 = vadd.f32 %v1651_v56, %v1615_v45 }
 0x308   : > { %v3180_v60 = vmul.f32 0.5, %v3148_v2  ;;  %v3212_v42 = vmul.f32 0.70710677, %v3148_v2  ;;  %v1732_v43 = vmul.f32 %v7330_v37, %v6424_v61  ;;  %v1849_v29 = vrot.slane %v1730_v1, 1 }
 0x309   : > { %4670 = verf.f32 %v3211_v46  ;;  %v1684_v48 = vadd.f32 %v1652_v21, %v1616_v28  ;;  %v1850_v12 = vrot.slane %v1731_v36, 1  ;;  %v1975_v22 = vmul.f32 %v5372_v26, %v7385_v10 }
 0x30a   : > { %4672 = verf.f32 %v3212_v42  ;;  %v1852_v18 = vrot.slane %v1732_v43, 1  ;;  %v1976_v9 = vmul.f32 %v5372_v26, %v7386_v50  ;;  %v1977_v13 = vmul.f32 %v5372_v26, %v7387_v44 }
 0x30b   : > { %v1851_v34 = vsel %vm1793_vm1, %v1849_v29, %v1850_v12  ;;  %v2219_v24 = vmul.f32 %v5376_v30, %v7388_v51  ;;  %v2220_v4 = vmul.f32 %v5376_v30, %v7389_v57  ;;  %v2093_v6 = vrot.slane %v1975_v22, 1 }
 0x30c   : > { %v1853_v17 = vsel %vm1793_vm1, %v1850_v12, %v1852_v18  ;;  %v1928_v59 = vadd.f32 %v1851_v34, %v1683_v5  ;;  %v2094_v58 = vrot.slane %v1976_v9, 1  ;;  %v2096_v49 = vrot.slane %v1977_v13, 1 }
 0x30d   : > { %v1929_v52 = vadd.f32 %v1853_v17, %v1684_v48  ;;  %v2221_v16 = vmul.f32 %v5376_v30, %v7390_v0  ;;  %v2337_v25 = vrot.slane %v2219_v24, 1  ;;  %v2338_v11 = vrot.slane %v2220_v4, 1 }
 0x30e   : > { %v2095_v20 = vsel %vm1793_vm1, %v2093_v6, %v2094_v58  ;;  %v2463_v63 = vmul.f32 %v7369_v53, %v6327_v38  ;;  %v2464_v14 = vmul.f32 %v7369_v53, %v6337_v35  ;;  %v2097_v3 = vsel %vm1793_vm1, %v2094_v58, %v2096_v49 }
 0x30f   : > { %v2172_v15 = vadd.f32 %v2095_v20, %v1928_v59  ;;  %v2340_v54 = vrot.slane %v2221_v16, 1  ;;  %v2465_v62 = vmul.f32 %v7369_v53, %v6424_v61  ;;  %v2173_v8 = vadd.f32 %v2097_v3, %v1929_v52 }
 0x310   : > { %v2339_v47 = vsel %vm1793_vm1, %v2337_v25, %v2338_v11  ;;  %v2582_v7 = vrot.slane %v2463_v63, 2  ;;  %v2583_v56 = vrot.slane %v2464_v14, 2  ;;  %v2708_v38 = vmul.f32 %v5374_v27, %v7385_v10 }
 0x311   : > { %v2341_v2 = vsel %vm1793_vm1, %v2338_v11, %v2340_v54  ;;  %v2416_v45 = vadd.f32 %v2339_v47, %v2172_v15  ;;  %v2585_v21 = vrot.slane %v2465_v62, 2  ;;  %v2709_v46 = vmul.f32 %v5374_v27, %v7386_v50  ;;  %v7391_v15 = vld [vmem:[#allocation40_spill] sm:$0xff] }
 0x312   : > { %v2417_v35 = vadd.f32 %v2341_v2, %v2173_v8  ;;  %v2584_v1 = vsel %vm2526_vm2, %v2582_v7, %v2583_v56  ;;  %v2710_v61 = vmul.f32 %v5374_v27, %v7387_v44  ;;  %v2826_v5 = vrot.slane %v2708_v38, 2 }
 0x313   : > { %v4671_v28 = vpop.eup %4670  ;;  %v2586_v36 = vsel %vm2526_vm2, %v2583_v56, %v2585_v21  ;;  %v2661_v42 = vadd.f32 %v2584_v1, %v2416_v45  ;;  %v2952_v43 = vmul.f32 %v6754_v55, %v7388_v51  ;;  %v2827_v18 = vrot.slane %v2709_v46, 2  ;;  %v7392_v56 = vld [vmem:[#allocation41_spill] sm:$0xff] }
 0x314   : > { %v4673_v48 = vpop.eup %4672  ;;  %v3275_v29 = vadd.f32 1.0, %v4671_v28  ;;  %v2662_v12 = vadd.f32 %v2586_v36, %v2417_v35  ;;  %v2829_v22 = vrot.slane %v2710_v61, 2  ;;  %v2953_v34 = vmul.f32 %v6754_v55, %v7389_v57 }
 0x315   : > { %v3276_v9 = vadd.f32 1.0, %v4673_v48  ;;  %v2954_v13 = vmul.f32 %v6754_v55, %v7390_v0  ;;  %v3070_v24 = vrot.slane %v2952_v43, 2  ;;  %v2828_v17 = vsel %vm2526_vm2, %v2826_v5, %v2827_v18 }
 0x316   : > { %v3307_v4 = vmul.f32 %v3275_v29, %v3179_v33  ;;  %v2830_v59 = vsel %vm2526_vm2, %v2827_v18, %v2829_v22  ;;  %v1517_v6 = vmul.f32 %v5365_v19, %v7385_v10  ;;  %v2905_v52 = vadd.f32 %v2828_v17, %v2661_v42 }
 0x317   : > { %v3308_v58 = vmul.f32 %v3276_v9, %v3180_v60  ;;  %v2906_v49 = vadd.f32 %v2830_v59, %v2662_v12  ;;  %v3071_v16 = vrot.slane %v2953_v34, 2  ;;  %v3073_v25 = vrot.slane %v2954_v13, 2 }
 0x318   : > { %v1518_v20 = vmul.f32 %v5365_v19, %v7386_v50  ;;  %v1549_v11 = vadd.f32 %v6503_v23, %v1517_v6  ;;  %v1585_v33 = vmul.f32 %v5378_v32, %v7388_v51  ;;  %v1586_v3 = vmul.f32 %v5378_v32, %v7389_v57 }
 0x319   : > { %v3329_v63 = vpack.c.bf16 %v3308_v58, %v3307_v4  ;;  %v3072_v14 = vsel %vm2526_vm2, %v3070_v24, %v3071_v16  ;;  %v1653_v60 = vmul.f32 %v5380_v39, %v7391_v15  ;;  %v3074_v54 = vsel %vm2526_vm2, %v3071_v16, %v3073_v25  ;;  %v7393_v16 = vld [vmem:[#allocation42_spill] sm:$0xff] }
 0x31a   : > { %v3149_v62 = vadd.f32 %v3072_v14, %v2905_v52  ;;  %v1550_v8 = vadd.f32 %v6503_v23, %v1518_v20  ;;  %v1617_v47 = vadd.f32 %v1585_v33, %v1549_v11  ;;  %v3150_v7 = vadd.f32 %v3074_v54, %v2906_v49 }
 0x31b   : > { %4335 = vmatprep.mubr.bf16.mxu1 %v3329_v63  ;;  %v1654_v2 = vmul.f32 %v5380_v39, %v7392_v56  ;;  %v1733_v45 = vmul.f32 %v7330_v37, %v7385_v10  ;;  %v1734_v21 = vmul.f32 %v7330_v37, %v7386_v50  ;;  %v1735_v28 = vmul.f32 %v7330_v37, %v7387_v44 }
 0x31c   : > { %v6848_v38 = vmul.f32 0.5, %v3149_v62  ;;  %v3213_v35 = vmul.f32 0.70710677, %v3149_v62  ;;  %v1618_v1 = vadd.f32 %v1586_v3, %v1550_v8  ;;  %v1685_v46 = vadd.f32 %v1653_v60, %v1617_v47 }
 0x31d   : > { %v6850_v61 = vmul.f32 0.5, %v3150_v7  ;;  %v3214_v23 = vmul.f32 0.70710677, %v3150_v7  ;;  %v1854_v36 = vrot.slane %v1733_v45, 1  ;;  %v6854_v42 = vpop.f32.mrb[36].mxu1  ;;  %v1855_v43 = vrot.slane %v1734_v21, 1 }
 0x31e   : > { %4674 = verf.f32 %v3213_v35  ;;  %v1686_v5 = vadd.f32 %v1654_v2, %v1618_v1  ;;  %v1978_v48 = vmul.f32 %v5372_v26, %v7388_v51  ;;  %v6858_v29 = vpop.f32.mrb[37].mxu1  ;;  %v1857_v12 = vrot.slane %v1735_v28, 1 }
 0x31f   : > { %4676 = verf.f32 %v3214_v23  ;;  %v1979_v18 = vmul.f32 %v5372_v26, %v7389_v57  ;;  %v1980_v22 = vmul.f32 %v5372_v26, %v7390_v0  ;;  %v6864_v9 = vpop.f32.mrb[38].mxu1  ;;  %v1856_v34 = vsel %vm1793_vm1, %v1854_v36, %v1855_v43 }
 0x320   : > { %v2098_v13 = vrot.slane %v1978_v48, 1  ;;  %v2222_v24 = vmul.f32 %v5376_v30, %v7391_v15  ;;  %v2223_v4 = vmul.f32 %v5376_v30, %v7392_v56  ;;  %v6871_v17 = vpop.f32.mrb[39].mxu1  ;;  %v1858_v59 = vsel %vm1793_vm1, %v1855_v43, %v1857_v12 }
 0x321   : > { %v1930_v6 = vadd.f32 %v1856_v34, %v1685_v46  ;;  %v2099_v58 = vrot.slane %v1979_v18, 1  ;;  %v2101_v52 = vrot.slane %v1980_v22, 1  ;;  %v1931_v49 = vadd.f32 %v1858_v59, %v1686_v5 }
 0x322   : > { %v2224_v25 = vmul.f32 %v5376_v30, %v7393_v16  ;;  %v2342_v20 = vrot.slane %v2222_v24, 1  ;;  %v2343_v11 = vrot.slane %v2223_v4, 1  ;;  %v2466_v14 = vmul.f32 %v7369_v53, %v7385_v10 }
 0x323   : > { %v2100_v33 = vsel %vm1793_vm1, %v2098_v13, %v2099_v58  ;;  %v2102_v63 = vsel %vm1793_vm1, %v2099_v58, %v2101_v52  ;;  %v2467_v3 = vmul.f32 %v7369_v53, %v7386_v50  ;;  %v2468_v47 = vmul.f32 %v7369_v53, %v7387_v44 }
 0x324   : > { %v2174_v60 = vadd.f32 %v2100_v33, %v1930_v6  ;;  %v2175_v54 = vadd.f32 %v2102_v63, %v1931_v49  ;;  %v2344_v62 = vsel %vm1793_vm1, %v2342_v20, %v2343_v11  ;;  %v2345_v8 = vrot.slane %v2224_v25, 1 }
 0x325   : > { %v2587_v7 = vrot.slane %v2466_v14, 2  ;;  %v2588_v2 = vrot.slane %v2467_v3, 2  ;;  %v2711_v45 = vmul.f32 %v5374_v27, %v7388_v51  ;;  %v2712_v10 = vmul.f32 %v5374_v27, %v7389_v57 }
 0x326   : > { %v2346_v21 = vsel %vm1793_vm1, %v2343_v11, %v2345_v8  ;;  %v2418_v35 = vadd.f32 %v2344_v62, %v2174_v60  ;;  %v2713_v50 = vmul.f32 %v5374_v27, %v7390_v0  ;;  %v2590_v23 = vrot.slane %v2468_v47, 2  ;;  %v6917_v8 = vld [vmem:[%s7200_s6] ss:$0 sm:$0xff] }
 0x327   : > { %v2419_v1 = vadd.f32 %v2346_v21, %v2175_v54  ;;  %v2589_v46 = vsel %vm2526_vm2, %v2587_v7, %v2588_v2  ;;  %v2831_v28 = vrot.slane %v2711_v45, 2  ;;  %v2832_v5 = vrot.slane %v2712_v10, 2  ;;  %v7394_v45 = vld [vmem:[#allocation44_spill] sm:$0xff] }
 0x328   : > { %v4675_v44 = vpop.eup %4674  ;;  %v2663_v36 = vadd.f32 %v2589_v46, %v2418_v35  ;;  %v2834_v43 = vrot.slane %v2713_v50, 2  ;;  %v2955_v48 = vmul.f32 %v6754_v55, %v7391_v15  ;;  %v2591_v22 = vsel %vm2526_vm2, %v2588_v2, %v2590_v23  ;;  %v7395_v35 = vld [vmem:[#allocation45_spill] sm:$0xff] }
 0x329   : > { %v4677_v12 = vpop.eup %4676  ;;  %v3277_v18 = vadd.f32 1.0, %v4675_v44  ;;  %v2956_v34 = vmul.f32 %v6754_v55, %v7392_v56  ;;  %v2957_v13 = vmul.f32 %v6754_v55, %v7393_v16  ;;  %v2664_v4 = vadd.f32 %v2591_v22, %v2419_v1 }
 0x32a   : > { %v3278_v24 = vadd.f32 1.0, %v4677_v12  ;;  %v2833_v59 = vsel %vm2526_vm2, %v2831_v28, %v2832_v5  ;;  %v2835_v6 = vsel %vm2526_vm2, %v2832_v5, %v2834_v43  ;;  %v3075_v49 = vrot.slane %v2955_v48, 2 }
 0x32b   : > { %v3309_v58 = vmul.f32 %v3277_v18, %v6848_v38  ;;  %v2907_v52 = vadd.f32 %v2833_v59, %v2663_v36  ;;  %v3076_v25 = vrot.slane %v2956_v34, 2  ;;  %v2908_v11 = vadd.f32 %v2835_v6, %v2664_v4 }
 0x32c   : > { %v3310_v20 = vmul.f32 %v3278_v24, %v6850_v61  ;;  %v3078_v33 = vrot.slane %v2957_v13, 2  ;;  %v1519_v63 = vmul.f32 %v5365_v19, %v7388_v51  ;;  %v1520_v3 = vmul.f32 %v5365_v19, %v7389_v57 }
 0x32d   : > { %v3077_v14 = vsel %vm2526_vm2, %v3075_v49, %v3076_v25  ;;  %v1587_v60 = vmul.f32 %v5378_v32, %v7391_v15  ;;  %v1588_v38 = vmul.f32 %v5378_v32, %v7392_v56  ;;  %v1655_v21 = vmul.f32 %v5380_v39, %v7394_v45  ;;  %v7396_v49 = vld [vmem:[#allocation49_spill] sm:$0xff] }
 0x32e   : > { %v3330_v54 = vpack.c.bf16 %v3310_v20, %v3309_v58  ;;  %v3079_v62 = vsel %vm2526_vm2, %v3076_v25, %v3078_v33  ;;  %v3151_v61 = vadd.f32 %v3077_v14, %v2907_v52  ;;  %v1551_v47 = vadd.f32 %v6917_v8, %v1519_v63 }
 0x32f   : > { %v3152_v7 = vadd.f32 %v3079_v62, %v2908_v11  ;;  %v1552_v2 = vadd.f32 %v6917_v8, %v1520_v3  ;;  %v1656_v10 = vmul.f32 %v5380_v39, %v7395_v35  ;;  %v1736_v23 = vmul.f32 %v7330_v37, %v7388_v51 }
 0x330   : > { %4336 = vmatmul.mubr.bf16.gmra.mrb[56].mxu1 %v3330_v54  ;;  %v3183_v50 = vmul.f32 0.5, %v3151_v61  ;;  %v3215_v1 = vmul.f32 0.70710677, %v3151_v61  ;;  %v1619_v46 = vadd.f32 %v1587_v60, %v1551_v47  ;;  %v1737_v5 = vmul.f32 %v7330_v37, %v7389_v57 }
 0x331   : > { %v6927_v28 = vmul.f32 0.5, %v3152_v7  ;;  %v3216_v44 = vmul.f32 0.70710677, %v3152_v7  ;;  %v1620_v36 = vadd.f32 %v1588_v38, %v1552_v2  ;;  %v1738_v48 = vmul.f32 %v7330_v37, %v7390_v0 }
 0x332   : > { %4678 = verf.f32 %v3215_v1  ;;  %v1687_v43 = vadd.f32 %v1655_v21, %v1619_v46  ;;  %v1859_v12 = vrot.slane %v1736_v23, 1  ;;  %v1860_v22 = vrot.slane %v1737_v5, 1 }
 0x333   : > { %4680 = verf.f32 %v3216_v44  ;;  %v1688_v18 = vadd.f32 %v1656_v10, %v1620_v36  ;;  %v1981_v34 = vmul.f32 %v5372_v26, %v7391_v15  ;;  %v1862_v13 = vrot.slane %v1738_v48, 1 }
 0x334   : > { %v1982_v24 = vmul.f32 %v5372_v26, %v7392_v56  ;;  %v1983_v4 = vmul.f32 %v5372_v26, %v7393_v16  ;;  %v2225_v59 = vmul.f32 %v5376_v30, %v7394_v45  ;;  %v1861_v6 = vsel %vm1793_vm1, %v1859_v12, %v1860_v22 }
 0x335   : > { %v2103_v58 = vrot.slane %v1981_v34, 1  ;;  %v2226_v52 = vmul.f32 %v5376_v30, %v7395_v35  ;;  %v2227_v25 = vmul.f32 %v5376_v30, %v7396_v49  ;;  %v1863_v20 = vsel %vm1793_vm1, %v1860_v22, %v1862_v13 }
 0x336   : > { %v1932_v11 = vadd.f32 %v1861_v6, %v1687_v43  ;;  %v2104_v33 = vrot.slane %v1982_v24, 1  ;;  %v2106_v63 = vrot.slane %v1983_v4, 1  ;;  %v1933_v14 = vadd.f32 %v1863_v20, %v1688_v18 }
 0x337   : > { %v2347_v3 = vrot.slane %v2225_v59, 1  ;;  %v2348_v60 = vrot.slane %v2226_v52, 1  ;;  %v2350_v38 = vrot.slane %v2227_v25, 1  ;;  %v2469_v61 = vmul.f32 %v7369_v53, %v7388_v51 }
 0x338   : > { %v2105_v54 = vsel %vm1793_vm1, %v2103_v58, %v2104_v33  ;;  %v2107_v62 = vsel %vm1793_vm1, %v2104_v33, %v2106_v63  ;;  %v2470_v47 = vmul.f32 %v7369_v53, %v7389_v57  ;;  %v2471_v1 = vmul.f32 %v7369_v53, %v7390_v0 }
 0x339   : > { %v2176_v7 = vadd.f32 %v2105_v54, %v1932_v11  ;;  %v2177_v2 = vadd.f32 %v2107_v62, %v1933_v14  ;;  %v2349_v21 = vsel %vm1793_vm1, %v2347_v3, %v2348_v60  ;;  %v2351_v10 = vsel %vm1793_vm1, %v2348_v60, %v2350_v38 }
 0x33a   : > { %v2592_v46 = vrot.slane %v2469_v61, 2  ;;  %v2593_v23 = vrot.slane %v2470_v47, 2  ;;  %v2714_v44 = vmul.f32 %v5374_v27, %v7391_v15  ;;  %v2715_v51 = vmul.f32 %v5374_v27, %v7392_v56 }
 0x33b   : > { %v2420_v36 = vadd.f32 %v2349_v21, %v2176_v7  ;;  %v2421_v5 = vadd.f32 %v2351_v10, %v2177_v2  ;;  %v2716_v57 = vmul.f32 %v5374_v27, %v7393_v16  ;;  %v2595_v12 = vrot.slane %v2471_v1, 2 }
 0x33c   : > { %v4679_v43 = vpop.eup %4678  ;;  %v2594_v48 = vsel %vm2526_vm2, %v2592_v46, %v2593_v23  ;;  %v2836_v18 = vrot.slane %v2714_v44, 2  ;;  %v2958_v0 = vmul.f32 %v6754_v55, %v7394_v45  ;;  %v2837_v24 = vrot.slane %v2715_v51, 2  ;;  %v7398_v44 = vld [vmem:[#allocation21_spill] sm:$0xff] }
 0x33d   : > { %v4681_v22 = vpop.eup %4680  ;;  %v3279_v34 = vadd.f32 1.0, %v4679_v43  ;;  %v2665_v13 = vadd.f32 %v2594_v48, %v2420_v36  ;;  %v2839_v4 = vrot.slane %v2716_v57, 2  ;;  %v2596_v6 = vsel %vm2526_vm2, %v2593_v23, %v2595_v12  ;;  %v7397_v23 = vld [vmem:[#allocation51_spill] sm:$0xff] }
 0x33e   : > { %v3280_v59 = vadd.f32 1.0, %v4681_v22  ;;  %v2959_v58 = vmul.f32 %v6754_v55, %v7395_v35  ;;  %v2960_v52 = vmul.f32 %v6754_v55, %v7396_v49  ;;  %v2666_v20 = vadd.f32 %v2596_v6, %v2421_v5 }
 0x33f   : > { %v3311_v25 = vmul.f32 %v3279_v34, %v3183_v50  ;;  %v2838_v11 = vsel %vm2526_vm2, %v2836_v18, %v2837_v24  ;;  %v2840_v33 = vsel %vm2526_vm2, %v2837_v24, %v2839_v4  ;;  %v3080_v3 = vrot.slane %v2958_v0, 2 }
 0x340   : > { %v3312_v63 = vmul.f32 %v3280_v59, %v6927_v28  ;;  %v2909_v14 = vadd.f32 %v2838_v11, %v2665_v13  ;;  %v3081_v60 = vrot.slane %v2959_v58, 2  ;;  %v2910_v38 = vadd.f32 %v2840_v33, %v2666_v20 }
 0x341   : > { %v3083_v54 = vrot.slane %v2960_v52, 2  ;;  %v1521_v62 = vmul.f32 %v5365_v19, %v7391_v15  ;;  %v1522_v61 = vmul.f32 %v5365_v19, %v7392_v56  ;;  %v1589_v7 = vmul.f32 %v5378_v32, %v7394_v45 }
 0x342   : > { %v3331_v47 = vpack.c.bf16 %v3312_v63, %v3311_v25  ;;  %v3082_v50 = vsel %vm2526_vm2, %v3080_v3, %v3081_v60  ;;  %v1590_v28 = vmul.f32 %v5378_v32, %v7395_v35  ;;  %v1657_v19 = vmul.f32 %v5380_v39, %v7397_v23 }
 0x343   : > { %v3084_v2 = vsel %vm2526_vm2, %v3081_v60, %v3083_v54  ;;  %v3153_v21 = vadd.f32 %v3082_v50, %v2909_v14  ;;  %v1553_v10 = vadd.f32 %v6917_v8, %v1521_v62  ;;  %v1554_v1 = vadd.f32 %v6917_v8, %v1522_v61 }
 0x344   : > { %4339 = vmatprep.mubr.bf16.mxu1 %v3331_v47  ;;  %v3154_v46 = vadd.f32 %v3084_v2, %v2910_v38  ;;  %v1658_v36 = vmul.f32 %v5380_v39, %v7398_v44  ;;  %v1739_v5 = vmul.f32 %v7330_v37, %v7391_v15  ;;  %v1740_v8 = vmul.f32 %v7330_v37, %v7392_v56 }
 0x345   : > { %v3185_v51 = vmul.f32 0.5, %v3153_v21  ;;  %v3217_v32 = vmul.f32 0.70710677, %v3153_v21  ;;  %v1621_v57 = vadd.f32 %v1589_v7, %v1553_v10  ;;  %v1622_v43 = vadd.f32 %v1590_v28, %v1554_v1  ;;  %v7399_v28 = vld [vmem:[#allocation24_spill] sm:$0xff] }
 0x346   : > { %v3186_v48 = vmul.f32 0.5, %v3154_v46  ;;  %v3218_v12 = vmul.f32 0.70710677, %v3154_v46  ;;  %v1741_v18 = vmul.f32 %v7330_v37, %v7393_v16  ;;  %v1864_v34 = vrot.slane %v1739_v5, 1 }
 0x347   : > { %4682 = verf.f32 %v3217_v32  ;;  %v1689_v0 = vadd.f32 %v1657_v19, %v1621_v57  ;;  %v1690_v22 = vadd.f32 %v1658_v36, %v1622_v43  ;;  %v1865_v39 = vrot.slane %v1740_v8, 1 }
 0x348   : > { %4684 = verf.f32 %v3218_v12  ;;  %v1867_v13 = vrot.slane %v1741_v18, 1  ;;  %v1984_v24 = vmul.f32 %v5372_v26, %v7394_v45  ;;  %v1985_v4 = vmul.f32 %v5372_v26, %v7395_v35 }
 0x349   : > { %v1986_v59 = vmul.f32 %v5372_v26, %v7396_v49  ;;  %v2228_v6 = vmul.f32 %v5376_v30, %v7397_v23  ;;  %v2229_v37 = vmul.f32 %v5376_v30, %v7398_v44  ;;  %v1866_v58 = vsel %vm1793_vm1, %v1864_v34, %v1865_v39 }
 0x34a   : > { %v1868_v52 = vsel %vm1793_vm1, %v1865_v39, %v1867_v13  ;;  %v2108_v25 = vrot.slane %v1984_v24, 1  ;;  %v2472_v20 = vmul.f32 %v7369_v53, %v7391_v15  ;;  %v1934_v11 = vadd.f32 %v1866_v58, %v1689_v0 }
 0x34b   : > { %v1935_v33 = vadd.f32 %v1868_v52, %v1690_v22  ;;  %v2109_v63 = vrot.slane %v1985_v4, 1  ;;  %v2111_v14 = vrot.slane %v1986_v59, 1  ;;  %v2352_v3 = vrot.slane %v2228_v6, 1  ;;  %v7401_v59 = vld [vmem:[#allocation30_spill] sm:$0xff] }
 0x34c   : > { %v2353_v60 = vrot.slane %v2229_v37, 1  ;;  %v2473_v38 = vmul.f32 %v7369_v53, %v7392_v56  ;;  %v2474_v30 = vmul.f32 %v7369_v53, %v7393_v16  ;;  %v2597_v61 = vrot.slane %v2472_v20, 2 }
 0x34d   : > { %v2110_v54 = vsel %vm1793_vm1, %v2108_v25, %v2109_v63  ;;  %v2112_v62 = vsel %vm1793_vm1, %v2109_v63, %v2111_v14  ;;  %v2717_v15 = vmul.f32 %v5374_v27, %v7394_v45  ;;  %v7400_v2 = vrot.slane %v7399_v28, 1 }
 0x34e   : > { %v2178_v47 = vadd.f32 %v2110_v54, %v1934_v11  ;;  %v2179_v50 = vadd.f32 %v2112_v62, %v1935_v33  ;;  %v2354_v7 = vsel %vm1793_vm1, %v2352_v3, %v2353_v60  ;;  %v2598_v56 = vrot.slane %v2473_v38, 2 }
 0x34f   : > { %v2356_v21 = vsel %vm1793_vm1, %v2353_v60, %v7400_v2  ;;  %v2600_v10 = vrot.slane %v2474_v30, 2  ;;  %v2718_v16 = vmul.f32 %v5374_v27, %v7395_v35  ;;  %v2719_v1 = vmul.f32 %v5374_v27, %v7396_v49  ;;  %v7403_v60 = vld [vmem:[#allocation34_spill] sm:$0xff] }
 0x350   : > { %v2422_v46 = vadd.f32 %v2354_v7, %v2178_v47  ;;  %v2423_v19 = vadd.f32 %v2356_v21, %v2179_v50  ;;  %v2841_v36 = vrot.slane %v2717_v15, 2  ;;  %v2961_v5 = vmul.f32 %v6754_v55, %v7397_v23 }
 0x351   : > { %v4683_v32 = vpop.eup %4682  ;;  %v2599_v57 = vsel %vm2526_vm2, %v2597_v61, %v2598_v56  ;;  %v2601_v43 = vsel %vm2526_vm2, %v2598_v56, %v2600_v10  ;;  %v2842_v12 = vrot.slane %v2718_v16, 2  ;;  %v2844_v8 = vrot.slane %v2719_v1, 2  ;;  %v7405_v10 = vld [vmem:[#allocation25_spill] sm:$0xff] }
 0x352   : > { %v4685_v18 = vpop.eup %4684  ;;  %v3281_v0 = vadd.f32 1.0, %v4683_v32  ;;  %v2667_v22 = vadd.f32 %v2599_v57, %v2422_v46  ;;  %v2668_v34 = vadd.f32 %v2601_v43, %v2423_v19  ;;  %v2962_v39 = vmul.f32 %v6754_v55, %v7398_v44  ;;  %v7410_v57 = vld [vmem:[#allocation59_spill] sm:$0xff] }
 0x353   : > { %v3282_v13 = vadd.f32 1.0, %v4685_v18  ;;  %v2843_v24 = vsel %vm2526_vm2, %v2841_v36, %v2842_v12  ;;  %v2845_v4 = vsel %vm2526_vm2, %v2842_v12, %v2844_v8  ;;  %v2963_v6 = vmul.f32 %v6754_v55, %v7401_v59 }
 0x354   : > { %v3313_v37 = vmul.f32 %v3281_v0, %v3185_v51  ;;  %v2911_v58 = vadd.f32 %v2843_v24, %v2667_v22  ;;  %v2912_v52 = vadd.f32 %v2845_v4, %v2668_v34  ;;  %v3085_v25 = vrot.slane %v2961_v5, 2  ;;  %v7411_v0 = vld [vmem:[#allocation56_spill] sm:$0xff]  ;;  %v7413_v34 = vld [vmem:[#allocation29_spill] sm:$0xff] }
 0x355   : > { %v3314_v20 = vmul.f32 %v3282_v13, %v3186_v48  ;;  %v3086_v11 = vrot.slane %v2962_v39, 2  ;;  %v3088_v33 = vrot.slane %v2963_v6, 2  ;;  %v1987_v63 = vmul.f32 %v5372_v26, %v7397_v23 }
 0x356   : > { %v1988_v14 = vmul.f32 %v5372_v26, %v7398_v44  ;;  %v7402_v3 = vrot.slane %v6003_v31, 1  ;;  %v7404_v38 = vrot.slane %v7403_v60, 1  ;;  %v2475_v55 = vmul.f32 %v7369_v53, %v7394_v45  ;;  %v4321_v48 = vpop.f32.mrb[40].mxu1 }
 0x357   : > { %v2476_v51 = vmul.f32 %v7369_v53, %v7395_v35  ;;  %v3332_v54 = vpack.c.bf16 %v3314_v20, %v3313_v37  ;;  %v3087_v62 = vsel %vm2526_vm2, %v3085_v25, %v3086_v11  ;;  %v3089_v61 = vsel %vm2526_vm2, %v3086_v11, %v3088_v33  ;;  %v3456_v26 = vpop.f32.mrb[41].mxu1 }
 0x358   : > { %v2359_v30 = vsel %vm1793_vm1, %v7404_v38, %v7402_v3  ;;  %v2113_v15 = vrot.slane %v1987_v63, 1  ;;  %v3155_v47 = vadd.f32 %v3087_v62, %v2911_v58  ;;  %v3156_v31 = vadd.f32 %v3089_v61, %v2912_v52  ;;  %v4322_v28 = vpop.f32.mrb[42].mxu1 }
 0x359   : > { %v2114_v50 = vrot.slane %v1988_v14, 1  ;;  %v2477_v7 = vmul.f32 %v7369_v53, %v7396_v49  ;;  %4340 = vmatmul.mubr.bf16.gmra.mrb[60].mxu1 %v3332_v54  ;;  %v2602_v45 = vrot.slane %v2475_v55, 2  ;;  %v2603_v2 = vrot.slane %v2476_v51, 2  ;;  %v3459_v56 = vpop.f32.mrb[43].mxu1  ;;  %v7406_v49 = vld [vmem:[#allocation28_spill] sm:$0xff] }
 0x35a   : > { %v2720_v35 = vmul.f32 %v5374_v27, %v7397_v23  ;;  %v2721_v21 = vmul.f32 %v5374_v27, %v7398_v44  ;;  %v2849_v16 = vrot.slane %v7405_v10, 2  ;;  %v3093_v1 = vrot.slane %v6123_v40, 2  ;;  %v7067_v27 = vld [vmem:[%s7408_s8] ss:$0 sm:$0xff] }
 0x35b   : > { %v3219_v46 = vmul.f32 0.70710677, %v3155_v47  ;;  %v3220_v19 = vmul.f32 0.70710677, %v3156_v31  ;;  %v2115_v53 = vsel %vm1793_vm1, %v2113_v15, %v2114_v50  ;;  %v7407_v36 = vrot.slane %v7406_v49, 1  ;;  %v7409_v44 = vld [vmem:[#allocation55_spill] sm:$0xff] }
 0x35c   : > { %v2604_v32 = vsel %vm2526_vm2, %v2602_v45, %v2603_v2  ;;  %v2605_v23 = vrot.slane %v2477_v7, 2  ;;  %v2180_v40 = vadd.f32 %v2115_v53, %v7409_v44  ;;  %v2846_v12 = vrot.slane %v2720_v35, 2 }
 0x35d   : > { %v2117_v5 = vsel %vm1793_vm1, %v2114_v50, %v7407_v36  ;;  %4686 = verf.f32 %v3219_v46  ;;  %v2847_v18 = vrot.slane %v2721_v21, 2  ;;  %v7412_v22 = vrot.slane %v7411_v0, 2 }
 0x35e   : > { %v2181_v43 = vadd.f32 %v2117_v5, %v7410_v57  ;;  %4688 = verf.f32 %v3220_v19  ;;  %v2606_v8 = vsel %vm2526_vm2, %v2603_v2, %v2605_v23  ;;  %v7414_v39 = vrot.slane %v7413_v34, 2 }
 0x35f   : > { %v2424_v24 = vadd.f32 %v2359_v30, %v2180_v40  ;;  %v7415_v59 = vmov %v7412_v22  ;;  %v3449_v37 = vadd.f32 %v6854_v42, %v7067_v27  ;;  %v2848_v58 = vsel %vm2526_vm2, %v2846_v12, %v2847_v18 }
 0x360   : > { %v3092_v13 = vsel %vm2526_vm2, %v7414_v39, %v7412_v22  ;;  %v2425_v4 = vadd.f32 %v6143_v41, %v2181_v43  ;;  %v3094_v6 = vsel %vm2526_vm2, %v7415_v59, %v3093_v1  ;;  %v2850_v52 = vsel %vm2526_vm2, %v2847_v18, %v2849_v16 }
 0x361   : > { %v3441_v25 = vadd.f32 %v7067_v27, %v6858_v29  ;;  %v3452_v20 = vadd.f32 %v6864_v9, %v7067_v27  ;;  %v2669_v11 = vadd.f32 %v2604_v32, %v2424_v24  ;;  %v3444_v41 = vadd.f32 %v7067_v27, %v6871_v17 }
 0x362   : > { %v2670_v33 = vadd.f32 %v2606_v8, %v2425_v4  ;;  %v3465_v63 = vadd.f32 %v4321_v48, %v7067_v27  ;;  %v3457_v42 = vadd.f32 %v7067_v27, %v3456_v26  ;;  %v3468_v3 = vadd.f32 %v4322_v28, %v7067_v27 }
 0x363   : > { %v4029_v14 = vpack.c.bf16 %v3452_v20, %v3449_v37  ;;  %v3460_v60 = vadd.f32 %v7067_v27, %v3459_v56  ;;  %v2913_v38 = vadd.f32 %v2848_v58, %v2669_v11  ;;  %v4024_v29 = vpack.c.bf16 %v3444_v41, %v3441_v25 }
 0x364   : > { %v2914_v30 = vadd.f32 %v2850_v52, %v2670_v33  ;;  %v4039_v9 = vpack.c.bf16 %v3468_v3, %v3465_v63  ;;  %v3187_v48 = vmul.f32 0.5, %v3155_v47  ;;  %v3188_v62 = vmul.f32 0.5, %v3156_v31 }
 0x365   : > { %4101 = vst [vmem:[%s7096_s20 + $0x8] sm:$0xff] %v4029_v14   ;;  %v4034_v17 = vpack.c.bf16 %v3460_v60, %v3457_v42  ;;  %v3157_v55 = vadd.f32 %v3092_v13, %v2913_v38  ;;  %4025 = vst [vmem:[%s7096_s20] sm:$0xff] %v4024_v29  }
 0x366   : > { %v3158_v51 = vadd.f32 %v3094_v6, %v2914_v30  ;;  %4103 = vst [vmem:[%s7096_s20 + $0x18] sm:$0xff] %v4039_v9  }
 0x367   : > { %4102 = vst [vmem:[%s7096_s20 + $0x10] sm:$0xff] %v4034_v17   ;;  %v4687_v54 = vpop.eup %4686  ;;  %v3221_v61 = vmul.f32 0.70710677, %v3157_v55  ;;  %v3189_v35 = vmul.f32 0.5, %v3157_v55 }
 0x368   : > { %v3222_v15 = vmul.f32 0.70710677, %v3158_v51  ;;  %v4689_v26 = vpop.eup %4688  ;;  %v3283_v50 = vadd.f32 1.0, %v4687_v54  ;;  %v3190_v56 = vmul.f32 0.5, %v3158_v51 }
 0x369   : > { %v3284_v7 = vadd.f32 1.0, %v4689_v26  ;;  %4690 = verf.f32 %v3221_v61 }
 0x36a   : > { %v3315_v28 = vmul.f32 %v3283_v50, %v3187_v48  ;;  %4692 = verf.f32 %v3222_v15 }
 0x36b   : > { %v3316_v45 = vmul.f32 %v3284_v7, %v3188_v62 }
 0x36d   : > { %v3333_v2 = vpack.c.bf16 %v3316_v45, %v3315_v28 }
 0x36f   : > { %4343 = vmatprep.mubr.bf16.mxu1 %v3333_v2 }
 0x373   : > { %v4691_v21 = vpop.eup %4690 }
 0x374   : > { %v4693_v10 = vpop.eup %4692  ;;  %v3285_v47 = vadd.f32 1.0, %v4691_v21 }
 0x375   : > { %v3286_v16 = vadd.f32 1.0, %v4693_v10 }
 0x376   : > { %v3317_v31 = vmul.f32 %v3285_v47, %v3189_v35 }
 0x377   : > { %v3318_v1 = vmul.f32 %v3286_v16, %v3190_v56 }
 0x379   : > { %v3334_v46 = vpack.c.bf16 %v3318_v1, %v3317_v31 }
 0x37b   : > { %4344 = vmatmul.mubr.bf16.gmra.mrb[64].mxu1 %v3334_v46 }
 0x388   : > { %v4325_v19 = vpop.f32.mrb[44].mxu1 }
 0x389   : > { %v3472_v53 = vpop.f32.mrb[45].mxu1  ;;  %v3481_v36 = vadd.f32 %v4325_v19, %v7067_v27 }
 0x38a   : > { %v4326_v49 = vpop.f32.mrb[46].mxu1  ;;  %v3473_v23 = vadd.f32 %v7067_v27, %v3472_v53 }
 0x38b   : > { %v3484_v5 = vadd.f32 %v4326_v49, %v7067_v27  ;;  %v3475_v32 = vpop.f32.mrb[47].mxu1 }
 0x38c   : > { %v3476_v44 = vadd.f32 %v7067_v27, %v3475_v32 }
 0x38d   : > { %v4049_v40 = vpack.c.bf16 %v3484_v5, %v3481_v36 }
 0x38e   : > { %v4044_v57 = vpack.c.bf16 %v3476_v44, %v3473_v23 }
 0x38f   : > { %4105 = vst [vmem:[%s7096_s20 + $0x28] sm:$0xff] %v4049_v40  }
 0x390   : > { %4104 = vst [vmem:[%s7096_s20 + $0x20] sm:$0xff] %v4044_v57  }
 0x3b0   : > { %v4329_v43 = vpop.f32.mrb[48].mxu1 }
 0x3b1   : > { %v3488_v12 = vpop.f32.mrb[49].mxu1  ;;  %v3497_v18 = vadd.f32 %v4329_v43, %v7067_v27 }
 0x3b2   : > { %v4330_v8 = vpop.f32.mrb[50].mxu1  ;;  %v3489_v34 = vadd.f32 %v7067_v27, %v3488_v12 }
 0x3b3   : > { %v3500_v0 = vadd.f32 %v4330_v8, %v7067_v27  ;;  %v3491_v22 = vpop.f32.mrb[51].mxu1 }
 0x3b4   : > { %v3492_v39 = vadd.f32 %v7067_v27, %v3491_v22 }
 0x3b5   : > { %v4059_v13 = vpack.c.bf16 %v3500_v0, %v3497_v18 }
 0x3b6   : > { %v4054_v24 = vpack.c.bf16 %v3492_v39, %v3489_v34 }
 0x3b7   : > { %4107 = vst [vmem:[%s7096_s20 + $0x38] sm:$0xff] %v4059_v13  }
 0x3b8   : > { %4106 = vst [vmem:[%s7096_s20 + $0x30] sm:$0xff] %v4054_v24  }
 0x3d9   : > { %v4333_v4 = vpop.f32.mrb[52].mxu1 }
 0x3da   : > { %v3504_v59 = vpop.f32.mrb[53].mxu1  ;;  %v3513_v37 = vadd.f32 %v4333_v4, %v7067_v27 }
 0x3db   : > { %v4334_v6 = vpop.f32.mrb[54].mxu1  ;;  %v3505_v25 = vadd.f32 %v7067_v27, %v3504_v59 }
 0x3dc   : > { %v3516_v58 = vadd.f32 %v4334_v6, %v7067_v27  ;;  %v3507_v52 = vpop.f32.mrb[55].mxu1 }
 0x3dd   : > { %v3508_v20 = vadd.f32 %v7067_v27, %v3507_v52 }
 0x3de   : > { %v4069_v11 = vpack.c.bf16 %v3516_v58, %v3513_v37 }
 0x3df   : > { %v4064_v33 = vpack.c.bf16 %v3508_v20, %v3505_v25 }
 0x3e0   : > { %4109 = vst [vmem:[%s7096_s20 + $0x48] sm:$0xff] %v4069_v11  }
 0x3e1   : > { %4108 = vst [vmem:[%s7096_s20 + $0x40] sm:$0xff] %v4064_v33  }
 0x403   : > { %v4337_v41 = vpop.f32.mrb[56].mxu1 }
 0x404   : > { %v3520_v63 = vpop.f32.mrb[57].mxu1  ;;  %v3529_v42 = vadd.f32 %v4337_v41, %v7067_v27 }
 0x405   : > { %v4338_v14 = vpop.f32.mrb[58].mxu1  ;;  %v3521_v38 = vadd.f32 %v7067_v27, %v3520_v63 }
 0x406   : > { %v3532_v3 = vadd.f32 %v4338_v14, %v7067_v27  ;;  %v3523_v60 = vpop.f32.mrb[59].mxu1 }
 0x407   : > { %v3524_v30 = vadd.f32 %v7067_v27, %v3523_v60 }
 0x408   : > { %v4079_v29 = vpack.c.bf16 %v3532_v3, %v3529_v42 }
 0x409   : > { %v4074_v9 = vpack.c.bf16 %v3524_v30, %v3521_v38 }
 0x40a   : > { %4111 = vst [vmem:[%s7096_s20 + $0x58] sm:$0xff] %v4079_v29  }
 0x40b   : > { %4110 = vst [vmem:[%s7096_s20 + $0x50] sm:$0xff] %v4074_v9  }
 0x42c   : > { %v4341_v17 = vpop.f32.mrb[60].mxu1 }
 0x42d   : > { %v3536_v55 = vpop.f32.mrb[61].mxu1  ;;  %v3545_v48 = vadd.f32 %v4341_v17, %v7067_v27 }
 0x42e   : > { %v4342_v51 = vpop.f32.mrb[62].mxu1  ;;  %v3537_v61 = vadd.f32 %v7067_v27, %v3536_v55 }
 0x42f   : > { %v3548_v54 = vadd.f32 %v4342_v51, %v7067_v27  ;;  %v3539_v62 = vpop.f32.mrb[63].mxu1 }
 0x430   : > { %v3540_v15 = vadd.f32 %v7067_v27, %v3539_v62 }
 0x431   : > { %v4089_v26 = vpack.c.bf16 %v3548_v54, %v3545_v48 }
 0x432   : > { %v4084_v50 = vpack.c.bf16 %v3540_v15, %v3537_v61 }
 0x433   : > { %4113 = vst [vmem:[%s7096_s20 + $0x68] sm:$0xff] %v4089_v26  }
 0x434   : > { %4112 = vst [vmem:[%s7096_s20 + $0x60] sm:$0xff] %v4084_v50  }
 0x44e   : > { %v4345_v7 = vpop.f32.mrb[64].mxu1 }
 0x44f   : > { %v3552_v28 = vpop.f32.mrb[65].mxu1  ;;  %v3561_v2 = vadd.f32 %v4345_v7, %v7067_v27 }
 0x450   : > { %v4346_v45 = vpop.f32.mrb[66].mxu1  ;;  %v3553_v56 = vadd.f32 %v7067_v27, %v3552_v28 }
 0x451   : > { %v3564_v35 = vadd.f32 %v4346_v45, %v7067_v27  ;;  %v3555_v21 = vpop.f32.mrb[67].mxu1 }
 0x452   : > { %v3556_v10 = vadd.f32 %v7067_v27, %v3555_v21 }
 0x453   : > { %v4099_v47 = vpack.c.bf16 %v3564_v35, %v3561_v2 }
 0x454   : > { %v4094_v16 = vpack.c.bf16 %v3556_v10, %v3553_v56 }
 0x455   : > { %4115 = vst [vmem:[%s7096_s20 + $0x78] sm:$0xff] %v4099_v47  }
 0x456   : > { %4114 = vst [vmem:[%s7096_s20 + $0x70] sm:$0xff] %v4094_v16  }
 0x457   : > { %4859 = shalt.err (!%p4856_p0)
}
 0x458   : > { %s4860_s9 = scalar_lea.hbm %s7141_s19, 2048  ;;  %s4864_s20 = scalar_lea.hbm %s7417_s17, 4096 }
 0x459   : > { %p4861_p4 = scmp.ne.s32.totalorder %s7141_s19, %s4860_s9  ;;  %p4865_p12 = scmp.lt.u32.totalorder %s7141_s19, %s7417_s17 }
 0x45a   : > { %p4866_p1 = scmp.lt.u32.totalorder %s4864_s20, %s4860_s9  ;;  %p4868_p8 = scmp.lt.u32.totalorder %s4860_s9, %s7141_s19 }
 0x45b   : > { %p4862_p13 = pnand %p4861_p4, %p5179_p5 }
 0x45c   : > { %p4867_p11 = por %p4866_p1, %p4865_p12 }
 0x45d   : > { %p4863_p2 = pneg %p4862_p13 }
 0x45e   : > { %p4869_p6 = por %p4868_p8, %p4867_p11 }
 0x460   : > { %p4870_p10 = pnand %p4869_p6, %p4863_p2 }
 0x462   : > { %4873 = shalt.err (!%p4870_p10)
}
 0x463   : > { %s4952_s23 = smov 64   ;;  %s4953_s18 = smov 4  }
 0x464   : > { %4384 = dma.vmem_to_hbm [thread:$0]  (%p5179_p5), %s7143_s27, 2048, %s7141_s19, %s3728_s21, %s4952_s23, %s4952_s23, %s4953_s18  }
 0x465 PF: > { %s7418_s30 = sld [smem:[#allocation16_spill]]  ;;  %s7419_s12 = sld [smem:[#allocation18_spill]] }
 0x466   : > { %p7421_p7 = scmp.ge.s32.totalorder %s4936_s14, 2 }
 0x46b   : > { %s3759_s16 = sand.u32 1, %s7418_s30   ;;  %p7420_p3 = scmp.ne.s32.totalorder %s7419_s12, 0 }
 0x46c   : > { %s3760_s26 = scalar_lea.sflag [#allocation4], %s3759_s16 }
 0x46d   : > { %p4404_p9 = pnand %p7421_p7, %p7420_p3 }
 0x46f   : > { %4911 = dma.done.wait (!%p4404_p9), %s3760_s26, 2048  }
 0x470   : > { %4913 = vsyncadd (!%p4404_p9), %s3760_s26, 4294965248  ;;  %s27_s14 = sadd.s32 1, %s4936_s14   ;;  %s7422_s30 = smov %s4920_s10 }
 0x471   : > { %p24_p0 = scmp.ge.s32.totalorder %s27_s14, 4   ;;  %s7423_s10 = smov %s4924_s11 }
 0x472   : > { %s7424_s11 = smov %s5191_s25  ;;  %s7425_s12 = smov %s4932_s13 }
 0x473   : > { %s7426_s13 = smov %s7428_s22  ;;  %26 = sbr.rel (!%p24_p0) target bundleno = 12 (0xc), region = 118 }
 0x47a   :  { %3765 = vsyncpa [#allocation3], 1 }
 0x47b   :  { %3767 = vsyncpa [#allocation3 + $0x1], 1 }
 0x47c   :  { %3768 = vsyncpa [#allocation6], 1 }
 0x47d   :  { %3769 = vsyncpa [#allocation9], 1 }
 0x47e   :  { %3770 = vsyncpa [#allocation4], 1 }
 0x47f   :  { %3772 = vsyncpa [#allocation4 + $0x1], 1 }

</bundles_post_ra>
